<compile_context>
chip_gen: v7x
topology: tpu7x:2x2x1
jax: 0.10.0
libtpu: 0.0.40
codegen_flags: <defaults>
</compile_context>

<pallas_src>
import functools
import math

import numpy as np
import jax
import jax.numpy as jnp
from jax.experimental import pallas as pl
from jax.experimental.pallas import tpu as pltpu

# ----------------------------- model configuration ---------------------------
B = 2                      # batch
T = 16                     # audio time frames
C_IN = 8                   # in_channels_encoder
OUT_CH = [16, 16, 16]      # out_channels_encoder (assumed uniform for packing)
K_ENC = 3                  # kernel_size_encoder
DIL_RATES = [2, 2, 2]      # dilation levels per wave block (assumed uniform)
N_FEAT = 32                # last_dim_encoder == n_features_decoder
N_HID = 64                 # n_hidden_decoder
NUM_HEADS = 4              # num_heads_decoder
NUM_LAYERS = 2             # num_layers_decoder
NB_CLASSES = 20            # vocabulary size
MAX_LEN = 8                # caption length of y (decoder sees MAX_LEN-1 tokens)
CLS_PAD = 128              # classifier output padded to 128 lanes (cropped later)

assert len(set(OUT_CH)) == 1, "packed encoder weights assume uniform out_channels"
assert len(set(DIL_RATES)) == 1, "packed encoder weights assume uniform #rates"


# ----------------------------- spec helpers -----------------------------------
def _full_specs(args):
    """Whole-array VMEM blocks for a grid=(1,) pallas_call."""
    specs = []
    for a in args:
        nd = a.ndim
        specs.append(pl.BlockSpec(a.shape, lambda i, _nd=nd: (0,) * _nd))
    return specs


# ----------------------------- fully fused kernel -----------------------------
def _fused_kernel(x_ref, w0_ref, b0_ref, wfg_ref, bfg_ref, ws_ref, bs_ref,
                  fcw_ref, fcb_ref,
                  y_ref, emb_ref, pos_ref, mself_ref, mcross_ref,
                  wqkv_s_ref, bqkv_s_ref, wq_c_ref, bq_c_ref,
                  wkv_c_ref, bkv_c_ref, wo_ref, bo_ref,
                  ln_g_ref, ln_b_ref, w1_ref, b1_ref, w2_ref, b2_ref,
                  clsw_ref, clsb_ref, o_ref,
                  *, n_blocks, n_rates, K, t_len, num_layers, num_heads):
    f32 = jnp.float32
    bf16 = jnp.bfloat16

    def mm(a, b):
        # bf16 MXU operands, f32 accumulation
        return jnp.dot(a.astype(bf16), b.astype(bf16), preferred_element_type=f32)

    def mm_t(a, b):  # a @ b.T
        return jax.lax.dot_general(a.astype(bf16), b.astype(bf16),
                                   (((1,), (1,)), ((), ())),
                                   preferred_element_type=f32)

    # ============== WaveNet encoder on batch-folded (B*T, C) rows ==============
    h = x_ref[...]                                       # (B*T, C)
    M_enc, C = h.shape
    t_row = jax.lax.broadcasted_iota(jnp.int32, (M_enc, 1), 0) % t_len

    for bi in range(n_blocks):
        h = mm(h, w0_ref[bi]) + b0_ref[bi]               # 1x1 conv
        res = h
        cur = h
        for r in range(n_rates):
            dil = 2 ** r
            pad = (K - 1) * dil // 2
            idx = bi * n_rates + r
            taps = []
            for k in range(K):                           # static unrolled taps
                s_off = k * dil - pad
                if s_off == 0:
                    taps.append(cur)
                else:
                    # xs[m] = cur[m + s_off] if within the same time window, else 0
                    rolled = pltpu.roll(cur, (-s_off) % M_enc, 0)
                    valid = (((t_row + s_off) >= 0) &
                             ((t_row + s_off) < t_len)).astype(f32)
                    taps.append(rolled * valid)          # VPU mask, XLU roll
            xs = jnp.concatenate(taps, axis=-1)          # (M, K*C)
            fg = mm(xs, wfg_ref[idx]) + bfg_ref[idx]     # fused filter|gate matmul
            gated = jnp.tanh(fg[:, :C]) * jax.nn.sigmoid(fg[:, C:])
            cur = mm(gated, ws_ref[idx]) + bs_ref[idx]   # 1x1 skip projection
            res = res + cur                              # residual sum
        h = res
    mem = jnp.maximum(mm(h, fcw_ref[...]) + fcb_ref[...], 0.0)   # (B*T, D)

    # ============== token embedding + positional encoding =====================
    pos = pos_ref[...]                                   # (B*S, D)
    Mq, D = pos.shape
    NB = emb_ref.shape[0]
    tok = y_ref[...]                                     # (B*S, 1) int32
    cls_iota = jax.lax.broadcasted_iota(jnp.int32, (Mq, NB), 1)
    onehot = (cls_iota == tok).astype(f32)               # (B*S, NB)
    x = jnp.dot(onehot, emb_ref[...], preferred_element_type=f32) + pos

    # ============== post-norm transformer decoder + classifier ================
    dh = D // num_heads
    scale = 1.0 / math.sqrt(dh)
    m_self = mself_ref[...]                              # (B*S, B*S) additive
    m_cross = mcross_ref[...]                            # (B*S, B*T) additive

    def layer_norm(v, idx):
        mu = jnp.mean(v, axis=-1, keepdims=True)
        ms = jnp.mean(v * v, axis=-1, keepdims=True)     # single-pass moments
        var = ms - mu * mu
        return (v - mu) * jax.lax.rsqrt(var + 1e-5) * ln_g_ref[idx] + ln_b_ref[idx]

    def attend(q, k, v, add_mask, attn_idx):
        heads = []
        for hh in range(num_heads):                      # static per-head loop
            lo = hh * dh
            qh = q[:, lo:lo + dh]
            kh = k[:, lo:lo + dh]
            vh = v[:, lo:lo + dh]
            s = mm_t(qh, kh) * scale + add_mask
            p = jnp.exp(s - jnp.max(s, axis=-1, keepdims=True))
            p = p * pl.reciprocal(jnp.sum(p, axis=-1, keepdims=True), approx=True)
            heads.append(mm(p, vh))
        ctx = jnp.concatenate(heads, axis=-1)            # (Mq, D)
        return mm(ctx, wo_ref[attn_idx]) + bo_ref[attn_idx]   # single full W_o

    for l in range(num_layers):
        # masked self-attention (packed Q/K/V projection)
        qkv = mm(x, wqkv_s_ref[l]) + bqkv_s_ref[l]       # (Mq, 3D)
        sa = attend(qkv[:, :D], qkv[:, D:2 * D], qkv[:, 2 * D:], m_self, 2 * l + 0)
        x = layer_norm(x + sa, 3 * l + 0)
        # cross-attention over encoder memory (packed K/V projection)
        qc = mm(x, wq_c_ref[l]) + bq_c_ref[l]
        kv = mm(mem, wkv_c_ref[l]) + bkv_c_ref[l]        # (B*T, 2D)
        ca = attend(qc, kv[:, :D], kv[:, D:], m_cross, 2 * l + 1)
        x = layer_norm(x + ca, 3 * l + 1)
        # feed-forward
        h1 = jnp.maximum(mm(x, w1_ref[l]) + b1_ref[l], 0.0)
        ff = mm(h1, w2_ref[l]) + b2_ref[l]
        x = layer_norm(x + ff, 3 * l + 2)

    # classifier — 128-lane padded output (lane-dense full stores)
    logits = mm(x, clsw_ref[...]) + clsb_ref[...]
    o_ref[...] = logits.astype(o_ref.dtype)


# ----------------------------- host-side constants ----------------------------
def _attn_masks(bsz, s_len, t_len):
    """Additive masks: 0 where attention is allowed, -1e9 elsewhere."""
    NEG = -1e9
    r = np.arange(bsz * s_len)
    c = np.arange(bsz * s_len)
    same_b = (r[:, None] // s_len) == (c[None, :] // s_len)
    causal = (r[:, None] % s_len) >= (c[None, :] % s_len)
    m_self = np.where(same_b & causal, 0.0, NEG).astype(np.float32)
    ck = np.arange(bsz * t_len)
    same_b2 = (r[:, None] // s_len) == (ck[None, :] // t_len)
    m_cross = np.where(same_b2, 0.0, NEG).astype(np.float32)
    return jnp.asarray(m_self), jnp.asarray(m_cross)


# ----------------------------- parameters ------------------------------------
def init_params(key):
    keys = iter(jax.random.split(key, 64))

    def nrm(shape, scale=0.05):
        return jax.random.normal(next(keys), shape, jnp.float32) * scale

    C = OUT_CH[0]
    n_blocks = len(OUT_CH)
    n_rates = DIL_RATES[0]

    # encoder (packed): block-0's 1x1 weight is zero-padded from C_IN->C rows
    # (the input is zero channel-padded to match -> numerically identical).
    w0_list = []
    for bi in range(n_blocks):
        cin = C_IN if bi == 0 else OUT_CH[bi - 1]
        w0 = nrm((cin, OUT_CH[bi]))
        if cin < C:
            w0 = jnp.pad(w0, ((0, C - cin), (0, 0)))
        w0_list.append(w0)

    encoder = {
        "w0": jnp.stack(w0_list),                              # (nb, C, C)
        "b0": nrm((n_blocks, 1, C)),
        # fused dilated-conv weights: per (block, rate) the K taps are stacked
        # along rows and the [filter | gate] weights packed along output lanes.
        "wfg": nrm((n_blocks * n_rates, K_ENC * C, 2 * C)),    # (nb*nr, K*C, 2C)
        "bfg": nrm((n_blocks * n_rates, 1, 2 * C)),
        "ws": nrm((n_blocks * n_rates, C, C)),
        "bs": nrm((n_blocks * n_rates, 1, C)),
        "fc_w": nrm((C, N_FEAT)),
        "fc_b": nrm((1, N_FEAT)),
    }

    D = N_FEAT
    decoder = {
        # self-attention: packed Q/K/V projection; cross: separate Q + packed K/V
        "wqkv_self": nrm((NUM_LAYERS, D, 3 * D)),
        "bqkv_self": nrm((NUM_LAYERS, 1, 3 * D)),
        "wq_cross": nrm((NUM_LAYERS, D, D)),
        "bq_cross": nrm((NUM_LAYERS, 1, D)),
        "wkv_cross": nrm((NUM_LAYERS, D, 2 * D)),
        "bkv_cross": nrm((NUM_LAYERS, 1, 2 * D)),
        # full output projections (per layer x {self, cross})
        "wo": nrm((NUM_LAYERS * 2, D, D)),
        "bo": nrm((NUM_LAYERS * 2, 1, D)),
        "ln_g": jnp.ones((NUM_LAYERS * 3, 1, D), jnp.float32),
        "ln_b": jnp.zeros((NUM_LAYERS * 3, 1, D), jnp.float32),
        "w1": nrm((NUM_LAYERS, D, N_HID)),
        "b1": nrm((NUM_LAYERS, 1, N_HID)),
        "w2": nrm((NUM_LAYERS, N_HID, D)),
        "b2": nrm((NUM_LAYERS, 1, D)),
        # classifier padded to 128 lanes (cropped to NB_CLASSES in wrapper)
        "cls_w": jnp.pad(nrm((N_FEAT, NB_CLASSES)),
                         ((0, 0), (0, CLS_PAD - NB_CLASSES))),
        "cls_b": jnp.pad(nrm((1, NB_CLASSES)),
                         ((0, 0), (0, CLS_PAD - NB_CLASSES))),
    }

    # sinusoidal positional encoding ([sin | cos] concatenated, self-consistent),
    # pre-tiled over the batch into batch-folded rows (row b*S + s -> pos s).
    S = MAX_LEN - 1
    pos = jnp.arange(S, dtype=jnp.float32)[:, None]
    i = jnp.arange(D // 2, dtype=jnp.float32)[None, :]
    angle = pos / jnp.power(10000.0, 2.0 * i / D)
    pos_enc = jnp.concatenate([jnp.sin(angle), jnp.cos(angle)], axis=-1)  # (S, D)
    pos_flat = jnp.tile(pos_enc, (B, 1))                                  # (B*S, D)

    return {"encoder": encoder, "decoder": decoder,
            "emb": nrm((NB_CLASSES, N_FEAT), scale=0.1),
            "pos_flat": pos_flat}


# ----------------------------- forward pass ----------------------------------
def wave_transformer3_forward(params, x, y):
    """Training-pass forward. x: (B, T, C_in), y: (B, MAX_LEN) int tokens.
    Returns logits of shape (MAX_LEN-1, B, NB_CLASSES) to match PyTorch."""
    B_, T_, Cin = x.shape
    C = OUT_CH[0]
    n_blocks = len(OUT_CH)
    n_rates = DIL_RATES[0]

    # tiny input-boundary glue only (one pad/reshape each); everything else is
    # fused into the single pallas_call below.
    x_flat = jnp.pad(x, ((0, 0), (0, 0), (0, C - Cin))).reshape(B_ * T_, C)
    y_in = y[:, :-1]                                     # (B, S), S = MAX_LEN-1
    S = y_in.shape[1]
    Mq = B_ * S
    y_flat = y_in.reshape(Mq, 1).astype(jnp.int32)
    mask_self, mask_cross = _attn_masks(B_, S, T_)       # trace-time constants

    enc = params["encoder"]
    dec = params["decoder"]
    args = [x_flat, enc["w0"], enc["b0"], enc["wfg"], enc["bfg"], enc["ws"],
            enc["bs"], enc["fc_w"], enc["fc_b"],
            y_flat, params["emb"], params["pos_flat"], mask_self, mask_cross,
            dec["wqkv_self"], dec["bqkv_self"], dec["wq_cross"], dec["bq_cross"],
            dec["wkv_cross"], dec["bkv_cross"], dec["wo"], dec["bo"],
            dec["ln_g"], dec["ln_b"], dec["w1"], dec["b1"], dec["w2"], dec["b2"],
            dec["cls_w"], dec["cls_b"]]

    kernel = functools.partial(
        _fused_kernel, n_blocks=n_blocks, n_rates=n_rates, K=K_ENC, t_len=T_,
        num_layers=NUM_LAYERS, num_heads=NUM_HEADS)

    logits_pad = pl.pallas_call(
        kernel,
        grid=(1,),
        in_specs=_full_specs(args),
        out_specs=pl.BlockSpec((Mq, CLS_PAD), lambda i: (0, 0)),
        out_shape=jax.ShapeDtypeStruct((Mq, CLS_PAD), jnp.float32),
        compiler_params=pltpu.CompilerParams(dimension_semantics=("arbitrary",)),
        cost_estimate=pl.CostEstimate(flops=2_000_000, transcendentals=16_000,
                                      bytes_accessed=250_000),
    )(*args)

    logits = logits_pad[:, :NB_CLASSES].reshape(B_, S, NB_CLASSES)
    return jnp.transpose(logits, (1, 0, 2))              # (MAX_LEN-1, B, NB_CLASSES)


# ----------------------------- driver -----------------------------------------
if __name__ == "__main__":
    key = jax.random.PRNGKey(0)
    kp, kx, ky = jax.random.split(key, 3)
    params = init_params(kp)
    x = jax.random.normal(kx, (B, T, C_IN), jnp.float32)
    y = jax.random.randint(ky, (B, MAX_LEN), 0, NB_CLASSES, dtype=jnp.int32)

    fwd = jax.jit(wave_transformer3_forward)
    out = jax.block_until_ready(fwd(params, x, y))
    assert out.shape == (MAX_LEN - 1, B, NB_CLASSES), out.shape
    assert bool(jnp.all(jnp.isfinite(out)))
    print("KERNEL_OK")
</pallas_src>

<mosaic_0001>
module attributes {stable_mosaic.version = 11 : i64} {
  func.func @_fused_kernel(%arg0: i32, %arg1: memref<32x16xf32, #tpu.memory_space<vmem>>, %arg2: memref<3x16x16xf32, #tpu.memory_space<vmem>>, %arg3: memref<3x1x16xf32, #tpu.memory_space<vmem>>, %arg4: memref<6x48x32xf32, #tpu.memory_space<vmem>>, %arg5: memref<6x1x32xf32, #tpu.memory_space<vmem>>, %arg6: memref<6x16x16xf32, #tpu.memory_space<vmem>>, %arg7: memref<6x1x16xf32, #tpu.memory_space<vmem>>, %arg8: memref<16x32xf32, #tpu.memory_space<vmem>>, %arg9: memref<1x32xf32, #tpu.memory_space<vmem>>, %arg10: memref<14x1xi32, #tpu.memory_space<vmem>>, %arg11: memref<20x32xf32, #tpu.memory_space<vmem>>, %arg12: memref<14x32xf32, #tpu.memory_space<vmem>>, %arg13: memref<14x14xf32, #tpu.memory_space<vmem>>, %arg14: memref<14x32xf32, #tpu.memory_space<vmem>>, %arg15: memref<2x32x96xf32, #tpu.memory_space<vmem>>, %arg16: memref<2x1x96xf32, #tpu.memory_space<vmem>>, %arg17: memref<2x32x32xf32, #tpu.memory_space<vmem>>, %arg18: memref<2x1x32xf32, #tpu.memory_space<vmem>>, %arg19: memref<2x32x64xf32, #tpu.memory_space<vmem>>, %arg20: memref<2x1x64xf32, #tpu.memory_space<vmem>>, %arg21: memref<4x32x32xf32, #tpu.memory_space<vmem>>, %arg22: memref<4x1x32xf32, #tpu.memory_space<vmem>>, %arg23: memref<6x1x32xf32, #tpu.memory_space<vmem>>, %arg24: memref<6x1x32xf32, #tpu.memory_space<vmem>>, %arg25: memref<2x32x64xf32, #tpu.memory_space<vmem>>, %arg26: memref<2x1x64xf32, #tpu.memory_space<vmem>>, %arg27: memref<2x64x32xf32, #tpu.memory_space<vmem>>, %arg28: memref<2x1x32xf32, #tpu.memory_space<vmem>>, %arg29: memref<32x128xf32, #tpu.memory_space<vmem>>, %arg30: memref<1x128xf32, #tpu.memory_space<vmem>>, %arg31: memref<14x128xf32, #tpu.memory_space<vmem>>) attributes {dimension_semantics = [#tpu.dimension_semantics<arbitrary>], iteration_bounds = array<i64: 1>, scalar_prefetch = 0 : i64, scratch_operands = 0 : i64, tpu.core_type = #tpu.core_type<tc>, window_params = [{pipeline_mode = #tpu.pipeline_mode<synchronous>, transform_indices = @transform_0, window_bounds = array<i64: 32, 16>}, {pipeline_mode = #tpu.pipeline_mode<synchronous>, transform_indices = @transform_1, window_bounds = array<i64: 3, 16, 16>}, {pipeline_mode = #tpu.pipeline_mode<synchronous>, transform_indices = @transform_2, window_bounds = array<i64: 3, 1, 16>}, {pipeline_mode = #tpu.pipeline_mode<synchronous>, transform_indices = @transform_3, window_bounds = array<i64: 6, 48, 32>}, {pipeline_mode = #tpu.pipeline_mode<synchronous>, transform_indices = @transform_4, window_bounds = array<i64: 6, 1, 32>}, {pipeline_mode = #tpu.pipeline_mode<synchronous>, transform_indices = @transform_5, window_bounds = array<i64: 6, 16, 16>}, {pipeline_mode = #tpu.pipeline_mode<synchronous>, transform_indices = @transform_6, window_bounds = array<i64: 6, 1, 16>}, {pipeline_mode = #tpu.pipeline_mode<synchronous>, transform_indices = @transform_7, window_bounds = array<i64: 16, 32>}, {pipeline_mode = #tpu.pipeline_mode<synchronous>, transform_indices = @transform_8, window_bounds = array<i64: 1, 32>}, {pipeline_mode = #tpu.pipeline_mode<synchronous>, transform_indices = @transform_9, window_bounds = array<i64: 14, 1>}, {pipeline_mode = #tpu.pipeline_mode<synchronous>, transform_indices = @transform_10, window_bounds = array<i64: 20, 32>}, {pipeline_mode = #tpu.pipeline_mode<synchronous>, transform_indices = @transform_11, window_bounds = array<i64: 14, 32>}, {pipeline_mode = #tpu.pipeline_mode<synchronous>, transform_indices = @transform_12, window_bounds = array<i64: 14, 14>}, {pipeline_mode = #tpu.pipeline_mode<synchronous>, transform_indices = @transform_13, window_bounds = array<i64: 14, 32>}, {pipeline_mode = #tpu.pipeline_mode<synchronous>, transform_indices = @transform_14, window_bounds = array<i64: 2, 32, 96>}, {pipeline_mode = #tpu.pipeline_mode<synchronous>, transform_indices = @transform_15, window_bounds = array<i64: 2, 1, 96>}, {pipeline_mode = #tpu.pipeline_mode<synchronous>, transform_indices = @transform_16, window_bounds = array<i64: 2, 32, 32>}, {pipeline_mode = #tpu.pipeline_mode<synchronous>, transform_indices = @transform_17, window_bounds = array<i64: 2, 1, 32>}, {pipeline_mode = #tpu.pipeline_mode<synchronous>, transform_indices = @transform_18, window_bounds = array<i64: 2, 32, 64>}, {pipeline_mode = #tpu.pipeline_mode<synchronous>, transform_indices = @transform_19, window_bounds = array<i64: 2, 1, 64>}, {pipeline_mode = #tpu.pipeline_mode<synchronous>, transform_indices = @transform_20, window_bounds = array<i64: 4, 32, 32>}, {pipeline_mode = #tpu.pipeline_mode<synchronous>, transform_indices = @transform_21, window_bounds = array<i64: 4, 1, 32>}, {pipeline_mode = #tpu.pipeline_mode<synchronous>, transform_indices = @transform_22, window_bounds = array<i64: 6, 1, 32>}, {pipeline_mode = #tpu.pipeline_mode<synchronous>, transform_indices = @transform_23, window_bounds = array<i64: 6, 1, 32>}, {pipeline_mode = #tpu.pipeline_mode<synchronous>, transform_indices = @transform_24, window_bounds = array<i64: 2, 32, 64>}, {pipeline_mode = #tpu.pipeline_mode<synchronous>, transform_indices = @transform_25, window_bounds = array<i64: 2, 1, 64>}, {pipeline_mode = #tpu.pipeline_mode<synchronous>, transform_indices = @transform_26, window_bounds = array<i64: 2, 64, 32>}, {pipeline_mode = #tpu.pipeline_mode<synchronous>, transform_indices = @transform_27, window_bounds = array<i64: 2, 1, 32>}, {pipeline_mode = #tpu.pipeline_mode<synchronous>, transform_indices = @transform_28, window_bounds = array<i64: 32, 128>}, {pipeline_mode = #tpu.pipeline_mode<synchronous>, transform_indices = @transform_29, window_bounds = array<i64: 1, 128>}, {pipeline_mode = #tpu.pipeline_mode<synchronous>, transform_indices = @transform_30, window_bounds = array<i64: 14, 128>}]} {
    %c0 = arith.constant 0 : index
    %c0_0 = arith.constant 0 : index
    %0 = vector.load %arg1[%c0, %c0_0] : memref<32x16xf32, #tpu.memory_space<vmem>>, vector<32x16xf32>
    %1 = tpu.iota {dimensions = array<i32: 0>} : vector<32x1xi32>
    %c16_i32 = arith.constant 16 : i32
    %c0_i32 = arith.constant 0 : i32
    %2 = arith.cmpi eq, %c16_i32, %c0_i32 : i32
    %c1_i32 = arith.constant 1 : i32
    %3 = arith.select %2, %c1_i32, %c16_i32 : i32
    %4 = vector.broadcast %3 : i32 to vector<32x1xi32>
    %5 = arith.remsi %1, %4 : vector<32x1xi32>
    %c0_i32_1 = arith.constant 0 : i32
    %6 = vector.broadcast %c0_i32_1 : i32 to vector<32x1xi32>
    %7 = arith.cmpi ne, %5, %6 : vector<32x1xi32>
    %c0_i32_2 = arith.constant 0 : i32
    %8 = vector.broadcast %c0_i32_2 : i32 to vector<32x1xi32>
    %9 = arith.cmpi slt, %5, %8 : vector<32x1xi32>
    %c0_i32_3 = arith.constant 0 : i32
    %10 = arith.cmpi slt, %3, %c0_i32_3 : i32
    %11 = vector.broadcast %10 : i1 to vector<32x1xi1>
    %12 = vector.broadcast %11 : vector<32x1xi1> to vector<32x1xi1>
    %13 = arith.xori %9, %12 : vector<32x1xi1>
    %14 = arith.andi %13, %7 : vector<32x1xi1>
    %15 = vector.broadcast %3 : i32 to vector<32x1xi32>
    %16 = arith.addi %5, %15 : vector<32x1xi32>
    %17 = arith.select %14, %16, %5 : vector<32x1xi1>, vector<32x1xi32>
    %c0_4 = arith.constant 0 : index
    %c0_5 = arith.constant 0 : index
    %c0_6 = arith.constant 0 : index
    %18 = vector.load %arg2[%c0_4, %c0_5, %c0_6] : memref<3x16x16xf32, #tpu.memory_space<vmem>>, vector<1x16x16xf32>
    %19 = vector.shape_cast %18 : vector<1x16x16xf32> to vector<16x16xf32>
    %20 = arith.truncf %0 : vector<32x16xf32> to vector<32x16xbf16>
    %21 = arith.truncf %19 : vector<16x16xf32> to vector<16x16xbf16>
    %cst = arith.constant dense<0.000000e+00> : vector<32x16xf32>
    %22 = tpu.matmul %20, %21, %cst {dimension_numbers = #tpu.dot_dimension_numbers<[1], [0], [0], [1], [0, 0, 1, 1], [], []>} : vector<32x16xbf16>, vector<16x16xbf16>, vector<32x16xf32> -> vector<32x16xf32>
    %c0_7 = arith.constant 0 : index
    %c0_8 = arith.constant 0 : index
    %c0_9 = arith.constant 0 : index
    %23 = vector.load %arg3[%c0_7, %c0_8, %c0_9] : memref<3x1x16xf32, #tpu.memory_space<vmem>>, vector<1x1x16xf32>
    %24 = vector.shape_cast %23 : vector<1x1x16xf32> to vector<1x16xf32>
    %25 = vector.broadcast %24 : vector<1x16xf32> to vector<32x16xf32>
    %26 = arith.addf %22, %25 : vector<32x16xf32>
    %c1_i32_10 = arith.constant 1 : i32
    %27 = tpu.dynamic_rotate %26 by %c1_i32_10 dim 0 : vector<32x16xf32>, i32 -> vector<32x16xf32>
    %c-1_i32 = arith.constant -1 : i32
    %28 = vector.broadcast %c-1_i32 : i32 to vector<32x1xi32>
    %29 = arith.addi %17, %28 : vector<32x1xi32>
    %c0_i32_11 = arith.constant 0 : i32
    %30 = vector.broadcast %c0_i32_11 : i32 to vector<32x1xi32>
    %31 = arith.cmpi sge, %29, %30 : vector<32x1xi32>
    %c-1_i32_12 = arith.constant -1 : i32
    %32 = vector.broadcast %c-1_i32_12 : i32 to vector<32x1xi32>
    %33 = arith.addi %17, %32 : vector<32x1xi32>
    %c16_i32_13 = arith.constant 16 : i32
    %34 = vector.broadcast %c16_i32_13 : i32 to vector<32x1xi32>
    %35 = arith.cmpi slt, %33, %34 : vector<32x1xi32>
    %36 = arith.andi %31, %35 : vector<32x1xi1>
    %37 = arith.extui %36 : vector<32x1xi1> to vector<32x1xi32>
    %38 = arith.sitofp %37 : vector<32x1xi32> to vector<32x1xf32>
    %39 = vector.broadcast %38 : vector<32x1xf32> to vector<32x16xf32>
    %40 = arith.mulf %27, %39 : vector<32x16xf32>
    %c31_i32 = arith.constant 31 : i32
    %41 = tpu.dynamic_rotate %26 by %c31_i32 dim 0 : vector<32x16xf32>, i32 -> vector<32x16xf32>
    %c1_i32_14 = arith.constant 1 : i32
    %42 = vector.broadcast %c1_i32_14 : i32 to vector<32x1xi32>
    %43 = arith.addi %17, %42 : vector<32x1xi32>
    %c0_i32_15 = arith.constant 0 : i32
    %44 = vector.broadcast %c0_i32_15 : i32 to vector<32x1xi32>
    %45 = arith.cmpi sge, %43, %44 : vector<32x1xi32>
    %c1_i32_16 = arith.constant 1 : i32
    %46 = vector.broadcast %c1_i32_16 : i32 to vector<32x1xi32>
    %47 = arith.addi %17, %46 : vector<32x1xi32>
    %c16_i32_17 = arith.constant 16 : i32
    %48 = vector.broadcast %c16_i32_17 : i32 to vector<32x1xi32>
    %49 = arith.cmpi slt, %47, %48 : vector<32x1xi32>
    %50 = arith.andi %45, %49 : vector<32x1xi1>
    %51 = arith.extui %50 : vector<32x1xi1> to vector<32x1xi32>
    %52 = arith.sitofp %51 : vector<32x1xi32> to vector<32x1xf32>
    %53 = vector.broadcast %52 : vector<32x1xf32> to vector<32x16xf32>
    %54 = arith.mulf %41, %53 : vector<32x16xf32>
    %55 = tpu.concatenate %40, %26, %54 in 1 : vector<32x16xf32>, vector<32x16xf32>, vector<32x16xf32> -> vector<32x48xf32>
    %c0_18 = arith.constant 0 : index
    %c0_19 = arith.constant 0 : index
    %c0_20 = arith.constant 0 : index
    %56 = vector.load %arg4[%c0_18, %c0_19, %c0_20] : memref<6x48x32xf32, #tpu.memory_space<vmem>>, vector<1x48x32xf32>
    %57 = vector.shape_cast %56 : vector<1x48x32xf32> to vector<48x32xf32>
    %58 = arith.truncf %55 : vector<32x48xf32> to vector<32x48xbf16>
    %59 = arith.truncf %57 : vector<48x32xf32> to vector<48x32xbf16>
    %cst_21 = arith.constant dense<0.000000e+00> : vector<32x32xf32>
    %60 = tpu.matmul %58, %59, %cst_21 {dimension_numbers = #tpu.dot_dimension_numbers<[1], [0], [0], [1], [0, 0, 1, 1], [], []>} : vector<32x48xbf16>, vector<48x32xbf16>, vector<32x32xf32> -> vector<32x32xf32>
    %c0_22 = arith.constant 0 : index
    %c0_23 = arith.constant 0 : index
    %c0_24 = arith.constant 0 : index
    %61 = vector.load %arg5[%c0_22, %c0_23, %c0_24] : memref<6x1x32xf32, #tpu.memory_space<vmem>>, vector<1x1x32xf32>
    %62 = vector.shape_cast %61 : vector<1x1x32xf32> to vector<1x32xf32>
    %63 = vector.broadcast %62 : vector<1x32xf32> to vector<32x32xf32>
    %64 = arith.addf %60, %63 : vector<32x32xf32>
    %65 = vector.extract_strided_slice %64 {offsets = [0, 0], sizes = [32, 16], strides = [1, 1]} : vector<32x32xf32> to vector<32x16xf32>
    %66 = math.tanh %65 : vector<32x16xf32>
    %67 = vector.extract_strided_slice %64 {offsets = [0, 16], sizes = [32, 16], strides = [1, 1]} : vector<32x32xf32> to vector<32x16xf32>
    %68 = arith.negf %67 : vector<32x16xf32>
    %69 = math.exp %68 : vector<32x16xf32>
    %cst_25 = arith.constant 1.000000e+00 : f32
    %70 = vector.broadcast %cst_25 : f32 to vector<32x16xf32>
    %71 = arith.addf %70, %69 : vector<32x16xf32>
    %72 = arith.divf %70, %71 : vector<32x16xf32>
    %73 = arith.mulf %66, %72 : vector<32x16xf32>
    %c0_26 = arith.constant 0 : index
    %c0_27 = arith.constant 0 : index
    %c0_28 = arith.constant 0 : index
    %74 = vector.load %arg6[%c0_26, %c0_27, %c0_28] : memref<6x16x16xf32, #tpu.memory_space<vmem>>, vector<1x16x16xf32>
    %75 = vector.shape_cast %74 : vector<1x16x16xf32> to vector<16x16xf32>
    %76 = arith.truncf %73 : vector<32x16xf32> to vector<32x16xbf16>
    %77 = arith.truncf %75 : vector<16x16xf32> to vector<16x16xbf16>
    %cst_29 = arith.constant dense<0.000000e+00> : vector<32x16xf32>
    %78 = tpu.matmul %76, %77, %cst_29 {dimension_numbers = #tpu.dot_dimension_numbers<[1], [0], [0], [1], [0, 0, 1, 1], [], []>} : vector<32x16xbf16>, vector<16x16xbf16>, vector<32x16xf32> -> vector<32x16xf32>
    %c0_30 = arith.constant 0 : index
    %c0_31 = arith.constant 0 : index
    %c0_32 = arith.constant 0 : index
    %79 = vector.load %arg7[%c0_30, %c0_31, %c0_32] : memref<6x1x16xf32, #tpu.memory_space<vmem>>, vector<1x1x16xf32>
    %80 = vector.shape_cast %79 : vector<1x1x16xf32> to vector<1x16xf32>
    %81 = vector.broadcast %80 : vector<1x16xf32> to vector<32x16xf32>
    %82 = arith.addf %78, %81 : vector<32x16xf32>
    %83 = arith.addf %26, %82 : vector<32x16xf32>
    %c2_i32 = arith.constant 2 : i32
    %84 = tpu.dynamic_rotate %82 by %c2_i32 dim 0 : vector<32x16xf32>, i32 -> vector<32x16xf32>
    %c-2_i32 = arith.constant -2 : i32
    %85 = vector.broadcast %c-2_i32 : i32 to vector<32x1xi32>
    %86 = arith.addi %17, %85 : vector<32x1xi32>
    %c0_i32_33 = arith.constant 0 : i32
    %87 = vector.broadcast %c0_i32_33 : i32 to vector<32x1xi32>
    %88 = arith.cmpi sge, %86, %87 : vector<32x1xi32>
    %c-2_i32_34 = arith.constant -2 : i32
    %89 = vector.broadcast %c-2_i32_34 : i32 to vector<32x1xi32>
    %90 = arith.addi %17, %89 : vector<32x1xi32>
    %c16_i32_35 = arith.constant 16 : i32
    %91 = vector.broadcast %c16_i32_35 : i32 to vector<32x1xi32>
    %92 = arith.cmpi slt, %90, %91 : vector<32x1xi32>
    %93 = arith.andi %88, %92 : vector<32x1xi1>
    %94 = arith.extui %93 : vector<32x1xi1> to vector<32x1xi32>
    %95 = arith.sitofp %94 : vector<32x1xi32> to vector<32x1xf32>
    %96 = vector.broadcast %95 : vector<32x1xf32> to vector<32x16xf32>
    %97 = arith.mulf %84, %96 : vector<32x16xf32>
    %c30_i32 = arith.constant 30 : i32
    %98 = tpu.dynamic_rotate %82 by %c30_i32 dim 0 : vector<32x16xf32>, i32 -> vector<32x16xf32>
    %c2_i32_36 = arith.constant 2 : i32
    %99 = vector.broadcast %c2_i32_36 : i32 to vector<32x1xi32>
    %100 = arith.addi %17, %99 : vector<32x1xi32>
    %c0_i32_37 = arith.constant 0 : i32
    %101 = vector.broadcast %c0_i32_37 : i32 to vector<32x1xi32>
    %102 = arith.cmpi sge, %100, %101 : vector<32x1xi32>
    %c2_i32_38 = arith.constant 2 : i32
    %103 = vector.broadcast %c2_i32_38 : i32 to vector<32x1xi32>
    %104 = arith.addi %17, %103 : vector<32x1xi32>
    %c16_i32_39 = arith.constant 16 : i32
    %105 = vector.broadcast %c16_i32_39 : i32 to vector<32x1xi32>
    %106 = arith.cmpi slt, %104, %105 : vector<32x1xi32>
    %107 = arith.andi %102, %106 : vector<32x1xi1>
    %108 = arith.extui %107 : vector<32x1xi1> to vector<32x1xi32>
    %109 = arith.sitofp %108 : vector<32x1xi32> to vector<32x1xf32>
    %110 = vector.broadcast %109 : vector<32x1xf32> to vector<32x16xf32>
    %111 = arith.mulf %98, %110 : vector<32x16xf32>
    %112 = tpu.concatenate %97, %82, %111 in 1 : vector<32x16xf32>, vector<32x16xf32>, vector<32x16xf32> -> vector<32x48xf32>
    %c1 = arith.constant 1 : index
    %c0_40 = arith.constant 0 : index
    %c0_41 = arith.constant 0 : index
    %113 = vector.load %arg4[%c1, %c0_40, %c0_41] : memref<6x48x32xf32, #tpu.memory_space<vmem>>, vector<1x48x32xf32>
    %114 = vector.shape_cast %113 : vector<1x48x32xf32> to vector<48x32xf32>
    %115 = arith.truncf %112 : vector<32x48xf32> to vector<32x48xbf16>
    %116 = arith.truncf %114 : vector<48x32xf32> to vector<48x32xbf16>
    %cst_42 = arith.constant dense<0.000000e+00> : vector<32x32xf32>
    %117 = tpu.matmul %115, %116, %cst_42 {dimension_numbers = #tpu.dot_dimension_numbers<[1], [0], [0], [1], [0, 0, 1, 1], [], []>} : vector<32x48xbf16>, vector<48x32xbf16>, vector<32x32xf32> -> vector<32x32xf32>
    %c1_43 = arith.constant 1 : index
    %c0_44 = arith.constant 0 : index
    %c0_45 = arith.constant 0 : index
    %118 = vector.load %arg5[%c1_43, %c0_44, %c0_45] : memref<6x1x32xf32, #tpu.memory_space<vmem>>, vector<1x1x32xf32>
    %119 = vector.shape_cast %118 : vector<1x1x32xf32> to vector<1x32xf32>
    %120 = vector.broadcast %119 : vector<1x32xf32> to vector<32x32xf32>
    %121 = arith.addf %117, %120 : vector<32x32xf32>
    %122 = vector.extract_strided_slice %121 {offsets = [0, 0], sizes = [32, 16], strides = [1, 1]} : vector<32x32xf32> to vector<32x16xf32>
    %123 = math.tanh %122 : vector<32x16xf32>
    %124 = vector.extract_strided_slice %121 {offsets = [0, 16], sizes = [32, 16], strides = [1, 1]} : vector<32x32xf32> to vector<32x16xf32>
    %125 = arith.negf %124 : vector<32x16xf32>
    %126 = math.exp %125 : vector<32x16xf32>
    %cst_46 = arith.constant 1.000000e+00 : f32
    %127 = vector.broadcast %cst_46 : f32 to vector<32x16xf32>
    %128 = arith.addf %127, %126 : vector<32x16xf32>
    %129 = arith.divf %127, %128 : vector<32x16xf32>
    %130 = arith.mulf %123, %129 : vector<32x16xf32>
    %c1_47 = arith.constant 1 : index
    %c0_48 = arith.constant 0 : index
    %c0_49 = arith.constant 0 : index
    %131 = vector.load %arg6[%c1_47, %c0_48, %c0_49] : memref<6x16x16xf32, #tpu.memory_space<vmem>>, vector<1x16x16xf32>
    %132 = vector.shape_cast %131 : vector<1x16x16xf32> to vector<16x16xf32>
    %133 = arith.truncf %130 : vector<32x16xf32> to vector<32x16xbf16>
    %134 = arith.truncf %132 : vector<16x16xf32> to vector<16x16xbf16>
    %cst_50 = arith.constant dense<0.000000e+00> : vector<32x16xf32>
    %135 = tpu.matmul %133, %134, %cst_50 {dimension_numbers = #tpu.dot_dimension_numbers<[1], [0], [0], [1], [0, 0, 1, 1], [], []>} : vector<32x16xbf16>, vector<16x16xbf16>, vector<32x16xf32> -> vector<32x16xf32>
    %c1_51 = arith.constant 1 : index
    %c0_52 = arith.constant 0 : index
    %c0_53 = arith.constant 0 : index
    %136 = vector.load %arg7[%c1_51, %c0_52, %c0_53] : memref<6x1x16xf32, #tpu.memory_space<vmem>>, vector<1x1x16xf32>
    %137 = vector.shape_cast %136 : vector<1x1x16xf32> to vector<1x16xf32>
    %138 = vector.broadcast %137 : vector<1x16xf32> to vector<32x16xf32>
    %139 = arith.addf %135, %138 : vector<32x16xf32>
    %140 = arith.addf %83, %139 : vector<32x16xf32>
    %c1_54 = arith.constant 1 : index
    %c0_55 = arith.constant 0 : index
    %c0_56 = arith.constant 0 : index
    %141 = vector.load %arg2[%c1_54, %c0_55, %c0_56] : memref<3x16x16xf32, #tpu.memory_space<vmem>>, vector<1x16x16xf32>
    %142 = vector.shape_cast %141 : vector<1x16x16xf32> to vector<16x16xf32>
    %143 = arith.truncf %140 : vector<32x16xf32> to vector<32x16xbf16>
    %144 = arith.truncf %142 : vector<16x16xf32> to vector<16x16xbf16>
    %cst_57 = arith.constant dense<0.000000e+00> : vector<32x16xf32>
    %145 = tpu.matmul %143, %144, %cst_57 {dimension_numbers = #tpu.dot_dimension_numbers<[1], [0], [0], [1], [0, 0, 1, 1], [], []>} : vector<32x16xbf16>, vector<16x16xbf16>, vector<32x16xf32> -> vector<32x16xf32>
    %c1_58 = arith.constant 1 : index
    %c0_59 = arith.constant 0 : index
    %c0_60 = arith.constant 0 : index
    %146 = vector.load %arg3[%c1_58, %c0_59, %c0_60] : memref<3x1x16xf32, #tpu.memory_space<vmem>>, vector<1x1x16xf32>
    %147 = vector.shape_cast %146 : vector<1x1x16xf32> to vector<1x16xf32>
    %148 = vector.broadcast %147 : vector<1x16xf32> to vector<32x16xf32>
    %149 = arith.addf %145, %148 : vector<32x16xf32>
    %c1_i32_61 = arith.constant 1 : i32
    %150 = tpu.dynamic_rotate %149 by %c1_i32_61 dim 0 : vector<32x16xf32>, i32 -> vector<32x16xf32>
    %c-1_i32_62 = arith.constant -1 : i32
    %151 = vector.broadcast %c-1_i32_62 : i32 to vector<32x1xi32>
    %152 = arith.addi %17, %151 : vector<32x1xi32>
    %c0_i32_63 = arith.constant 0 : i32
    %153 = vector.broadcast %c0_i32_63 : i32 to vector<32x1xi32>
    %154 = arith.cmpi sge, %152, %153 : vector<32x1xi32>
    %c-1_i32_64 = arith.constant -1 : i32
    %155 = vector.broadcast %c-1_i32_64 : i32 to vector<32x1xi32>
    %156 = arith.addi %17, %155 : vector<32x1xi32>
    %c16_i32_65 = arith.constant 16 : i32
    %157 = vector.broadcast %c16_i32_65 : i32 to vector<32x1xi32>
    %158 = arith.cmpi slt, %156, %157 : vector<32x1xi32>
    %159 = arith.andi %154, %158 : vector<32x1xi1>
    %160 = arith.extui %159 : vector<32x1xi1> to vector<32x1xi32>
    %161 = arith.sitofp %160 : vector<32x1xi32> to vector<32x1xf32>
    %162 = vector.broadcast %161 : vector<32x1xf32> to vector<32x16xf32>
    %163 = arith.mulf %150, %162 : vector<32x16xf32>
    %c31_i32_66 = arith.constant 31 : i32
    %164 = tpu.dynamic_rotate %149 by %c31_i32_66 dim 0 : vector<32x16xf32>, i32 -> vector<32x16xf32>
    %c1_i32_67 = arith.constant 1 : i32
    %165 = vector.broadcast %c1_i32_67 : i32 to vector<32x1xi32>
    %166 = arith.addi %17, %165 : vector<32x1xi32>
    %c0_i32_68 = arith.constant 0 : i32
    %167 = vector.broadcast %c0_i32_68 : i32 to vector<32x1xi32>
    %168 = arith.cmpi sge, %166, %167 : vector<32x1xi32>
    %c1_i32_69 = arith.constant 1 : i32
    %169 = vector.broadcast %c1_i32_69 : i32 to vector<32x1xi32>
    %170 = arith.addi %17, %169 : vector<32x1xi32>
    %c16_i32_70 = arith.constant 16 : i32
    %171 = vector.broadcast %c16_i32_70 : i32 to vector<32x1xi32>
    %172 = arith.cmpi slt, %170, %171 : vector<32x1xi32>
    %173 = arith.andi %168, %172 : vector<32x1xi1>
    %174 = arith.extui %173 : vector<32x1xi1> to vector<32x1xi32>
    %175 = arith.sitofp %174 : vector<32x1xi32> to vector<32x1xf32>
    %176 = vector.broadcast %175 : vector<32x1xf32> to vector<32x16xf32>
    %177 = arith.mulf %164, %176 : vector<32x16xf32>
    %178 = tpu.concatenate %163, %149, %177 in 1 : vector<32x16xf32>, vector<32x16xf32>, vector<32x16xf32> -> vector<32x48xf32>
    %c2 = arith.constant 2 : index
    %c0_71 = arith.constant 0 : index
    %c0_72 = arith.constant 0 : index
    %179 = vector.load %arg4[%c2, %c0_71, %c0_72] : memref<6x48x32xf32, #tpu.memory_space<vmem>>, vector<1x48x32xf32>
    %180 = vector.shape_cast %179 : vector<1x48x32xf32> to vector<48x32xf32>
    %181 = arith.truncf %178 : vector<32x48xf32> to vector<32x48xbf16>
    %182 = arith.truncf %180 : vector<48x32xf32> to vector<48x32xbf16>
    %cst_73 = arith.constant dense<0.000000e+00> : vector<32x32xf32>
    %183 = tpu.matmul %181, %182, %cst_73 {dimension_numbers = #tpu.dot_dimension_numbers<[1], [0], [0], [1], [0, 0, 1, 1], [], []>} : vector<32x48xbf16>, vector<48x32xbf16>, vector<32x32xf32> -> vector<32x32xf32>
    %c2_74 = arith.constant 2 : index
    %c0_75 = arith.constant 0 : index
    %c0_76 = arith.constant 0 : index
    %184 = vector.load %arg5[%c2_74, %c0_75, %c0_76] : memref<6x1x32xf32, #tpu.memory_space<vmem>>, vector<1x1x32xf32>
    %185 = vector.shape_cast %184 : vector<1x1x32xf32> to vector<1x32xf32>
    %186 = vector.broadcast %185 : vector<1x32xf32> to vector<32x32xf32>
    %187 = arith.addf %183, %186 : vector<32x32xf32>
    %188 = vector.extract_strided_slice %187 {offsets = [0, 0], sizes = [32, 16], strides = [1, 1]} : vector<32x32xf32> to vector<32x16xf32>
    %189 = math.tanh %188 : vector<32x16xf32>
    %190 = vector.extract_strided_slice %187 {offsets = [0, 16], sizes = [32, 16], strides = [1, 1]} : vector<32x32xf32> to vector<32x16xf32>
    %191 = arith.negf %190 : vector<32x16xf32>
    %192 = math.exp %191 : vector<32x16xf32>
    %cst_77 = arith.constant 1.000000e+00 : f32
    %193 = vector.broadcast %cst_77 : f32 to vector<32x16xf32>
    %194 = arith.addf %193, %192 : vector<32x16xf32>
    %195 = arith.divf %193, %194 : vector<32x16xf32>
    %196 = arith.mulf %189, %195 : vector<32x16xf32>
    %c2_78 = arith.constant 2 : index
    %c0_79 = arith.constant 0 : index
    %c0_80 = arith.constant 0 : index
    %197 = vector.load %arg6[%c2_78, %c0_79, %c0_80] : memref<6x16x16xf32, #tpu.memory_space<vmem>>, vector<1x16x16xf32>
    %198 = vector.shape_cast %197 : vector<1x16x16xf32> to vector<16x16xf32>
    %199 = arith.truncf %196 : vector<32x16xf32> to vector<32x16xbf16>
    %200 = arith.truncf %198 : vector<16x16xf32> to vector<16x16xbf16>
    %cst_81 = arith.constant dense<0.000000e+00> : vector<32x16xf32>
    %201 = tpu.matmul %199, %200, %cst_81 {dimension_numbers = #tpu.dot_dimension_numbers<[1], [0], [0], [1], [0, 0, 1, 1], [], []>} : vector<32x16xbf16>, vector<16x16xbf16>, vector<32x16xf32> -> vector<32x16xf32>
    %c2_82 = arith.constant 2 : index
    %c0_83 = arith.constant 0 : index
    %c0_84 = arith.constant 0 : index
    %202 = vector.load %arg7[%c2_82, %c0_83, %c0_84] : memref<6x1x16xf32, #tpu.memory_space<vmem>>, vector<1x1x16xf32>
    %203 = vector.shape_cast %202 : vector<1x1x16xf32> to vector<1x16xf32>
    %204 = vector.broadcast %203 : vector<1x16xf32> to vector<32x16xf32>
    %205 = arith.addf %201, %204 : vector<32x16xf32>
    %206 = arith.addf %149, %205 : vector<32x16xf32>
    %c2_i32_85 = arith.constant 2 : i32
    %207 = tpu.dynamic_rotate %205 by %c2_i32_85 dim 0 : vector<32x16xf32>, i32 -> vector<32x16xf32>
    %c-2_i32_86 = arith.constant -2 : i32
    %208 = vector.broadcast %c-2_i32_86 : i32 to vector<32x1xi32>
    %209 = arith.addi %17, %208 : vector<32x1xi32>
    %c0_i32_87 = arith.constant 0 : i32
    %210 = vector.broadcast %c0_i32_87 : i32 to vector<32x1xi32>
    %211 = arith.cmpi sge, %209, %210 : vector<32x1xi32>
    %c-2_i32_88 = arith.constant -2 : i32
    %212 = vector.broadcast %c-2_i32_88 : i32 to vector<32x1xi32>
    %213 = arith.addi %17, %212 : vector<32x1xi32>
    %c16_i32_89 = arith.constant 16 : i32
    %214 = vector.broadcast %c16_i32_89 : i32 to vector<32x1xi32>
    %215 = arith.cmpi slt, %213, %214 : vector<32x1xi32>
    %216 = arith.andi %211, %215 : vector<32x1xi1>
    %217 = arith.extui %216 : vector<32x1xi1> to vector<32x1xi32>
    %218 = arith.sitofp %217 : vector<32x1xi32> to vector<32x1xf32>
    %219 = vector.broadcast %218 : vector<32x1xf32> to vector<32x16xf32>
    %220 = arith.mulf %207, %219 : vector<32x16xf32>
    %c30_i32_90 = arith.constant 30 : i32
    %221 = tpu.dynamic_rotate %205 by %c30_i32_90 dim 0 : vector<32x16xf32>, i32 -> vector<32x16xf32>
    %c2_i32_91 = arith.constant 2 : i32
    %222 = vector.broadcast %c2_i32_91 : i32 to vector<32x1xi32>
    %223 = arith.addi %17, %222 : vector<32x1xi32>
    %c0_i32_92 = arith.constant 0 : i32
    %224 = vector.broadcast %c0_i32_92 : i32 to vector<32x1xi32>
    %225 = arith.cmpi sge, %223, %224 : vector<32x1xi32>
    %c2_i32_93 = arith.constant 2 : i32
    %226 = vector.broadcast %c2_i32_93 : i32 to vector<32x1xi32>
    %227 = arith.addi %17, %226 : vector<32x1xi32>
    %c16_i32_94 = arith.constant 16 : i32
    %228 = vector.broadcast %c16_i32_94 : i32 to vector<32x1xi32>
    %229 = arith.cmpi slt, %227, %228 : vector<32x1xi32>
    %230 = arith.andi %225, %229 : vector<32x1xi1>
    %231 = arith.extui %230 : vector<32x1xi1> to vector<32x1xi32>
    %232 = arith.sitofp %231 : vector<32x1xi32> to vector<32x1xf32>
    %233 = vector.broadcast %232 : vector<32x1xf32> to vector<32x16xf32>
    %234 = arith.mulf %221, %233 : vector<32x16xf32>
    %235 = tpu.concatenate %220, %205, %234 in 1 : vector<32x16xf32>, vector<32x16xf32>, vector<32x16xf32> -> vector<32x48xf32>
    %c3 = arith.constant 3 : index
    %c0_95 = arith.constant 0 : index
    %c0_96 = arith.constant 0 : index
    %236 = vector.load %arg4[%c3, %c0_95, %c0_96] : memref<6x48x32xf32, #tpu.memory_space<vmem>>, vector<1x48x32xf32>
    %237 = vector.shape_cast %236 : vector<1x48x32xf32> to vector<48x32xf32>
    %238 = arith.truncf %235 : vector<32x48xf32> to vector<32x48xbf16>
    %239 = arith.truncf %237 : vector<48x32xf32> to vector<48x32xbf16>
    %cst_97 = arith.constant dense<0.000000e+00> : vector<32x32xf32>
    %240 = tpu.matmul %238, %239, %cst_97 {dimension_numbers = #tpu.dot_dimension_numbers<[1], [0], [0], [1], [0, 0, 1, 1], [], []>} : vector<32x48xbf16>, vector<48x32xbf16>, vector<32x32xf32> -> vector<32x32xf32>
    %c3_98 = arith.constant 3 : index
    %c0_99 = arith.constant 0 : index
    %c0_100 = arith.constant 0 : index
    %241 = vector.load %arg5[%c3_98, %c0_99, %c0_100] : memref<6x1x32xf32, #tpu.memory_space<vmem>>, vector<1x1x32xf32>
    %242 = vector.shape_cast %241 : vector<1x1x32xf32> to vector<1x32xf32>
    %243 = vector.broadcast %242 : vector<1x32xf32> to vector<32x32xf32>
    %244 = arith.addf %240, %243 : vector<32x32xf32>
    %245 = vector.extract_strided_slice %244 {offsets = [0, 0], sizes = [32, 16], strides = [1, 1]} : vector<32x32xf32> to vector<32x16xf32>
    %246 = math.tanh %245 : vector<32x16xf32>
    %247 = vector.extract_strided_slice %244 {offsets = [0, 16], sizes = [32, 16], strides = [1, 1]} : vector<32x32xf32> to vector<32x16xf32>
    %248 = arith.negf %247 : vector<32x16xf32>
    %249 = math.exp %248 : vector<32x16xf32>
    %cst_101 = arith.constant 1.000000e+00 : f32
    %250 = vector.broadcast %cst_101 : f32 to vector<32x16xf32>
    %251 = arith.addf %250, %249 : vector<32x16xf32>
    %252 = arith.divf %250, %251 : vector<32x16xf32>
    %253 = arith.mulf %246, %252 : vector<32x16xf32>
    %c3_102 = arith.constant 3 : index
    %c0_103 = arith.constant 0 : index
    %c0_104 = arith.constant 0 : index
    %254 = vector.load %arg6[%c3_102, %c0_103, %c0_104] : memref<6x16x16xf32, #tpu.memory_space<vmem>>, vector<1x16x16xf32>
    %255 = vector.shape_cast %254 : vector<1x16x16xf32> to vector<16x16xf32>
    %256 = arith.truncf %253 : vector<32x16xf32> to vector<32x16xbf16>
    %257 = arith.truncf %255 : vector<16x16xf32> to vector<16x16xbf16>
    %cst_105 = arith.constant dense<0.000000e+00> : vector<32x16xf32>
    %258 = tpu.matmul %256, %257, %cst_105 {dimension_numbers = #tpu.dot_dimension_numbers<[1], [0], [0], [1], [0, 0, 1, 1], [], []>} : vector<32x16xbf16>, vector<16x16xbf16>, vector<32x16xf32> -> vector<32x16xf32>
    %c3_106 = arith.constant 3 : index
    %c0_107 = arith.constant 0 : index
    %c0_108 = arith.constant 0 : index
    %259 = vector.load %arg7[%c3_106, %c0_107, %c0_108] : memref<6x1x16xf32, #tpu.memory_space<vmem>>, vector<1x1x16xf32>
    %260 = vector.shape_cast %259 : vector<1x1x16xf32> to vector<1x16xf32>
    %261 = vector.broadcast %260 : vector<1x16xf32> to vector<32x16xf32>
    %262 = arith.addf %258, %261 : vector<32x16xf32>
    %263 = arith.addf %206, %262 : vector<32x16xf32>
    %c2_109 = arith.constant 2 : index
    %c0_110 = arith.constant 0 : index
    %c0_111 = arith.constant 0 : index
    %264 = vector.load %arg2[%c2_109, %c0_110, %c0_111] : memref<3x16x16xf32, #tpu.memory_space<vmem>>, vector<1x16x16xf32>
    %265 = vector.shape_cast %264 : vector<1x16x16xf32> to vector<16x16xf32>
    %266 = arith.truncf %263 : vector<32x16xf32> to vector<32x16xbf16>
    %267 = arith.truncf %265 : vector<16x16xf32> to vector<16x16xbf16>
    %cst_112 = arith.constant dense<0.000000e+00> : vector<32x16xf32>
    %268 = tpu.matmul %266, %267, %cst_112 {dimension_numbers = #tpu.dot_dimension_numbers<[1], [0], [0], [1], [0, 0, 1, 1], [], []>} : vector<32x16xbf16>, vector<16x16xbf16>, vector<32x16xf32> -> vector<32x16xf32>
    %c2_113 = arith.constant 2 : index
    %c0_114 = arith.constant 0 : index
    %c0_115 = arith.constant 0 : index
    %269 = vector.load %arg3[%c2_113, %c0_114, %c0_115] : memref<3x1x16xf32, #tpu.memory_space<vmem>>, vector<1x1x16xf32>
    %270 = vector.shape_cast %269 : vector<1x1x16xf32> to vector<1x16xf32>
    %271 = vector.broadcast %270 : vector<1x16xf32> to vector<32x16xf32>
    %272 = arith.addf %268, %271 : vector<32x16xf32>
    %c1_i32_116 = arith.constant 1 : i32
    %273 = tpu.dynamic_rotate %272 by %c1_i32_116 dim 0 : vector<32x16xf32>, i32 -> vector<32x16xf32>
    %c-1_i32_117 = arith.constant -1 : i32
    %274 = vector.broadcast %c-1_i32_117 : i32 to vector<32x1xi32>
    %275 = arith.addi %17, %274 : vector<32x1xi32>
    %c0_i32_118 = arith.constant 0 : i32
    %276 = vector.broadcast %c0_i32_118 : i32 to vector<32x1xi32>
    %277 = arith.cmpi sge, %275, %276 : vector<32x1xi32>
    %c-1_i32_119 = arith.constant -1 : i32
    %278 = vector.broadcast %c-1_i32_119 : i32 to vector<32x1xi32>
    %279 = arith.addi %17, %278 : vector<32x1xi32>
    %c16_i32_120 = arith.constant 16 : i32
    %280 = vector.broadcast %c16_i32_120 : i32 to vector<32x1xi32>
    %281 = arith.cmpi slt, %279, %280 : vector<32x1xi32>
    %282 = arith.andi %277, %281 : vector<32x1xi1>
    %283 = arith.extui %282 : vector<32x1xi1> to vector<32x1xi32>
    %284 = arith.sitofp %283 : vector<32x1xi32> to vector<32x1xf32>
    %285 = vector.broadcast %284 : vector<32x1xf32> to vector<32x16xf32>
    %286 = arith.mulf %273, %285 : vector<32x16xf32>
    %c31_i32_121 = arith.constant 31 : i32
    %287 = tpu.dynamic_rotate %272 by %c31_i32_121 dim 0 : vector<32x16xf32>, i32 -> vector<32x16xf32>
    %c1_i32_122 = arith.constant 1 : i32
    %288 = vector.broadcast %c1_i32_122 : i32 to vector<32x1xi32>
    %289 = arith.addi %17, %288 : vector<32x1xi32>
    %c0_i32_123 = arith.constant 0 : i32
    %290 = vector.broadcast %c0_i32_123 : i32 to vector<32x1xi32>
    %291 = arith.cmpi sge, %289, %290 : vector<32x1xi32>
    %c1_i32_124 = arith.constant 1 : i32
    %292 = vector.broadcast %c1_i32_124 : i32 to vector<32x1xi32>
    %293 = arith.addi %17, %292 : vector<32x1xi32>
    %c16_i32_125 = arith.constant 16 : i32
    %294 = vector.broadcast %c16_i32_125 : i32 to vector<32x1xi32>
    %295 = arith.cmpi slt, %293, %294 : vector<32x1xi32>
    %296 = arith.andi %291, %295 : vector<32x1xi1>
    %297 = arith.extui %296 : vector<32x1xi1> to vector<32x1xi32>
    %298 = arith.sitofp %297 : vector<32x1xi32> to vector<32x1xf32>
    %299 = vector.broadcast %298 : vector<32x1xf32> to vector<32x16xf32>
    %300 = arith.mulf %287, %299 : vector<32x16xf32>
    %301 = tpu.concatenate %286, %272, %300 in 1 : vector<32x16xf32>, vector<32x16xf32>, vector<32x16xf32> -> vector<32x48xf32>
    %c4 = arith.constant 4 : index
    %c0_126 = arith.constant 0 : index
    %c0_127 = arith.constant 0 : index
    %302 = vector.load %arg4[%c4, %c0_126, %c0_127] : memref<6x48x32xf32, #tpu.memory_space<vmem>>, vector<1x48x32xf32>
    %303 = vector.shape_cast %302 : vector<1x48x32xf32> to vector<48x32xf32>
    %304 = arith.truncf %301 : vector<32x48xf32> to vector<32x48xbf16>
    %305 = arith.truncf %303 : vector<48x32xf32> to vector<48x32xbf16>
    %cst_128 = arith.constant dense<0.000000e+00> : vector<32x32xf32>
    %306 = tpu.matmul %304, %305, %cst_128 {dimension_numbers = #tpu.dot_dimension_numbers<[1], [0], [0], [1], [0, 0, 1, 1], [], []>} : vector<32x48xbf16>, vector<48x32xbf16>, vector<32x32xf32> -> vector<32x32xf32>
    %c4_129 = arith.constant 4 : index
    %c0_130 = arith.constant 0 : index
    %c0_131 = arith.constant 0 : index
    %307 = vector.load %arg5[%c4_129, %c0_130, %c0_131] : memref<6x1x32xf32, #tpu.memory_space<vmem>>, vector<1x1x32xf32>
    %308 = vector.shape_cast %307 : vector<1x1x32xf32> to vector<1x32xf32>
    %309 = vector.broadcast %308 : vector<1x32xf32> to vector<32x32xf32>
    %310 = arith.addf %306, %309 : vector<32x32xf32>
    %311 = vector.extract_strided_slice %310 {offsets = [0, 0], sizes = [32, 16], strides = [1, 1]} : vector<32x32xf32> to vector<32x16xf32>
    %312 = math.tanh %311 : vector<32x16xf32>
    %313 = vector.extract_strided_slice %310 {offsets = [0, 16], sizes = [32, 16], strides = [1, 1]} : vector<32x32xf32> to vector<32x16xf32>
    %314 = arith.negf %313 : vector<32x16xf32>
    %315 = math.exp %314 : vector<32x16xf32>
    %cst_132 = arith.constant 1.000000e+00 : f32
    %316 = vector.broadcast %cst_132 : f32 to vector<32x16xf32>
    %317 = arith.addf %316, %315 : vector<32x16xf32>
    %318 = arith.divf %316, %317 : vector<32x16xf32>
    %319 = arith.mulf %312, %318 : vector<32x16xf32>
    %c4_133 = arith.constant 4 : index
    %c0_134 = arith.constant 0 : index
    %c0_135 = arith.constant 0 : index
    %320 = vector.load %arg6[%c4_133, %c0_134, %c0_135] : memref<6x16x16xf32, #tpu.memory_space<vmem>>, vector<1x16x16xf32>
    %321 = vector.shape_cast %320 : vector<1x16x16xf32> to vector<16x16xf32>
    %322 = arith.truncf %319 : vector<32x16xf32> to vector<32x16xbf16>
    %323 = arith.truncf %321 : vector<16x16xf32> to vector<16x16xbf16>
    %cst_136 = arith.constant dense<0.000000e+00> : vector<32x16xf32>
    %324 = tpu.matmul %322, %323, %cst_136 {dimension_numbers = #tpu.dot_dimension_numbers<[1], [0], [0], [1], [0, 0, 1, 1], [], []>} : vector<32x16xbf16>, vector<16x16xbf16>, vector<32x16xf32> -> vector<32x16xf32>
    %c4_137 = arith.constant 4 : index
    %c0_138 = arith.constant 0 : index
    %c0_139 = arith.constant 0 : index
    %325 = vector.load %arg7[%c4_137, %c0_138, %c0_139] : memref<6x1x16xf32, #tpu.memory_space<vmem>>, vector<1x1x16xf32>
    %326 = vector.shape_cast %325 : vector<1x1x16xf32> to vector<1x16xf32>
    %327 = vector.broadcast %326 : vector<1x16xf32> to vector<32x16xf32>
    %328 = arith.addf %324, %327 : vector<32x16xf32>
    %329 = arith.addf %272, %328 : vector<32x16xf32>
    %c2_i32_140 = arith.constant 2 : i32
    %330 = tpu.dynamic_rotate %328 by %c2_i32_140 dim 0 : vector<32x16xf32>, i32 -> vector<32x16xf32>
    %c-2_i32_141 = arith.constant -2 : i32
    %331 = vector.broadcast %c-2_i32_141 : i32 to vector<32x1xi32>
    %332 = arith.addi %17, %331 : vector<32x1xi32>
    %c0_i32_142 = arith.constant 0 : i32
    %333 = vector.broadcast %c0_i32_142 : i32 to vector<32x1xi32>
    %334 = arith.cmpi sge, %332, %333 : vector<32x1xi32>
    %c-2_i32_143 = arith.constant -2 : i32
    %335 = vector.broadcast %c-2_i32_143 : i32 to vector<32x1xi32>
    %336 = arith.addi %17, %335 : vector<32x1xi32>
    %c16_i32_144 = arith.constant 16 : i32
    %337 = vector.broadcast %c16_i32_144 : i32 to vector<32x1xi32>
    %338 = arith.cmpi slt, %336, %337 : vector<32x1xi32>
    %339 = arith.andi %334, %338 : vector<32x1xi1>
    %340 = arith.extui %339 : vector<32x1xi1> to vector<32x1xi32>
    %341 = arith.sitofp %340 : vector<32x1xi32> to vector<32x1xf32>
    %342 = vector.broadcast %341 : vector<32x1xf32> to vector<32x16xf32>
    %343 = arith.mulf %330, %342 : vector<32x16xf32>
    %c30_i32_145 = arith.constant 30 : i32
    %344 = tpu.dynamic_rotate %328 by %c30_i32_145 dim 0 : vector<32x16xf32>, i32 -> vector<32x16xf32>
    %c2_i32_146 = arith.constant 2 : i32
    %345 = vector.broadcast %c2_i32_146 : i32 to vector<32x1xi32>
    %346 = arith.addi %17, %345 : vector<32x1xi32>
    %c0_i32_147 = arith.constant 0 : i32
    %347 = vector.broadcast %c0_i32_147 : i32 to vector<32x1xi32>
    %348 = arith.cmpi sge, %346, %347 : vector<32x1xi32>
    %c2_i32_148 = arith.constant 2 : i32
    %349 = vector.broadcast %c2_i32_148 : i32 to vector<32x1xi32>
    %350 = arith.addi %17, %349 : vector<32x1xi32>
    %c16_i32_149 = arith.constant 16 : i32
    %351 = vector.broadcast %c16_i32_149 : i32 to vector<32x1xi32>
    %352 = arith.cmpi slt, %350, %351 : vector<32x1xi32>
    %353 = arith.andi %348, %352 : vector<32x1xi1>
    %354 = arith.extui %353 : vector<32x1xi1> to vector<32x1xi32>
    %355 = arith.sitofp %354 : vector<32x1xi32> to vector<32x1xf32>
    %356 = vector.broadcast %355 : vector<32x1xf32> to vector<32x16xf32>
    %357 = arith.mulf %344, %356 : vector<32x16xf32>
    %358 = tpu.concatenate %343, %328, %357 in 1 : vector<32x16xf32>, vector<32x16xf32>, vector<32x16xf32> -> vector<32x48xf32>
    %c5 = arith.constant 5 : index
    %c0_150 = arith.constant 0 : index
    %c0_151 = arith.constant 0 : index
    %359 = vector.load %arg4[%c5, %c0_150, %c0_151] : memref<6x48x32xf32, #tpu.memory_space<vmem>>, vector<1x48x32xf32>
    %360 = vector.shape_cast %359 : vector<1x48x32xf32> to vector<48x32xf32>
    %361 = arith.truncf %358 : vector<32x48xf32> to vector<32x48xbf16>
    %362 = arith.truncf %360 : vector<48x32xf32> to vector<48x32xbf16>
    %cst_152 = arith.constant dense<0.000000e+00> : vector<32x32xf32>
    %363 = tpu.matmul %361, %362, %cst_152 {dimension_numbers = #tpu.dot_dimension_numbers<[1], [0], [0], [1], [0, 0, 1, 1], [], []>} : vector<32x48xbf16>, vector<48x32xbf16>, vector<32x32xf32> -> vector<32x32xf32>
    %c5_153 = arith.constant 5 : index
    %c0_154 = arith.constant 0 : index
    %c0_155 = arith.constant 0 : index
    %364 = vector.load %arg5[%c5_153, %c0_154, %c0_155] : memref<6x1x32xf32, #tpu.memory_space<vmem>>, vector<1x1x32xf32>
    %365 = vector.shape_cast %364 : vector<1x1x32xf32> to vector<1x32xf32>
    %366 = vector.broadcast %365 : vector<1x32xf32> to vector<32x32xf32>
    %367 = arith.addf %363, %366 : vector<32x32xf32>
    %368 = vector.extract_strided_slice %367 {offsets = [0, 0], sizes = [32, 16], strides = [1, 1]} : vector<32x32xf32> to vector<32x16xf32>
    %369 = math.tanh %368 : vector<32x16xf32>
    %370 = vector.extract_strided_slice %367 {offsets = [0, 16], sizes = [32, 16], strides = [1, 1]} : vector<32x32xf32> to vector<32x16xf32>
    %371 = arith.negf %370 : vector<32x16xf32>
    %372 = math.exp %371 : vector<32x16xf32>
    %cst_156 = arith.constant 1.000000e+00 : f32
    %373 = vector.broadcast %cst_156 : f32 to vector<32x16xf32>
    %374 = arith.addf %373, %372 : vector<32x16xf32>
    %375 = arith.divf %373, %374 : vector<32x16xf32>
    %376 = arith.mulf %369, %375 : vector<32x16xf32>
    %c5_157 = arith.constant 5 : index
    %c0_158 = arith.constant 0 : index
    %c0_159 = arith.constant 0 : index
    %377 = vector.load %arg6[%c5_157, %c0_158, %c0_159] : memref<6x16x16xf32, #tpu.memory_space<vmem>>, vector<1x16x16xf32>
    %378 = vector.shape_cast %377 : vector<1x16x16xf32> to vector<16x16xf32>
    %379 = arith.truncf %376 : vector<32x16xf32> to vector<32x16xbf16>
    %380 = arith.truncf %378 : vector<16x16xf32> to vector<16x16xbf16>
    %cst_160 = arith.constant dense<0.000000e+00> : vector<32x16xf32>
    %381 = tpu.matmul %379, %380, %cst_160 {dimension_numbers = #tpu.dot_dimension_numbers<[1], [0], [0], [1], [0, 0, 1, 1], [], []>} : vector<32x16xbf16>, vector<16x16xbf16>, vector<32x16xf32> -> vector<32x16xf32>
    %c5_161 = arith.constant 5 : index
    %c0_162 = arith.constant 0 : index
    %c0_163 = arith.constant 0 : index
    %382 = vector.load %arg7[%c5_161, %c0_162, %c0_163] : memref<6x1x16xf32, #tpu.memory_space<vmem>>, vector<1x1x16xf32>
    %383 = vector.shape_cast %382 : vector<1x1x16xf32> to vector<1x16xf32>
    %384 = vector.broadcast %383 : vector<1x16xf32> to vector<32x16xf32>
    %385 = arith.addf %381, %384 : vector<32x16xf32>
    %386 = arith.addf %329, %385 : vector<32x16xf32>
    %c0_164 = arith.constant 0 : index
    %c0_165 = arith.constant 0 : index
    %387 = vector.load %arg8[%c0_164, %c0_165] : memref<16x32xf32, #tpu.memory_space<vmem>>, vector<16x32xf32>
    %388 = arith.truncf %386 : vector<32x16xf32> to vector<32x16xbf16>
    %389 = arith.truncf %387 : vector<16x32xf32> to vector<16x32xbf16>
    %cst_166 = arith.constant dense<0.000000e+00> : vector<32x32xf32>
    %390 = tpu.matmul %388, %389, %cst_166 {dimension_numbers = #tpu.dot_dimension_numbers<[1], [0], [0], [1], [0, 0, 1, 1], [], []>} : vector<32x16xbf16>, vector<16x32xbf16>, vector<32x32xf32> -> vector<32x32xf32>
    %c0_167 = arith.constant 0 : index
    %c0_168 = arith.constant 0 : index
    %391 = vector.load %arg9[%c0_167, %c0_168] : memref<1x32xf32, #tpu.memory_space<vmem>>, vector<1x32xf32>
    %392 = vector.broadcast %391 : vector<1x32xf32> to vector<32x32xf32>
    %393 = arith.addf %390, %392 : vector<32x32xf32>
    %cst_169 = arith.constant 0.000000e+00 : f32
    %394 = vector.broadcast %cst_169 : f32 to vector<32x32xf32>
    %395 = arith.maximumf %393, %394 : vector<32x32xf32>
    %c0_170 = arith.constant 0 : index
    %c0_171 = arith.constant 0 : index
    %396 = vector.load %arg12[%c0_170, %c0_171] : memref<14x32xf32, #tpu.memory_space<vmem>>, vector<14x32xf32>
    %c0_172 = arith.constant 0 : index
    %c0_173 = arith.constant 0 : index
    %397 = vector.load %arg10[%c0_172, %c0_173] : memref<14x1xi32, #tpu.memory_space<vmem>>, vector<14x1xi32>
    %398 = tpu.iota {dimensions = array<i32: 1>} : vector<14x20xi32>
    %399 = vector.broadcast %397 : vector<14x1xi32> to vector<14x20xi32>
    %400 = arith.cmpi eq, %398, %399 : vector<14x20xi32>
    %401 = arith.extui %400 : vector<14x20xi1> to vector<14x20xi32>
    %402 = arith.sitofp %401 : vector<14x20xi32> to vector<14x20xf32>
    %c0_174 = arith.constant 0 : index
    %c0_175 = arith.constant 0 : index
    %403 = vector.load %arg11[%c0_174, %c0_175] : memref<20x32xf32, #tpu.memory_space<vmem>>, vector<20x32xf32>
    %cst_176 = arith.constant dense<0.000000e+00> : vector<14x32xf32>
    %404 = tpu.matmul %402, %403, %cst_176 {dimension_numbers = #tpu.dot_dimension_numbers<[1], [0], [0], [1], [0, 0, 1, 1], [], []>} : vector<14x20xf32>, vector<20x32xf32>, vector<14x32xf32> -> vector<14x32xf32>
    %405 = arith.addf %404, %396 : vector<14x32xf32>
    %c0_177 = arith.constant 0 : index
    %c0_178 = arith.constant 0 : index
    %406 = vector.load %arg13[%c0_177, %c0_178] : memref<14x14xf32, #tpu.memory_space<vmem>>, vector<14x14xf32>
    %c0_179 = arith.constant 0 : index
    %c0_180 = arith.constant 0 : index
    %407 = vector.load %arg14[%c0_179, %c0_180] : memref<14x32xf32, #tpu.memory_space<vmem>>, vector<14x32xf32>
    %c0_181 = arith.constant 0 : index
    %c0_182 = arith.constant 0 : index
    %c0_183 = arith.constant 0 : index
    %408 = vector.load %arg15[%c0_181, %c0_182, %c0_183] : memref<2x32x96xf32, #tpu.memory_space<vmem>>, vector<1x32x96xf32>
    %409 = vector.shape_cast %408 : vector<1x32x96xf32> to vector<32x96xf32>
    %410 = arith.truncf %405 : vector<14x32xf32> to vector<14x32xbf16>
    %411 = arith.truncf %409 : vector<32x96xf32> to vector<32x96xbf16>
    %cst_184 = arith.constant dense<0.000000e+00> : vector<14x96xf32>
    %412 = tpu.matmul %410, %411, %cst_184 {dimension_numbers = #tpu.dot_dimension_numbers<[1], [0], [0], [1], [0, 0, 1, 1], [], []>} : vector<14x32xbf16>, vector<32x96xbf16>, vector<14x96xf32> -> vector<14x96xf32>
    %c0_185 = arith.constant 0 : index
    %c0_186 = arith.constant 0 : index
    %c0_187 = arith.constant 0 : index
    %413 = vector.load %arg16[%c0_185, %c0_186, %c0_187] : memref<2x1x96xf32, #tpu.memory_space<vmem>>, vector<1x1x96xf32>
    %414 = vector.shape_cast %413 : vector<1x1x96xf32> to vector<1x96xf32>
    %415 = vector.broadcast %414 : vector<1x96xf32> to vector<14x96xf32>
    %416 = arith.addf %412, %415 : vector<14x96xf32>
    %417 = vector.extract_strided_slice %416 {offsets = [0, 0], sizes = [14, 32], strides = [1, 1]} : vector<14x96xf32> to vector<14x32xf32>
    %418 = vector.extract_strided_slice %416 {offsets = [0, 32], sizes = [14, 32], strides = [1, 1]} : vector<14x96xf32> to vector<14x32xf32>
    %419 = vector.extract_strided_slice %416 {offsets = [0, 64], sizes = [14, 32], strides = [1, 1]} : vector<14x96xf32> to vector<14x32xf32>
    %420 = vector.extract_strided_slice %417 {offsets = [0, 0], sizes = [14, 8], strides = [1, 1]} : vector<14x32xf32> to vector<14x8xf32>
    %421 = vector.extract_strided_slice %418 {offsets = [0, 0], sizes = [14, 8], strides = [1, 1]} : vector<14x32xf32> to vector<14x8xf32>
    %422 = vector.extract_strided_slice %419 {offsets = [0, 0], sizes = [14, 8], strides = [1, 1]} : vector<14x32xf32> to vector<14x8xf32>
    %423 = arith.truncf %420 : vector<14x8xf32> to vector<14x8xbf16>
    %424 = arith.truncf %421 : vector<14x8xf32> to vector<14x8xbf16>
    %cst_188 = arith.constant dense<0.000000e+00> : vector<14x14xf32>
    %425 = tpu.matmul %423, %424, %cst_188 {dimension_numbers = #tpu.dot_dimension_numbers<[1], [1], [0], [0], [0, 0, 1, 0], [], []>} : vector<14x8xbf16>, vector<14x8xbf16>, vector<14x14xf32> -> vector<14x14xf32>
    %cst_189 = arith.constant 0.353553385 : f32
    %426 = vector.broadcast %cst_189 : f32 to vector<14x14xf32>
    %427 = arith.mulf %425, %426 : vector<14x14xf32>
    %428 = arith.addf %427, %406 : vector<14x14xf32>
    %cst_190 = arith.constant dense<0xFF800000> : vector<14xf32>
    %429 = vector.multi_reduction <maximumf>, %428, %cst_190 [1] : vector<14x14xf32> to vector<14xf32>
    %430 = vector.shape_cast %429 : vector<14xf32> to vector<14x1xf32>
    %431 = vector.broadcast %430 : vector<14x1xf32> to vector<14x14xf32>
    %432 = arith.subf %428, %431 : vector<14x14xf32>
    %433 = math.exp %432 : vector<14x14xf32>
    %cst_191 = arith.constant dense<0.000000e+00> : vector<14xf32>
    %434 = vector.multi_reduction <add>, %433, %cst_191 [1] : vector<14x14xf32> to vector<14xf32>
    %435 = vector.shape_cast %434 : vector<14xf32> to vector<14x1xf32>
    %436 = tpu.reciprocal %435 {approx = true} : vector<14x1xf32> -> vector<14x1xf32>
    %437 = vector.broadcast %436 : vector<14x1xf32> to vector<14x14xf32>
    %438 = arith.mulf %433, %437 : vector<14x14xf32>
    %439 = arith.truncf %438 : vector<14x14xf32> to vector<14x14xbf16>
    %440 = arith.truncf %422 : vector<14x8xf32> to vector<14x8xbf16>
    %cst_192 = arith.constant dense<0.000000e+00> : vector<14x8xf32>
    %441 = tpu.matmul %439, %440, %cst_192 {dimension_numbers = #tpu.dot_dimension_numbers<[1], [0], [0], [1], [0, 0, 1, 1], [], []>} : vector<14x14xbf16>, vector<14x8xbf16>, vector<14x8xf32> -> vector<14x8xf32>
    %442 = vector.extract_strided_slice %417 {offsets = [0, 8], sizes = [14, 8], strides = [1, 1]} : vector<14x32xf32> to vector<14x8xf32>
    %443 = vector.extract_strided_slice %418 {offsets = [0, 8], sizes = [14, 8], strides = [1, 1]} : vector<14x32xf32> to vector<14x8xf32>
    %444 = vector.extract_strided_slice %419 {offsets = [0, 8], sizes = [14, 8], strides = [1, 1]} : vector<14x32xf32> to vector<14x8xf32>
    %445 = arith.truncf %442 : vector<14x8xf32> to vector<14x8xbf16>
    %446 = arith.truncf %443 : vector<14x8xf32> to vector<14x8xbf16>
    %cst_193 = arith.constant dense<0.000000e+00> : vector<14x14xf32>
    %447 = tpu.matmul %445, %446, %cst_193 {dimension_numbers = #tpu.dot_dimension_numbers<[1], [1], [0], [0], [0, 0, 1, 0], [], []>} : vector<14x8xbf16>, vector<14x8xbf16>, vector<14x14xf32> -> vector<14x14xf32>
    %cst_194 = arith.constant 0.353553385 : f32
    %448 = vector.broadcast %cst_194 : f32 to vector<14x14xf32>
    %449 = arith.mulf %447, %448 : vector<14x14xf32>
    %450 = arith.addf %449, %406 : vector<14x14xf32>
    %cst_195 = arith.constant dense<0xFF800000> : vector<14xf32>
    %451 = vector.multi_reduction <maximumf>, %450, %cst_195 [1] : vector<14x14xf32> to vector<14xf32>
    %452 = vector.shape_cast %451 : vector<14xf32> to vector<14x1xf32>
    %453 = vector.broadcast %452 : vector<14x1xf32> to vector<14x14xf32>
    %454 = arith.subf %450, %453 : vector<14x14xf32>
    %455 = math.exp %454 : vector<14x14xf32>
    %cst_196 = arith.constant dense<0.000000e+00> : vector<14xf32>
    %456 = vector.multi_reduction <add>, %455, %cst_196 [1] : vector<14x14xf32> to vector<14xf32>
    %457 = vector.shape_cast %456 : vector<14xf32> to vector<14x1xf32>
    %458 = tpu.reciprocal %457 {approx = true} : vector<14x1xf32> -> vector<14x1xf32>
    %459 = vector.broadcast %458 : vector<14x1xf32> to vector<14x14xf32>
    %460 = arith.mulf %455, %459 : vector<14x14xf32>
    %461 = arith.truncf %460 : vector<14x14xf32> to vector<14x14xbf16>
    %462 = arith.truncf %444 : vector<14x8xf32> to vector<14x8xbf16>
    %cst_197 = arith.constant dense<0.000000e+00> : vector<14x8xf32>
    %463 = tpu.matmul %461, %462, %cst_197 {dimension_numbers = #tpu.dot_dimension_numbers<[1], [0], [0], [1], [0, 0, 1, 1], [], []>} : vector<14x14xbf16>, vector<14x8xbf16>, vector<14x8xf32> -> vector<14x8xf32>
    %464 = vector.extract_strided_slice %417 {offsets = [0, 16], sizes = [14, 8], strides = [1, 1]} : vector<14x32xf32> to vector<14x8xf32>
    %465 = vector.extract_strided_slice %418 {offsets = [0, 16], sizes = [14, 8], strides = [1, 1]} : vector<14x32xf32> to vector<14x8xf32>
    %466 = vector.extract_strided_slice %419 {offsets = [0, 16], sizes = [14, 8], strides = [1, 1]} : vector<14x32xf32> to vector<14x8xf32>
    %467 = arith.truncf %464 : vector<14x8xf32> to vector<14x8xbf16>
    %468 = arith.truncf %465 : vector<14x8xf32> to vector<14x8xbf16>
    %cst_198 = arith.constant dense<0.000000e+00> : vector<14x14xf32>
    %469 = tpu.matmul %467, %468, %cst_198 {dimension_numbers = #tpu.dot_dimension_numbers<[1], [1], [0], [0], [0, 0, 1, 0], [], []>} : vector<14x8xbf16>, vector<14x8xbf16>, vector<14x14xf32> -> vector<14x14xf32>
    %cst_199 = arith.constant 0.353553385 : f32
    %470 = vector.broadcast %cst_199 : f32 to vector<14x14xf32>
    %471 = arith.mulf %469, %470 : vector<14x14xf32>
    %472 = arith.addf %471, %406 : vector<14x14xf32>
    %cst_200 = arith.constant dense<0xFF800000> : vector<14xf32>
    %473 = vector.multi_reduction <maximumf>, %472, %cst_200 [1] : vector<14x14xf32> to vector<14xf32>
    %474 = vector.shape_cast %473 : vector<14xf32> to vector<14x1xf32>
    %475 = vector.broadcast %474 : vector<14x1xf32> to vector<14x14xf32>
    %476 = arith.subf %472, %475 : vector<14x14xf32>
    %477 = math.exp %476 : vector<14x14xf32>
    %cst_201 = arith.constant dense<0.000000e+00> : vector<14xf32>
    %478 = vector.multi_reduction <add>, %477, %cst_201 [1] : vector<14x14xf32> to vector<14xf32>
    %479 = vector.shape_cast %478 : vector<14xf32> to vector<14x1xf32>
    %480 = tpu.reciprocal %479 {approx = true} : vector<14x1xf32> -> vector<14x1xf32>
    %481 = vector.broadcast %480 : vector<14x1xf32> to vector<14x14xf32>
    %482 = arith.mulf %477, %481 : vector<14x14xf32>
    %483 = arith.truncf %482 : vector<14x14xf32> to vector<14x14xbf16>
    %484 = arith.truncf %466 : vector<14x8xf32> to vector<14x8xbf16>
    %cst_202 = arith.constant dense<0.000000e+00> : vector<14x8xf32>
    %485 = tpu.matmul %483, %484, %cst_202 {dimension_numbers = #tpu.dot_dimension_numbers<[1], [0], [0], [1], [0, 0, 1, 1], [], []>} : vector<14x14xbf16>, vector<14x8xbf16>, vector<14x8xf32> -> vector<14x8xf32>
    %486 = vector.extract_strided_slice %417 {offsets = [0, 24], sizes = [14, 8], strides = [1, 1]} : vector<14x32xf32> to vector<14x8xf32>
    %487 = vector.extract_strided_slice %418 {offsets = [0, 24], sizes = [14, 8], strides = [1, 1]} : vector<14x32xf32> to vector<14x8xf32>
    %488 = vector.extract_strided_slice %419 {offsets = [0, 24], sizes = [14, 8], strides = [1, 1]} : vector<14x32xf32> to vector<14x8xf32>
    %489 = arith.truncf %486 : vector<14x8xf32> to vector<14x8xbf16>
    %490 = arith.truncf %487 : vector<14x8xf32> to vector<14x8xbf16>
    %cst_203 = arith.constant dense<0.000000e+00> : vector<14x14xf32>
    %491 = tpu.matmul %489, %490, %cst_203 {dimension_numbers = #tpu.dot_dimension_numbers<[1], [1], [0], [0], [0, 0, 1, 0], [], []>} : vector<14x8xbf16>, vector<14x8xbf16>, vector<14x14xf32> -> vector<14x14xf32>
    %cst_204 = arith.constant 0.353553385 : f32
    %492 = vector.broadcast %cst_204 : f32 to vector<14x14xf32>
    %493 = arith.mulf %491, %492 : vector<14x14xf32>
    %494 = arith.addf %493, %406 : vector<14x14xf32>
    %cst_205 = arith.constant dense<0xFF800000> : vector<14xf32>
    %495 = vector.multi_reduction <maximumf>, %494, %cst_205 [1] : vector<14x14xf32> to vector<14xf32>
    %496 = vector.shape_cast %495 : vector<14xf32> to vector<14x1xf32>
    %497 = vector.broadcast %496 : vector<14x1xf32> to vector<14x14xf32>
    %498 = arith.subf %494, %497 : vector<14x14xf32>
    %499 = math.exp %498 : vector<14x14xf32>
    %cst_206 = arith.constant dense<0.000000e+00> : vector<14xf32>
    %500 = vector.multi_reduction <add>, %499, %cst_206 [1] : vector<14x14xf32> to vector<14xf32>
    %501 = vector.shape_cast %500 : vector<14xf32> to vector<14x1xf32>
    %502 = tpu.reciprocal %501 {approx = true} : vector<14x1xf32> -> vector<14x1xf32>
    %503 = vector.broadcast %502 : vector<14x1xf32> to vector<14x14xf32>
    %504 = arith.mulf %499, %503 : vector<14x14xf32>
    %505 = arith.truncf %504 : vector<14x14xf32> to vector<14x14xbf16>
    %506 = arith.truncf %488 : vector<14x8xf32> to vector<14x8xbf16>
    %cst_207 = arith.constant dense<0.000000e+00> : vector<14x8xf32>
    %507 = tpu.matmul %505, %506, %cst_207 {dimension_numbers = #tpu.dot_dimension_numbers<[1], [0], [0], [1], [0, 0, 1, 1], [], []>} : vector<14x14xbf16>, vector<14x8xbf16>, vector<14x8xf32> -> vector<14x8xf32>
    %508 = tpu.concatenate %441, %463, %485, %507 in 1 : vector<14x8xf32>, vector<14x8xf32>, vector<14x8xf32>, vector<14x8xf32> -> vector<14x32xf32>
    %c0_208 = arith.constant 0 : index
    %c0_209 = arith.constant 0 : index
    %c0_210 = arith.constant 0 : index
    %509 = vector.load %arg21[%c0_208, %c0_209, %c0_210] : memref<4x32x32xf32, #tpu.memory_space<vmem>>, vector<1x32x32xf32>
    %510 = vector.shape_cast %509 : vector<1x32x32xf32> to vector<32x32xf32>
    %511 = arith.truncf %508 : vector<14x32xf32> to vector<14x32xbf16>
    %512 = arith.truncf %510 : vector<32x32xf32> to vector<32x32xbf16>
    %cst_211 = arith.constant dense<0.000000e+00> : vector<14x32xf32>
    %513 = tpu.matmul %511, %512, %cst_211 {dimension_numbers = #tpu.dot_dimension_numbers<[1], [0], [0], [1], [0, 0, 1, 1], [], []>} : vector<14x32xbf16>, vector<32x32xbf16>, vector<14x32xf32> -> vector<14x32xf32>
    %c0_212 = arith.constant 0 : index
    %c0_213 = arith.constant 0 : index
    %c0_214 = arith.constant 0 : index
    %514 = vector.load %arg22[%c0_212, %c0_213, %c0_214] : memref<4x1x32xf32, #tpu.memory_space<vmem>>, vector<1x1x32xf32>
    %515 = vector.shape_cast %514 : vector<1x1x32xf32> to vector<1x32xf32>
    %516 = vector.broadcast %515 : vector<1x32xf32> to vector<14x32xf32>
    %517 = arith.addf %513, %516 : vector<14x32xf32>
    %518 = arith.addf %405, %517 : vector<14x32xf32>
    %cst_215 = arith.constant dense<0.000000e+00> : vector<14xf32>
    %519 = vector.multi_reduction <add>, %518, %cst_215 [1] : vector<14x32xf32> to vector<14xf32>
    %520 = vector.shape_cast %519 : vector<14xf32> to vector<14x1xf32>
    %cst_216 = arith.constant 3.200000e+01 : f32
    %521 = vector.broadcast %cst_216 : f32 to vector<14x1xf32>
    %522 = arith.divf %520, %521 : vector<14x1xf32>
    %523 = arith.mulf %518, %518 : vector<14x32xf32>
    %cst_217 = arith.constant dense<0.000000e+00> : vector<14xf32>
    %524 = vector.multi_reduction <add>, %523, %cst_217 [1] : vector<14x32xf32> to vector<14xf32>
    %525 = vector.shape_cast %524 : vector<14xf32> to vector<14x1xf32>
    %cst_218 = arith.constant 3.200000e+01 : f32
    %526 = vector.broadcast %cst_218 : f32 to vector<14x1xf32>
    %527 = arith.divf %525, %526 : vector<14x1xf32>
    %528 = arith.mulf %522, %522 : vector<14x1xf32>
    %529 = arith.subf %527, %528 : vector<14x1xf32>
    %530 = vector.broadcast %522 : vector<14x1xf32> to vector<14x32xf32>
    %531 = arith.subf %518, %530 : vector<14x32xf32>
    %cst_219 = arith.constant 9.99999974E-6 : f32
    %532 = vector.broadcast %cst_219 : f32 to vector<14x1xf32>
    %533 = arith.addf %529, %532 : vector<14x1xf32>
    %534 = math.rsqrt %533 : vector<14x1xf32>
    %535 = vector.broadcast %534 : vector<14x1xf32> to vector<14x32xf32>
    %536 = arith.mulf %531, %535 : vector<14x32xf32>
    %c0_220 = arith.constant 0 : index
    %c0_221 = arith.constant 0 : index
    %c0_222 = arith.constant 0 : index
    %537 = vector.load %arg23[%c0_220, %c0_221, %c0_222] : memref<6x1x32xf32, #tpu.memory_space<vmem>>, vector<1x1x32xf32>
    %538 = vector.shape_cast %537 : vector<1x1x32xf32> to vector<1x32xf32>
    %539 = vector.broadcast %538 : vector<1x32xf32> to vector<14x32xf32>
    %540 = arith.mulf %536, %539 : vector<14x32xf32>
    %c0_223 = arith.constant 0 : index
    %c0_224 = arith.constant 0 : index
    %c0_225 = arith.constant 0 : index
    %541 = vector.load %arg24[%c0_223, %c0_224, %c0_225] : memref<6x1x32xf32, #tpu.memory_space<vmem>>, vector<1x1x32xf32>
    %542 = vector.shape_cast %541 : vector<1x1x32xf32> to vector<1x32xf32>
    %543 = vector.broadcast %542 : vector<1x32xf32> to vector<14x32xf32>
    %544 = arith.addf %540, %543 : vector<14x32xf32>
    %c0_226 = arith.constant 0 : index
    %c0_227 = arith.constant 0 : index
    %c0_228 = arith.constant 0 : index
    %545 = vector.load %arg17[%c0_226, %c0_227, %c0_228] : memref<2x32x32xf32, #tpu.memory_space<vmem>>, vector<1x32x32xf32>
    %546 = vector.shape_cast %545 : vector<1x32x32xf32> to vector<32x32xf32>
    %547 = arith.truncf %544 : vector<14x32xf32> to vector<14x32xbf16>
    %548 = arith.truncf %546 : vector<32x32xf32> to vector<32x32xbf16>
    %cst_229 = arith.constant dense<0.000000e+00> : vector<14x32xf32>
    %549 = tpu.matmul %547, %548, %cst_229 {dimension_numbers = #tpu.dot_dimension_numbers<[1], [0], [0], [1], [0, 0, 1, 1], [], []>} : vector<14x32xbf16>, vector<32x32xbf16>, vector<14x32xf32> -> vector<14x32xf32>
    %c0_230 = arith.constant 0 : index
    %c0_231 = arith.constant 0 : index
    %c0_232 = arith.constant 0 : index
    %550 = vector.load %arg18[%c0_230, %c0_231, %c0_232] : memref<2x1x32xf32, #tpu.memory_space<vmem>>, vector<1x1x32xf32>
    %551 = vector.shape_cast %550 : vector<1x1x32xf32> to vector<1x32xf32>
    %552 = vector.broadcast %551 : vector<1x32xf32> to vector<14x32xf32>
    %553 = arith.addf %549, %552 : vector<14x32xf32>
    %c0_233 = arith.constant 0 : index
    %c0_234 = arith.constant 0 : index
    %c0_235 = arith.constant 0 : index
    %554 = vector.load %arg19[%c0_233, %c0_234, %c0_235] : memref<2x32x64xf32, #tpu.memory_space<vmem>>, vector<1x32x64xf32>
    %555 = vector.shape_cast %554 : vector<1x32x64xf32> to vector<32x64xf32>
    %556 = arith.truncf %395 : vector<32x32xf32> to vector<32x32xbf16>
    %557 = arith.truncf %555 : vector<32x64xf32> to vector<32x64xbf16>
    %cst_236 = arith.constant dense<0.000000e+00> : vector<32x64xf32>
    %558 = tpu.matmul %556, %557, %cst_236 {dimension_numbers = #tpu.dot_dimension_numbers<[1], [0], [0], [1], [0, 0, 1, 1], [], []>} : vector<32x32xbf16>, vector<32x64xbf16>, vector<32x64xf32> -> vector<32x64xf32>
    %c0_237 = arith.constant 0 : index
    %c0_238 = arith.constant 0 : index
    %c0_239 = arith.constant 0 : index
    %559 = vector.load %arg20[%c0_237, %c0_238, %c0_239] : memref<2x1x64xf32, #tpu.memory_space<vmem>>, vector<1x1x64xf32>
    %560 = vector.shape_cast %559 : vector<1x1x64xf32> to vector<1x64xf32>
    %561 = vector.broadcast %560 : vector<1x64xf32> to vector<32x64xf32>
    %562 = arith.addf %558, %561 : vector<32x64xf32>
    %563 = vector.extract_strided_slice %562 {offsets = [0, 0], sizes = [32, 32], strides = [1, 1]} : vector<32x64xf32> to vector<32x32xf32>
    %564 = vector.extract_strided_slice %562 {offsets = [0, 32], sizes = [32, 32], strides = [1, 1]} : vector<32x64xf32> to vector<32x32xf32>
    %565 = vector.extract_strided_slice %553 {offsets = [0, 0], sizes = [14, 8], strides = [1, 1]} : vector<14x32xf32> to vector<14x8xf32>
    %566 = vector.extract_strided_slice %563 {offsets = [0, 0], sizes = [32, 8], strides = [1, 1]} : vector<32x32xf32> to vector<32x8xf32>
    %567 = vector.extract_strided_slice %564 {offsets = [0, 0], sizes = [32, 8], strides = [1, 1]} : vector<32x32xf32> to vector<32x8xf32>
    %568 = arith.truncf %565 : vector<14x8xf32> to vector<14x8xbf16>
    %569 = arith.truncf %566 : vector<32x8xf32> to vector<32x8xbf16>
    %cst_240 = arith.constant dense<0.000000e+00> : vector<14x32xf32>
    %570 = tpu.matmul %568, %569, %cst_240 {dimension_numbers = #tpu.dot_dimension_numbers<[1], [1], [0], [0], [0, 0, 1, 0], [], []>} : vector<14x8xbf16>, vector<32x8xbf16>, vector<14x32xf32> -> vector<14x32xf32>
    %cst_241 = arith.constant 0.353553385 : f32
    %571 = vector.broadcast %cst_241 : f32 to vector<14x32xf32>
    %572 = arith.mulf %570, %571 : vector<14x32xf32>
    %573 = arith.addf %572, %407 : vector<14x32xf32>
    %cst_242 = arith.constant dense<0xFF800000> : vector<14xf32>
    %574 = vector.multi_reduction <maximumf>, %573, %cst_242 [1] : vector<14x32xf32> to vector<14xf32>
    %575 = vector.shape_cast %574 : vector<14xf32> to vector<14x1xf32>
    %576 = vector.broadcast %575 : vector<14x1xf32> to vector<14x32xf32>
    %577 = arith.subf %573, %576 : vector<14x32xf32>
    %578 = math.exp %577 : vector<14x32xf32>
    %cst_243 = arith.constant dense<0.000000e+00> : vector<14xf32>
    %579 = vector.multi_reduction <add>, %578, %cst_243 [1] : vector<14x32xf32> to vector<14xf32>
    %580 = vector.shape_cast %579 : vector<14xf32> to vector<14x1xf32>
    %581 = tpu.reciprocal %580 {approx = true} : vector<14x1xf32> -> vector<14x1xf32>
    %582 = vector.broadcast %581 : vector<14x1xf32> to vector<14x32xf32>
    %583 = arith.mulf %578, %582 : vector<14x32xf32>
    %584 = arith.truncf %583 : vector<14x32xf32> to vector<14x32xbf16>
    %585 = arith.truncf %567 : vector<32x8xf32> to vector<32x8xbf16>
    %cst_244 = arith.constant dense<0.000000e+00> : vector<14x8xf32>
    %586 = tpu.matmul %584, %585, %cst_244 {dimension_numbers = #tpu.dot_dimension_numbers<[1], [0], [0], [1], [0, 0, 1, 1], [], []>} : vector<14x32xbf16>, vector<32x8xbf16>, vector<14x8xf32> -> vector<14x8xf32>
    %587 = vector.extract_strided_slice %553 {offsets = [0, 8], sizes = [14, 8], strides = [1, 1]} : vector<14x32xf32> to vector<14x8xf32>
    %588 = vector.extract_strided_slice %563 {offsets = [0, 8], sizes = [32, 8], strides = [1, 1]} : vector<32x32xf32> to vector<32x8xf32>
    %589 = vector.extract_strided_slice %564 {offsets = [0, 8], sizes = [32, 8], strides = [1, 1]} : vector<32x32xf32> to vector<32x8xf32>
    %590 = arith.truncf %587 : vector<14x8xf32> to vector<14x8xbf16>
    %591 = arith.truncf %588 : vector<32x8xf32> to vector<32x8xbf16>
    %cst_245 = arith.constant dense<0.000000e+00> : vector<14x32xf32>
    %592 = tpu.matmul %590, %591, %cst_245 {dimension_numbers = #tpu.dot_dimension_numbers<[1], [1], [0], [0], [0, 0, 1, 0], [], []>} : vector<14x8xbf16>, vector<32x8xbf16>, vector<14x32xf32> -> vector<14x32xf32>
    %cst_246 = arith.constant 0.353553385 : f32
    %593 = vector.broadcast %cst_246 : f32 to vector<14x32xf32>
    %594 = arith.mulf %592, %593 : vector<14x32xf32>
    %595 = arith.addf %594, %407 : vector<14x32xf32>
    %cst_247 = arith.constant dense<0xFF800000> : vector<14xf32>
    %596 = vector.multi_reduction <maximumf>, %595, %cst_247 [1] : vector<14x32xf32> to vector<14xf32>
    %597 = vector.shape_cast %596 : vector<14xf32> to vector<14x1xf32>
    %598 = vector.broadcast %597 : vector<14x1xf32> to vector<14x32xf32>
    %599 = arith.subf %595, %598 : vector<14x32xf32>
    %600 = math.exp %599 : vector<14x32xf32>
    %cst_248 = arith.constant dense<0.000000e+00> : vector<14xf32>
    %601 = vector.multi_reduction <add>, %600, %cst_248 [1] : vector<14x32xf32> to vector<14xf32>
    %602 = vector.shape_cast %601 : vector<14xf32> to vector<14x1xf32>
    %603 = tpu.reciprocal %602 {approx = true} : vector<14x1xf32> -> vector<14x1xf32>
    %604 = vector.broadcast %603 : vector<14x1xf32> to vector<14x32xf32>
    %605 = arith.mulf %600, %604 : vector<14x32xf32>
    %606 = arith.truncf %605 : vector<14x32xf32> to vector<14x32xbf16>
    %607 = arith.truncf %589 : vector<32x8xf32> to vector<32x8xbf16>
    %cst_249 = arith.constant dense<0.000000e+00> : vector<14x8xf32>
    %608 = tpu.matmul %606, %607, %cst_249 {dimension_numbers = #tpu.dot_dimension_numbers<[1], [0], [0], [1], [0, 0, 1, 1], [], []>} : vector<14x32xbf16>, vector<32x8xbf16>, vector<14x8xf32> -> vector<14x8xf32>
    %609 = vector.extract_strided_slice %553 {offsets = [0, 16], sizes = [14, 8], strides = [1, 1]} : vector<14x32xf32> to vector<14x8xf32>
    %610 = vector.extract_strided_slice %563 {offsets = [0, 16], sizes = [32, 8], strides = [1, 1]} : vector<32x32xf32> to vector<32x8xf32>
    %611 = vector.extract_strided_slice %564 {offsets = [0, 16], sizes = [32, 8], strides = [1, 1]} : vector<32x32xf32> to vector<32x8xf32>
    %612 = arith.truncf %609 : vector<14x8xf32> to vector<14x8xbf16>
    %613 = arith.truncf %610 : vector<32x8xf32> to vector<32x8xbf16>
    %cst_250 = arith.constant dense<0.000000e+00> : vector<14x32xf32>
    %614 = tpu.matmul %612, %613, %cst_250 {dimension_numbers = #tpu.dot_dimension_numbers<[1], [1], [0], [0], [0, 0, 1, 0], [], []>} : vector<14x8xbf16>, vector<32x8xbf16>, vector<14x32xf32> -> vector<14x32xf32>
    %cst_251 = arith.constant 0.353553385 : f32
    %615 = vector.broadcast %cst_251 : f32 to vector<14x32xf32>
    %616 = arith.mulf %614, %615 : vector<14x32xf32>
    %617 = arith.addf %616, %407 : vector<14x32xf32>
    %cst_252 = arith.constant dense<0xFF800000> : vector<14xf32>
    %618 = vector.multi_reduction <maximumf>, %617, %cst_252 [1] : vector<14x32xf32> to vector<14xf32>
    %619 = vector.shape_cast %618 : vector<14xf32> to vector<14x1xf32>
    %620 = vector.broadcast %619 : vector<14x1xf32> to vector<14x32xf32>
    %621 = arith.subf %617, %620 : vector<14x32xf32>
    %622 = math.exp %621 : vector<14x32xf32>
    %cst_253 = arith.constant dense<0.000000e+00> : vector<14xf32>
    %623 = vector.multi_reduction <add>, %622, %cst_253 [1] : vector<14x32xf32> to vector<14xf32>
    %624 = vector.shape_cast %623 : vector<14xf32> to vector<14x1xf32>
    %625 = tpu.reciprocal %624 {approx = true} : vector<14x1xf32> -> vector<14x1xf32>
    %626 = vector.broadcast %625 : vector<14x1xf32> to vector<14x32xf32>
    %627 = arith.mulf %622, %626 : vector<14x32xf32>
    %628 = arith.truncf %627 : vector<14x32xf32> to vector<14x32xbf16>
    %629 = arith.truncf %611 : vector<32x8xf32> to vector<32x8xbf16>
    %cst_254 = arith.constant dense<0.000000e+00> : vector<14x8xf32>
    %630 = tpu.matmul %628, %629, %cst_254 {dimension_numbers = #tpu.dot_dimension_numbers<[1], [0], [0], [1], [0, 0, 1, 1], [], []>} : vector<14x32xbf16>, vector<32x8xbf16>, vector<14x8xf32> -> vector<14x8xf32>
    %631 = vector.extract_strided_slice %553 {offsets = [0, 24], sizes = [14, 8], strides = [1, 1]} : vector<14x32xf32> to vector<14x8xf32>
    %632 = vector.extract_strided_slice %563 {offsets = [0, 24], sizes = [32, 8], strides = [1, 1]} : vector<32x32xf32> to vector<32x8xf32>
    %633 = vector.extract_strided_slice %564 {offsets = [0, 24], sizes = [32, 8], strides = [1, 1]} : vector<32x32xf32> to vector<32x8xf32>
    %634 = arith.truncf %631 : vector<14x8xf32> to vector<14x8xbf16>
    %635 = arith.truncf %632 : vector<32x8xf32> to vector<32x8xbf16>
    %cst_255 = arith.constant dense<0.000000e+00> : vector<14x32xf32>
    %636 = tpu.matmul %634, %635, %cst_255 {dimension_numbers = #tpu.dot_dimension_numbers<[1], [1], [0], [0], [0, 0, 1, 0], [], []>} : vector<14x8xbf16>, vector<32x8xbf16>, vector<14x32xf32> -> vector<14x32xf32>
    %cst_256 = arith.constant 0.353553385 : f32
    %637 = vector.broadcast %cst_256 : f32 to vector<14x32xf32>
    %638 = arith.mulf %636, %637 : vector<14x32xf32>
    %639 = arith.addf %638, %407 : vector<14x32xf32>
    %cst_257 = arith.constant dense<0xFF800000> : vector<14xf32>
    %640 = vector.multi_reduction <maximumf>, %639, %cst_257 [1] : vector<14x32xf32> to vector<14xf32>
    %641 = vector.shape_cast %640 : vector<14xf32> to vector<14x1xf32>
    %642 = vector.broadcast %641 : vector<14x1xf32> to vector<14x32xf32>
    %643 = arith.subf %639, %642 : vector<14x32xf32>
    %644 = math.exp %643 : vector<14x32xf32>
    %cst_258 = arith.constant dense<0.000000e+00> : vector<14xf32>
    %645 = vector.multi_reduction <add>, %644, %cst_258 [1] : vector<14x32xf32> to vector<14xf32>
    %646 = vector.shape_cast %645 : vector<14xf32> to vector<14x1xf32>
    %647 = tpu.reciprocal %646 {approx = true} : vector<14x1xf32> -> vector<14x1xf32>
    %648 = vector.broadcast %647 : vector<14x1xf32> to vector<14x32xf32>
    %649 = arith.mulf %644, %648 : vector<14x32xf32>
    %650 = arith.truncf %649 : vector<14x32xf32> to vector<14x32xbf16>
    %651 = arith.truncf %633 : vector<32x8xf32> to vector<32x8xbf16>
    %cst_259 = arith.constant dense<0.000000e+00> : vector<14x8xf32>
    %652 = tpu.matmul %650, %651, %cst_259 {dimension_numbers = #tpu.dot_dimension_numbers<[1], [0], [0], [1], [0, 0, 1, 1], [], []>} : vector<14x32xbf16>, vector<32x8xbf16>, vector<14x8xf32> -> vector<14x8xf32>
    %653 = tpu.concatenate %586, %608, %630, %652 in 1 : vector<14x8xf32>, vector<14x8xf32>, vector<14x8xf32>, vector<14x8xf32> -> vector<14x32xf32>
    %c1_260 = arith.constant 1 : index
    %c0_261 = arith.constant 0 : index
    %c0_262 = arith.constant 0 : index
    %654 = vector.load %arg21[%c1_260, %c0_261, %c0_262] : memref<4x32x32xf32, #tpu.memory_space<vmem>>, vector<1x32x32xf32>
    %655 = vector.shape_cast %654 : vector<1x32x32xf32> to vector<32x32xf32>
    %656 = arith.truncf %653 : vector<14x32xf32> to vector<14x32xbf16>
    %657 = arith.truncf %655 : vector<32x32xf32> to vector<32x32xbf16>
    %cst_263 = arith.constant dense<0.000000e+00> : vector<14x32xf32>
    %658 = tpu.matmul %656, %657, %cst_263 {dimension_numbers = #tpu.dot_dimension_numbers<[1], [0], [0], [1], [0, 0, 1, 1], [], []>} : vector<14x32xbf16>, vector<32x32xbf16>, vector<14x32xf32> -> vector<14x32xf32>
    %c1_264 = arith.constant 1 : index
    %c0_265 = arith.constant 0 : index
    %c0_266 = arith.constant 0 : index
    %659 = vector.load %arg22[%c1_264, %c0_265, %c0_266] : memref<4x1x32xf32, #tpu.memory_space<vmem>>, vector<1x1x32xf32>
    %660 = vector.shape_cast %659 : vector<1x1x32xf32> to vector<1x32xf32>
    %661 = vector.broadcast %660 : vector<1x32xf32> to vector<14x32xf32>
    %662 = arith.addf %658, %661 : vector<14x32xf32>
    %663 = arith.addf %544, %662 : vector<14x32xf32>
    %cst_267 = arith.constant dense<0.000000e+00> : vector<14xf32>
    %664 = vector.multi_reduction <add>, %663, %cst_267 [1] : vector<14x32xf32> to vector<14xf32>
    %665 = vector.shape_cast %664 : vector<14xf32> to vector<14x1xf32>
    %cst_268 = arith.constant 3.200000e+01 : f32
    %666 = vector.broadcast %cst_268 : f32 to vector<14x1xf32>
    %667 = arith.divf %665, %666 : vector<14x1xf32>
    %668 = arith.mulf %663, %663 : vector<14x32xf32>
    %cst_269 = arith.constant dense<0.000000e+00> : vector<14xf32>
    %669 = vector.multi_reduction <add>, %668, %cst_269 [1] : vector<14x32xf32> to vector<14xf32>
    %670 = vector.shape_cast %669 : vector<14xf32> to vector<14x1xf32>
    %cst_270 = arith.constant 3.200000e+01 : f32
    %671 = vector.broadcast %cst_270 : f32 to vector<14x1xf32>
    %672 = arith.divf %670, %671 : vector<14x1xf32>
    %673 = arith.mulf %667, %667 : vector<14x1xf32>
    %674 = arith.subf %672, %673 : vector<14x1xf32>
    %675 = vector.broadcast %667 : vector<14x1xf32> to vector<14x32xf32>
    %676 = arith.subf %663, %675 : vector<14x32xf32>
    %cst_271 = arith.constant 9.99999974E-6 : f32
    %677 = vector.broadcast %cst_271 : f32 to vector<14x1xf32>
    %678 = arith.addf %674, %677 : vector<14x1xf32>
    %679 = math.rsqrt %678 : vector<14x1xf32>
    %680 = vector.broadcast %679 : vector<14x1xf32> to vector<14x32xf32>
    %681 = arith.mulf %676, %680 : vector<14x32xf32>
    %c1_272 = arith.constant 1 : index
    %c0_273 = arith.constant 0 : index
    %c0_274 = arith.constant 0 : index
    %682 = vector.load %arg23[%c1_272, %c0_273, %c0_274] : memref<6x1x32xf32, #tpu.memory_space<vmem>>, vector<1x1x32xf32>
    %683 = vector.shape_cast %682 : vector<1x1x32xf32> to vector<1x32xf32>
    %684 = vector.broadcast %683 : vector<1x32xf32> to vector<14x32xf32>
    %685 = arith.mulf %681, %684 : vector<14x32xf32>
    %c1_275 = arith.constant 1 : index
    %c0_276 = arith.constant 0 : index
    %c0_277 = arith.constant 0 : index
    %686 = vector.load %arg24[%c1_275, %c0_276, %c0_277] : memref<6x1x32xf32, #tpu.memory_space<vmem>>, vector<1x1x32xf32>
    %687 = vector.shape_cast %686 : vector<1x1x32xf32> to vector<1x32xf32>
    %688 = vector.broadcast %687 : vector<1x32xf32> to vector<14x32xf32>
    %689 = arith.addf %685, %688 : vector<14x32xf32>
    %c0_278 = arith.constant 0 : index
    %c0_279 = arith.constant 0 : index
    %c0_280 = arith.constant 0 : index
    %690 = vector.load %arg25[%c0_278, %c0_279, %c0_280] : memref<2x32x64xf32, #tpu.memory_space<vmem>>, vector<1x32x64xf32>
    %691 = vector.shape_cast %690 : vector<1x32x64xf32> to vector<32x64xf32>
    %692 = arith.truncf %689 : vector<14x32xf32> to vector<14x32xbf16>
    %693 = arith.truncf %691 : vector<32x64xf32> to vector<32x64xbf16>
    %cst_281 = arith.constant dense<0.000000e+00> : vector<14x64xf32>
    %694 = tpu.matmul %692, %693, %cst_281 {dimension_numbers = #tpu.dot_dimension_numbers<[1], [0], [0], [1], [0, 0, 1, 1], [], []>} : vector<14x32xbf16>, vector<32x64xbf16>, vector<14x64xf32> -> vector<14x64xf32>
    %c0_282 = arith.constant 0 : index
    %c0_283 = arith.constant 0 : index
    %c0_284 = arith.constant 0 : index
    %695 = vector.load %arg26[%c0_282, %c0_283, %c0_284] : memref<2x1x64xf32, #tpu.memory_space<vmem>>, vector<1x1x64xf32>
    %696 = vector.shape_cast %695 : vector<1x1x64xf32> to vector<1x64xf32>
    %697 = vector.broadcast %696 : vector<1x64xf32> to vector<14x64xf32>
    %698 = arith.addf %694, %697 : vector<14x64xf32>
    %cst_285 = arith.constant 0.000000e+00 : f32
    %699 = vector.broadcast %cst_285 : f32 to vector<14x64xf32>
    %700 = arith.maximumf %698, %699 : vector<14x64xf32>
    %c0_286 = arith.constant 0 : index
    %c0_287 = arith.constant 0 : index
    %c0_288 = arith.constant 0 : index
    %701 = vector.load %arg27[%c0_286, %c0_287, %c0_288] : memref<2x64x32xf32, #tpu.memory_space<vmem>>, vector<1x64x32xf32>
    %702 = vector.shape_cast %701 : vector<1x64x32xf32> to vector<64x32xf32>
    %703 = arith.truncf %700 : vector<14x64xf32> to vector<14x64xbf16>
    %704 = arith.truncf %702 : vector<64x32xf32> to vector<64x32xbf16>
    %cst_289 = arith.constant dense<0.000000e+00> : vector<14x32xf32>
    %705 = tpu.matmul %703, %704, %cst_289 {dimension_numbers = #tpu.dot_dimension_numbers<[1], [0], [0], [1], [0, 0, 1, 1], [], []>} : vector<14x64xbf16>, vector<64x32xbf16>, vector<14x32xf32> -> vector<14x32xf32>
    %c0_290 = arith.constant 0 : index
    %c0_291 = arith.constant 0 : index
    %c0_292 = arith.constant 0 : index
    %706 = vector.load %arg28[%c0_290, %c0_291, %c0_292] : memref<2x1x32xf32, #tpu.memory_space<vmem>>, vector<1x1x32xf32>
    %707 = vector.shape_cast %706 : vector<1x1x32xf32> to vector<1x32xf32>
    %708 = vector.broadcast %707 : vector<1x32xf32> to vector<14x32xf32>
    %709 = arith.addf %705, %708 : vector<14x32xf32>
    %710 = arith.addf %689, %709 : vector<14x32xf32>
    %cst_293 = arith.constant dense<0.000000e+00> : vector<14xf32>
    %711 = vector.multi_reduction <add>, %710, %cst_293 [1] : vector<14x32xf32> to vector<14xf32>
    %712 = vector.shape_cast %711 : vector<14xf32> to vector<14x1xf32>
    %cst_294 = arith.constant 3.200000e+01 : f32
    %713 = vector.broadcast %cst_294 : f32 to vector<14x1xf32>
    %714 = arith.divf %712, %713 : vector<14x1xf32>
    %715 = arith.mulf %710, %710 : vector<14x32xf32>
    %cst_295 = arith.constant dense<0.000000e+00> : vector<14xf32>
    %716 = vector.multi_reduction <add>, %715, %cst_295 [1] : vector<14x32xf32> to vector<14xf32>
    %717 = vector.shape_cast %716 : vector<14xf32> to vector<14x1xf32>
    %cst_296 = arith.constant 3.200000e+01 : f32
    %718 = vector.broadcast %cst_296 : f32 to vector<14x1xf32>
    %719 = arith.divf %717, %718 : vector<14x1xf32>
    %720 = arith.mulf %714, %714 : vector<14x1xf32>
    %721 = arith.subf %719, %720 : vector<14x1xf32>
    %722 = vector.broadcast %714 : vector<14x1xf32> to vector<14x32xf32>
    %723 = arith.subf %710, %722 : vector<14x32xf32>
    %cst_297 = arith.constant 9.99999974E-6 : f32
    %724 = vector.broadcast %cst_297 : f32 to vector<14x1xf32>
    %725 = arith.addf %721, %724 : vector<14x1xf32>
    %726 = math.rsqrt %725 : vector<14x1xf32>
    %727 = vector.broadcast %726 : vector<14x1xf32> to vector<14x32xf32>
    %728 = arith.mulf %723, %727 : vector<14x32xf32>
    %c2_298 = arith.constant 2 : index
    %c0_299 = arith.constant 0 : index
    %c0_300 = arith.constant 0 : index
    %729 = vector.load %arg23[%c2_298, %c0_299, %c0_300] : memref<6x1x32xf32, #tpu.memory_space<vmem>>, vector<1x1x32xf32>
    %730 = vector.shape_cast %729 : vector<1x1x32xf32> to vector<1x32xf32>
    %731 = vector.broadcast %730 : vector<1x32xf32> to vector<14x32xf32>
    %732 = arith.mulf %728, %731 : vector<14x32xf32>
    %c2_301 = arith.constant 2 : index
    %c0_302 = arith.constant 0 : index
    %c0_303 = arith.constant 0 : index
    %733 = vector.load %arg24[%c2_301, %c0_302, %c0_303] : memref<6x1x32xf32, #tpu.memory_space<vmem>>, vector<1x1x32xf32>
    %734 = vector.shape_cast %733 : vector<1x1x32xf32> to vector<1x32xf32>
    %735 = vector.broadcast %734 : vector<1x32xf32> to vector<14x32xf32>
    %736 = arith.addf %732, %735 : vector<14x32xf32>
    %c1_304 = arith.constant 1 : index
    %c0_305 = arith.constant 0 : index
    %c0_306 = arith.constant 0 : index
    %737 = vector.load %arg15[%c1_304, %c0_305, %c0_306] : memref<2x32x96xf32, #tpu.memory_space<vmem>>, vector<1x32x96xf32>
    %738 = vector.shape_cast %737 : vector<1x32x96xf32> to vector<32x96xf32>
    %739 = arith.truncf %736 : vector<14x32xf32> to vector<14x32xbf16>
    %740 = arith.truncf %738 : vector<32x96xf32> to vector<32x96xbf16>
    %cst_307 = arith.constant dense<0.000000e+00> : vector<14x96xf32>
    %741 = tpu.matmul %739, %740, %cst_307 {dimension_numbers = #tpu.dot_dimension_numbers<[1], [0], [0], [1], [0, 0, 1, 1], [], []>} : vector<14x32xbf16>, vector<32x96xbf16>, vector<14x96xf32> -> vector<14x96xf32>
    %c1_308 = arith.constant 1 : index
    %c0_309 = arith.constant 0 : index
    %c0_310 = arith.constant 0 : index
    %742 = vector.load %arg16[%c1_308, %c0_309, %c0_310] : memref<2x1x96xf32, #tpu.memory_space<vmem>>, vector<1x1x96xf32>
    %743 = vector.shape_cast %742 : vector<1x1x96xf32> to vector<1x96xf32>
    %744 = vector.broadcast %743 : vector<1x96xf32> to vector<14x96xf32>
    %745 = arith.addf %741, %744 : vector<14x96xf32>
    %746 = vector.extract_strided_slice %745 {offsets = [0, 0], sizes = [14, 32], strides = [1, 1]} : vector<14x96xf32> to vector<14x32xf32>
    %747 = vector.extract_strided_slice %745 {offsets = [0, 32], sizes = [14, 32], strides = [1, 1]} : vector<14x96xf32> to vector<14x32xf32>
    %748 = vector.extract_strided_slice %745 {offsets = [0, 64], sizes = [14, 32], strides = [1, 1]} : vector<14x96xf32> to vector<14x32xf32>
    %749 = vector.extract_strided_slice %746 {offsets = [0, 0], sizes = [14, 8], strides = [1, 1]} : vector<14x32xf32> to vector<14x8xf32>
    %750 = vector.extract_strided_slice %747 {offsets = [0, 0], sizes = [14, 8], strides = [1, 1]} : vector<14x32xf32> to vector<14x8xf32>
    %751 = vector.extract_strided_slice %748 {offsets = [0, 0], sizes = [14, 8], strides = [1, 1]} : vector<14x32xf32> to vector<14x8xf32>
    %752 = arith.truncf %749 : vector<14x8xf32> to vector<14x8xbf16>
    %753 = arith.truncf %750 : vector<14x8xf32> to vector<14x8xbf16>
    %cst_311 = arith.constant dense<0.000000e+00> : vector<14x14xf32>
    %754 = tpu.matmul %752, %753, %cst_311 {dimension_numbers = #tpu.dot_dimension_numbers<[1], [1], [0], [0], [0, 0, 1, 0], [], []>} : vector<14x8xbf16>, vector<14x8xbf16>, vector<14x14xf32> -> vector<14x14xf32>
    %cst_312 = arith.constant 0.353553385 : f32
    %755 = vector.broadcast %cst_312 : f32 to vector<14x14xf32>
    %756 = arith.mulf %754, %755 : vector<14x14xf32>
    %757 = arith.addf %756, %406 : vector<14x14xf32>
    %cst_313 = arith.constant dense<0xFF800000> : vector<14xf32>
    %758 = vector.multi_reduction <maximumf>, %757, %cst_313 [1] : vector<14x14xf32> to vector<14xf32>
    %759 = vector.shape_cast %758 : vector<14xf32> to vector<14x1xf32>
    %760 = vector.broadcast %759 : vector<14x1xf32> to vector<14x14xf32>
    %761 = arith.subf %757, %760 : vector<14x14xf32>
    %762 = math.exp %761 : vector<14x14xf32>
    %cst_314 = arith.constant dense<0.000000e+00> : vector<14xf32>
    %763 = vector.multi_reduction <add>, %762, %cst_314 [1] : vector<14x14xf32> to vector<14xf32>
    %764 = vector.shape_cast %763 : vector<14xf32> to vector<14x1xf32>
    %765 = tpu.reciprocal %764 {approx = true} : vector<14x1xf32> -> vector<14x1xf32>
    %766 = vector.broadcast %765 : vector<14x1xf32> to vector<14x14xf32>
    %767 = arith.mulf %762, %766 : vector<14x14xf32>
    %768 = arith.truncf %767 : vector<14x14xf32> to vector<14x14xbf16>
    %769 = arith.truncf %751 : vector<14x8xf32> to vector<14x8xbf16>
    %cst_315 = arith.constant dense<0.000000e+00> : vector<14x8xf32>
    %770 = tpu.matmul %768, %769, %cst_315 {dimension_numbers = #tpu.dot_dimension_numbers<[1], [0], [0], [1], [0, 0, 1, 1], [], []>} : vector<14x14xbf16>, vector<14x8xbf16>, vector<14x8xf32> -> vector<14x8xf32>
    %771 = vector.extract_strided_slice %746 {offsets = [0, 8], sizes = [14, 8], strides = [1, 1]} : vector<14x32xf32> to vector<14x8xf32>
    %772 = vector.extract_strided_slice %747 {offsets = [0, 8], sizes = [14, 8], strides = [1, 1]} : vector<14x32xf32> to vector<14x8xf32>
    %773 = vector.extract_strided_slice %748 {offsets = [0, 8], sizes = [14, 8], strides = [1, 1]} : vector<14x32xf32> to vector<14x8xf32>
    %774 = arith.truncf %771 : vector<14x8xf32> to vector<14x8xbf16>
    %775 = arith.truncf %772 : vector<14x8xf32> to vector<14x8xbf16>
    %cst_316 = arith.constant dense<0.000000e+00> : vector<14x14xf32>
    %776 = tpu.matmul %774, %775, %cst_316 {dimension_numbers = #tpu.dot_dimension_numbers<[1], [1], [0], [0], [0, 0, 1, 0], [], []>} : vector<14x8xbf16>, vector<14x8xbf16>, vector<14x14xf32> -> vector<14x14xf32>
    %cst_317 = arith.constant 0.353553385 : f32
    %777 = vector.broadcast %cst_317 : f32 to vector<14x14xf32>
    %778 = arith.mulf %776, %777 : vector<14x14xf32>
    %779 = arith.addf %778, %406 : vector<14x14xf32>
    %cst_318 = arith.constant dense<0xFF800000> : vector<14xf32>
    %780 = vector.multi_reduction <maximumf>, %779, %cst_318 [1] : vector<14x14xf32> to vector<14xf32>
    %781 = vector.shape_cast %780 : vector<14xf32> to vector<14x1xf32>
    %782 = vector.broadcast %781 : vector<14x1xf32> to vector<14x14xf32>
    %783 = arith.subf %779, %782 : vector<14x14xf32>
    %784 = math.exp %783 : vector<14x14xf32>
    %cst_319 = arith.constant dense<0.000000e+00> : vector<14xf32>
    %785 = vector.multi_reduction <add>, %784, %cst_319 [1] : vector<14x14xf32> to vector<14xf32>
    %786 = vector.shape_cast %785 : vector<14xf32> to vector<14x1xf32>
    %787 = tpu.reciprocal %786 {approx = true} : vector<14x1xf32> -> vector<14x1xf32>
    %788 = vector.broadcast %787 : vector<14x1xf32> to vector<14x14xf32>
    %789 = arith.mulf %784, %788 : vector<14x14xf32>
    %790 = arith.truncf %789 : vector<14x14xf32> to vector<14x14xbf16>
    %791 = arith.truncf %773 : vector<14x8xf32> to vector<14x8xbf16>
    %cst_320 = arith.constant dense<0.000000e+00> : vector<14x8xf32>
    %792 = tpu.matmul %790, %791, %cst_320 {dimension_numbers = #tpu.dot_dimension_numbers<[1], [0], [0], [1], [0, 0, 1, 1], [], []>} : vector<14x14xbf16>, vector<14x8xbf16>, vector<14x8xf32> -> vector<14x8xf32>
    %793 = vector.extract_strided_slice %746 {offsets = [0, 16], sizes = [14, 8], strides = [1, 1]} : vector<14x32xf32> to vector<14x8xf32>
    %794 = vector.extract_strided_slice %747 {offsets = [0, 16], sizes = [14, 8], strides = [1, 1]} : vector<14x32xf32> to vector<14x8xf32>
    %795 = vector.extract_strided_slice %748 {offsets = [0, 16], sizes = [14, 8], strides = [1, 1]} : vector<14x32xf32> to vector<14x8xf32>
    %796 = arith.truncf %793 : vector<14x8xf32> to vector<14x8xbf16>
    %797 = arith.truncf %794 : vector<14x8xf32> to vector<14x8xbf16>
    %cst_321 = arith.constant dense<0.000000e+00> : vector<14x14xf32>
    %798 = tpu.matmul %796, %797, %cst_321 {dimension_numbers = #tpu.dot_dimension_numbers<[1], [1], [0], [0], [0, 0, 1, 0], [], []>} : vector<14x8xbf16>, vector<14x8xbf16>, vector<14x14xf32> -> vector<14x14xf32>
    %cst_322 = arith.constant 0.353553385 : f32
    %799 = vector.broadcast %cst_322 : f32 to vector<14x14xf32>
    %800 = arith.mulf %798, %799 : vector<14x14xf32>
    %801 = arith.addf %800, %406 : vector<14x14xf32>
    %cst_323 = arith.constant dense<0xFF800000> : vector<14xf32>
    %802 = vector.multi_reduction <maximumf>, %801, %cst_323 [1] : vector<14x14xf32> to vector<14xf32>
    %803 = vector.shape_cast %802 : vector<14xf32> to vector<14x1xf32>
    %804 = vector.broadcast %803 : vector<14x1xf32> to vector<14x14xf32>
    %805 = arith.subf %801, %804 : vector<14x14xf32>
    %806 = math.exp %805 : vector<14x14xf32>
    %cst_324 = arith.constant dense<0.000000e+00> : vector<14xf32>
    %807 = vector.multi_reduction <add>, %806, %cst_324 [1] : vector<14x14xf32> to vector<14xf32>
    %808 = vector.shape_cast %807 : vector<14xf32> to vector<14x1xf32>
    %809 = tpu.reciprocal %808 {approx = true} : vector<14x1xf32> -> vector<14x1xf32>
    %810 = vector.broadcast %809 : vector<14x1xf32> to vector<14x14xf32>
    %811 = arith.mulf %806, %810 : vector<14x14xf32>
    %812 = arith.truncf %811 : vector<14x14xf32> to vector<14x14xbf16>
    %813 = arith.truncf %795 : vector<14x8xf32> to vector<14x8xbf16>
    %cst_325 = arith.constant dense<0.000000e+00> : vector<14x8xf32>
    %814 = tpu.matmul %812, %813, %cst_325 {dimension_numbers = #tpu.dot_dimension_numbers<[1], [0], [0], [1], [0, 0, 1, 1], [], []>} : vector<14x14xbf16>, vector<14x8xbf16>, vector<14x8xf32> -> vector<14x8xf32>
    %815 = vector.extract_strided_slice %746 {offsets = [0, 24], sizes = [14, 8], strides = [1, 1]} : vector<14x32xf32> to vector<14x8xf32>
    %816 = vector.extract_strided_slice %747 {offsets = [0, 24], sizes = [14, 8], strides = [1, 1]} : vector<14x32xf32> to vector<14x8xf32>
    %817 = vector.extract_strided_slice %748 {offsets = [0, 24], sizes = [14, 8], strides = [1, 1]} : vector<14x32xf32> to vector<14x8xf32>
    %818 = arith.truncf %815 : vector<14x8xf32> to vector<14x8xbf16>
    %819 = arith.truncf %816 : vector<14x8xf32> to vector<14x8xbf16>
    %cst_326 = arith.constant dense<0.000000e+00> : vector<14x14xf32>
    %820 = tpu.matmul %818, %819, %cst_326 {dimension_numbers = #tpu.dot_dimension_numbers<[1], [1], [0], [0], [0, 0, 1, 0], [], []>} : vector<14x8xbf16>, vector<14x8xbf16>, vector<14x14xf32> -> vector<14x14xf32>
    %cst_327 = arith.constant 0.353553385 : f32
    %821 = vector.broadcast %cst_327 : f32 to vector<14x14xf32>
    %822 = arith.mulf %820, %821 : vector<14x14xf32>
    %823 = arith.addf %822, %406 : vector<14x14xf32>
    %cst_328 = arith.constant dense<0xFF800000> : vector<14xf32>
    %824 = vector.multi_reduction <maximumf>, %823, %cst_328 [1] : vector<14x14xf32> to vector<14xf32>
    %825 = vector.shape_cast %824 : vector<14xf32> to vector<14x1xf32>
    %826 = vector.broadcast %825 : vector<14x1xf32> to vector<14x14xf32>
    %827 = arith.subf %823, %826 : vector<14x14xf32>
    %828 = math.exp %827 : vector<14x14xf32>
    %cst_329 = arith.constant dense<0.000000e+00> : vector<14xf32>
    %829 = vector.multi_reduction <add>, %828, %cst_329 [1] : vector<14x14xf32> to vector<14xf32>
    %830 = vector.shape_cast %829 : vector<14xf32> to vector<14x1xf32>
    %831 = tpu.reciprocal %830 {approx = true} : vector<14x1xf32> -> vector<14x1xf32>
    %832 = vector.broadcast %831 : vector<14x1xf32> to vector<14x14xf32>
    %833 = arith.mulf %828, %832 : vector<14x14xf32>
    %834 = arith.truncf %833 : vector<14x14xf32> to vector<14x14xbf16>
    %835 = arith.truncf %817 : vector<14x8xf32> to vector<14x8xbf16>
    %cst_330 = arith.constant dense<0.000000e+00> : vector<14x8xf32>
    %836 = tpu.matmul %834, %835, %cst_330 {dimension_numbers = #tpu.dot_dimension_numbers<[1], [0], [0], [1], [0, 0, 1, 1], [], []>} : vector<14x14xbf16>, vector<14x8xbf16>, vector<14x8xf32> -> vector<14x8xf32>
    %837 = tpu.concatenate %770, %792, %814, %836 in 1 : vector<14x8xf32>, vector<14x8xf32>, vector<14x8xf32>, vector<14x8xf32> -> vector<14x32xf32>
    %c2_331 = arith.constant 2 : index
    %c0_332 = arith.constant 0 : index
    %c0_333 = arith.constant 0 : index
    %838 = vector.load %arg21[%c2_331, %c0_332, %c0_333] : memref<4x32x32xf32, #tpu.memory_space<vmem>>, vector<1x32x32xf32>
    %839 = vector.shape_cast %838 : vector<1x32x32xf32> to vector<32x32xf32>
    %840 = arith.truncf %837 : vector<14x32xf32> to vector<14x32xbf16>
    %841 = arith.truncf %839 : vector<32x32xf32> to vector<32x32xbf16>
    %cst_334 = arith.constant dense<0.000000e+00> : vector<14x32xf32>
    %842 = tpu.matmul %840, %841, %cst_334 {dimension_numbers = #tpu.dot_dimension_numbers<[1], [0], [0], [1], [0, 0, 1, 1], [], []>} : vector<14x32xbf16>, vector<32x32xbf16>, vector<14x32xf32> -> vector<14x32xf32>
    %c2_335 = arith.constant 2 : index
    %c0_336 = arith.constant 0 : index
    %c0_337 = arith.constant 0 : index
    %843 = vector.load %arg22[%c2_335, %c0_336, %c0_337] : memref<4x1x32xf32, #tpu.memory_space<vmem>>, vector<1x1x32xf32>
    %844 = vector.shape_cast %843 : vector<1x1x32xf32> to vector<1x32xf32>
    %845 = vector.broadcast %844 : vector<1x32xf32> to vector<14x32xf32>
    %846 = arith.addf %842, %845 : vector<14x32xf32>
    %847 = arith.addf %736, %846 : vector<14x32xf32>
    %cst_338 = arith.constant dense<0.000000e+00> : vector<14xf32>
    %848 = vector.multi_reduction <add>, %847, %cst_338 [1] : vector<14x32xf32> to vector<14xf32>
    %849 = vector.shape_cast %848 : vector<14xf32> to vector<14x1xf32>
    %cst_339 = arith.constant 3.200000e+01 : f32
    %850 = vector.broadcast %cst_339 : f32 to vector<14x1xf32>
    %851 = arith.divf %849, %850 : vector<14x1xf32>
    %852 = arith.mulf %847, %847 : vector<14x32xf32>
    %cst_340 = arith.constant dense<0.000000e+00> : vector<14xf32>
    %853 = vector.multi_reduction <add>, %852, %cst_340 [1] : vector<14x32xf32> to vector<14xf32>
    %854 = vector.shape_cast %853 : vector<14xf32> to vector<14x1xf32>
    %cst_341 = arith.constant 3.200000e+01 : f32
    %855 = vector.broadcast %cst_341 : f32 to vector<14x1xf32>
    %856 = arith.divf %854, %855 : vector<14x1xf32>
    %857 = arith.mulf %851, %851 : vector<14x1xf32>
    %858 = arith.subf %856, %857 : vector<14x1xf32>
    %859 = vector.broadcast %851 : vector<14x1xf32> to vector<14x32xf32>
    %860 = arith.subf %847, %859 : vector<14x32xf32>
    %cst_342 = arith.constant 9.99999974E-6 : f32
    %861 = vector.broadcast %cst_342 : f32 to vector<14x1xf32>
    %862 = arith.addf %858, %861 : vector<14x1xf32>
    %863 = math.rsqrt %862 : vector<14x1xf32>
    %864 = vector.broadcast %863 : vector<14x1xf32> to vector<14x32xf32>
    %865 = arith.mulf %860, %864 : vector<14x32xf32>
    %c3_343 = arith.constant 3 : index
    %c0_344 = arith.constant 0 : index
    %c0_345 = arith.constant 0 : index
    %866 = vector.load %arg23[%c3_343, %c0_344, %c0_345] : memref<6x1x32xf32, #tpu.memory_space<vmem>>, vector<1x1x32xf32>
    %867 = vector.shape_cast %866 : vector<1x1x32xf32> to vector<1x32xf32>
    %868 = vector.broadcast %867 : vector<1x32xf32> to vector<14x32xf32>
    %869 = arith.mulf %865, %868 : vector<14x32xf32>
    %c3_346 = arith.constant 3 : index
    %c0_347 = arith.constant 0 : index
    %c0_348 = arith.constant 0 : index
    %870 = vector.load %arg24[%c3_346, %c0_347, %c0_348] : memref<6x1x32xf32, #tpu.memory_space<vmem>>, vector<1x1x32xf32>
    %871 = vector.shape_cast %870 : vector<1x1x32xf32> to vector<1x32xf32>
    %872 = vector.broadcast %871 : vector<1x32xf32> to vector<14x32xf32>
    %873 = arith.addf %869, %872 : vector<14x32xf32>
    %c1_349 = arith.constant 1 : index
    %c0_350 = arith.constant 0 : index
    %c0_351 = arith.constant 0 : index
    %874 = vector.load %arg17[%c1_349, %c0_350, %c0_351] : memref<2x32x32xf32, #tpu.memory_space<vmem>>, vector<1x32x32xf32>
    %875 = vector.shape_cast %874 : vector<1x32x32xf32> to vector<32x32xf32>
    %876 = arith.truncf %873 : vector<14x32xf32> to vector<14x32xbf16>
    %877 = arith.truncf %875 : vector<32x32xf32> to vector<32x32xbf16>
    %cst_352 = arith.constant dense<0.000000e+00> : vector<14x32xf32>
    %878 = tpu.matmul %876, %877, %cst_352 {dimension_numbers = #tpu.dot_dimension_numbers<[1], [0], [0], [1], [0, 0, 1, 1], [], []>} : vector<14x32xbf16>, vector<32x32xbf16>, vector<14x32xf32> -> vector<14x32xf32>
    %c1_353 = arith.constant 1 : index
    %c0_354 = arith.constant 0 : index
    %c0_355 = arith.constant 0 : index
    %879 = vector.load %arg18[%c1_353, %c0_354, %c0_355] : memref<2x1x32xf32, #tpu.memory_space<vmem>>, vector<1x1x32xf32>
    %880 = vector.shape_cast %879 : vector<1x1x32xf32> to vector<1x32xf32>
    %881 = vector.broadcast %880 : vector<1x32xf32> to vector<14x32xf32>
    %882 = arith.addf %878, %881 : vector<14x32xf32>
    %c1_356 = arith.constant 1 : index
    %c0_357 = arith.constant 0 : index
    %c0_358 = arith.constant 0 : index
    %883 = vector.load %arg19[%c1_356, %c0_357, %c0_358] : memref<2x32x64xf32, #tpu.memory_space<vmem>>, vector<1x32x64xf32>
    %884 = vector.shape_cast %883 : vector<1x32x64xf32> to vector<32x64xf32>
    %885 = arith.truncf %395 : vector<32x32xf32> to vector<32x32xbf16>
    %886 = arith.truncf %884 : vector<32x64xf32> to vector<32x64xbf16>
    %cst_359 = arith.constant dense<0.000000e+00> : vector<32x64xf32>
    %887 = tpu.matmul %885, %886, %cst_359 {dimension_numbers = #tpu.dot_dimension_numbers<[1], [0], [0], [1], [0, 0, 1, 1], [], []>} : vector<32x32xbf16>, vector<32x64xbf16>, vector<32x64xf32> -> vector<32x64xf32>
    %c1_360 = arith.constant 1 : index
    %c0_361 = arith.constant 0 : index
    %c0_362 = arith.constant 0 : index
    %888 = vector.load %arg20[%c1_360, %c0_361, %c0_362] : memref<2x1x64xf32, #tpu.memory_space<vmem>>, vector<1x1x64xf32>
    %889 = vector.shape_cast %888 : vector<1x1x64xf32> to vector<1x64xf32>
    %890 = vector.broadcast %889 : vector<1x64xf32> to vector<32x64xf32>
    %891 = arith.addf %887, %890 : vector<32x64xf32>
    %892 = vector.extract_strided_slice %891 {offsets = [0, 0], sizes = [32, 32], strides = [1, 1]} : vector<32x64xf32> to vector<32x32xf32>
    %893 = vector.extract_strided_slice %891 {offsets = [0, 32], sizes = [32, 32], strides = [1, 1]} : vector<32x64xf32> to vector<32x32xf32>
    %894 = vector.extract_strided_slice %882 {offsets = [0, 0], sizes = [14, 8], strides = [1, 1]} : vector<14x32xf32> to vector<14x8xf32>
    %895 = vector.extract_strided_slice %892 {offsets = [0, 0], sizes = [32, 8], strides = [1, 1]} : vector<32x32xf32> to vector<32x8xf32>
    %896 = vector.extract_strided_slice %893 {offsets = [0, 0], sizes = [32, 8], strides = [1, 1]} : vector<32x32xf32> to vector<32x8xf32>
    %897 = arith.truncf %894 : vector<14x8xf32> to vector<14x8xbf16>
    %898 = arith.truncf %895 : vector<32x8xf32> to vector<32x8xbf16>
    %cst_363 = arith.constant dense<0.000000e+00> : vector<14x32xf32>
    %899 = tpu.matmul %897, %898, %cst_363 {dimension_numbers = #tpu.dot_dimension_numbers<[1], [1], [0], [0], [0, 0, 1, 0], [], []>} : vector<14x8xbf16>, vector<32x8xbf16>, vector<14x32xf32> -> vector<14x32xf32>
    %cst_364 = arith.constant 0.353553385 : f32
    %900 = vector.broadcast %cst_364 : f32 to vector<14x32xf32>
    %901 = arith.mulf %899, %900 : vector<14x32xf32>
    %902 = arith.addf %901, %407 : vector<14x32xf32>
    %cst_365 = arith.constant dense<0xFF800000> : vector<14xf32>
    %903 = vector.multi_reduction <maximumf>, %902, %cst_365 [1] : vector<14x32xf32> to vector<14xf32>
    %904 = vector.shape_cast %903 : vector<14xf32> to vector<14x1xf32>
    %905 = vector.broadcast %904 : vector<14x1xf32> to vector<14x32xf32>
    %906 = arith.subf %902, %905 : vector<14x32xf32>
    %907 = math.exp %906 : vector<14x32xf32>
    %cst_366 = arith.constant dense<0.000000e+00> : vector<14xf32>
    %908 = vector.multi_reduction <add>, %907, %cst_366 [1] : vector<14x32xf32> to vector<14xf32>
    %909 = vector.shape_cast %908 : vector<14xf32> to vector<14x1xf32>
    %910 = tpu.reciprocal %909 {approx = true} : vector<14x1xf32> -> vector<14x1xf32>
    %911 = vector.broadcast %910 : vector<14x1xf32> to vector<14x32xf32>
    %912 = arith.mulf %907, %911 : vector<14x32xf32>
    %913 = arith.truncf %912 : vector<14x32xf32> to vector<14x32xbf16>
    %914 = arith.truncf %896 : vector<32x8xf32> to vector<32x8xbf16>
    %cst_367 = arith.constant dense<0.000000e+00> : vector<14x8xf32>
    %915 = tpu.matmul %913, %914, %cst_367 {dimension_numbers = #tpu.dot_dimension_numbers<[1], [0], [0], [1], [0, 0, 1, 1], [], []>} : vector<14x32xbf16>, vector<32x8xbf16>, vector<14x8xf32> -> vector<14x8xf32>
    %916 = vector.extract_strided_slice %882 {offsets = [0, 8], sizes = [14, 8], strides = [1, 1]} : vector<14x32xf32> to vector<14x8xf32>
    %917 = vector.extract_strided_slice %892 {offsets = [0, 8], sizes = [32, 8], strides = [1, 1]} : vector<32x32xf32> to vector<32x8xf32>
    %918 = vector.extract_strided_slice %893 {offsets = [0, 8], sizes = [32, 8], strides = [1, 1]} : vector<32x32xf32> to vector<32x8xf32>
    %919 = arith.truncf %916 : vector<14x8xf32> to vector<14x8xbf16>
    %920 = arith.truncf %917 : vector<32x8xf32> to vector<32x8xbf16>
    %cst_368 = arith.constant dense<0.000000e+00> : vector<14x32xf32>
    %921 = tpu.matmul %919, %920, %cst_368 {dimension_numbers = #tpu.dot_dimension_numbers<[1], [1], [0], [0], [0, 0, 1, 0], [], []>} : vector<14x8xbf16>, vector<32x8xbf16>, vector<14x32xf32> -> vector<14x32xf32>
    %cst_369 = arith.constant 0.353553385 : f32
    %922 = vector.broadcast %cst_369 : f32 to vector<14x32xf32>
    %923 = arith.mulf %921, %922 : vector<14x32xf32>
    %924 = arith.addf %923, %407 : vector<14x32xf32>
    %cst_370 = arith.constant dense<0xFF800000> : vector<14xf32>
    %925 = vector.multi_reduction <maximumf>, %924, %cst_370 [1] : vector<14x32xf32> to vector<14xf32>
    %926 = vector.shape_cast %925 : vector<14xf32> to vector<14x1xf32>
    %927 = vector.broadcast %926 : vector<14x1xf32> to vector<14x32xf32>
    %928 = arith.subf %924, %927 : vector<14x32xf32>
    %929 = math.exp %928 : vector<14x32xf32>
    %cst_371 = arith.constant dense<0.000000e+00> : vector<14xf32>
    %930 = vector.multi_reduction <add>, %929, %cst_371 [1] : vector<14x32xf32> to vector<14xf32>
    %931 = vector.shape_cast %930 : vector<14xf32> to vector<14x1xf32>
    %932 = tpu.reciprocal %931 {approx = true} : vector<14x1xf32> -> vector<14x1xf32>
    %933 = vector.broadcast %932 : vector<14x1xf32> to vector<14x32xf32>
    %934 = arith.mulf %929, %933 : vector<14x32xf32>
    %935 = arith.truncf %934 : vector<14x32xf32> to vector<14x32xbf16>
    %936 = arith.truncf %918 : vector<32x8xf32> to vector<32x8xbf16>
    %cst_372 = arith.constant dense<0.000000e+00> : vector<14x8xf32>
    %937 = tpu.matmul %935, %936, %cst_372 {dimension_numbers = #tpu.dot_dimension_numbers<[1], [0], [0], [1], [0, 0, 1, 1], [], []>} : vector<14x32xbf16>, vector<32x8xbf16>, vector<14x8xf32> -> vector<14x8xf32>
    %938 = vector.extract_strided_slice %882 {offsets = [0, 16], sizes = [14, 8], strides = [1, 1]} : vector<14x32xf32> to vector<14x8xf32>
    %939 = vector.extract_strided_slice %892 {offsets = [0, 16], sizes = [32, 8], strides = [1, 1]} : vector<32x32xf32> to vector<32x8xf32>
    %940 = vector.extract_strided_slice %893 {offsets = [0, 16], sizes = [32, 8], strides = [1, 1]} : vector<32x32xf32> to vector<32x8xf32>
    %941 = arith.truncf %938 : vector<14x8xf32> to vector<14x8xbf16>
    %942 = arith.truncf %939 : vector<32x8xf32> to vector<32x8xbf16>
    %cst_373 = arith.constant dense<0.000000e+00> : vector<14x32xf32>
    %943 = tpu.matmul %941, %942, %cst_373 {dimension_numbers = #tpu.dot_dimension_numbers<[1], [1], [0], [0], [0, 0, 1, 0], [], []>} : vector<14x8xbf16>, vector<32x8xbf16>, vector<14x32xf32> -> vector<14x32xf32>
    %cst_374 = arith.constant 0.353553385 : f32
    %944 = vector.broadcast %cst_374 : f32 to vector<14x32xf32>
    %945 = arith.mulf %943, %944 : vector<14x32xf32>
    %946 = arith.addf %945, %407 : vector<14x32xf32>
    %cst_375 = arith.constant dense<0xFF800000> : vector<14xf32>
    %947 = vector.multi_reduction <maximumf>, %946, %cst_375 [1] : vector<14x32xf32> to vector<14xf32>
    %948 = vector.shape_cast %947 : vector<14xf32> to vector<14x1xf32>
    %949 = vector.broadcast %948 : vector<14x1xf32> to vector<14x32xf32>
    %950 = arith.subf %946, %949 : vector<14x32xf32>
    %951 = math.exp %950 : vector<14x32xf32>
    %cst_376 = arith.constant dense<0.000000e+00> : vector<14xf32>
    %952 = vector.multi_reduction <add>, %951, %cst_376 [1] : vector<14x32xf32> to vector<14xf32>
    %953 = vector.shape_cast %952 : vector<14xf32> to vector<14x1xf32>
    %954 = tpu.reciprocal %953 {approx = true} : vector<14x1xf32> -> vector<14x1xf32>
    %955 = vector.broadcast %954 : vector<14x1xf32> to vector<14x32xf32>
    %956 = arith.mulf %951, %955 : vector<14x32xf32>
    %957 = arith.truncf %956 : vector<14x32xf32> to vector<14x32xbf16>
    %958 = arith.truncf %940 : vector<32x8xf32> to vector<32x8xbf16>
    %cst_377 = arith.constant dense<0.000000e+00> : vector<14x8xf32>
    %959 = tpu.matmul %957, %958, %cst_377 {dimension_numbers = #tpu.dot_dimension_numbers<[1], [0], [0], [1], [0, 0, 1, 1], [], []>} : vector<14x32xbf16>, vector<32x8xbf16>, vector<14x8xf32> -> vector<14x8xf32>
    %960 = vector.extract_strided_slice %882 {offsets = [0, 24], sizes = [14, 8], strides = [1, 1]} : vector<14x32xf32> to vector<14x8xf32>
    %961 = vector.extract_strided_slice %892 {offsets = [0, 24], sizes = [32, 8], strides = [1, 1]} : vector<32x32xf32> to vector<32x8xf32>
    %962 = vector.extract_strided_slice %893 {offsets = [0, 24], sizes = [32, 8], strides = [1, 1]} : vector<32x32xf32> to vector<32x8xf32>
    %963 = arith.truncf %960 : vector<14x8xf32> to vector<14x8xbf16>
    %964 = arith.truncf %961 : vector<32x8xf32> to vector<32x8xbf16>
    %cst_378 = arith.constant dense<0.000000e+00> : vector<14x32xf32>
    %965 = tpu.matmul %963, %964, %cst_378 {dimension_numbers = #tpu.dot_dimension_numbers<[1], [1], [0], [0], [0, 0, 1, 0], [], []>} : vector<14x8xbf16>, vector<32x8xbf16>, vector<14x32xf32> -> vector<14x32xf32>
    %cst_379 = arith.constant 0.353553385 : f32
    %966 = vector.broadcast %cst_379 : f32 to vector<14x32xf32>
    %967 = arith.mulf %965, %966 : vector<14x32xf32>
    %968 = arith.addf %967, %407 : vector<14x32xf32>
    %cst_380 = arith.constant dense<0xFF800000> : vector<14xf32>
    %969 = vector.multi_reduction <maximumf>, %968, %cst_380 [1] : vector<14x32xf32> to vector<14xf32>
    %970 = vector.shape_cast %969 : vector<14xf32> to vector<14x1xf32>
    %971 = vector.broadcast %970 : vector<14x1xf32> to vector<14x32xf32>
    %972 = arith.subf %968, %971 : vector<14x32xf32>
    %973 = math.exp %972 : vector<14x32xf32>
    %cst_381 = arith.constant dense<0.000000e+00> : vector<14xf32>
    %974 = vector.multi_reduction <add>, %973, %cst_381 [1] : vector<14x32xf32> to vector<14xf32>
    %975 = vector.shape_cast %974 : vector<14xf32> to vector<14x1xf32>
    %976 = tpu.reciprocal %975 {approx = true} : vector<14x1xf32> -> vector<14x1xf32>
    %977 = vector.broadcast %976 : vector<14x1xf32> to vector<14x32xf32>
    %978 = arith.mulf %973, %977 : vector<14x32xf32>
    %979 = arith.truncf %978 : vector<14x32xf32> to vector<14x32xbf16>
    %980 = arith.truncf %962 : vector<32x8xf32> to vector<32x8xbf16>
    %cst_382 = arith.constant dense<0.000000e+00> : vector<14x8xf32>
    %981 = tpu.matmul %979, %980, %cst_382 {dimension_numbers = #tpu.dot_dimension_numbers<[1], [0], [0], [1], [0, 0, 1, 1], [], []>} : vector<14x32xbf16>, vector<32x8xbf16>, vector<14x8xf32> -> vector<14x8xf32>
    %982 = tpu.concatenate %915, %937, %959, %981 in 1 : vector<14x8xf32>, vector<14x8xf32>, vector<14x8xf32>, vector<14x8xf32> -> vector<14x32xf32>
    %c3_383 = arith.constant 3 : index
    %c0_384 = arith.constant 0 : index
    %c0_385 = arith.constant 0 : index
    %983 = vector.load %arg21[%c3_383, %c0_384, %c0_385] : memref<4x32x32xf32, #tpu.memory_space<vmem>>, vector<1x32x32xf32>
    %984 = vector.shape_cast %983 : vector<1x32x32xf32> to vector<32x32xf32>
    %985 = arith.truncf %982 : vector<14x32xf32> to vector<14x32xbf16>
    %986 = arith.truncf %984 : vector<32x32xf32> to vector<32x32xbf16>
    %cst_386 = arith.constant dense<0.000000e+00> : vector<14x32xf32>
    %987 = tpu.matmul %985, %986, %cst_386 {dimension_numbers = #tpu.dot_dimension_numbers<[1], [0], [0], [1], [0, 0, 1, 1], [], []>} : vector<14x32xbf16>, vector<32x32xbf16>, vector<14x32xf32> -> vector<14x32xf32>
    %c3_387 = arith.constant 3 : index
    %c0_388 = arith.constant 0 : index
    %c0_389 = arith.constant 0 : index
    %988 = vector.load %arg22[%c3_387, %c0_388, %c0_389] : memref<4x1x32xf32, #tpu.memory_space<vmem>>, vector<1x1x32xf32>
    %989 = vector.shape_cast %988 : vector<1x1x32xf32> to vector<1x32xf32>
    %990 = vector.broadcast %989 : vector<1x32xf32> to vector<14x32xf32>
    %991 = arith.addf %987, %990 : vector<14x32xf32>
    %992 = arith.addf %873, %991 : vector<14x32xf32>
    %cst_390 = arith.constant dense<0.000000e+00> : vector<14xf32>
    %993 = vector.multi_reduction <add>, %992, %cst_390 [1] : vector<14x32xf32> to vector<14xf32>
    %994 = vector.shape_cast %993 : vector<14xf32> to vector<14x1xf32>
    %cst_391 = arith.constant 3.200000e+01 : f32
    %995 = vector.broadcast %cst_391 : f32 to vector<14x1xf32>
    %996 = arith.divf %994, %995 : vector<14x1xf32>
    %997 = arith.mulf %992, %992 : vector<14x32xf32>
    %cst_392 = arith.constant dense<0.000000e+00> : vector<14xf32>
    %998 = vector.multi_reduction <add>, %997, %cst_392 [1] : vector<14x32xf32> to vector<14xf32>
    %999 = vector.shape_cast %998 : vector<14xf32> to vector<14x1xf32>
    %cst_393 = arith.constant 3.200000e+01 : f32
    %1000 = vector.broadcast %cst_393 : f32 to vector<14x1xf32>
    %1001 = arith.divf %999, %1000 : vector<14x1xf32>
    %1002 = arith.mulf %996, %996 : vector<14x1xf32>
    %1003 = arith.subf %1001, %1002 : vector<14x1xf32>
    %1004 = vector.broadcast %996 : vector<14x1xf32> to vector<14x32xf32>
    %1005 = arith.subf %992, %1004 : vector<14x32xf32>
    %cst_394 = arith.constant 9.99999974E-6 : f32
    %1006 = vector.broadcast %cst_394 : f32 to vector<14x1xf32>
    %1007 = arith.addf %1003, %1006 : vector<14x1xf32>
    %1008 = math.rsqrt %1007 : vector<14x1xf32>
    %1009 = vector.broadcast %1008 : vector<14x1xf32> to vector<14x32xf32>
    %1010 = arith.mulf %1005, %1009 : vector<14x32xf32>
    %c4_395 = arith.constant 4 : index
    %c0_396 = arith.constant 0 : index
    %c0_397 = arith.constant 0 : index
    %1011 = vector.load %arg23[%c4_395, %c0_396, %c0_397] : memref<6x1x32xf32, #tpu.memory_space<vmem>>, vector<1x1x32xf32>
    %1012 = vector.shape_cast %1011 : vector<1x1x32xf32> to vector<1x32xf32>
    %1013 = vector.broadcast %1012 : vector<1x32xf32> to vector<14x32xf32>
    %1014 = arith.mulf %1010, %1013 : vector<14x32xf32>
    %c4_398 = arith.constant 4 : index
    %c0_399 = arith.constant 0 : index
    %c0_400 = arith.constant 0 : index
    %1015 = vector.load %arg24[%c4_398, %c0_399, %c0_400] : memref<6x1x32xf32, #tpu.memory_space<vmem>>, vector<1x1x32xf32>
    %1016 = vector.shape_cast %1015 : vector<1x1x32xf32> to vector<1x32xf32>
    %1017 = vector.broadcast %1016 : vector<1x32xf32> to vector<14x32xf32>
    %1018 = arith.addf %1014, %1017 : vector<14x32xf32>
    %c1_401 = arith.constant 1 : index
    %c0_402 = arith.constant 0 : index
    %c0_403 = arith.constant 0 : index
    %1019 = vector.load %arg25[%c1_401, %c0_402, %c0_403] : memref<2x32x64xf32, #tpu.memory_space<vmem>>, vector<1x32x64xf32>
    %1020 = vector.shape_cast %1019 : vector<1x32x64xf32> to vector<32x64xf32>
    %1021 = arith.truncf %1018 : vector<14x32xf32> to vector<14x32xbf16>
    %1022 = arith.truncf %1020 : vector<32x64xf32> to vector<32x64xbf16>
    %cst_404 = arith.constant dense<0.000000e+00> : vector<14x64xf32>
    %1023 = tpu.matmul %1021, %1022, %cst_404 {dimension_numbers = #tpu.dot_dimension_numbers<[1], [0], [0], [1], [0, 0, 1, 1], [], []>} : vector<14x32xbf16>, vector<32x64xbf16>, vector<14x64xf32> -> vector<14x64xf32>
    %c1_405 = arith.constant 1 : index
    %c0_406 = arith.constant 0 : index
    %c0_407 = arith.constant 0 : index
    %1024 = vector.load %arg26[%c1_405, %c0_406, %c0_407] : memref<2x1x64xf32, #tpu.memory_space<vmem>>, vector<1x1x64xf32>
    %1025 = vector.shape_cast %1024 : vector<1x1x64xf32> to vector<1x64xf32>
    %1026 = vector.broadcast %1025 : vector<1x64xf32> to vector<14x64xf32>
    %1027 = arith.addf %1023, %1026 : vector<14x64xf32>
    %cst_408 = arith.constant 0.000000e+00 : f32
    %1028 = vector.broadcast %cst_408 : f32 to vector<14x64xf32>
    %1029 = arith.maximumf %1027, %1028 : vector<14x64xf32>
    %c1_409 = arith.constant 1 : index
    %c0_410 = arith.constant 0 : index
    %c0_411 = arith.constant 0 : index
    %1030 = vector.load %arg27[%c1_409, %c0_410, %c0_411] : memref<2x64x32xf32, #tpu.memory_space<vmem>>, vector<1x64x32xf32>
    %1031 = vector.shape_cast %1030 : vector<1x64x32xf32> to vector<64x32xf32>
    %1032 = arith.truncf %1029 : vector<14x64xf32> to vector<14x64xbf16>
    %1033 = arith.truncf %1031 : vector<64x32xf32> to vector<64x32xbf16>
    %cst_412 = arith.constant dense<0.000000e+00> : vector<14x32xf32>
    %1034 = tpu.matmul %1032, %1033, %cst_412 {dimension_numbers = #tpu.dot_dimension_numbers<[1], [0], [0], [1], [0, 0, 1, 1], [], []>} : vector<14x64xbf16>, vector<64x32xbf16>, vector<14x32xf32> -> vector<14x32xf32>
    %c1_413 = arith.constant 1 : index
    %c0_414 = arith.constant 0 : index
    %c0_415 = arith.constant 0 : index
    %1035 = vector.load %arg28[%c1_413, %c0_414, %c0_415] : memref<2x1x32xf32, #tpu.memory_space<vmem>>, vector<1x1x32xf32>
    %1036 = vector.shape_cast %1035 : vector<1x1x32xf32> to vector<1x32xf32>
    %1037 = vector.broadcast %1036 : vector<1x32xf32> to vector<14x32xf32>
    %1038 = arith.addf %1034, %1037 : vector<14x32xf32>
    %1039 = arith.addf %1018, %1038 : vector<14x32xf32>
    %cst_416 = arith.constant dense<0.000000e+00> : vector<14xf32>
    %1040 = vector.multi_reduction <add>, %1039, %cst_416 [1] : vector<14x32xf32> to vector<14xf32>
    %1041 = vector.shape_cast %1040 : vector<14xf32> to vector<14x1xf32>
    %cst_417 = arith.constant 3.200000e+01 : f32
    %1042 = vector.broadcast %cst_417 : f32 to vector<14x1xf32>
    %1043 = arith.divf %1041, %1042 : vector<14x1xf32>
    %1044 = arith.mulf %1039, %1039 : vector<14x32xf32>
    %cst_418 = arith.constant dense<0.000000e+00> : vector<14xf32>
    %1045 = vector.multi_reduction <add>, %1044, %cst_418 [1] : vector<14x32xf32> to vector<14xf32>
    %1046 = vector.shape_cast %1045 : vector<14xf32> to vector<14x1xf32>
    %cst_419 = arith.constant 3.200000e+01 : f32
    %1047 = vector.broadcast %cst_419 : f32 to vector<14x1xf32>
    %1048 = arith.divf %1046, %1047 : vector<14x1xf32>
    %1049 = arith.mulf %1043, %1043 : vector<14x1xf32>
    %1050 = arith.subf %1048, %1049 : vector<14x1xf32>
    %1051 = vector.broadcast %1043 : vector<14x1xf32> to vector<14x32xf32>
    %1052 = arith.subf %1039, %1051 : vector<14x32xf32>
    %cst_420 = arith.constant 9.99999974E-6 : f32
    %1053 = vector.broadcast %cst_420 : f32 to vector<14x1xf32>
    %1054 = arith.addf %1050, %1053 : vector<14x1xf32>
    %1055 = math.rsqrt %1054 : vector<14x1xf32>
    %1056 = vector.broadcast %1055 : vector<14x1xf32> to vector<14x32xf32>
    %1057 = arith.mulf %1052, %1056 : vector<14x32xf32>
    %c5_421 = arith.constant 5 : index
    %c0_422 = arith.constant 0 : index
    %c0_423 = arith.constant 0 : index
    %1058 = vector.load %arg23[%c5_421, %c0_422, %c0_423] : memref<6x1x32xf32, #tpu.memory_space<vmem>>, vector<1x1x32xf32>
    %1059 = vector.shape_cast %1058 : vector<1x1x32xf32> to vector<1x32xf32>
    %1060 = vector.broadcast %1059 : vector<1x32xf32> to vector<14x32xf32>
    %1061 = arith.mulf %1057, %1060 : vector<14x32xf32>
    %c5_424 = arith.constant 5 : index
    %c0_425 = arith.constant 0 : index
    %c0_426 = arith.constant 0 : index
    %1062 = vector.load %arg24[%c5_424, %c0_425, %c0_426] : memref<6x1x32xf32, #tpu.memory_space<vmem>>, vector<1x1x32xf32>
    %1063 = vector.shape_cast %1062 : vector<1x1x32xf32> to vector<1x32xf32>
    %1064 = vector.broadcast %1063 : vector<1x32xf32> to vector<14x32xf32>
    %1065 = arith.addf %1061, %1064 : vector<14x32xf32>
    %c0_427 = arith.constant 0 : index
    %c0_428 = arith.constant 0 : index
    %1066 = vector.load %arg29[%c0_427, %c0_428] : memref<32x128xf32, #tpu.memory_space<vmem>>, vector<32x128xf32>
    %1067 = arith.truncf %1065 : vector<14x32xf32> to vector<14x32xbf16>
    %1068 = arith.truncf %1066 : vector<32x128xf32> to vector<32x128xbf16>
    %cst_429 = arith.constant dense<0.000000e+00> : vector<14x128xf32>
    %1069 = tpu.matmul %1067, %1068, %cst_429 {dimension_numbers = #tpu.dot_dimension_numbers<[1], [0], [0], [1], [0, 0, 1, 1], [], []>} : vector<14x32xbf16>, vector<32x128xbf16>, vector<14x128xf32> -> vector<14x128xf32>
    %c0_430 = arith.constant 0 : index
    %c0_431 = arith.constant 0 : index
    %1070 = vector.load %arg30[%c0_430, %c0_431] : memref<1x128xf32, #tpu.memory_space<vmem>>, vector<1x128xf32>
    %1071 = vector.broadcast %1070 : vector<1x128xf32> to vector<14x128xf32>
    %1072 = arith.addf %1069, %1071 : vector<14x128xf32>
    %c0_432 = arith.constant 0 : index
    %c0_433 = arith.constant 0 : index
    %1073 = vector.load %arg31[%c0_432, %c0_433] : memref<14x128xf32, #tpu.memory_space<vmem>>, vector<14x128xf32>
    tpu.vector_store %arg31[%c0_432, %c0_433], %1072 {strides = array<i32>} : memref<14x128xf32, #tpu.memory_space<vmem>>, vector<14x128xf32>,
    return
  }
  func.func @transform_0(%arg0: i32) -> (i32, i32) {
    %c0_i32 = arith.constant 0 : i32
    %c0_i32_0 = arith.constant 0 : i32
    %c0_i32_1 = arith.constant 0 : i32
    return %c0_i32, %c0_i32_0 : i32, i32
  }
  func.func @transform_1(%arg0: i32) -> (i32, i32, i32) {
    %c0_i32 = arith.constant 0 : i32
    %c0_i32_0 = arith.constant 0 : i32
    %c0_i32_1 = arith.constant 0 : i32
    %c0_i32_2 = arith.constant 0 : i32
    return %c0_i32, %c0_i32_0, %c0_i32_1 : i32, i32, i32
  }
  func.func @transform_2(%arg0: i32) -> (i32, i32, i32) {
    %c0_i32 = arith.constant 0 : i32
    %c0_i32_0 = arith.constant 0 : i32
    %c0_i32_1 = arith.constant 0 : i32
    %c0_i32_2 = arith.constant 0 : i32
    return %c0_i32, %c0_i32_0, %c0_i32_1 : i32, i32, i32
  }
  func.func @transform_3(%arg0: i32) -> (i32, i32, i32) {
    %c0_i32 = arith.constant 0 : i32
    %c0_i32_0 = arith.constant 0 : i32
    %c0_i32_1 = arith.constant 0 : i32
    %c0_i32_2 = arith.constant 0 : i32
    return %c0_i32, %c0_i32_0, %c0_i32_1 : i32, i32, i32
  }
  func.func @transform_4(%arg0: i32) -> (i32, i32, i32) {
    %c0_i32 = arith.constant 0 : i32
    %c0_i32_0 = arith.constant 0 : i32
    %c0_i32_1 = arith.constant 0 : i32
    %c0_i32_2 = arith.constant 0 : i32
    return %c0_i32, %c0_i32_0, %c0_i32_1 : i32, i32, i32
  }
  func.func @transform_5(%arg0: i32) -> (i32, i32, i32) {
    %c0_i32 = arith.constant 0 : i32
    %c0_i32_0 = arith.constant 0 : i32
    %c0_i32_1 = arith.constant 0 : i32
    %c0_i32_2 = arith.constant 0 : i32
    return %c0_i32, %c0_i32_0, %c0_i32_1 : i32, i32, i32
  }
  func.func @transform_6(%arg0: i32) -> (i32, i32, i32) {
    %c0_i32 = arith.constant 0 : i32
    %c0_i32_0 = arith.constant 0 : i32
    %c0_i32_1 = arith.constant 0 : i32
    %c0_i32_2 = arith.constant 0 : i32
    return %c0_i32, %c0_i32_0, %c0_i32_1 : i32, i32, i32
  }
  func.func @transform_7(%arg0: i32) -> (i32, i32) {
    %c0_i32 = arith.constant 0 : i32
    %c0_i32_0 = arith.constant 0 : i32
    %c0_i32_1 = arith.constant 0 : i32
    return %c0_i32, %c0_i32_0 : i32, i32
  }
  func.func @transform_8(%arg0: i32) -> (i32, i32) {
    %c0_i32 = arith.constant 0 : i32
    %c0_i32_0 = arith.constant 0 : i32
    %c0_i32_1 = arith.constant 0 : i32
    return %c0_i32, %c0_i32_0 : i32, i32
  }
  func.func @transform_9(%arg0: i32) -> (i32, i32) {
    %c0_i32 = arith.constant 0 : i32
    %c0_i32_0 = arith.constant 0 : i32
    %c0_i32_1 = arith.constant 0 : i32
    return %c0_i32, %c0_i32_0 : i32, i32
  }
  func.func @transform_10(%arg0: i32) -> (i32, i32) {
    %c0_i32 = arith.constant 0 : i32
    %c0_i32_0 = arith.constant 0 : i32
    %c0_i32_1 = arith.constant 0 : i32
    return %c0_i32, %c0_i32_0 : i32, i32
  }
  func.func @transform_11(%arg0: i32) -> (i32, i32) {
    %c0_i32 = arith.constant 0 : i32
    %c0_i32_0 = arith.constant 0 : i32
    %c0_i32_1 = arith.constant 0 : i32
    return %c0_i32, %c0_i32_0 : i32, i32
  }
  func.func @transform_12(%arg0: i32) -> (i32, i32) {
    %c0_i32 = arith.constant 0 : i32
    %c0_i32_0 = arith.constant 0 : i32
    %c0_i32_1 = arith.constant 0 : i32
    return %c0_i32, %c0_i32_0 : i32, i32
  }
  func.func @transform_13(%arg0: i32) -> (i32, i32) {
    %c0_i32 = arith.constant 0 : i32
    %c0_i32_0 = arith.constant 0 : i32
    %c0_i32_1 = arith.constant 0 : i32
    return %c0_i32, %c0_i32_0 : i32, i32
  }
  func.func @transform_14(%arg0: i32) -> (i32, i32, i32) {
    %c0_i32 = arith.constant 0 : i32
    %c0_i32_0 = arith.constant 0 : i32
    %c0_i32_1 = arith.constant 0 : i32
    %c0_i32_2 = arith.constant 0 : i32
    return %c0_i32, %c0_i32_0, %c0_i32_1 : i32, i32, i32
  }
  func.func @transform_15(%arg0: i32) -> (i32, i32, i32) {
    %c0_i32 = arith.constant 0 : i32
    %c0_i32_0 = arith.constant 0 : i32
    %c0_i32_1 = arith.constant 0 : i32
    %c0_i32_2 = arith.constant 0 : i32
    return %c0_i32, %c0_i32_0, %c0_i32_1 : i32, i32, i32
  }
  func.func @transform_16(%arg0: i32) -> (i32, i32, i32) {
    %c0_i32 = arith.constant 0 : i32
    %c0_i32_0 = arith.constant 0 : i32
    %c0_i32_1 = arith.constant 0 : i32
    %c0_i32_2 = arith.constant 0 : i32
    return %c0_i32, %c0_i32_0, %c0_i32_1 : i32, i32, i32
  }
  func.func @transform_17(%arg0: i32) -> (i32, i32, i32) {
    %c0_i32 = arith.constant 0 : i32
    %c0_i32_0 = arith.constant 0 : i32
    %c0_i32_1 = arith.constant 0 : i32
    %c0_i32_2 = arith.constant 0 : i32
    return %c0_i32, %c0_i32_0, %c0_i32_1 : i32, i32, i32
  }
  func.func @transform_18(%arg0: i32) -> (i32, i32, i32) {
    %c0_i32 = arith.constant 0 : i32
    %c0_i32_0 = arith.constant 0 : i32
    %c0_i32_1 = arith.constant 0 : i32
    %c0_i32_2 = arith.constant 0 : i32
    return %c0_i32, %c0_i32_0, %c0_i32_1 : i32, i32, i32
  }
  func.func @transform_19(%arg0: i32) -> (i32, i32, i32) {
    %c0_i32 = arith.constant 0 : i32
    %c0_i32_0 = arith.constant 0 : i32
    %c0_i32_1 = arith.constant 0 : i32
    %c0_i32_2 = arith.constant 0 : i32
    return %c0_i32, %c0_i32_0, %c0_i32_1 : i32, i32, i32
  }
  func.func @transform_20(%arg0: i32) -> (i32, i32, i32) {
    %c0_i32 = arith.constant 0 : i32
    %c0_i32_0 = arith.constant 0 : i32
    %c0_i32_1 = arith.constant 0 : i32
    %c0_i32_2 = arith.constant 0 : i32
    return %c0_i32, %c0_i32_0, %c0_i32_1 : i32, i32, i32
  }
  func.func @transform_21(%arg0: i32) -> (i32, i32, i32) {
    %c0_i32 = arith.constant 0 : i32
    %c0_i32_0 = arith.constant 0 : i32
    %c0_i32_1 = arith.constant 0 : i32
    %c0_i32_2 = arith.constant 0 : i32
    return %c0_i32, %c0_i32_0, %c0_i32_1 : i32, i32, i32
  }
  func.func @transform_22(%arg0: i32) -> (i32, i32, i32) {
    %c0_i32 = arith.constant 0 : i32
    %c0_i32_0 = arith.constant 0 : i32
    %c0_i32_1 = arith.constant 0 : i32
    %c0_i32_2 = arith.constant 0 : i32
    return %c0_i32, %c0_i32_0, %c0_i32_1 : i32, i32, i32
  }
  func.func @transform_23(%arg0: i32) -> (i32, i32, i32) {
    %c0_i32 = arith.constant 0 : i32
    %c0_i32_0 = arith.constant 0 : i32
    %c0_i32_1 = arith.constant 0 : i32
    %c0_i32_2 = arith.constant 0 : i32
    return %c0_i32, %c0_i32_0, %c0_i32_1 : i32, i32, i32
  }
  func.func @transform_24(%arg0: i32) -> (i32, i32, i32) {
    %c0_i32 = arith.constant 0 : i32
    %c0_i32_0 = arith.constant 0 : i32
    %c0_i32_1 = arith.constant 0 : i32
    %c0_i32_2 = arith.constant 0 : i32
    return %c0_i32, %c0_i32_0, %c0_i32_1 : i32, i32, i32
  }
  func.func @transform_25(%arg0: i32) -> (i32, i32, i32) {
    %c0_i32 = arith.constant 0 : i32
    %c0_i32_0 = arith.constant 0 : i32
    %c0_i32_1 = arith.constant 0 : i32
    %c0_i32_2 = arith.constant 0 : i32
    return %c0_i32, %c0_i32_0, %c0_i32_1 : i32, i32, i32
  }
  func.func @transform_26(%arg0: i32) -> (i32, i32, i32) {
    %c0_i32 = arith.constant 0 : i32
    %c0_i32_0 = arith.constant 0 : i32
    %c0_i32_1 = arith.constant 0 : i32
    %c0_i32_2 = arith.constant 0 : i32
    return %c0_i32, %c0_i32_0, %c0_i32_1 : i32, i32, i32
  }
  func.func @transform_27(%arg0: i32) -> (i32, i32, i32) {
    %c0_i32 = arith.constant 0 : i32
    %c0_i32_0 = arith.constant 0 : i32
    %c0_i32_1 = arith.constant 0 : i32
    %c0_i32_2 = arith.constant 0 : i32
    return %c0_i32, %c0_i32_0, %c0_i32_1 : i32, i32, i32
  }
  func.func @transform_28(%arg0: i32) -> (i32, i32) {
    %c0_i32 = arith.constant 0 : i32
    %c0_i32_0 = arith.constant 0 : i32
    %c0_i32_1 = arith.constant 0 : i32
    return %c0_i32, %c0_i32_0 : i32, i32
  }
  func.func @transform_29(%arg0: i32) -> (i32, i32) {
    %c0_i32 = arith.constant 0 : i32
    %c0_i32_0 = arith.constant 0 : i32
    %c0_i32_1 = arith.constant 0 : i32
    return %c0_i32, %c0_i32_0 : i32, i32
  }
  func.func @transform_30(%arg0: i32) -> (i32, i32) {
    %c0_i32 = arith.constant 0 : i32
    %c0_i32_0 = arith.constant 0 : i32
    %c0_i32_1 = arith.constant 0 : i32
    return %c0_i32, %c0_i32_0 : i32, i32
  }
}

</mosaic_0001>

<bundles_post_ra>
// kernel: wave_transformer3_forward.1
= control target key start
LH: loop header
LB: loop body
LE: loop exit
PB: predicated region body
PF: predicated region fallthrough
CT: control target
= control target key end

     0   :  { %s7510_s6 = smov 1   ;;  %s7511_s10 = smov 2   ;;  %s9044_s0 = inlined_call_operand.smem [shape: u32[31], index: -1, kind: input, shape index: {}] }
   0x1   :  { %s7576_s5 = sld [smem:[%s9044_s0]]   ;;  %s7512_s14 = smov 3  }
   0x2   :  { %s7581_s9 = sld [smem:[%s9044_s0 + %s7510_s6]]   ;;  %s7513_s18 = smov 4  }
   0x3   :  { %s7586_s13 = sld [smem:[%s9044_s0 + %s7511_s10]]   ;;  %s7514_s22 = smov 5  }
   0x4   :  { %s7591_s17 = sld [smem:[%s9044_s0 + %s7512_s14]]   ;;  %s7515_s26 = smov 6  }
   0x5   :  { %s7596_s21 = sld [smem:[%s9044_s0 + %s7513_s18]]   ;;  %s7516_s30 = smov 7  }
   0x6   :  { %s7601_s25 = sld [smem:[%s9044_s0 + %s7514_s22]]   ;;  %s7517_s4 = smov 8  }
   0x7   :  { %s7606_s29 = sld [smem:[%s9044_s0 + %s7515_s26]]   ;;  %s7518_s10 = smov 9  }
   0x8   :  { %s7611_s3 = sld [smem:[%s9044_s0 + %s7516_s30]]   ;;  %s7519_s15 = smov 10  }
   0x9   :  { %s7616_s8 = sld [smem:[%s9044_s0 + %s7517_s4]]   ;;  %s7520_s20 = smov 11  }
   0xa   :  { %s7621_s14 = sld [smem:[%s9044_s0 + %s7518_s10]]   ;;  %s7521_s26 = smov 12  }
   0xb   :  { %s7626_s19 = sld [smem:[%s9044_s0 + %s7519_s15]]   ;;  %s7522_s1 = smov 13  }
   0xc   :  { %s7631_s24 = sld [smem:[%s9044_s0 + %s7520_s20]]   ;;  %s7523_s7 = smov 14  }
   0xd   :  { %s7636_s30 = sld [smem:[%s9044_s0 + %s7521_s26]]   ;;  %s7524_s15 = smov 15  }
   0xe   :  { %9057 = sst [smem:[#allocation21_spill]] %s7611_s3  ;;  %s7525_s22 = smov 16  }
   0xf   :  { %9058 = sst [smem:[#allocation22_spill]] %s7616_s8  ;;  %s7526_s28 = smov 17  }
  0x10   :  { %9059 = sst [smem:[#allocation23_spill]] %s7621_s14 }
  0x11   :  { %s7641_s6 = sld [smem:[%s9044_s0 + %s7522_s1]]  }
  0x12   :  { %9060 = sst [smem:[#allocation24_spill]] %s7631_s24 }
  0x13   :  { %9061 = sst [smem:[#allocation25_spill]] %s7636_s30 }
  0x14   :  { %s7646_s12 = sld [smem:[%s9044_s0 + %s7523_s7]]   ;;  %s7527_s7 = smov 18  }
  0x15   :  { %s7651_s20 = sld [smem:[%s9044_s0 + %s7524_s15]]   ;;  %s7528_s15 = smov 19  }
  0x16   :  { %s7656_s27 = sld [smem:[%s9044_s0 + %s7525_s22]]   ;;  %s7529_s22 = smov 20  }
  0x17   :  { %9062 = sst [smem:[#allocation26_spill]] %s7641_s6 }
  0x18   :  { %s7661_s4 = sld [smem:[%s9044_s0 + %s7526_s28]]   ;;  %s7530_s28 = smov 21  }
  0x19   :  { %s7666_s6 = sld [smem:[%s9044_s0 + %s7527_s7]]   ;;  %s7531_s7 = smov 22  }
  0x1a   :  { %9063 = sst [smem:[#allocation27_spill]] %s7646_s12 }
  0x1b   :  { %s7671_s30 = sld [smem:[%s9044_s0 + %s7528_s15]]   ;;  %s7532_s15 = smov 23  }
  0x1c   :  { %9064 = sst [smem:[#allocation28_spill]] %s7656_s27 }
  0x1d   :  { %s7676_s27 = sld [smem:[%s9044_s0 + %s7529_s22]]   ;;  %s7533_s22 = smov 24  }
  0x1e   :  { %s7681_s8 = sld [smem:[%s9044_s0 + %s7530_s28]]   ;;  %s7534_s28 = smov 25  }
  0x1f   :  { %9065 = sst [smem:[#allocation29_spill]] %s7666_s6 }
  0x20   :  { %s7686_s6 = sld [smem:[%s9044_s0 + %s7531_s7]]   ;;  %s7535_s7 = smov 26  }
  0x21   :  { %s7691_s24 = sld [smem:[%s9044_s0 + %s7532_s15]]   ;;  %s7536_s15 = smov 27  }
  0x22   :  { %s7706_s12 = sld [smem:[%s9044_s0 + %s7535_s7]]   ;;  %s7539_s7 = smov 30  }
  0x23   :  { %9066 = sst [smem:[#allocation30_spill]] %s7676_s27 }
  0x24   :  { %9067 = sst [smem:[#allocation31_spill]] %s7681_s8 }
  0x25   :  { %s7696_s27 = sld [smem:[%s9044_s0 + %s7533_s22]]   ;;  %s7537_s22 = smov 28  }
  0x26   :  { %s7701_s8 = sld [smem:[%s9044_s0 + %s7534_s28]]   ;;  %s7538_s28 = smov 29  }
  0x27   :  { %s7711_s3 = sld [smem:[%s9044_s0 + %s7536_s15]]  }
  0x28   :  { %9069 = sst [smem:[#allocation33_spill]] %s7706_s12 }
  0x29   :  { %s7721_s14 = sld [smem:[%s9044_s0 + %s7538_s28]]  }
  0x2a   :  { %s7726_s12 = sld [smem:[%s9044_s0 + %s7539_s7]]  }
  0x2b   :  { %9068 = sst [smem:[#allocation32_spill]] %s7696_s27 }
  0x2c   :  { %s7716_s27 = sld [smem:[%s9044_s0 + %s7537_s22]]  }
  0x2d   :  { %66 = vsyncpa [#allocation3], 0 }
  0x2e   :  { %67 = vsyncpa [#allocation5], 0 }
  0x2f   :  { %68 = vsyncpa [#allocation8], 0 }
  0x30   :  { %69 = vsyncpa [#allocation11], 0 }
  0x31   :  { %70 = vsyncpa [#allocation14], 0  ;;  %s7540_s15 = smov [#allocation4]   ;;  %s7541_s18 = smov [#allocation7]  }
  0x32   :  { %s116_s16 = sshll.u32 %s7540_s15, 4  ;;  %s144_s22 = sshll.u32 %s7541_s18, 4  ;;  %s117_s16 = int_to_ptr.vmem [resolvable:$true] %s116_s16  ;;  %s7728_s22 = int_to_ptr.vmem [resolvable:$true] %s144_s22 }
  0x33   :  { %s7302_s23 = scalar_lea.hbm %s7651_s20, 32 }
  0x34   :  { %p7303_p0 = scmp.ne.s32.totalorder %s7651_s20, %s7302_s23  ;;  %p7306_p1 = scmp.lt.u32.totalorder %s7302_s23, %s7651_s20 }
  0x36   :  { %p7308_p2 = pnand %p7306_p1, %p7303_p0 }
  0x38   :  { %7311 = shalt.err (!%p7308_p2)
}
  0x39   :  { %s7312_s0 = scalar_lea.vmem %s117_s16, 32  ;;  %p7317_p4 = scmp.lt.s32.totalorder %s117_s16, %s117_s16 }
  0x3a   :  { %p7313_p3 = scmp.ne.s32.totalorder %s117_s16, %s7312_s0  ;;  %p7318_p5 = scmp.lt.s32.totalorder %s7312_s0, %s7312_s0 }
  0x3c   :  { %p7319_p6 = por %p7318_p5, %p7317_p4 }
  0x3e   :  { %p7320_p7 = pnand %p7319_p6, %p7313_p3 }
  0x40   :  { %7323 = shalt.err (!%p7320_p7)
}
  0x41   :  { %s7542_s26 = smov 16   ;;  %s7543_s28 = smov 1  }
  0x42   :  { %122 = dma.hbm_to_vmem [thread:$0]  %s7651_s20, 32, %s117_s16, [#allocation5], %s7542_s26, %s7542_s26, %s7543_s28  }
  0x43   :  { %s7324_s1 = scalar_lea.hbm %s7671_s30, 32 }
  0x44   :  { %p7325_p8 = scmp.ne.s32.totalorder %s7671_s30, %s7324_s1  ;;  %p7328_p9 = scmp.lt.u32.totalorder %s7324_s1, %s7671_s30 }
  0x46   :  { %p7330_p10 = pnand %p7328_p9, %p7325_p8 }
  0x48   :  { %7333 = shalt.err (!%p7330_p10)
}
  0x49   :  { %s7334_s2 = scalar_lea.vmem %s7728_s22, 32  ;;  %p7339_p12 = scmp.lt.s32.totalorder %s7728_s22, %s7728_s22 }
  0x4a   :  { %p7335_p11 = scmp.ne.s32.totalorder %s7728_s22, %s7334_s2  ;;  %p7340_p13 = scmp.lt.s32.totalorder %s7334_s2, %s7334_s2 }
  0x4c   :  { %p7341_p0 = por %p7340_p13, %p7339_p12 }
  0x4e   :  { %p7342_p1 = pnand %p7341_p0, %p7335_p11 }
  0x50   :  { %7345 = shalt.err (!%p7342_p1)
}
  0x51   :  { %150 = dma.hbm_to_vmem [thread:$0]  %s7671_s30, 32, %s7728_s22, [#allocation8], %s7542_s26, %s7542_s26, %s7543_s28  }
  0x52   :  { %s7544_s20 = smov [#allocation10]   ;;  %s7545_s10 = smov [#allocation13]  }
  0x53   :  { %s172_s7 = sshll.u32 %s7544_s20, 4  ;;  %s200_s11 = sshll.u32 %s7545_s10, 4  ;;  %s173_s7 = int_to_ptr.vmem [resolvable:$true] %s172_s7  ;;  %s7749_s11 = int_to_ptr.vmem [resolvable:$true] %s200_s11 }
  0x54   :  { %s7346_s15 = scalar_lea.hbm %s7691_s24, 96 }
  0x55   :  { %p7347_p2 = scmp.ne.s32.totalorder %s7691_s24, %s7346_s15  ;;  %p7350_p3 = scmp.lt.u32.totalorder %s7346_s15, %s7691_s24 }
  0x57   :  { %p7352_p4 = pnand %p7350_p3, %p7347_p2 }
  0x59   :  { %7355 = shalt.err (!%p7352_p4)
}
  0x5a   :  { %s7356_s16 = scalar_lea.vmem %s173_s7, 96  ;;  %p7361_p6 = scmp.lt.s32.totalorder %s173_s7, %s173_s7 }
  0x5b   :  { %p7357_p5 = scmp.ne.s32.totalorder %s173_s7, %s7356_s16  ;;  %p7362_p7 = scmp.lt.s32.totalorder %s7356_s16, %s7356_s16 }
  0x5d   :  { %p7363_p8 = por %p7362_p7, %p7361_p6 }
  0x5f   :  { %p7364_p9 = pnand %p7363_p8, %p7357_p5 }
  0x61   :  { %7367 = shalt.err (!%p7364_p9)
}
  0x62   :  { %178 = dma.hbm_to_vmem [thread:$0]  %s7691_s24, 96, %s173_s7, [#allocation11], %s7542_s26, %s7542_s26, %s7543_s28  }
  0x63   :  { %s7368_s30 = scalar_lea.hbm %s7711_s3, 32 }
  0x64   :  { %p7369_p10 = scmp.ne.s32.totalorder %s7711_s3, %s7368_s30  ;;  %p7372_p11 = scmp.lt.u32.totalorder %s7368_s30, %s7711_s3 }
  0x66   :  { %p7374_p12 = pnand %p7372_p11, %p7369_p10 }
  0x68   :  { %7377 = shalt.err (!%p7374_p12)
}
  0x69   :  { %s7378_s18 = scalar_lea.vmem %s7749_s11, 32  ;;  %p7383_p0 = scmp.lt.s32.totalorder %s7749_s11, %s7749_s11 }
  0x6a   :  { %p7379_p13 = scmp.ne.s32.totalorder %s7749_s11, %s7378_s18  ;;  %p7384_p1 = scmp.lt.s32.totalorder %s7378_s18, %s7378_s18 }
  0x6c   :  { %p7385_p2 = por %p7384_p1, %p7383_p0 }
  0x6e   :  { %p7386_p3 = pnand %p7385_p2, %p7379_p13 }
  0x70   :  { %7389 = shalt.err (!%p7386_p3)
}
  0x71   :  { %206 = dma.hbm_to_vmem [thread:$0]  %s7711_s3, 32, %s7749_s11, [#allocation14], %s7542_s26, %s7542_s26, %s7543_s28  }
  0x72   :  { %s7546_s24 = smov [#allocation2]   ;;  %s7547_s23 = smov [#allocation6]  }
  0x73   :  { %s80_s22 = sshll.u32 %s7546_s24, 4  ;;  %s130_s0 = sshll.u32 %s7547_s23, 4  ;;  %s81_s22 = int_to_ptr.vmem [resolvable:$true] %s80_s22  ;;  %s7770_s0 = int_to_ptr.vmem [resolvable:$true] %s130_s0 }
  0x74   :  { %s7390_s1 = scalar_lea.hbm %s7586_s13, 48 }
  0x75   :  { %p7391_p4 = scmp.ne.s32.totalorder %s7586_s13, %s7390_s1  ;;  %p7394_p5 = scmp.lt.u32.totalorder %s7390_s1, %s7586_s13 }
  0x77   :  { %p7396_p6 = pnand %p7394_p5, %p7391_p4 }
  0x79   :  { %7399 = shalt.err (!%p7396_p6)
}
  0x7a   :  { %s7400_s2 = scalar_lea.vmem %s81_s22, 48  ;;  %s7404_s20 = scalar_lea.vmem %s81_s22, 64 }
  0x7b   :  { %p7401_p7 = scmp.ne.s32.totalorder %s81_s22, %s7400_s2  ;;  %p7405_p8 = scmp.lt.s32.totalorder %s81_s22, %s81_s22 }
  0x7c   :  { %p7406_p9 = scmp.lt.s32.totalorder %s7404_s20, %s7400_s2 }
  0x7e   :  { %p7407_p10 = por %p7406_p9, %p7405_p8 }
  0x80   :  { %p7408_p11 = pnand %p7407_p10, %p7401_p7 }
  0x82   :  { %7411 = shalt.err (!%p7408_p11)
}
  0x83   :  { %86 = dma.hbm_to_vmem [thread:$0]  %s7586_s13, 48, %s81_s22, [#allocation3], %s7542_s26, %s7542_s26, %s7543_s28  }
  0x84   :  { %s7412_s3 = scalar_lea.hbm %s7661_s4, 32 }
  0x85   :  { %p7413_p12 = scmp.ne.s32.totalorder %s7661_s4, %s7412_s3  ;;  %p7416_p13 = scmp.lt.u32.totalorder %s7412_s3, %s7661_s4 }
  0x87   :  { %p7418_p0 = pnand %p7416_p13, %p7413_p12 }
  0x89   :  { %7421 = shalt.err (!%p7418_p0)
}
  0x8a   :  { %s7422_s7 = scalar_lea.vmem %s7770_s0, 32  ;;  %p7427_p2 = scmp.lt.s32.totalorder %s7770_s0, %s7770_s0 }
  0x8b   :  { %p7423_p1 = scmp.ne.s32.totalorder %s7770_s0, %s7422_s7  ;;  %p7428_p3 = scmp.lt.s32.totalorder %s7422_s7, %s7422_s7 }
  0x8d   :  { %p7429_p4 = por %p7428_p3, %p7427_p2 }
  0x8f   :  { %p7430_p5 = pnand %p7429_p4, %p7423_p1 }
  0x91   :  { %7433 = shalt.err (!%p7430_p5)
}
  0x92   :  { %136 = dma.hbm_to_vmem [thread:$0]  %s7661_s4, 32, %s7770_s0, [#allocation5], %s7542_s26, %s7542_s26, %s7543_s28  }
  0x93   :  { %s7548_s13 = smov [#allocation9]   ;;  %s7549_s11 = smov [#allocation12]  }
  0x94   :  { %s160_s10 = sshll.u32 %s7548_s13, 4  ;;  %s186_s15 = sshll.u32 %s7549_s11, 4  ;;  %s161_s10 = int_to_ptr.vmem [resolvable:$true] %s160_s10  ;;  %s7791_s15 = int_to_ptr.vmem [resolvable:$true] %s186_s15 }
  0x95   :  { %s7434_s16 = scalar_lea.hbm %s7686_s6, 96 }
  0x96   :  { %p7435_p6 = scmp.ne.s32.totalorder %s7686_s6, %s7434_s16  ;;  %p7438_p7 = scmp.lt.u32.totalorder %s7434_s16, %s7686_s6 }
  0x98   :  { %p7440_p8 = pnand %p7438_p7, %p7435_p6 }
  0x9a   :  { %7443 = shalt.err (!%p7440_p8)
}
  0x9b   :  { %s7444_s30 = scalar_lea.vmem %s161_s10, 96  ;;  %p7449_p10 = scmp.lt.s32.totalorder %s161_s10, %s161_s10 }
  0x9c   :  { %p7445_p9 = scmp.ne.s32.totalorder %s161_s10, %s7444_s30  ;;  %p7450_p11 = scmp.lt.s32.totalorder %s7444_s30, %s7444_s30 }
  0x9e   :  { %p7451_p12 = por %p7450_p11, %p7449_p10 }
  0xa0   :  { %p7452_p13 = pnand %p7451_p12, %p7445_p9 }
  0xa2   :  { %7455 = shalt.err (!%p7452_p13)
}
  0xa3   :  { %166 = dma.hbm_to_vmem [thread:$0]  %s7686_s6, 96, %s161_s10, [#allocation8], %s7542_s26, %s7542_s26, %s7543_s28  }
  0xa4   :  { %s7456_s4 = scalar_lea.hbm %s7701_s8, 32 }
  0xa5   :  { %p7457_p0 = scmp.ne.s32.totalorder %s7701_s8, %s7456_s4  ;;  %p7460_p1 = scmp.lt.u32.totalorder %s7456_s4, %s7701_s8 }
  0xa7   :  { %p7462_p2 = pnand %p7460_p1, %p7457_p0 }
  0xa9   :  { %7465 = shalt.err (!%p7462_p2)
}
  0xaa   :  { %s7466_s18 = scalar_lea.vmem %s7791_s15, 32  ;;  %p7471_p4 = scmp.lt.s32.totalorder %s7791_s15, %s7791_s15 }
  0xab   :  { %p7467_p3 = scmp.ne.s32.totalorder %s7791_s15, %s7466_s18  ;;  %p7472_p5 = scmp.lt.s32.totalorder %s7466_s18, %s7466_s18 }
  0xad   :  { %p7473_p6 = por %p7472_p5, %p7471_p4 }
  0xaf   :  { %p7474_p7 = pnand %p7473_p6, %p7467_p3 }
  0xb1   :  { %7477 = shalt.err (!%p7474_p7)
}
  0xb2   :  { %192 = dma.hbm_to_vmem [thread:$0]  %s7701_s8, 32, %s7791_s15, [#allocation11], %s7542_s26, %s7542_s26, %s7543_s28  }
  0xb3   :  { %s7550_s6 = smov [#allocation15]   ;;  %s7478_s22 = scalar_lea.hbm %s7721_s14, 16 }
  0xb4   :  { %s215_s24 = sshll.u32 %s7550_s6, 4  ;;  %p7479_p8 = scmp.ne.s32.totalorder %s7721_s14, %s7478_s22  ;;  %s216_s24 = int_to_ptr.vmem [resolvable:$true] %s215_s24 }
  0xb5   :  { %p7482_p9 = scmp.lt.u32.totalorder %s7478_s22, %s7721_s14 }
  0xb7   :  { %p7484_p10 = pnand %p7482_p9, %p7479_p8 }
  0xb9   :  { %7487 = shalt.err (!%p7484_p10)
}
  0xba   :  { %s7488_s23 = scalar_lea.vmem %s216_s24, 16  ;;  %s7492_s0 = scalar_lea.vmem %s216_s24, 32 }
  0xbb   :  { %p7489_p11 = scmp.ne.s32.totalorder %s216_s24, %s7488_s23  ;;  %p7493_p12 = scmp.lt.s32.totalorder %s216_s24, %s216_s24 }
  0xbc   :  { %p7494_p13 = scmp.lt.s32.totalorder %s7492_s0, %s7488_s23 }
  0xbe   :  { %p7495_p0 = por %p7494_p13, %p7493_p12 }
  0xc0   :  { %p7496_p1 = pnand %p7495_p0, %p7489_p11 }
  0xc2   :  { %7499 = shalt.err (!%p7496_p1)
}
  0xc3   :  { %218 = dma.hbm_to_vmem [thread:$0]  %s7721_s14, 16, %s216_s24, [#allocation14]  }
  0xc4   :  { %7500 = dma.done.wait [#allocation3], 48  }
  0xc5   :  { %7501 = vsyncadd [#allocation3], 4294967248 }
  0xc6   :  { %7502 = dma.done.wait [#allocation5], 64  }
  0xc7   :  { %7503 = vsyncadd [#allocation5], 4294967232 }
  0xc8   :  { %7504 = dma.done.wait [#allocation8], 128  }
  0xc9   :  { %7505 = vsyncadd [#allocation8], 4294967168 }
  0xca   :  { %7506 = dma.done.wait [#allocation11], 128  }
  0xcb   :  { %7507 = vsyncadd [#allocation11], 4294967168 }
  0xcc   :  { %7508 = dma.done.wait [#allocation14], 48  }
  0xcd   :  { %7509 = vsyncadd [#allocation14], 4294967248  ;;  %v304_v0 = vld [vmem:[%s7581_s9] sm:$0xff]  ;;  %v305_v1 = vld [vmem:[%s7581_s9 + $0x8] sm:$0xff]  ;;  %vm316_vm0 = vcmask 130048   ;;  %v251_v9 = vlaneseq  ;;  %v7551_v40 = vmov 0.0  }
  0xce   :  { %v247_v2 = vld [vmem:[%s7576_s5] sm:$0xff]  ;;  %v308_v3 = vpack.c.bf16 %v305_v1, %v304_v0  ;;  %v248_v4 = vld [vmem:[%s7576_s5 + $0x8] sm:$0xff]  ;;  %v249_v5 = vld [vmem:[%s7576_s5 + $0x10] sm:$0xff]  ;;  %vm482_vm7 = vcmask 261120   ;;  %vm505_vm8 = vcmask 392192   ;;  %s7553_s8 = smov 112  }
  0xcf   :  { %v250_v6 = vld [vmem:[%s7576_s5 + $0x18] sm:$0xff]  ;;  %v306_v7 = vpack.c.bf16 %v248_v4, %v247_v2  ;;  %v7825_v10 = vshrl.u32 %v251_v9, 7  ;;  %v487_v13 = vld [vmem:[%s7591_s17] sm:$0xff]  ;;  %v488_v14 = vld [vmem:[%s7591_s17 + $0x8] sm:$0xff]  ;;  %s7552_s5 = smov 32   ;;  %vm2267_vm15 = vcmask 1043456  }
  0xd0   :  { %6277 = vmatprep.subr.bf16.mxu0 %v308_v3  ;;  %v307_v8 = vpack.c.bf16 %v250_v6, %v249_v5  ;;  %v495_v16 = vpack.c.bf16 %v488_v14, %v487_v13  ;;  %v489_v18 = vld [vmem:[%s7591_s17 + $0x10] sm:$0xff]  ;;  %v490_v19 = vld [vmem:[%s7591_s17 + $0x18] sm:$0xff]  ;;  %v5827_v20 = vld [vmem:[#allocation2] ss:$0 sm:$0xff]  ;;  %s7556_s14 = smov 88   ;;  %s7558_s28 = smov 80  }
  0xd1   :  { %6278 = vmatpush3.bf16.msra.mxu0 %v308_v3  ;;  %6279 = vmatprep.mubr.msk.bf16.mxu0 %vm316_vm0, %v306_v7  ;;  %v7828_v11 = vadd.s32 8, %v7825_v10  ;;  %v7831_v12 = vadd.s32 24, %v7825_v10  ;;  %v496_v22 = vpack.c.bf16 %v490_v19, %v489_v18  ;;  %v491_v29 = vld [vmem:[%s7591_s17 + $0x20] sm:$0xff]  ;;  %v492_v30 = vld [vmem:[%s7591_s17 + $0x28] sm:$0xff]  ;;  %vm413_vm2 = vcmp.lt.s32.totalorder %v7825_v10, 7  ;;  %s7559_s1 = smov 120  }
  0xd2   :  { %6283 = vmatprep.subr.bf16.mxu1 %v495_v16  ;;  %v497_v33 = vpack.c.bf16 %v492_v30, %v491_v29  ;;  %v7883_v52 = vadd.s32 16, %v7825_v10  ;;  %v260_v53 = vand.u32 15, %v7825_v10  ;;  %vm376_vm4 = vcmp.lt.s32.totalorder %v7825_v10, 1  ;;  %s7560_s2 = smov 72   ;;  %s7561_s20 = smov 104  }
  0xd3   :  { %v267_v15 = vand.u32 15, %v7828_v11  ;;  %v281_v17 = vand.u32 15, %v7831_v12  ;;  %6284 = vmatpush3.bf16.msra.mxu1 %v495_v16  ;;  %vm684_vm10 = vcmp.lt.s32.totalorder %v7825_v10, 2  ;;  %vm721_vm11 = vcmp.lt.s32.totalorder %v7825_v10, 6  ;;  %s9075_s3 = sld [smem:[#allocation25_spill]]  ;;  %s7562_s7 = smov 64  }
  0xd4   :  { %6280 = vmatmul.mubr.msk.bf16.vlgmr.msra.gmra.mrb[0].mxu0 %vm316_vm0, %v307_v8  ;;  %6285 = vmatprep.subr.bf16.mxu1 %v496_v22  ;;  %v274_v54 = vand.u32 15, %v7883_v52  ;;  %v381_v55 = vadd.s32 4294967295, %v260_v53  ;;  %s7563_s13 = smov 48   ;;  %s7564_s10 = smov 40  }
  0xd5   :  { %v419_v21 = vadd.s32 1, %v267_v15  ;;  %v421_v25 = vadd.s32 1, %v281_v17  ;;  %s7565_s11 = smov 56   ;;  %s9076_s15 = sld [smem:[#allocation30_spill]] }
  0xd6   :  { %v383_v58 = vadd.s32 4294967295, %v274_v54  ;;  %vm385_vm5 = vcmp.ge.s32.totalorder %v381_v55, 0  ;;  %s9077_s16 = sld [smem:[#allocation29_spill]]  ;;  %s7566_s30 = smov 8  }
  0xd7   :  { %6286 = vmatpush3.bf16.msra.mxu1 %v496_v22  ;;  %vm427_vm1 = vcmp.lt.s32.totalorder %v419_v21, 16  ;;  %vm429_vm3 = vcmp.lt.s32.totalorder %v421_v25, 16  ;;  %v7898_v62 = vsel %vm385_vm5, 1.0, %v7551_v40  ;;  %vm2412_vm5 = vcmask 64512   ;;  %s7567_s4 = smov 24   ;;  %s9078_s18 = sld [smem:[#allocation31_spill]] }
  0xd8   :  { %6287 = vmatprep.subr.bf16.mxu1 %v497_v33  ;;  %v7861_v41 = vsel %vm427_vm1, 1.0, %v7551_v40  ;;  %v7869_v44 = vsel %vm429_vm3, 1.0, %v7551_v40  ;;  %vm387_vm6 = vcmp.ge.s32.totalorder %v383_v58, 0  ;;  %vm2260_vm1 = vcmask 162816   ;;  %s9079_s6 = sld [smem:[#allocation28_spill]]  ;;  %s9080_s24 = sld [smem:[#allocation26_spill]] }
  0xd9   :  { %v7902_v3 = vsel %vm387_vm6, 1.0, %v7551_v40  ;;  %vm2464_vm6 = vcmask 113664   ;;  %s9081_s22 = sld [smem:[#allocation32_spill]]  ;;  %s9082_s23 = sld [smem:[#allocation33_spill]] }
  0xdb   :  { %6288 = vmatpush3.bf16.msra.mxu1 %v497_v33 }
 0x1a7   :  { %v6281_v23 = vpop.f32.mrb[0].mxu0 }
 0x1a8   :  { %v357_v24 = vpop.f32.mrb[1].mxu0  ;;  %v7843_v26 = vadd.f32 %v6281_v23, %v5827_v20 }
 0x1a9   :  { %v7845_v27 = vadd.f32 %v5827_v20, %v357_v24  ;;  %v6282_v28 = vpop.f32.mrb[2].mxu0 }
 0x1aa   :  { %v7849_v31 = vadd.f32 %v6282_v28, %v5827_v20  ;;  %v360_v32 = vpop.f32.mrb[3].mxu0  ;;  %v411_v37 = vrot.slane %v7843_v26, 1  ;;  %v374_v1 = vrot.slane %v7843_v26, 7 }
 0x1ab   :  { %v7851_v34 = vadd.f32 %v5827_v20, %v360_v32  ;;  %v409_v35 = vrot.slane %v7845_v27, 1  ;;  %v372_v56 = vrot.slane %v7845_v27, 7 }
 0x1ac   :  { %v412_v36 = vrot.slane %v7849_v31, 1  ;;  %v6825_v46 = vpack.i.bf16 %v7849_v31, %v7843_v26  ;;  %v375_v57 = vrot.slane %v7849_v31, 7 }
 0x1ad   :  { %v6820_v38 = vpack.i.bf16 %v7851_v34, %v7845_v27  ;;  %v410_v39 = vrot.slane %v7851_v34, 1  ;;  %v373_v60 = vrot.slane %v7851_v34, 7 }
 0x1ae   :  { %v417_v43 = vsel %vm413_vm2, %v412_v36, %v409_v35  ;;  %v414_v50 = vsel %vm413_vm2, %v411_v37, %v412_v36  ;;  %v380_v61 = vsel %vm376_vm4, %v375_v57, %v372_v56  ;;  %v377_v25 = vsel %vm376_vm4, %v374_v1, %v375_v57 }
 0x1af   :  { %6821 = vrot.lane.b32.xlu0 %v6820_v38, %s7542_s26  ;;  %v415_v42 = vsel %vm413_vm2, %v410_v39, %v411_v37  ;;  %v416_v47 = vsel %vm413_vm2, %v409_v35, %v410_v39  ;;  %v445_v49 = vmul.f32 %v7869_v44, %v417_v43  ;;  %v405_v5 = vmul.f32 %v7898_v62, %v380_v61  ;;  %v5834_v37 = vld [vmem:[%s7596_s21] ss:$0 sm:$0xff] }
 0x1b0   :  { %v443_v45 = vmul.f32 %v7861_v41, %v415_v42  ;;  %v378_v6 = vsel %vm376_vm4, %v373_v60, %v374_v1  ;;  %v379_v13 = vsel %vm376_vm4, %v372_v56, %v373_v60  ;;  %v609_v1 = vld [vmem:[%s7601_s25] sm:$0xff] }
 0x1b1   :  { %v6835_v51 = vpack.i.bf16 %v445_v49, %v414_v50  ;;  %v407_v22 = vmul.f32 %v7902_v3, %v378_v6 }
 0x1b2   :  { %v6830_v48 = vpack.i.bf16 %v443_v45, %v416_v47 }
 0x1b3   :  { %6826 = vrot.lane.b32.xlu0 %v6825_v46, %s7542_s26 }
 0x1b4   :  { %6831 = vrot.lane.b32.xlu1 %v6830_v48, %s7552_s5 }
 0x1b8   :  { %6836 = vrot.lane.b32.xlu1 %v6835_v51, %s7552_s5 }
 0x221   :  { %v6822_v59 = vpop.permute.xlu0 %6821 }
 0x222   :  { %v6824_v63 = vunpack.i.h.bf16 %v6822_v59  ;;  %v6823_v0 = vunpack.i.l.bf16 %v6822_v59 }
 0x224   :  { %v478_v18 = vsel %vm316_vm0, %v405_v5, %v6823_v0  ;;  %v479_v19 = vsel %vm316_vm0, %v379_v13, %v6824_v63 }
 0x225   :  { %v6827_v2 = vpop.permute.xlu0 %6826 }
 0x226   :  { %v6832_v4 = vpop.permute.xlu1 %6831  ;;  %v6829_v14 = vunpack.i.h.bf16 %v6827_v2  ;;  %v6828_v16 = vunpack.i.l.bf16 %v6827_v2  ;;  %v610_v2 = vld [vmem:[%s7601_s25 + $0x8] sm:$0xff] }
 0x227   :  { %v6834_v7 = vunpack.i.h.bf16 %v6832_v4  ;;  %v6833_v8 = vunpack.i.l.bf16 %v6832_v4  ;;  %v613_v4 = vpack.c.bf16 %v610_v2, %v609_v1 }
 0x228   :  { %v481_v30 = vsel %vm316_vm0, %v377_v25, %v6829_v14  ;;  %v480_v32 = vsel %vm316_vm0, %v407_v22, %v6828_v16 }
 0x229   :  { %v483_v20 = vsel %vm482_vm7, %v478_v18, %v6833_v8  ;;  %v484_v21 = vsel %vm482_vm7, %v479_v19, %v6834_v7  ;;  %6293 = vmatprep.subr.bf16.mxu0 %v613_v4 }
 0x22a   :  { %v6837_v23 = vpop.permute.xlu1 %6836  ;;  %v493_v24 = vpack.c.bf16 %v484_v21, %v483_v20  ;;  %6294 = vmatpush3.bf16.msra.mxu0 %v613_v4 }
 0x22b   :  { %v6839_v28 = vunpack.i.h.bf16 %v6837_v23  ;;  %v6838_v29 = vunpack.i.l.bf16 %v6837_v23 }
 0x22c   :  { %6289 = vmatprep.mubr.msk.bf16.mxu1 %vm505_vm8, %v493_v24 }
 0x22d   :  { %v486_v33 = vsel %vm482_vm7, %v481_v30, %v6839_v28  ;;  %v485_v35 = vsel %vm482_vm7, %v480_v32, %v6838_v29  ;;  %v5848_v32 = vld [vmem:[%s7591_s17 + $0x30] sm:$0xff] }
 0x22e   :  { %v494_v36 = vpack.c.bf16 %v486_v33, %v485_v35  ;;  %v5849_v33 = vld [vmem:[%s7591_s17 + $0x38] sm:$0xff] }
 0x22f   :  { %v803_v35 = vpack.c.bf16 %v5849_v33, %v5848_v32 }
 0x230   :  { %6290 = vmatmul.mubr.msk.bf16.vlgmr.msra.gmra.mrb[0].mxu1 %vm505_vm8, %v494_v36  ;;  %v729_v36 = vadd.s32 2, %v281_v17 }
 0x231   :  { %6299 = vmatprep.subr.bf16.mxu0 %v803_v35 }
 0x232   :  { %vm737_vm9 = vcmp.lt.s32.totalorder %v729_v36, 16 }
 0x233   :  { %v7951_v11 = vsel %vm737_vm9, 1.0, %v7551_v40  ;;  %vm2494_vm9 = vcmask 1046528  }
 0x303   :  { %v6291_v38 = vpop.f32.mrb[0].mxu1 }
 0x304   :  { %v555_v39 = vadd.f32 %v6291_v38, %v5834_v37  ;;  %v546_v42 = vpop.f32.mrb[1].mxu1  ;;  %v5851_v38 = vld [vmem:[%s7591_s17 + $0x48] sm:$0xff] }
 0x305   :  { %v547_v43 = vadd.f32 %v5834_v37, %v546_v42  ;;  %v6292_v45 = vpop.f32.mrb[2].mxu1  ;;  %v5841_v42 = vld [vmem:[%s7606_s29] ss:$0 sm:$0xff] }
 0x306   :  { %v5839_v46 = vmul.f32 -1.442695, %v555_v39  ;;  %v558_v47 = vadd.f32 %v6292_v45, %v5834_v37  ;;  %v549_v48 = vpop.f32.mrb[3].mxu1 }
 0x307   :  { %v5837_v49 = vmul.f32 -1.442695, %v547_v43  ;;  %v550_v50 = vadd.f32 %v5834_v37, %v549_v48  ;;  %v5850_v37 = vld [vmem:[%s7591_s17 + $0x40] sm:$0xff] }
 0x308   :  { %7002 = vpow2.f32 %v5839_v46  ;;  %v5840_v51 = vmul.f32 -1.442695, %v558_v47  ;;  %v5852_v46 = vld [vmem:[%s7591_s17 + $0x50] sm:$0xff] }
 0x309   :  { %7004 = vpow2.f32 %v5837_v49  ;;  %v5838_v55 = vmul.f32 -1.442695, %v550_v50 }
 0x30a   :  { %7006 = vpow2.f32 %v5840_v51 }
 0x30b   :  { %7008 = vpow2.f32 %v5838_v55 }
 0x312   :  { %v7003_v56 = vpop.eup %7002 }
 0x313   :  { %v7005_v57 = vpop.eup %7004  ;;  %v579_v59 = vadd.f32 1.0, %v7003_v56 }
 0x314   :  { %v577_v58 = vadd.f32 1.0, %v7005_v57  ;;  %v7007_v60 = vpop.eup %7006 }
 0x315   :  { %v7009_v61 = vpop.eup %7008  ;;  %v580_v0 = vadd.f32 1.0, %v7007_v60 }
 0x316   :  { %7010 = vrcp.f32 %v577_v58  ;;  %v578_v63 = vadd.f32 1.0, %v7009_v61 }
 0x317   :  { %7012 = vrcp.f32 %v579_v59 }
 0x318   :  { %7014 = vrcp.f32 %v578_v63 }
 0x319   :  { %7016 = vrcp.f32 %v580_v0 }
 0x31a   :  { %7018 = vtanh.f32 %v547_v43  ;;  %v727_v43 = vadd.s32 2, %v267_v15 }
 0x31b   :  { %7020 = vtanh.f32 %v550_v50 }
 0x31c   :  { %7022 = vtanh.f32 %v555_v39  ;;  %v804_v39 = vpack.c.bf16 %v5851_v38, %v5850_v37  ;;  %vm735_vm12 = vcmp.lt.s32.totalorder %v727_v43, 16 }
 0x31d   :  { %7024 = vtanh.f32 %v558_v47  ;;  %v5853_v47 = vld [vmem:[%s7591_s17 + $0x58] sm:$0xff]  ;;  %v7968_v4 = vsel %vm735_vm12, 1.0, %v7551_v40  ;;  %vm3943_vm12 = vcmask 523264  }
 0x31e   :  { %v805_v50 = vpack.c.bf16 %v5853_v47, %v5852_v46 }
 0x320   :  { %v7011_v5 = vpop.eup %7010 }
 0x321   :  { %593 = vrot.lane.b32.xlu0 %v7011_v5, %s7553_s8  ;;  %v7013_v6 = vpop.eup %7012 }
 0x322   :  { %v7015_v7 = vpop.eup %7014 }
 0x323   :  { %595 = vrot.lane.b32.xlu1 %v7015_v7, %s7553_s8  ;;  %v7017_v8 = vpop.eup %7016 }
 0x324   :  { %v7019_v14 = vpop.eup %7018 }
 0x325   :  { %597 = vrot.lane.b32.xlu0 %v7013_v6, %s7553_s8  ;;  %v7021_v16 = vpop.eup %7020 }
 0x326   :  { %v7023_v22 = vpop.eup %7022 }
 0x327   :  { %599 = vrot.lane.b32.xlu1 %v7017_v8, %s7553_s8  ;;  %v7025_v24 = vpop.eup %7024 }
 0x393   :  { %v594_v13 = vpop.permute.xlu0 %593 }
 0x394   :  { %v605_v19 = vmul.f32 %v7019_v14, %v594_v13 }
 0x395   :  { %v596_v18 = vpop.permute.xlu1 %595 }
 0x396   :  { %v606_v20 = vmul.f32 %v7021_v16, %v596_v18 }
 0x397   :  { %v598_v21 = vpop.permute.xlu0 %597 }
 0x398   :  { %v611_v23 = vpack.c.bf16 %v606_v20, %v605_v19  ;;  %v607_v28 = vmul.f32 %v7023_v22, %v598_v21 }
 0x399   :  { %v600_v25 = vpop.permute.xlu1 %599 }
 0x39a   :  { %v608_v29 = vmul.f32 %v7025_v24, %v600_v25  ;;  %6295 = vmatprep.mubr.msk.bf16.mxu0 %vm316_vm0, %v611_v23  ;;  %v691_v23 = vadd.s32 4294967294, %v274_v54  ;;  %v689_v24 = vadd.s32 4294967294, %v260_v53 }
 0x39c   :  { %v612_v30 = vpack.c.bf16 %v608_v29, %v607_v28  ;;  %vm695_vm13 = vcmp.ge.s32.totalorder %v691_v23, 0  ;;  %vm693_vm14 = vcmp.ge.s32.totalorder %v689_v24, 0 }
 0x39d   :  { %v7997_v29 = vsel %vm695_vm13, 1.0, %v7551_v40  ;;  %v8000_v33 = vsel %vm693_vm14, 1.0, %v7551_v40 }
 0x39e   :  { %6296 = vmatmul.mubr.msk.bf16.vlgmr.msra.gmra.mrb[4].mxu0 %vm316_vm0, %v612_v30 }
 0x39f   :  { %6300 = vmatpush3.bf16.msra.mxu0 %v803_v35 }
 0x3a0   :  { %6301 = vmatprep.subr.bf16.mxu0 %v804_v39 }
 0x3a3   :  { %6302 = vmatpush3.bf16.msra.mxu0 %v804_v39 }
 0x3a4   :  { %6303 = vmatprep.subr.bf16.mxu0 %v805_v50 }
 0x3a7   :  { %6304 = vmatpush3.bf16.msra.mxu0 %v805_v50 }
 0x471   :  { %v6297_v45 = vpop.f32.mrb[4].mxu0 }
 0x472   :  { %v7942_v48 = vadd.f32 %v6297_v45, %v5841_v42  ;;  %v661_v49 = vpop.f32.mrb[5].mxu0 }
 0x473   :  { %v7944_v12 = vadd.f32 %v5841_v42, %v661_v49  ;;  %v6298_v17 = vpop.f32.mrb[6].mxu0 }
 0x474   :  { %v7947_v51 = vadd.f32 %v6298_v17, %v5841_v42  ;;  %v664_v55 = vpop.f32.mrb[7].mxu0  ;;  %v682_v15 = vrot.slane %v7942_v48, 6  ;;  %v719_v59 = vrot.slane %v7942_v48, 2 }
 0x475   :  { %v680_v56 = vrot.slane %v7944_v12, 6  ;;  %v717_v57 = vrot.slane %v7944_v12, 2  ;;  %v7956_v58 = vadd.f32 %v5841_v42, %v664_v55 }
 0x476   :  { %v683_v60 = vrot.slane %v7947_v51, 6  ;;  %v720_v61 = vrot.slane %v7947_v51, 2  ;;  %v6840_v63 = vpack.i.bf16 %v7947_v51, %v7942_v48 }
 0x477   :  { %v681_v0 = vrot.slane %v7956_v58, 6  ;;  %v718_v1 = vrot.slane %v7956_v58, 2  ;;  %v6845_v2 = vpack.i.bf16 %v7956_v58, %v7944_v12 }
 0x478   :  { %v688_v5 = vsel %vm684_vm10, %v683_v60, %v680_v56  ;;  %6841 = vrot.lane.b32.xlu1 %v6840_v63, %s7542_s26  ;;  %v722_v6 = vsel %vm721_vm11, %v719_v59, %v720_v61  ;;  %v725_v7 = vsel %vm721_vm11, %v720_v61, %v717_v57  ;;  %v685_v8 = vsel %vm684_vm10, %v682_v15, %v683_v60 }
 0x479   :  { %v686_v13 = vsel %vm684_vm10, %v681_v0, %v682_v15  ;;  %6846 = vrot.lane.b32.xlu0 %v6845_v2, %s7542_s26  ;;  %v753_v14 = vmul.f32 %v7951_v11, %v725_v7  ;;  %v723_v16 = vsel %vm721_vm11, %v718_v1, %v719_v59  ;;  %v724_v18 = vsel %vm721_vm11, %v717_v57, %v718_v1  ;;  %v5855_v59 = vld [vmem:[%s7596_s21 + $0x1] ss:$0 sm:$0xff] }
 0x47a   :  { %v751_v19 = vmul.f32 %v7968_v4, %v723_v16  ;;  %v687_v20 = vsel %vm684_vm10, %v680_v56, %v681_v0  ;;  %v715_v52 = vmul.f32 %v7997_v29, %v686_v13  ;;  %v713_v37 = vmul.f32 %v8000_v33, %v688_v5 }
 0x47b   :  { %v6855_v21 = vpack.i.bf16 %v753_v14, %v722_v6 }
 0x47c   :  { %v6850_v22 = vpack.i.bf16 %v751_v19, %v724_v18 }
 0x47d   :  { %6856 = vrot.lane.b32.xlu1 %v6855_v21, %s7552_s5 }
 0x47e   :  { %6851 = vrot.lane.b32.xlu0 %v6850_v22, %s7552_s5 }
 0x4ea   :  { %v6842_v25 = vpop.permute.xlu1 %6841 }
 0x4eb   :  { %v6847_v28 = vpop.permute.xlu0 %6846  ;;  %v6844_v30 = vunpack.i.h.bf16 %v6842_v25  ;;  %v6843_v32 = vunpack.i.l.bf16 %v6842_v25  ;;  %v5862_v25 = vld [vmem:[%s7601_s25 + $0x10] sm:$0xff] }
 0x4ec   :  { %v6849_v35 = vunpack.i.h.bf16 %v6847_v28  ;;  %v6848_v36 = vunpack.i.l.bf16 %v6847_v28  ;;  %v5863_v28 = vld [vmem:[%s7601_s25 + $0x18] sm:$0xff] }
 0x4ed   :  { %v788_v42 = vsel %vm316_vm0, %v715_v52, %v6843_v32  ;;  %v789_v43 = vsel %vm316_vm0, %v685_v8, %v6844_v30  ;;  %v922_v30 = vpack.c.bf16 %v5863_v28, %v5862_v25 }
 0x4ee   :  { %v786_v47 = vsel %vm316_vm0, %v713_v37, %v6848_v36  ;;  %v787_v49 = vsel %vm316_vm0, %v687_v20, %v6849_v35 }
 0x4ef   :  { %v6857_v54 = vpop.permute.xlu1 %6856  ;;  %6309 = vmatprep.subr.bf16.mxu1 %v922_v30 }
 0x4f0   :  { %v6859_v53 = vunpack.i.h.bf16 %v6857_v54  ;;  %v6858_v38 = vunpack.i.l.bf16 %v6857_v54  ;;  %v6852_v39 = vpop.permute.xlu0 %6851  ;;  %6310 = vmatpush3.bf16.msra.mxu1 %v922_v30 }
 0x4f1   :  { %v6854_v45 = vunpack.i.h.bf16 %v6852_v39  ;;  %v6853_v46 = vunpack.i.l.bf16 %v6852_v39 }
 0x4f2   :  { %v793_v50 = vsel %vm482_vm7, %v789_v43, %v6859_v53  ;;  %v792_v17 = vsel %vm482_vm7, %v788_v42, %v6858_v38 }
 0x4f3   :  { %v802_v55 = vpack.c.bf16 %v793_v50, %v792_v17  ;;  %v790_v15 = vsel %vm482_vm7, %v786_v47, %v6853_v46  ;;  %v791_v56 = vsel %vm482_vm7, %v787_v49, %v6854_v45 }
 0x4f4   :  { %v801_v57 = vpack.c.bf16 %v791_v56, %v790_v15  ;;  %v5868_v15 = vld [vmem:[%s7581_s9 + $0x10] sm:$0xff]  ;;  %v5869_v56 = vld [vmem:[%s7581_s9 + $0x18] sm:$0xff] }
 0x4f6   :  { %6305 = vmatprep.mubr.msk.bf16.mxu0 %vm505_vm8, %v801_v57  ;;  %v995_v57 = vpack.c.bf16 %v5869_v56, %v5868_v15 }
 0x4f7   :  { %6306 = vmatmul.mubr.msk.bf16.vlgmr.msra.gmra.mrb[8].mxu0 %vm505_vm8, %v802_v55 }
 0x4f8   :  { %6315 = vmatprep.subr.bf16.mxu1 %v995_v57 }
 0x5ca   :  { %v6307_v60 = vpop.f32.mrb[8].mxu0 }
 0x5cb   :  { %v863_v61 = vadd.f32 %v6307_v60, %v5855_v59  ;;  %v854_v63 = vpop.f32.mrb[9].mxu0 }
 0x5cc   :  { %v855_v0 = vadd.f32 %v5855_v59, %v854_v63  ;;  %v6308_v1 = vpop.f32.mrb[10].mxu0 }
 0x5cd   :  { %v5860_v2 = vmul.f32 -1.442695, %v863_v61  ;;  %v866_v5 = vadd.f32 %v6308_v1, %v5855_v59  ;;  %v857_v6 = vpop.f32.mrb[11].mxu0  ;;  %v676_v1 = vadd.f32 %v7944_v12, %v7845_v27 }
 0x5ce   :  { %v5858_v7 = vmul.f32 -1.442695, %v855_v0  ;;  %v858_v8 = vadd.f32 %v5855_v59, %v857_v6  ;;  %v5865_v59 = vld [vmem:[%s7606_s29 + $0x1] ss:$0 sm:$0xff] }
 0x5cf   :  { %7026 = vpow2.f32 %v5860_v2  ;;  %v5861_v13 = vmul.f32 -1.442695, %v866_v5 }
 0x5d0   :  { %7028 = vpow2.f32 %v5858_v7  ;;  %v5859_v14 = vmul.f32 -1.442695, %v858_v8  ;;  %v679_v7 = vadd.f32 %v7947_v51, %v7849_v31  ;;  %v5873_v31 = vld [vmem:[%s7591_s17 + $0x60] sm:$0xff]  ;;  %v5874_v51 = vld [vmem:[%s7591_s17 + $0x68] sm:$0xff] }
 0x5d1   :  { %7030 = vpow2.f32 %v5861_v13 }
 0x5d2   :  { %7032 = vpow2.f32 %v5859_v14 }
 0x5d9   :  { %v7027_v16 = vpop.eup %7026 }
 0x5da   :  { %v7029_v18 = vpop.eup %7028  ;;  %v887_v20 = vadd.f32 1.0, %v7027_v16 }
 0x5db   :  { %v885_v19 = vadd.f32 1.0, %v7029_v18  ;;  %v7031_v21 = vpop.eup %7030 }
 0x5dc   :  { %v7033_v22 = vpop.eup %7032  ;;  %v888_v24 = vadd.f32 1.0, %v7031_v21  ;;  %v5876_v21 = vld [vmem:[%s7591_s17 + $0x78] sm:$0xff] }
 0x5dd   :  { %7034 = vrcp.f32 %v885_v19  ;;  %v886_v23 = vadd.f32 1.0, %v7033_v22  ;;  %v1132_v19 = vpack.c.bf16 %v5874_v51, %v5873_v31 }
 0x5de   :  { %7036 = vrcp.f32 %v887_v20  ;;  %v5875_v20 = vld [vmem:[%s7591_s17 + $0x70] sm:$0xff] }
 0x5df   :  { %7038 = vrcp.f32 %v886_v23  ;;  %6321 = vmatprep.subr.bf16.mxu0 %v1132_v19  ;;  %v1133_v22 = vpack.c.bf16 %v5876_v21, %v5875_v20  ;;  %v5877_v23 = vld [vmem:[%s7591_s17 + $0x80] sm:$0xff] }
 0x5e0   :  { %7040 = vrcp.f32 %v888_v24  ;;  %6322 = vmatpush3.bf16.msra.mxu0 %v1132_v19  ;;  %v5878_v24 = vld [vmem:[%s7591_s17 + $0x88] sm:$0xff] }
 0x5e1   :  { %7042 = vtanh.f32 %v855_v0  ;;  %6323 = vmatprep.subr.bf16.mxu0 %v1133_v22  ;;  %v1134_v28 = vpack.c.bf16 %v5878_v24, %v5877_v23 }
 0x5e2   :  { %7044 = vtanh.f32 %v858_v8 }
 0x5e3   :  { %7046 = vtanh.f32 %v863_v61  ;;  %v678_v61 = vadd.f32 %v7942_v48, %v7843_v26  ;;  %v677_v26 = vadd.f32 %v7956_v58, %v7851_v34  ;;  %v5870_v34 = vld [vmem:[#allocation2 + $0x1] ss:$0 sm:$0xff] }
 0x5e4   :  { %7048 = vtanh.f32 %v866_v5  ;;  %6324 = vmatpush3.bf16.msra.mxu0 %v1133_v22 }
 0x5e5   :  { %6325 = vmatprep.subr.bf16.mxu0 %v1134_v28 }
 0x5e7   :  { %v7035_v32 = vpop.eup %7034 }
 0x5e8   :  { %901 = vrot.lane.b32.xlu0 %v7035_v32, %s7553_s8  ;;  %v7037_v35 = vpop.eup %7036  ;;  %6326 = vmatpush3.bf16.msra.mxu0 %v1134_v28  ;;  %v5880_v28 = vld [vmem:[%s7596_s21 + $0x2] ss:$0 sm:$0xff] }
 0x5e9   :  { %v7039_v36 = vpop.eup %7038 }
 0x5ea   :  { %903 = vrot.lane.b32.xlu1 %v7039_v36, %s7553_s8  ;;  %v7041_v52 = vpop.eup %7040 }
 0x5eb   :  { %v7043_v37 = vpop.eup %7042 }
 0x5ec   :  { %905 = vrot.lane.b32.xlu0 %v7037_v35, %s7553_s8  ;;  %v7045_v53 = vpop.eup %7044 }
 0x5ed   :  { %v7047_v45 = vpop.eup %7046 }
 0x5ee   :  { %907 = vrot.lane.b32.xlu1 %v7041_v52, %s7553_s8  ;;  %v7049_v47 = vpop.eup %7048 }
 0x65a   :  { %v902_v54 = vpop.permute.xlu0 %901 }
 0x65b   :  { %v913_v39 = vmul.f32 %v7043_v37, %v902_v54 }
 0x65c   :  { %v904_v38 = vpop.permute.xlu1 %903 }
 0x65d   :  { %v914_v42 = vmul.f32 %v7045_v53, %v904_v38 }
 0x65e   :  { %v906_v43 = vpop.permute.xlu0 %905 }
 0x65f   :  { %v920_v46 = vpack.c.bf16 %v914_v42, %v913_v39  ;;  %v915_v50 = vmul.f32 %v7047_v45, %v906_v43 }
 0x660   :  { %v908_v49 = vpop.permute.xlu1 %907 }
 0x661   :  { %v916_v17 = vmul.f32 %v7049_v47, %v908_v49  ;;  %6311 = vmatprep.mubr.msk.bf16.mxu1 %vm316_vm0, %v920_v46 }
 0x663   :  { %v921_v55 = vpack.c.bf16 %v916_v17, %v915_v50 }
 0x665   :  { %6312 = vmatmul.mubr.msk.bf16.vlgmr.msra.gmra.mrb[4].mxu1 %vm316_vm0, %v921_v55 }
 0x666   :  { %6316 = vmatpush3.bf16.msra.mxu1 %v995_v57 }
 0x738   :  { %v6313_v60 = vpop.f32.mrb[4].mxu1 }
 0x739   :  { %v980_v63 = vadd.f32 %v6313_v60, %v5865_v59  ;;  %v971_v0 = vpop.f32.mrb[5].mxu1 }
 0x73a   :  { %v972_v2 = vadd.f32 %v5865_v59, %v971_v0  ;;  %v6314_v5 = vpop.f32.mrb[6].mxu1 }
 0x73b   :  { %v988_v6 = vadd.f32 %v980_v63, %v678_v61  ;;  %v983_v8 = vadd.f32 %v6314_v5, %v5865_v59  ;;  %v974_v13 = vpop.f32.mrb[7].mxu1 }
 0x73c   :  { %v986_v14 = vadd.f32 %v972_v2, %v676_v1  ;;  %v975_v48 = vadd.f32 %v5865_v59, %v974_v13 }
 0x73d   :  { %v989_v16 = vadd.f32 %v983_v8, %v679_v7 }
 0x73e   :  { %v987_v18 = vadd.f32 %v975_v48, %v677_v26 }
 0x73f   :  { %v994_v27 = vpack.c.bf16 %v989_v16, %v988_v6 }
 0x740   :  { %v993_v12 = vpack.c.bf16 %v987_v18, %v986_v14 }
 0x742   :  { %6317 = vmatprep.mubr.msk.bf16.mxu1 %vm316_vm0, %v993_v12 }
 0x743   :  { %6318 = vmatmul.mubr.msk.bf16.vlgmr.msra.gmra.mrb[8].mxu1 %vm316_vm0, %v994_v27 }
 0x816   :  { %v6319_v58 = vpop.f32.mrb[8].mxu1 }
 0x817   :  { %v1044_v25 = vpop.f32.mrb[9].mxu1  ;;  %v8042_v30 = vadd.f32 %v6319_v58, %v5870_v34 }
 0x818   :  { %v8044_v32 = vadd.f32 %v5870_v34, %v1044_v25  ;;  %v6320_v35 = vpop.f32.mrb[10].mxu1 }
 0x819   :  { %v8046_v36 = vadd.f32 %v6320_v35, %v5870_v34  ;;  %v1047_v52 = vpop.f32.mrb[11].mxu1  ;;  %v1073_v39 = vrot.slane %v8042_v30, 1  ;;  %v1061_v60 = vrot.slane %v8042_v30, 7 }
 0x81a   :  { %v1071_v54 = vrot.slane %v8044_v32, 1  ;;  %v8049_v37 = vadd.f32 %v5870_v34, %v1047_v52  ;;  %v1059_v57 = vrot.slane %v8044_v32, 7 }
 0x81b   :  { %v1074_v53 = vrot.slane %v8046_v36, 1  ;;  %v6860_v38 = vpack.i.bf16 %v8046_v36, %v8042_v30  ;;  %v1062_v59 = vrot.slane %v8046_v36, 7 }
 0x81c   :  { %v1072_v42 = vrot.slane %v8049_v37, 1  ;;  %v6865_v43 = vpack.i.bf16 %v8049_v37, %v8044_v32  ;;  %v1060_v56 = vrot.slane %v8049_v37, 7 }
 0x81d   :  { %6861 = vrot.lane.b32.xlu1 %v6860_v38, %s7542_s26  ;;  %v1078_v45 = vsel %vm413_vm2, %v1074_v53, %v1071_v54  ;;  %v1075_v49 = vsel %vm413_vm2, %v1073_v39, %v1074_v53  ;;  %v1066_v1 = vsel %vm376_vm4, %v1062_v59, %v1059_v57  ;;  %v1063_v8 = vsel %vm376_vm4, %v1061_v60, %v1062_v59 }
 0x81e   :  { %6866 = vrot.lane.b32.xlu0 %v6865_v43, %s7542_s26  ;;  %v1082_v46 = vmul.f32 %v7869_v44, %v1078_v45  ;;  %v1076_v47 = vsel %vm413_vm2, %v1072_v42, %v1073_v39  ;;  %v1077_v55 = vsel %vm413_vm2, %v1071_v54, %v1072_v42  ;;  %v1064_v0 = vsel %vm376_vm4, %v1060_v56, %v1061_v60 }
 0x81f   :  { %v1080_v50 = vmul.f32 %v7861_v41, %v1076_v47  ;;  %v1069_v13 = vmul.f32 %v7902_v3, %v1064_v0  ;;  %v1065_v26 = vsel %vm376_vm4, %v1059_v57, %v1060_v56  ;;  %v1067_v48 = vmul.f32 %v7898_v62, %v1066_v1 }
 0x820   :  { %v6875_v17 = vpack.i.bf16 %v1082_v46, %v1075_v49 }
 0x821   :  { %v6870_v15 = vpack.i.bf16 %v1080_v50, %v1077_v55 }
 0x822   :  { %6876 = vrot.lane.b32.xlu1 %v6875_v17, %s7552_s5 }
 0x823   :  { %6871 = vrot.lane.b32.xlu0 %v6870_v15, %s7552_s5 }
 0x88f   :  { %v6862_v61 = vpop.permute.xlu1 %6861 }
 0x890   :  { %v6867_v63 = vpop.permute.xlu0 %6866  ;;  %v6864_v2 = vunpack.i.h.bf16 %v6862_v61  ;;  %v6863_v5 = vunpack.i.l.bf16 %v6862_v61  ;;  %v5887_v61 = vld [vmem:[%s7601_s25 + $0x20] sm:$0xff] }
 0x891   :  { %v6869_v6 = vunpack.i.h.bf16 %v6867_v63  ;;  %v6868_v7 = vunpack.i.l.bf16 %v6867_v63  ;;  %v5888_v63 = vld [vmem:[%s7601_s25 + $0x28] sm:$0xff] }
 0x892   :  { %v1117_v12 = vsel %vm316_vm0, %v1069_v13, %v6863_v5  ;;  %v1118_v31 = vsel %vm316_vm0, %v1063_v8, %v6864_v2  ;;  %v1251_v0 = vpack.c.bf16 %v5888_v63, %v5887_v61 }
 0x893   :  { %v1115_v20 = vsel %vm316_vm0, %v1067_v48, %v6868_v7  ;;  %v1116_v21 = vsel %vm316_vm0, %v1065_v26, %v6869_v6 }
 0x894   :  { %v6877_v14 = vpop.permute.xlu1 %6876  ;;  %6331 = vmatprep.subr.bf16.mxu1 %v1251_v0 }
 0x895   :  { %v6879_v16 = vunpack.i.h.bf16 %v6877_v14  ;;  %v6878_v18 = vunpack.i.l.bf16 %v6877_v14  ;;  %v6872_v27 = vpop.permute.xlu0 %6871  ;;  %6332 = vmatpush3.bf16.msra.mxu1 %v1251_v0 }
 0x896   :  { %v6874_v51 = vunpack.i.h.bf16 %v6872_v27  ;;  %v6873_v19 = vunpack.i.l.bf16 %v6872_v27 }
 0x897   :  { %v1122_v22 = vsel %vm482_vm7, %v1118_v31, %v6879_v16  ;;  %v1121_v34 = vsel %vm482_vm7, %v1117_v12, %v6878_v18 }
 0x898   :  { %v1119_v58 = vsel %vm482_vm7, %v1115_v20, %v6873_v19  ;;  %v1120_v23 = vsel %vm482_vm7, %v1116_v21, %v6874_v51  ;;  %v1131_v25 = vpack.c.bf16 %v1122_v22, %v1121_v34  ;;  %v5893_v21 = vld [vmem:[%s7591_s17 + $0x90] sm:$0xff]  ;;  %v5894_v22 = vld [vmem:[%s7591_s17 + $0x98] sm:$0xff] }
 0x899   :  { %v1130_v24 = vpack.c.bf16 %v1120_v23, %v1119_v58  ;;  %v1392_v34 = vpack.c.bf16 %v5894_v22, %v5893_v21  ;;  %v5895_v58 = vld [vmem:[%s7591_s17 + $0xa0] sm:$0xff]  ;;  %v5896_v23 = vld [vmem:[%s7591_s17 + $0xa8] sm:$0xff] }
 0x89b   :  { %6327 = vmatprep.mubr.msk.bf16.mxu0 %vm505_vm8, %v1130_v24  ;;  %6337 = vmatprep.subr.bf16.mxu0 %v1392_v34  ;;  %v1393_v24 = vpack.c.bf16 %v5896_v23, %v5895_v58 }
 0x89c   :  { %6328 = vmatmul.mubr.msk.bf16.vlgmr.msra.gmra.mrb[12].mxu0 %vm505_vm8, %v1131_v25  ;;  %v5890_v25 = vld [vmem:[%s7606_s29 + $0x2] ss:$0 sm:$0xff] }
 0x89d   :  { %6338 = vmatpush3.bf16.msra.mxu0 %v1392_v34 }
 0x89e   :  { %6339 = vmatprep.subr.bf16.mxu0 %v1393_v24 }
 0x8a1   :  { %6340 = vmatpush3.bf16.msra.mxu0 %v1393_v24 }
 0x96f   :  { %v6329_v35 = vpop.f32.mrb[12].mxu0 }
 0x970   :  { %v1192_v52 = vadd.f32 %v6329_v35, %v5880_v28  ;;  %v1183_v54 = vpop.f32.mrb[13].mxu0  ;;  %v5897_v35 = vld [vmem:[%s7591_s17 + $0xb0] sm:$0xff] }
 0x971   :  { %v1184_v53 = vadd.f32 %v5880_v28, %v1183_v54  ;;  %v6330_v38 = vpop.f32.mrb[14].mxu0 }
 0x972   :  { %v5885_v39 = vmul.f32 -1.442695, %v1192_v52  ;;  %v1195_v42 = vadd.f32 %v6330_v38, %v5880_v28  ;;  %v1186_v43 = vpop.f32.mrb[15].mxu0 }
 0x973   :  { %v5883_v45 = vmul.f32 -1.442695, %v1184_v53  ;;  %v1187_v46 = vadd.f32 %v5880_v28, %v1186_v43 }
 0x974   :  { %7050 = vpow2.f32 %v5885_v39  ;;  %v5886_v47 = vmul.f32 -1.442695, %v1195_v42 }
 0x975   :  { %7052 = vpow2.f32 %v5883_v45  ;;  %v5884_v49 = vmul.f32 -1.442695, %v1187_v46 }
 0x976   :  { %7054 = vpow2.f32 %v5886_v47 }
 0x977   :  { %7056 = vpow2.f32 %v5884_v49 }
 0x97e   :  { %v7051_v50 = vpop.eup %7050 }
 0x97f   :  { %v7053_v17 = vpop.eup %7052  ;;  %v1216_v15 = vadd.f32 1.0, %v7051_v50 }
 0x980   :  { %v1214_v55 = vadd.f32 1.0, %v7053_v17  ;;  %v7055_v56 = vpop.eup %7054 }
 0x981   :  { %v7057_v57 = vpop.eup %7056  ;;  %v1217_v60 = vadd.f32 1.0, %v7055_v56 }
 0x982   :  { %7058 = vrcp.f32 %v1214_v55  ;;  %v1215_v59 = vadd.f32 1.0, %v7057_v57 }
 0x983   :  { %7060 = vrcp.f32 %v1216_v15 }
 0x984   :  { %7062 = vrcp.f32 %v1215_v59 }
 0x985   :  { %7064 = vrcp.f32 %v1217_v60 }
 0x986   :  { %7066 = vtanh.f32 %v1184_v53 }
 0x987   :  { %7068 = vtanh.f32 %v1187_v46 }
 0x988   :  { %7070 = vtanh.f32 %v1192_v52  ;;  %v5898_v52 = vld [vmem:[%s7591_s17 + $0xb8] sm:$0xff] }
 0x989   :  { %7072 = vtanh.f32 %v1195_v42  ;;  %v1394_v38 = vpack.c.bf16 %v5898_v52, %v5897_v35 }
 0x98b   :  { %6341 = vmatprep.subr.bf16.mxu0 %v1394_v38 }
 0x98c   :  { %v7059_v1 = vpop.eup %7058  ;;  %6342 = vmatpush3.bf16.msra.mxu0 %v1394_v38 }
 0x98d   :  { %1230 = vrot.lane.b32.xlu0 %v7059_v1, %s7553_s8  ;;  %v7061_v2 = vpop.eup %7060 }
 0x98e   :  { %v7063_v5 = vpop.eup %7062 }
 0x98f   :  { %1232 = vrot.lane.b32.xlu1 %v7063_v5, %s7553_s8  ;;  %v7065_v6 = vpop.eup %7064 }
 0x990   :  { %v7067_v8 = vpop.eup %7066 }
 0x991   :  { %1234 = vrot.lane.b32.xlu0 %v7061_v2, %s7553_s8  ;;  %v7069_v13 = vpop.eup %7068 }
 0x992   :  { %v7071_v18 = vpop.eup %7070 }
 0x993   :  { %1236 = vrot.lane.b32.xlu1 %v7065_v6, %s7553_s8  ;;  %v7073_v12 = vpop.eup %7072 }
 0x9ff   :  { %v1231_v7 = vpop.permute.xlu0 %1230 }
 0xa00   :  { %v1242_v26 = vmul.f32 %v7067_v8, %v1231_v7 }
 0xa01   :  { %v1233_v14 = vpop.permute.xlu1 %1232 }
 0xa02   :  { %v1243_v48 = vmul.f32 %v7069_v13, %v1233_v14 }
 0xa03   :  { %v1235_v16 = vpop.permute.xlu0 %1234 }
 0xa04   :  { %v1249_v27 = vpack.c.bf16 %v1243_v48, %v1242_v26  ;;  %v1244_v51 = vmul.f32 %v7071_v18, %v1235_v16 }
 0xa05   :  { %v1237_v31 = vpop.permute.xlu1 %1236 }
 0xa06   :  { %v1245_v19 = vmul.f32 %v7073_v12, %v1237_v31  ;;  %6333 = vmatprep.mubr.msk.bf16.mxu1 %vm316_vm0, %v1249_v27 }
 0xa08   :  { %v1250_v20 = vpack.c.bf16 %v1245_v19, %v1244_v51 }
 0xa0a   :  { %6334 = vmatmul.mubr.msk.bf16.vlgmr.msra.gmra.mrb[12].mxu1 %vm316_vm0, %v1250_v20 }
 0xadd   :  { %v6335_v28 = vpop.f32.mrb[12].mxu1 }
 0xade   :  { %v8112_v54 = vadd.f32 %v6335_v28, %v5890_v25  ;;  %v1300_v53 = vpop.f32.mrb[13].mxu1 }
 0xadf   :  { %v8114_v39 = vadd.f32 %v5890_v25, %v1300_v53  ;;  %v6336_v42 = vpop.f32.mrb[14].mxu1 }
 0xae0   :  { %v8116_v43 = vadd.f32 %v6336_v42, %v5890_v25  ;;  %v1303_v45 = vpop.f32.mrb[15].mxu1  ;;  %v1321_v46 = vrot.slane %v8112_v54, 6  ;;  %v1333_v17 = vrot.slane %v8112_v54, 2 }
 0xae1   :  { %v1319_v47 = vrot.slane %v8114_v39, 6  ;;  %v1331_v49 = vrot.slane %v8114_v39, 2  ;;  %v8121_v50 = vadd.f32 %v5890_v25, %v1303_v45 }
 0xae2   :  { %v1322_v55 = vrot.slane %v8116_v43, 6  ;;  %v1334_v15 = vrot.slane %v8116_v43, 2  ;;  %v6880_v56 = vpack.i.bf16 %v8116_v43, %v8112_v54 }
 0xae3   :  { %v1320_v57 = vrot.slane %v8121_v50, 6  ;;  %v1332_v59 = vrot.slane %v8121_v50, 2  ;;  %v6885_v60 = vpack.i.bf16 %v8121_v50, %v8114_v39 }
 0xae4   :  { %v1326_v61 = vsel %vm684_vm10, %v1322_v55, %v1319_v47  ;;  %6881 = vrot.lane.b32.xlu1 %v6880_v56, %s7542_s26  ;;  %v1335_v63 = vsel %vm721_vm11, %v1333_v17, %v1334_v15  ;;  %v1338_v0 = vsel %vm721_vm11, %v1334_v15, %v1331_v49  ;;  %v1323_v1 = vsel %vm684_vm10, %v1321_v46, %v1322_v55 }
 0xae5   :  { %v1324_v2 = vsel %vm684_vm10, %v1320_v57, %v1321_v46  ;;  %6886 = vrot.lane.b32.xlu0 %v6885_v60, %s7542_s26  ;;  %v1342_v5 = vmul.f32 %v7951_v11, %v1338_v0  ;;  %v1336_v6 = vsel %vm721_vm11, %v1332_v59, %v1333_v17  ;;  %v1337_v7 = vsel %vm721_vm11, %v1331_v49, %v1332_v59 }
 0xae6   :  { %v1340_v8 = vmul.f32 %v7968_v4, %v1336_v6  ;;  %v1325_v13 = vsel %vm684_vm10, %v1319_v47, %v1320_v57  ;;  %v1329_v51 = vmul.f32 %v7997_v29, %v1324_v2  ;;  %v1327_v20 = vmul.f32 %v8000_v33, %v1326_v61  ;;  %v5900_v47 = vld [vmem:[%s7596_s21 + $0x3] ss:$0 sm:$0xff] }
 0xae7   :  { %v6895_v14 = vpack.i.bf16 %v1342_v5, %v1335_v63 }
 0xae8   :  { %v6890_v26 = vpack.i.bf16 %v1340_v8, %v1337_v7 }
 0xae9   :  { %6896 = vrot.lane.b32.xlu1 %v6895_v14, %s7552_s5 }
 0xaea   :  { %6891 = vrot.lane.b32.xlu0 %v6890_v26, %s7552_s5 }
 0xb56   :  { %v6882_v48 = vpop.permute.xlu1 %6881 }
 0xb57   :  { %v6887_v16 = vpop.permute.xlu0 %6886  ;;  %v6884_v18 = vunpack.i.h.bf16 %v6882_v48  ;;  %v6883_v27 = vunpack.i.l.bf16 %v6882_v48  ;;  %v5907_v48 = vld [vmem:[%s7601_s25 + $0x30] sm:$0xff] }
 0xb58   :  { %v6889_v12 = vunpack.i.h.bf16 %v6887_v16  ;;  %v6888_v31 = vunpack.i.l.bf16 %v6887_v16  ;;  %v5908_v16 = vld [vmem:[%s7601_s25 + $0x38] sm:$0xff] }
 0xb59   :  { %v1377_v58 = vsel %vm316_vm0, %v1329_v51, %v6883_v27  ;;  %v1378_v23 = vsel %vm316_vm0, %v1323_v1, %v6884_v18  ;;  %v1511_v18 = vpack.c.bf16 %v5908_v16, %v5907_v48 }
 0xb5a   :  { %v1375_v28 = vsel %vm316_vm0, %v1327_v20, %v6888_v31  ;;  %v1376_v35 = vsel %vm316_vm0, %v1325_v13, %v6889_v12 }
 0xb5b   :  { %v6897_v19 = vpop.permute.xlu1 %6896  ;;  %6347 = vmatprep.subr.bf16.mxu1 %v1511_v18 }
 0xb5c   :  { %v6899_v21 = vunpack.i.h.bf16 %v6897_v19  ;;  %v6898_v22 = vunpack.i.l.bf16 %v6897_v19  ;;  %v6892_v34 = vpop.permute.xlu0 %6891  ;;  %6348 = vmatpush3.bf16.msra.mxu1 %v1511_v18 }
 0xb5d   :  { %v6894_v24 = vunpack.i.h.bf16 %v6892_v34  ;;  %v6893_v25 = vunpack.i.l.bf16 %v6892_v34 }
 0xb5e   :  { %v1382_v52 = vsel %vm482_vm7, %v1378_v23, %v6899_v21  ;;  %v1381_v53 = vsel %vm482_vm7, %v1377_v58, %v6898_v22 }
 0xb5f   :  { %v1391_v38 = vpack.c.bf16 %v1382_v52, %v1381_v53  ;;  %v1379_v42 = vsel %vm482_vm7, %v1375_v28, %v6893_v25  ;;  %v1380_v45 = vsel %vm482_vm7, %v1376_v35, %v6894_v24 }
 0xb60   :  { %v1390_v46 = vpack.c.bf16 %v1380_v45, %v1379_v42  ;;  %v5913_v42 = vld [vmem:[%s7581_s9 + $0x20] sm:$0xff]  ;;  %v5914_v45 = vld [vmem:[%s7581_s9 + $0x28] sm:$0xff]  ;;  %s9070_s9 = sld [smem:[#allocation23_spill]] }
 0xb62   :  { %6343 = vmatprep.mubr.msk.bf16.mxu0 %vm505_vm8, %v1390_v46  ;;  %v1584_v46 = vpack.c.bf16 %v5914_v45, %v5913_v42 }
 0xb63   :  { %6344 = vmatmul.mubr.msk.bf16.vlgmr.msra.gmra.mrb[16].mxu0 %vm505_vm8, %v1391_v38 }
 0xb64   :  { %6353 = vmatprep.subr.bf16.mxu1 %v1584_v46 }
 0xc36   :  { %v6345_v49 = vpop.f32.mrb[16].mxu0 }
 0xc37   :  { %v1452_v17 = vadd.f32 %v6345_v49, %v5900_v47  ;;  %v1443_v55 = vpop.f32.mrb[17].mxu0 }
 0xc38   :  { %v1444_v15 = vadd.f32 %v5900_v47, %v1443_v55  ;;  %v6346_v56 = vpop.f32.mrb[18].mxu0 }
 0xc39   :  { %v5905_v57 = vmul.f32 -1.442695, %v1452_v17  ;;  %v1455_v59 = vadd.f32 %v6346_v56, %v5900_v47  ;;  %v1446_v60 = vpop.f32.mrb[19].mxu0  ;;  %v1315_v56 = vadd.f32 %v8114_v39, %v8044_v32 }
 0xc3a   :  { %v5903_v61 = vmul.f32 -1.442695, %v1444_v15  ;;  %v1447_v63 = vadd.f32 %v5900_v47, %v1446_v60  ;;  %v5910_v47 = vld [vmem:[%s7606_s29 + $0x3] ss:$0 sm:$0xff] }
 0xc3b   :  { %7074 = vpow2.f32 %v5905_v57  ;;  %v5906_v0 = vmul.f32 -1.442695, %v1455_v59 }
 0xc3c   :  { %7076 = vpow2.f32 %v5903_v61  ;;  %v5904_v1 = vmul.f32 -1.442695, %v1447_v63  ;;  %v1318_v61 = vadd.f32 %v8116_v43, %v8046_v36  ;;  %v5918_v36 = vld [vmem:[%s7591_s17 + $0xc0] sm:$0xff]  ;;  %v5919_v43 = vld [vmem:[%s7591_s17 + $0xc8] sm:$0xff] }
 0xc3d   :  { %7078 = vpow2.f32 %v5906_v0 }
 0xc3e   :  { %7080 = vpow2.f32 %v5904_v1 }
 0xc45   :  { %v7075_v2 = vpop.eup %7074 }
 0xc46   :  { %v7077_v5 = vpop.eup %7076  ;;  %v1476_v7 = vadd.f32 1.0, %v7075_v2 }
 0xc47   :  { %v1474_v6 = vadd.f32 1.0, %v7077_v5  ;;  %v7079_v8 = vpop.eup %7078 }
 0xc48   :  { %v7081_v13 = vpop.eup %7080  ;;  %v1477_v26 = vadd.f32 1.0, %v7079_v8  ;;  %v5921_v8 = vld [vmem:[%s7591_s17 + $0xd8] sm:$0xff] }
 0xc49   :  { %7082 = vrcp.f32 %v1474_v6  ;;  %v1475_v14 = vadd.f32 1.0, %v7081_v13  ;;  %v1721_v6 = vpack.c.bf16 %v5919_v43, %v5918_v36 }
 0xc4a   :  { %7084 = vrcp.f32 %v1476_v7  ;;  %v5920_v7 = vld [vmem:[%s7591_s17 + $0xd0] sm:$0xff] }
 0xc4b   :  { %7086 = vrcp.f32 %v1475_v14  ;;  %6359 = vmatprep.subr.bf16.mxu0 %v1721_v6  ;;  %v1722_v13 = vpack.c.bf16 %v5921_v8, %v5920_v7  ;;  %v5922_v14 = vld [vmem:[%s7591_s17 + $0xe0] sm:$0xff] }
 0xc4c   :  { %7088 = vrcp.f32 %v1477_v26  ;;  %6360 = vmatpush3.bf16.msra.mxu0 %v1721_v6  ;;  %v5923_v26 = vld [vmem:[%s7591_s17 + $0xe8] sm:$0xff] }
 0xc4d   :  { %7090 = vtanh.f32 %v1444_v15  ;;  %6361 = vmatprep.subr.bf16.mxu0 %v1722_v13  ;;  %v1723_v16 = vpack.c.bf16 %v5923_v26, %v5922_v14 }
 0xc4e   :  { %7092 = vtanh.f32 %v1447_v63 }
 0xc4f   :  { %7094 = vtanh.f32 %v1452_v17  ;;  %v1317_v17 = vadd.f32 %v8112_v54, %v8042_v30  ;;  %v1316_v30 = vadd.f32 %v8121_v50, %v8049_v37  ;;  %v5915_v37 = vld [vmem:[#allocation2 + $0x2] ss:$0 sm:$0xff] }
 0xc50   :  { %7096 = vtanh.f32 %v1455_v59  ;;  %6362 = vmatpush3.bf16.msra.mxu0 %v1722_v13 }
 0xc51   :  { %6363 = vmatprep.subr.bf16.mxu0 %v1723_v16 }
 0xc53   :  { %v7083_v27 = vpop.eup %7082 }
 0xc54   :  { %1490 = vrot.lane.b32.xlu0 %v7083_v27, %s7553_s8  ;;  %v7085_v12 = vpop.eup %7084  ;;  %6364 = vmatpush3.bf16.msra.mxu0 %v1723_v16 }
 0xc55   :  { %v7087_v31 = vpop.eup %7086 }
 0xc56   :  { %1492 = vrot.lane.b32.xlu1 %v7087_v31, %s7553_s8  ;;  %v7089_v51 = vpop.eup %7088 }
 0xc57   :  { %v7091_v20 = vpop.eup %7090 }
 0xc58   :  { %1494 = vrot.lane.b32.xlu0 %v7085_v12, %s7553_s8  ;;  %v7093_v21 = vpop.eup %7092 }
 0xc59   :  { %v7095_v24 = vpop.eup %7094 }
 0xc5a   :  { %1496 = vrot.lane.b32.xlu1 %v7089_v51, %s7553_s8  ;;  %v7097_v28 = vpop.eup %7096 }
 0xcc6   :  { %v1491_v19 = vpop.permute.xlu0 %1490 }
 0xcc7   :  { %v1502_v34 = vmul.f32 %v7091_v20, %v1491_v19 }
 0xcc8   :  { %v1493_v22 = vpop.permute.xlu1 %1492 }
 0xcc9   :  { %v1503_v58 = vmul.f32 %v7093_v21, %v1493_v22 }
 0xcca   :  { %v1495_v23 = vpop.permute.xlu0 %1494 }
 0xccb   :  { %v1509_v25 = vpack.c.bf16 %v1503_v58, %v1502_v34  ;;  %v1504_v52 = vmul.f32 %v7095_v24, %v1495_v23 }
 0xccc   :  { %v1497_v35 = vpop.permute.xlu1 %1496 }
 0xccd   :  { %v1505_v53 = vmul.f32 %v7097_v28, %v1497_v35  ;;  %6349 = vmatprep.mubr.msk.bf16.mxu1 %vm316_vm0, %v1509_v25 }
 0xccf   :  { %v1510_v38 = vpack.c.bf16 %v1505_v53, %v1504_v52 }
 0xcd1   :  { %6350 = vmatmul.mubr.msk.bf16.vlgmr.msra.gmra.mrb[16].mxu1 %vm316_vm0, %v1510_v38 }
 0xcd2   :  { %6354 = vmatpush3.bf16.msra.mxu1 %v1584_v46 }
 0xda4   :  { %v6351_v49 = vpop.f32.mrb[16].mxu1 }
 0xda5   :  { %v1569_v55 = vadd.f32 %v6351_v49, %v5910_v47  ;;  %v1560_v15 = vpop.f32.mrb[17].mxu1 }
 0xda6   :  { %v1561_v57 = vadd.f32 %v5910_v47, %v1560_v15  ;;  %v6352_v59 = vpop.f32.mrb[18].mxu1 }
 0xda7   :  { %v1577_v60 = vadd.f32 %v1569_v55, %v1317_v17  ;;  %v1572_v63 = vadd.f32 %v6352_v59, %v5910_v47  ;;  %v1563_v0 = vpop.f32.mrb[19].mxu1 }
 0xda8   :  { %v1575_v1 = vadd.f32 %v1561_v57, %v1315_v56  ;;  %v1564_v54 = vadd.f32 %v5910_v47, %v1563_v0 }
 0xda9   :  { %v1578_v2 = vadd.f32 %v1572_v63, %v1318_v61 }
 0xdaa   :  { %v1576_v5 = vadd.f32 %v1564_v54, %v1316_v30 }
 0xdab   :  { %v1583_v32 = vpack.c.bf16 %v1578_v2, %v1577_v60 }
 0xdac   :  { %v1582_v39 = vpack.c.bf16 %v1576_v5, %v1575_v1 }
 0xdae   :  { %6355 = vmatprep.mubr.msk.bf16.mxu1 %vm316_vm0, %v1582_v39 }
 0xdaf   :  { %6356 = vmatmul.mubr.msk.bf16.vlgmr.msra.gmra.mrb[20].mxu1 %vm316_vm0, %v1583_v32 }
 0xe82   :  { %v6357_v50 = vpop.f32.mrb[20].mxu1 }
 0xe83   :  { %v1633_v48 = vpop.f32.mrb[21].mxu1  ;;  %v8194_v18 = vadd.f32 %v6357_v50, %v5915_v37  ;;  %v5925_v50 = vld [vmem:[%s7596_s21 + $0x4] ss:$0 sm:$0xff] }
 0xe84   :  { %v8196_v27 = vadd.f32 %v5915_v37, %v1633_v48  ;;  %v6358_v12 = vpop.f32.mrb[22].mxu1 }
 0xe85   :  { %v8198_v31 = vadd.f32 %v6358_v12, %v5915_v37  ;;  %v1636_v51 = vpop.f32.mrb[23].mxu1  ;;  %v1662_v34 = vrot.slane %v8194_v18, 1  ;;  %v1650_v47 = vrot.slane %v8194_v18, 7 }
 0xe86   :  { %v1660_v19 = vrot.slane %v8196_v27, 1  ;;  %v8201_v20 = vadd.f32 %v5915_v37, %v1636_v51 }
 0xe87   :  { %v1663_v21 = vrot.slane %v8198_v31, 1  ;;  %v6900_v22 = vpack.i.bf16 %v8198_v31, %v8194_v18  ;;  %v1651_v46 = vrot.slane %v8198_v31, 7 }
 0xe88   :  { %v1661_v58 = vrot.slane %v8201_v20, 1  ;;  %v6905_v23 = vpack.i.bf16 %v8201_v20, %v8196_v27  ;;  %v1649_v45 = vrot.slane %v8201_v20, 7 }
 0xe89   :  { %6901 = vrot.lane.b32.xlu1 %v6900_v22, %s7542_s26  ;;  %v1667_v24 = vsel %vm413_vm2, %v1663_v21, %v1660_v19  ;;  %v1664_v35 = vsel %vm413_vm2, %v1662_v34, %v1663_v21  ;;  %v1652_v60 = vsel %vm376_vm4, %v1650_v47, %v1651_v46 }
 0xe8a   :  { %6906 = vrot.lane.b32.xlu0 %v6905_v23, %s7542_s26  ;;  %v1671_v25 = vmul.f32 %v7869_v44, %v1667_v24  ;;  %v1665_v28 = vsel %vm413_vm2, %v1661_v58, %v1662_v34  ;;  %v1666_v38 = vsel %vm413_vm2, %v1660_v19, %v1661_v58  ;;  %v1648_v44 = vrot.slane %v8196_v27, 7 }
 0xe8b   :  { %v1669_v52 = vmul.f32 %v7861_v41, %v1665_v28  ;;  %v1653_v41 = vsel %vm376_vm4, %v1649_v45, %v1650_v47 }
 0xe8c   :  { %v6915_v53 = vpack.i.bf16 %v1671_v25, %v1664_v35  ;;  %v1655_v55 = vsel %vm376_vm4, %v1651_v46, %v1648_v44  ;;  %v1658_v61 = vmul.f32 %v7902_v3, %v1653_v41  ;;  %v1654_v0 = vsel %vm376_vm4, %v1648_v44, %v1649_v45  ;;  %v5932_v45 = vld [vmem:[%s7601_s25 + $0x40] sm:$0xff]  ;;  %v5933_v44 = vld [vmem:[%s7601_s25 + $0x48] sm:$0xff] }
 0xe8d   :  { %v6910_v42 = vpack.i.bf16 %v1669_v52, %v1666_v38  ;;  %v1656_v1 = vmul.f32 %v7898_v62, %v1655_v55  ;;  %v1840_v46 = vpack.c.bf16 %v5933_v44, %v5932_v45  ;;  %vm7555_vm4 = vmmov 0  }
 0xe8e   :  { %6916 = vrot.lane.b32.xlu1 %v6915_v53, %s7552_s5 }
 0xe8f   :  { %6911 = vrot.lane.b32.xlu0 %v6910_v42, %s7552_s5  ;;  %6369 = vmatprep.subr.bf16.mxu1 %v1840_v46 }
 0xe90   :  { %6370 = vmatpush3.bf16.msra.mxu1 %v1840_v46 }
 0xefb   :  { %v6902_v49 = vpop.permute.xlu1 %6901 }
 0xefc   :  { %v6907_v17 = vpop.permute.xlu0 %6906  ;;  %v6904_v15 = vunpack.i.h.bf16 %v6902_v49  ;;  %v6903_v56 = vunpack.i.l.bf16 %v6902_v49 }
 0xefd   :  { %v6909_v57 = vunpack.i.h.bf16 %v6907_v17  ;;  %v6908_v59 = vunpack.i.l.bf16 %v6907_v17 }
 0xefe   :  { %v1706_v5 = vsel %vm316_vm0, %v1658_v61, %v6903_v56  ;;  %v1707_v32 = vsel %vm316_vm0, %v1652_v60, %v6904_v15 }
 0xeff   :  { %v1704_v43 = vsel %vm316_vm0, %v1656_v1, %v6908_v59  ;;  %v1705_v3 = vsel %vm316_vm0, %v1654_v0, %v6909_v57 }
 0xf00   :  { %v6917_v63 = vpop.permute.xlu1 %6916 }
 0xf01   :  { %v6919_v30 = vunpack.i.h.bf16 %v6917_v63  ;;  %v6918_v54 = vunpack.i.l.bf16 %v6917_v63  ;;  %v6912_v2 = vpop.permute.xlu0 %6911 }
 0xf02   :  { %v6914_v39 = vunpack.i.h.bf16 %v6912_v2  ;;  %v6913_v36 = vunpack.i.l.bf16 %v6912_v2 }
 0xf03   :  { %v1711_v6 = vsel %vm482_vm7, %v1707_v32, %v6919_v30  ;;  %v1710_v7 = vsel %vm482_vm7, %v1706_v5, %v6918_v54  ;;  %v5938_v32 = vld [vmem:[%s7591_s17 + $0xf0] sm:$0xff] }
 0xf04   :  { %v1708_v62 = vsel %vm482_vm7, %v1704_v43, %v6913_v36  ;;  %v1709_v8 = vsel %vm482_vm7, %v1705_v3, %v6914_v39  ;;  %v1720_v37 = vpack.c.bf16 %v1711_v6, %v1710_v7  ;;  %v5939_v39 = vld [vmem:[%s7591_s17 + $0xf8] sm:$0xff]  ;;  %v5940_v43 = vld [vmem:[%s7591_s17 + $0x100] sm:$0xff]  ;;  %v5941_v3 = vld [vmem:[%s7591_s17 + $0x108] sm:$0xff] }
 0xf05   :  { %v1719_v13 = vpack.c.bf16 %v1709_v8, %v1708_v62  ;;  %v1981_v36 = vpack.c.bf16 %v5939_v39, %v5938_v32  ;;  %v1982_v6 = vpack.c.bf16 %v5941_v3, %v5940_v43  ;;  %v5935_v7 = vld [vmem:[%s7606_s29 + $0x4] ss:$0 sm:$0xff]  ;;  %v5942_v8 = vld [vmem:[%s7591_s17 + $0x110] sm:$0xff] }
 0xf07   :  { %6365 = vmatprep.mubr.msk.bf16.mxu0 %vm505_vm8, %v1719_v13  ;;  %6375 = vmatprep.subr.bf16.mxu0 %v1981_v36  ;;  %v5943_v13 = vld [vmem:[%s7591_s17 + $0x118] sm:$0xff]  ;;  %s9071_s17 = sld [smem:[#allocation21_spill]] }
 0xf08   :  { %6366 = vmatmul.mubr.msk.bf16.vlgmr.msra.gmra.mrb[20].mxu0 %vm505_vm8, %v1720_v37 }
 0xf09   :  { %6376 = vmatpush3.bf16.msra.mxu0 %v1981_v36 }
 0xf0a   :  { %6377 = vmatprep.subr.bf16.mxu0 %v1982_v6 }
 0xf0d   :  { %6378 = vmatpush3.bf16.msra.mxu0 %v1982_v6 }
 0xfdb   :  { %v6367_v14 = vpop.f32.mrb[20].mxu0 }
 0xfdc   :  { %v1781_v26 = vadd.f32 %v6367_v14, %v5925_v50  ;;  %v1772_v48 = vpop.f32.mrb[21].mxu0  ;;  %v1983_v14 = vpack.c.bf16 %v5943_v13, %v5942_v8 }
 0xfdd   :  { %v1773_v16 = vadd.f32 %v5925_v50, %v1772_v48  ;;  %v6368_v12 = vpop.f32.mrb[22].mxu0 }
 0xfde   :  { %v5930_v51 = vmul.f32 -1.442695, %v1781_v26  ;;  %v1784_v19 = vadd.f32 %v6368_v12, %v5925_v50  ;;  %v1775_v21 = vpop.f32.mrb[23].mxu0  ;;  %6379 = vmatprep.subr.bf16.mxu0 %v1983_v14 }
 0xfdf   :  { %v5928_v22 = vmul.f32 -1.442695, %v1773_v16  ;;  %v1776_v34 = vadd.f32 %v5925_v50, %v1775_v21  ;;  %6380 = vmatpush3.bf16.msra.mxu0 %v1983_v14 }
 0xfe0   :  { %7098 = vpow2.f32 %v5930_v51  ;;  %v5931_v58 = vmul.f32 -1.442695, %v1784_v19 }
 0xfe1   :  { %7100 = vpow2.f32 %v5928_v22  ;;  %v5929_v23 = vmul.f32 -1.442695, %v1776_v34 }
 0xfe2   :  { %7102 = vpow2.f32 %v5931_v58 }
 0xfe3   :  { %7104 = vpow2.f32 %v5929_v23 }
 0xfea   :  { %v7099_v24 = vpop.eup %7098 }
 0xfeb   :  { %v7101_v25 = vpop.eup %7100  ;;  %v1805_v35 = vadd.f32 1.0, %v7099_v24 }
 0xfec   :  { %v1803_v28 = vadd.f32 1.0, %v7101_v25  ;;  %v7103_v52 = vpop.eup %7102 }
 0xfed   :  { %v7105_v53 = vpop.eup %7104  ;;  %v1806_v42 = vadd.f32 1.0, %v7103_v52 }
 0xfee   :  { %7106 = vrcp.f32 %v1803_v28  ;;  %v1804_v38 = vadd.f32 1.0, %v7105_v53 }
 0xfef   :  { %7108 = vrcp.f32 %v1805_v35 }
 0xff0   :  { %7110 = vrcp.f32 %v1804_v38 }
 0xff1   :  { %7112 = vrcp.f32 %v1806_v42 }
 0xff2   :  { %7114 = vtanh.f32 %v1773_v16 }
 0xff3   :  { %7116 = vtanh.f32 %v1776_v34 }
 0xff4   :  { %7118 = vtanh.f32 %v1781_v26 }
 0xff5   :  { %7120 = vtanh.f32 %v1784_v19 }
 0xff8   :  { %v7107_v47 = vpop.eup %7106 }
 0xff9   :  { %1819 = vrot.lane.b32.xlu0 %v7107_v47, %s7553_s8  ;;  %v7109_v49 = vpop.eup %7108 }
 0xffa   :  { %v7111_v17 = vpop.eup %7110 }
 0xffb   :  { %1821 = vrot.lane.b32.xlu1 %v7111_v17, %s7553_s8  ;;  %v7113_v41 = vpop.eup %7112 }
 0xffc   :  { %v7115_v15 = vpop.eup %7114 }
 0xffd   :  { %1823 = vrot.lane.b32.xlu0 %v7109_v49, %s7553_s8  ;;  %v7117_v56 = vpop.eup %7116 }
 0xffe   :  { %v7119_v63 = vpop.eup %7118 }
 0xfff   :  { %1825 = vrot.lane.b32.xlu1 %v7113_v41, %s7553_s8  ;;  %v7121_v1 = vpop.eup %7120 }
0x106b   :  { %v1820_v55 = vpop.permute.xlu0 %1819 }
0x106c   :  { %v1831_v59 = vmul.f32 %v7115_v15, %v1820_v55 }
0x106d   :  { %v1822_v57 = vpop.permute.xlu1 %1821 }
0x106e   :  { %v1832_v60 = vmul.f32 %v7117_v56, %v1822_v57 }
0x106f   :  { %v1824_v61 = vpop.permute.xlu0 %1823 }
0x1070   :  { %v1838_v0 = vpack.c.bf16 %v1832_v60, %v1831_v59  ;;  %v1833_v54 = vmul.f32 %v7119_v63, %v1824_v61 }
0x1071   :  { %v1826_v30 = vpop.permute.xlu1 %1825 }
0x1072   :  { %v1834_v2 = vmul.f32 %v7121_v1, %v1826_v30  ;;  %6371 = vmatprep.mubr.msk.bf16.mxu1 %vm316_vm0, %v1838_v0 }
0x1074   :  { %v1839_v5 = vpack.c.bf16 %v1834_v2, %v1833_v54 }
0x1076   :  { %6372 = vmatmul.mubr.msk.bf16.vlgmr.msra.gmra.mrb[24].mxu1 %vm316_vm0, %v1839_v5 }
0x1149   :  { %v6373_v62 = vpop.f32.mrb[24].mxu1 }
0x114a   :  { %v8264_v37 = vadd.f32 %v6373_v62, %v5935_v7  ;;  %v1889_v50 = vpop.f32.mrb[25].mxu1  ;;  %v5945_v62 = vld [vmem:[%s7596_s21 + $0x5] ss:$0 sm:$0xff]  ;;  %s9072_s21 = sld [smem:[#allocation27_spill]] }
0x114b   :  { %v8266_v26 = vadd.f32 %v5935_v7, %v1889_v50  ;;  %v6374_v48 = vpop.f32.mrb[26].mxu1 }
0x114c   :  { %v8268_v16 = vadd.f32 %v6374_v48, %v5935_v7  ;;  %v1892_v12 = vpop.f32.mrb[27].mxu1  ;;  %v1910_v51 = vrot.slane %v8264_v37, 6  ;;  %v1922_v34 = vrot.slane %v8264_v37, 2 }
0x114d   :  { %v1908_v19 = vrot.slane %v8266_v26, 6  ;;  %v1920_v21 = vrot.slane %v8266_v26, 2  ;;  %v8273_v22 = vadd.f32 %v5935_v7, %v1892_v12  ;;  %v7554_v7 = vmov 0  }
0x114e   :  { %v1911_v58 = vrot.slane %v8268_v16, 6  ;;  %v1923_v23 = vrot.slane %v8268_v16, 2  ;;  %v6920_v24 = vpack.i.bf16 %v8268_v16, %v8264_v37  ;;  %6940 = vset.pattern.permute.xlu0 %v7554_v7  ;;  %6941 = vset.pattern.permute.xlu1 %v7554_v7  ;;  %v2168_v7 = vld [vmem:[%s9071_s17] sm:$0xff] }
0x114f   :  { %v1909_v25 = vrot.slane %v8273_v22, 6  ;;  %v1921_v28 = vrot.slane %v8273_v22, 2  ;;  %v6925_v35 = vpack.i.bf16 %v8273_v22, %v8266_v26 }
0x1150   :  { %v1915_v52 = vsel %vm684_vm10, %v1911_v58, %v1908_v19  ;;  %6921 = vrot.lane.b32.xlu1 %v6920_v24, %s7542_s26  ;;  %v1924_v53 = vsel %vm721_vm11, %v1922_v34, %v1923_v23  ;;  %v1927_v38 = vsel %vm721_vm11, %v1923_v23, %v1920_v21  ;;  %v1912_v42 = vsel %vm684_vm10, %v1910_v51, %v1911_v58 }
0x1151   :  { %v1913_v45 = vsel %vm684_vm10, %v1909_v25, %v1910_v51  ;;  %6926 = vrot.lane.b32.xlu0 %v6925_v35, %s7542_s26  ;;  %v1931_v44 = vmul.f32 %v7951_v11, %v1927_v38  ;;  %v1925_v46 = vsel %vm721_vm11, %v1921_v28, %v1922_v34  ;;  %v1926_v47 = vsel %vm721_vm11, %v1920_v21, %v1921_v28 }
0x1152   :  { %v1929_v49 = vmul.f32 %v7968_v4, %v1925_v46  ;;  %v1914_v17 = vsel %vm684_vm10, %v1908_v19, %v1909_v25  ;;  %v1918_v61 = vmul.f32 %v7997_v29, %v1913_v45  ;;  %v1916_v4 = vmul.f32 %v8000_v33, %v1915_v52  ;;  %v5952_v45 = vld [vmem:[%s7601_s25 + $0x50] sm:$0xff] }
0x1153   :  { %v6935_v41 = vpack.i.bf16 %v1931_v44, %v1924_v53  ;;  %v5953_v44 = vld [vmem:[%s7601_s25 + $0x58] sm:$0xff]  ;;  %s9073_s25 = sld [smem:[#allocation24_spill]]  ;;  %vm2948_vm10 = vcmask 195584   ;;  %vm3014_vm11 = vcmask 259072  }
0x1154   :  { %v6930_v55 = vpack.i.bf16 %v1929_v49, %v1926_v47  ;;  %v2100_v46 = vpack.c.bf16 %v5953_v44, %v5952_v45  ;;  %v2257_v49 = vld [vmem:[%s7626_s19] sm:$0xff] }
0x1155   :  { %6936 = vrot.lane.b32.xlu1 %v6935_v41, %s7552_s5 }
0x1156   :  { %6931 = vrot.lane.b32.xlu0 %v6930_v55, %s7552_s5  ;;  %6385 = vmatprep.subr.bf16.mxu1 %v2100_v46 }
0x1157   :  { %6386 = vmatpush3.bf16.msra.mxu1 %v2100_v46 }
0x11c2   :  { %v6922_v15 = vpop.permute.xlu1 %6921 }
0x11c3   :  { %v6927_v56 = vpop.permute.xlu0 %6926  ;;  %v6924_v11 = vunpack.i.h.bf16 %v6922_v15  ;;  %v6923_v57 = vunpack.i.l.bf16 %v6922_v15 }
0x11c4   :  { %v6929_v59 = vunpack.i.h.bf16 %v6927_v56  ;;  %v6928_v60 = vunpack.i.l.bf16 %v6927_v56  ;;  %v2241_v56 = vld [vmem:[%s9070_s9] sm:$0xff] }
0x11c5   :  { %v1966_v30 = vsel %vm316_vm0, %v1918_v61, %v6923_v57  ;;  %v1967_v54 = vsel %vm316_vm0, %v1912_v42, %v6924_v11  ;;  %v2242_v57 = vld [vmem:[%s9070_s9 + $0x8] sm:$0x3f] }
0x11c6   :  { %v1964_v32 = vsel %vm316_vm0, %v1916_v4, %v6928_v60  ;;  %v1965_v39 = vsel %vm316_vm0, %v1914_v17, %v6929_v59  ;;  %v2258_v17 = vld [vmem:[%s7626_s19 + $0x8] sm:$0xff]  ;;  %v2259_v59 = vld [vmem:[%s7626_s19 + $0x10] sm:$0xf]  ;;  %s7557_s19 = smov 96  }
0x11c7   :  { %v6937_v63 = vpop.permute.xlu1 %6936  ;;  %v6758_v41 = vpack.c.bf16 %v2258_v17, %v2257_v49 }
0x11c8   :  { %v6939_v0 = vunpack.i.h.bf16 %v6937_v63  ;;  %v6938_v10 = vunpack.i.l.bf16 %v6937_v63  ;;  %v6932_v1 = vpop.permute.xlu0 %6931 }
0x11c9   :  { %v6934_v2 = vunpack.i.h.bf16 %v6932_v1  ;;  %v6933_v5 = vunpack.i.l.bf16 %v6932_v1  ;;  %6759 = vmatprep.subr.bf16.mxu0 %v6758_v41 }
0x11ca   :  { %v1971_v36 = vsel %vm482_vm7, %v1967_v54, %v6939_v0  ;;  %v1970_v29 = vsel %vm482_vm7, %v1966_v30, %v6938_v10 }
0x11cb   :  { %v1980_v43 = vpack.c.bf16 %v1971_v36, %v1970_v29  ;;  %v1968_v33 = vsel %vm482_vm7, %v1964_v32, %v6933_v5  ;;  %v1969_v3 = vsel %vm482_vm7, %v1965_v39, %v6934_v2  ;;  %v2244_v29 = vand.u32 127, %v251_v9  ;;  %v5955_v9 = vld [vmem:[%s7606_s29 + $0x5] ss:$0 sm:$0xff]  ;;  %s9074_s29 = sld [smem:[#allocation22_spill]] }
0x11cc   :  { %v1979_v6 = vpack.c.bf16 %v1969_v3, %v1968_v33 }
0x11ce   :  { %6381 = vmatprep.mubr.msk.bf16.mxu0 %vm505_vm8, %v1979_v6 }
0x11cf   :  { %6382 = vmatmul.mubr.msk.bf16.vlgmr.msra.gmra.mrb[24].mxu0 %vm505_vm8, %v1980_v43  ;;  %vm2468_vm8 = vcmask 111616  }
0x11d0   :  { %6761 = vmatpush3.bf16.msra.mxu0 %v6758_v41 }
0x11d1   :  { %6401 = vmatprep.subr.msk.mxu0 %vm2267_vm15, %v2259_v59  ;;  %v5958_v49 = vld [vmem:[%s9074_s29] ss:$0 sm:$0xff] }
0x11d4   :  { %6402 = vmatpush3.msk.msra.mxu0 %vm2267_vm15, %v2259_v59 }
0x11d5   :  { %6414 = vmatprep.subr.bf16.mxu0 %v7551_v40 }
0x12a2   :  { %v6383_v8 = vpop.f32.mrb[24].mxu0 }
0x12a3   :  { %v2041_v13 = vadd.f32 %v6383_v8, %v5945_v62  ;;  %v2032_v50 = vpop.f32.mrb[25].mxu0 }
0x12a4   :  { %v2033_v14 = vadd.f32 %v5945_v62, %v2032_v50  ;;  %v6384_v48 = vpop.f32.mrb[26].mxu0  ;;  %v1906_v50 = vadd.f32 %v8264_v37, %v8194_v18 }
0x12a5   :  { %v5950_v12 = vmul.f32 -1.442695, %v2041_v13  ;;  %v2044_v51 = vadd.f32 %v6384_v48, %v5945_v62  ;;  %v2035_v19 = vpop.f32.mrb[27].mxu0 }
0x12a6   :  { %v5948_v21 = vmul.f32 -1.442695, %v2033_v14  ;;  %v2036_v34 = vadd.f32 %v5945_v62, %v2035_v19  ;;  %v2169_v62 = vld [vmem:[%s9071_s17 + $0x8] sm:$0xff] }
0x12a7   :  { %7122 = vpow2.f32 %v5950_v12  ;;  %v5951_v58 = vmul.f32 -1.442695, %v2044_v51  ;;  %v2172_v8 = vpack.c.bf16 %v2169_v62, %v2168_v7  ;;  %v1904_v12 = vadd.f32 %v8266_v26, %v8196_v27  ;;  %v2351_v27 = vld [vmem:[%s9072_s21 + $0x8] sm:$0xff] }
0x12a8   :  { %7124 = vpow2.f32 %v5948_v21  ;;  %v5949_v23 = vmul.f32 -1.442695, %v2036_v34 }
0x12a9   :  { %7126 = vpow2.f32 %v5951_v58  ;;  %6391 = vmatprep.subr.bf16.mxu1 %v2172_v8 }
0x12aa   :  { %7128 = vpow2.f32 %v5949_v23 }
0x12b1   :  { %v7123_v24 = vpop.eup %7122 }
0x12b2   :  { %v7125_v25 = vpop.eup %7124  ;;  %v2065_v35 = vadd.f32 1.0, %v7123_v24 }
0x12b3   :  { %v2063_v28 = vadd.f32 1.0, %v7125_v25  ;;  %v7127_v52 = vpop.eup %7126  ;;  %v1905_v25 = vadd.f32 %v8273_v22, %v8201_v20  ;;  %v2240_v20 = vld [vmem:[%s9073_s25 + $0x8] sm:$0x3f] }
0x12b4   :  { %v7129_v53 = vpop.eup %7128  ;;  %v2066_v42 = vadd.f32 1.0, %v7127_v52 }
0x12b5   :  { %7130 = vrcp.f32 %v2063_v28  ;;  %v2064_v38 = vadd.f32 1.0, %v7129_v53  ;;  %v2350_v28 = vld [vmem:[%s9072_s21] sm:$0xff] }
0x12b6   :  { %7132 = vrcp.f32 %v2065_v35  ;;  %v2355_v53 = vpack.c.bf16 %v2351_v27, %v2350_v28 }
0x12b7   :  { %7134 = vrcp.f32 %v2064_v38  ;;  %v2352_v38 = vld [vmem:[%s9072_s21 + $0x10] sm:$0xff] }
0x12b8   :  { %7136 = vrcp.f32 %v2066_v42  ;;  %v2353_v42 = vld [vmem:[%s9072_s21 + $0x18] sm:$0xff] }
0x12b9   :  { %7138 = vtanh.f32 %v2033_v14 }
0x12ba   :  { %7140 = vtanh.f32 %v2036_v34  ;;  %v1907_v34 = vadd.f32 %v8268_v16, %v8198_v31  ;;  %v2356_v31 = vpack.c.bf16 %v2353_v42, %v2352_v38  ;;  %v2239_v16 = vld [vmem:[%s9073_s25] sm:$0xff] }
0x12bb   :  { %7142 = vtanh.f32 %v2041_v13 }
0x12bc   :  { %7144 = vtanh.f32 %v2044_v51 }
0x12bf   :  { %v7131_v47 = vpop.eup %7130 }
0x12c0   :  { %2079 = vrot.lane.b32.xlu0 %v7131_v47, %s7553_s8  ;;  %v7133_v55 = vpop.eup %7132 }
0x12c1   :  { %v7135_v15 = vpop.eup %7134 }
0x12c2   :  { %2081 = vrot.lane.b32.xlu1 %v7135_v15, %s7553_s8  ;;  %v7137_v11 = vpop.eup %7136 }
0x12c3   :  { %v7139_v61 = vpop.eup %7138 }
0x12c4   :  { %2083 = vrot.lane.b32.xlu0 %v7133_v55, %s7553_s8  ;;  %v7141_v63 = vpop.eup %7140 }
0x12c5   :  { %v7143_v30 = vpop.eup %7142 }
0x12c6   :  { %2085 = vrot.lane.b32.xlu1 %v7137_v11, %s7553_s8  ;;  %v7145_v2 = vpop.eup %7144 }
0x12c8   :  { %2246 = vperm.xlu0 %6940, %v2241_v56  }
0x12ca   :  { %2249 = vperm.xlu1 %6941, %v2242_v57  }
0x1332   :  { %v2080_v60 = vpop.permute.xlu0 %2079 }
0x1333   :  { %v2091_v0 = vmul.f32 %v7139_v61, %v2080_v60 }
0x1334   :  { %v2082_v4 = vpop.permute.xlu1 %2081 }
0x1335   :  { %v2092_v10 = vmul.f32 %v7141_v63, %v2082_v4 }
0x1336   :  { %v2084_v1 = vpop.permute.xlu0 %2083 }
0x1337   :  { %v2098_v54 = vpack.c.bf16 %v2092_v10, %v2091_v0  ;;  %v2093_v32 = vmul.f32 %v7143_v30, %v2084_v1  ;;  %v5966_v1 = vld [vmem:[#allocation4] ss:$0 sm:$0xff] }
0x1338   :  { %v2086_v5 = vpop.permute.xlu1 %2085 }
0x1339   :  { %v2094_v39 = vmul.f32 %v7145_v2, %v2086_v5  ;;  %6387 = vmatprep.mubr.msk.bf16.mxu1 %vm316_vm0, %v2098_v54 }
0x133b   :  { %v2099_v36 = vpack.c.bf16 %v2094_v39, %v2093_v32 }
0x133d   :  { %6388 = vmatmul.mubr.msk.bf16.vlgmr.msra.gmra.mrb[28].mxu1 %vm316_vm0, %v2099_v36 }
0x133e   :  { %6392 = vmatpush3.bf16.msra.mxu1 %v2172_v8 }
0x133f   :  { %6406 = vmatprep.subr.bf16.mxu1 %v7551_v40 }
0x1347   :  { %v2247_v43 = vpop.permute.xlu0 %2246 }
0x1348   :  { %vm2251_vm2 = vcmp.eq.s32.totalorder %v2244_v29, %v2247_v43 }
0x1349   :  { %v5961_v33 = vsel %vm2251_vm2, 1.0, %v7551_v40  ;;  %v2250_v3 = vpop.permute.xlu1 %2249 }
0x134a   :  { %6403 = vmatprep.mubr.msk.f32.mxu0 %vm2260_vm1, %v5961_v33  ;;  %vm2252_vm3 = vcmp.eq.s32.totalorder %v2244_v29, %v2250_v3 }
0x134b   :  { %v5962_v6 = vsel %vm2252_vm3, 1.0, %v7551_v40 }
0x134c   :  { %6404 = vmatmul.mubr.msk.f32.vlgmr.msra.gmra.mrb[28].mxu0 %vm2260_vm1, %v5962_v6 }
0x134d   :  { %6416 = vmatprep.mubr.msk.bf16.mxu0 %vm7555_vm4, %v7551_v40 }
0x1410   :  { %v6389_v13 = vpop.f32.mrb[28].mxu1 }
0x1411   :  { %v2158_v14 = vadd.f32 %v6389_v13, %v5955_v9  ;;  %v2149_v48 = vpop.f32.mrb[29].mxu1 }
0x1412   :  { %v2150_v51 = vadd.f32 %v5955_v9, %v2149_v48  ;;  %v6390_v19 = vpop.f32.mrb[30].mxu1  ;;  %v2346_v48 = vld [vmem:[%s9075_s3] sm:$0xff] }
0x1413   :  { %v2166_v21 = vadd.f32 %v2158_v14, %v1906_v50  ;;  %v2161_v58 = vadd.f32 %v6390_v19, %v5955_v9  ;;  %v2152_v23 = vpop.f32.mrb[31].mxu1 }
0x1414   :  { %v2164_v24 = vadd.f32 %v2150_v51, %v1904_v12  ;;  %v2153_v18 = vadd.f32 %v5955_v9, %v2152_v23 }
0x1415   :  { %v2167_v37 = vadd.f32 %v2161_v58, %v1907_v34 }
0x1416   :  { %v2165_v26 = vadd.f32 %v2153_v18, %v1905_v25 }
0x1417   :  { %v2171_v35 = vpack.c.bf16 %v2167_v37, %v2166_v21  ;;  %v2347_v21 = vld [vmem:[%s9075_s3 + $0x8] sm:$0x3f] }
0x1418   :  { %v2170_v52 = vpack.c.bf16 %v2165_v26, %v2164_v24 }
0x141a   :  { %6393 = vmatprep.mubr.msk.bf16.mxu1 %vm316_vm0, %v2170_v52 }
0x141b   :  { %6394 = vmatmul.mubr.msk.bf16.vlgmr.msra.gmra.mrb[32].mxu1 %vm316_vm0, %v2171_v35 }
0x141c   :  { %6407 = vmatpush3.bf16.msra.mxu1 %v2355_v53  ;;  %6410 = vmatprep.mubr.msk.bf16.mxu1 %vm7555_vm4, %v7551_v40 }
0x141d   :  { %6408 = vmatprep.subr.bf16.mxu1 %v7551_v40 }
0x141f   :  { %v6405_v22 = vpop.f32.mrb[28].mxu0 }
0x1420   :  { %v8361_v45 = vadd.f32 %v6405_v22, %v2240_v20  ;;  %v2337_v44 = vpop.f32.mrb[29].mxu0  ;;  %6409 = vmatpush3.bf16.msra.mxu1 %v2356_v31 }
0x1421   :  { %v8363_v46 = vadd.f32 %v2337_v44, %v2239_v16  ;;  %6420 = vmatprep.subr.bf16.mxu1 %v7551_v40 }
0x1423   :  { %v2354_v47 = vpack.c.bf16 %v8361_v45, %v8363_v46 }
0x1425   :  { %6411 = vmatmul.mubr.msk.bf16.vlgmr.msra.gmra.mrb[36].mxu1 %vm482_vm7, %v2354_v47 }
0x1426   :  { %6422 = vmatprep.mubr.msk.bf16.mxu1 %vm7555_vm4, %v7551_v40 }
0x14ee   :  { %v6395_v17 = vpop.f32.mrb[32].mxu1 }
0x14ef   :  { %v2229_v41 = vadd.f32 %v6395_v17, %v5958_v49  ;;  %v2220_v55 = vpop.f32.mrb[33].mxu1 }
0x14f0   :  { %v2221_v15 = vadd.f32 %v5958_v49, %v2220_v55  ;;  %v6396_v56 = vpop.f32.mrb[34].mxu1 }
0x14f1   :  { %v2232_v11 = vadd.f32 %v6396_v56, %v5958_v49  ;;  %v2223_v57 = vpop.f32.mrb[35].mxu1  ;;  %v2237_v60 = vmax.f32 %v2229_v41, 0.0 }
0x14f2   :  { %v2224_v59 = vadd.f32 %v5958_v49, %v2223_v57  ;;  %v2235_v63 = vmax.f32 %v2221_v15, 0.0 }
0x14f3   :  { %v2238_v61 = vmax.f32 %v2232_v11, 0.0 }
0x14f4   :  { %v2236_v4 = vmax.f32 %v2224_v59, 0.0 }
0x14f5   :  { %v8372_v0 = vpack.c.bf16 %v2238_v61, %v2237_v60 }
0x14f6   :  { %v8374_v10 = vpack.c.bf16 %v2236_v4, %v2235_v63 }
0x14f8   :  { %v2401_v30 = vpop.f32.mrb[36].mxu1 }
0x14f9   :  { %v6412_v54 = vpop.f32.mrb[37].mxu1  ;;  %v2402_v5 = vadd.f32 %v5966_v1, %v2401_v30 }
0x14fa   :  { %v2404_v2 = vpop.f32.mrb[38].mxu1 }
0x14fb   :  { %v2405_v32 = vadd.f32 %v5966_v1, %v2404_v2  ;;  %v6413_v39 = vpop.f32.mrb[39].mxu1 }
0x14fd   :  { %v8376_v36 = vpack.c.bf16 %v2405_v32, %v2402_v5 }
0x14ff   :  { %2541 = vrot.lane.b32.xlu0 %v8376_v36, %s7556_s14  ;;  %2410 = vrot.lane.b32.xlu1 %v8376_v36, %s7557_s19 }
0x1503   :  { %2668 = vrot.lane.b32.xlu0 %v8376_v36, %s7558_s28  ;;  %2539 = vrot.lane.b32.xlu1 %v8376_v36, %s7559_s1 }
0x1507   :  { %2795 = vrot.lane.b32.xlu0 %v8376_v36, %s7560_s2  ;;  %2666 = vrot.lane.b32.xlu1 %v8376_v36, %s7553_s8 }
0x150b   :  { %2793 = vrot.lane.b32.xlu1 %v8376_v36, %s7561_s20 }
0x1571   :  { %v2411_v29 = vpop.permute.xlu1 %2410  ;;  %v2542_v33 = vpop.permute.xlu0 %2541 }
0x1572   :  { %v2417_v43 = vsel %vm2412_vm5, %v2411_v29, 0  ;;  %v2547_v3 = vsel %vm2412_vm5, %v2542_v33, 0 }
0x1573   :  { %6415 = vmatpush3.bf16.xpose.msra.mxu0 %v2417_v43 }
0x1574   :  { %6426 = vmatprep.subr.bf16.mxu0 %v7551_v40 }
0x1575   :  { %v2669_v6 = vpop.permute.xlu0 %2668  ;;  %v2540_v7 = vpop.permute.xlu1 %2539 }
0x1576   :  { %v2674_v62 = vsel %vm2412_vm5, %v2669_v6, 0 }
0x1579   :  { %v2796_v8 = vpop.permute.xlu0 %2795  ;;  %v2667_v9 = vpop.permute.xlu1 %2666 }
0x157a   :  { %6417 = vmatmul.mubr.msk.bf16.vlgmr.msra.gmra.mrb[32].mxu0 %vm2412_vm5, %v8376_v36  ;;  %v2801_v13 = vsel %vm2412_vm5, %v2796_v8, 0 }
0x157b   :  { %6427 = vmatpush3.bf16.xpose.msra.mxu0 %v2547_v3  ;;  %6428 = vmatprep.mubr.msk.bf16.mxu0 %vm7555_vm4, %v7551_v40 }
0x157c   :  { %6438 = vmatprep.subr.bf16.mxu0 %v7551_v40 }
0x157d   :  { %v2794_v50 = vpop.permute.xlu1 %2793 }
0x1582   :  { %6429 = vmatmul.mubr.msk.bf16.vlgmr.msra.gmra.mrb[36].mxu0 %vm2412_vm5, %v2540_v7 }
0x1583   :  { %6439 = vmatpush3.bf16.xpose.msra.mxu0 %v2674_v62  ;;  %6440 = vmatprep.mubr.msk.bf16.mxu0 %vm7555_vm4, %v7551_v40 }
0x1584   :  { %6450 = vmatprep.subr.bf16.mxu0 %v7551_v40 }
0x158a   :  { %6441 = vmatmul.mubr.msk.bf16.vlgmr.msra.gmra.mrb[40].mxu0 %vm2412_vm5, %v2667_v9 }
0x158b   :  { %6451 = vmatpush3.bf16.xpose.msra.mxu0 %v2801_v13  ;;  %6452 = vmatprep.mubr.msk.bf16.mxu0 %vm7555_vm4, %v7551_v40 }
0x158c   :  { %6462 = vmatprep.subr.bf16.mxu0 %v7551_v40 }
0x1592   :  { %6453 = vmatmul.mubr.msk.bf16.vlgmr.msra.gmra.mrb[44].mxu0 %vm2412_vm5, %v2794_v50 }
0x1593   :  { %6466 = vmatprep.mubr.msk.bf16.mxu0 %vm7555_vm4, %v7551_v40 }
0x164d   :  { %v2453_v14 = vpop.f32.mrb[32].mxu0 }
0x164e   :  { %v2460_v12 = vmul.f32 0.35355338, %v2453_v14  ;;  %v6418_v51 = vpop.f32.mrb[33].mxu0 }
0x164f   :  { %v2456_v19 = vpop.f32.mrb[34].mxu0 }
0x1650   :  { %v2461_v34 = vmul.f32 0.35355338, %v2456_v19  ;;  %v6419_v58 = vpop.f32.mrb[35].mxu0  ;;  %v2462_v23 = vadd.f32 %v2460_v12, %v2346_v48 }
0x1652   :  { %v2465_v24 = vsel %vm2464_vm6, %v2462_v23, -inf  ;;  %v2463_v25 = vadd.f32 %v2461_v34, %v2347_v21 }
0x1653   :  { %2466 = vmax.xlane.f32.xlu0 %v2465_v24 }
0x1654   :  { %v2469_v18 = vsel %vm2468_vm8, %v2463_v25, -inf }
0x1655   :  { %2470 = vmax.xlane.f32.xlu1 %v2469_v18  ;;  %v2583_v37 = vpop.f32.mrb[36].mxu0 }
0x1656   :  { %v2590_v28 = vmul.f32 0.35355338, %v2583_v37  ;;  %v6430_v27 = vpop.f32.mrb[37].mxu0 }
0x1657   :  { %v2586_v26 = vpop.f32.mrb[38].mxu0 }
0x1658   :  { %v2591_v35 = vmul.f32 0.35355338, %v2586_v26  ;;  %v6431_v52 = vpop.f32.mrb[39].mxu0  ;;  %v2592_v53 = vadd.f32 %v2590_v28, %v2346_v48 }
0x165a   :  { %v2594_v38 = vsel %vm2464_vm6, %v2592_v53, -inf  ;;  %v2593_v42 = vadd.f32 %v2591_v35, %v2347_v21 }
0x165b   :  { %2595 = vmax.xlane.f32.xlu0 %v2594_v38 }
0x165c   :  { %v2597_v22 = vsel %vm2468_vm8, %v2593_v42, -inf }
0x165d   :  { %v2710_v31 = vpop.f32.mrb[40].mxu0 }
0x165e   :  { %v2717_v20 = vmul.f32 0.35355338, %v2710_v31  ;;  %v6442_v16 = vpop.f32.mrb[41].mxu0 }
0x165f   :  { %2598 = vmax.xlane.f32.xlu0 %v2597_v22  ;;  %v2713_v44 = vpop.f32.mrb[42].mxu0 }
0x1660   :  { %v2718_v47 = vmul.f32 0.35355338, %v2713_v44  ;;  %v6443_v49 = vpop.f32.mrb[43].mxu0  ;;  %v2719_v17 = vadd.f32 %v2717_v20, %v2346_v48 }
0x1662   :  { %v2721_v41 = vsel %vm2464_vm6, %v2719_v17, -inf  ;;  %v2720_v55 = vadd.f32 %v2718_v47, %v2347_v21 }
0x1663   :  { %2722 = vmax.xlane.f32.xlu1 %v2721_v41 }
0x1664   :  { %v2724_v15 = vsel %vm2468_vm8, %v2720_v55, -inf }
0x1665   :  { %2725 = vmax.xlane.f32.xlu0 %v2724_v15  ;;  %v2837_v56 = vpop.f32.mrb[44].mxu0 }
0x1666   :  { %v2844_v11 = vmul.f32 0.35355338, %v2837_v56  ;;  %v6454_v57 = vpop.f32.mrb[45].mxu0 }
0x1667   :  { %v2840_v59 = vpop.f32.mrb[46].mxu0 }
0x1668   :  { %v2845_v60 = vmul.f32 0.35355338, %v2840_v59  ;;  %v6455_v61 = vpop.f32.mrb[47].mxu0  ;;  %v2846_v63 = vadd.f32 %v2844_v11, %v2346_v48 }
0x166a   :  { %v2848_v4 = vsel %vm2464_vm6, %v2846_v63, -inf  ;;  %v2847_v1 = vadd.f32 %v2845_v60, %v2347_v21 }
0x166b   :  { %2849 = vmax.xlane.f32.xlu1 %v2848_v4 }
0x166c   :  { %v2851_v30 = vsel %vm2468_vm8, %v2847_v1, -inf }
0x166d   :  { %2852 = vmax.xlane.f32.xlu0 %v2851_v30 }
0x167c   :  { %2489 = vrot.lane.b32.xlu1 %v8376_v36, %s7562_s7 }
0x16e0   :  { %v2467_v54 = vpop.xlane.xlu0 %2466 }
0x16e1   :  { %v2472_v2 = vsub.f32 %v2462_v23, %v2467_v54 }
0x16e2   :  { %v2471_v5 = vpop.xlane.xlu1 %2470 }
0x16e3   :  { %v2474_v32 = vmul.f32 1.442695, %v2472_v2  ;;  %v2473_v39 = vsub.f32 %v2463_v25, %v2471_v5 }
0x16e5   :  { %7146 = vpow2.f32 %v2474_v32  ;;  %v2476_v29 = vmul.f32 1.442695, %v2473_v39 }
0x16e7   :  { %7148 = vpow2.f32 %v2476_v29 }
0x16e8   :  { %v2596_v43 = vpop.xlane.xlu0 %2595 }
0x16e9   :  { %v2600_v33 = vsub.f32 %v2592_v53, %v2596_v43 }
0x16eb   :  { %v2602_v3 = vmul.f32 1.442695, %v2600_v33 }
0x16ec   :  { %v2599_v6 = vpop.xlane.xlu0 %2598 }
0x16ed   :  { %7150 = vpow2.f32 %v2602_v3  ;;  %v2601_v7 = vsub.f32 %v2593_v42, %v2599_v6 }
0x16ef   :  { %v7147_v62 = vpop.eup %7146  ;;  %v2604_v8 = vmul.f32 1.442695, %v2601_v7 }
0x16f0   :  { %v2723_v9 = vpop.xlane.xlu1 %2722  ;;  %v2478_v13 = vsel %vm2464_vm6, %v7147_v62, 0.0 }
0x16f1   :  { %v7149_v50 = vpop.eup %7148  ;;  %7152 = vpow2.f32 %v2604_v8  ;;  %v2727_v14 = vsub.f32 %v2719_v17, %v2723_v9  ;;  %2479 = vadd.xlane.f32.xlu1 %v2478_v13 }
0x16f2   :  { %v2726_v48 = vpop.xlane.xlu0 %2725  ;;  %v2481_v12 = vsel %vm2468_vm8, %v7149_v50, 0.0 }
0x16f3   :  { %v2729_v51 = vmul.f32 1.442695, %v2727_v14  ;;  %v2728_v19 = vsub.f32 %v2720_v55, %v2726_v48  ;;  %2482 = vadd.xlane.f32.xlu0 %v2481_v12 }
0x16f5   :  { %7154 = vpow2.f32 %v2729_v51  ;;  %v2731_v21 = vmul.f32 1.442695, %v2728_v19 }
0x16f7   :  { %v8427_v34 = vpop.eup %7150  ;;  %7156 = vpow2.f32 %v2731_v21 }
0x16f8   :  { %v2850_v58 = vpop.xlane.xlu1 %2849  ;;  %v2606_v23 = vsel %vm2464_vm6, %v8427_v34, 0.0 }
0x16f9   :  { %v2854_v24 = vsub.f32 %v2846_v63, %v2850_v58  ;;  %2607 = vadd.xlane.f32.xlu1 %v2606_v23  ;;  %v2951_v23 = vld [vmem:[%s9076_s15] sm:$0xff] }
0x16fa   :  { %v2853_v25 = vpop.xlane.xlu0 %2852 }
0x16fb   :  { %v7153_v18 = vpop.eup %7152  ;;  %v2856_v37 = vmul.f32 1.442695, %v2854_v24  ;;  %v2855_v28 = vsub.f32 %v2847_v1, %v2853_v25  ;;  %v2952_v24 = vld [vmem:[%s9076_s15 + $0x8] sm:$0xff] }
0x16fc   :  { %v2490_v27 = vpop.permute.xlu1 %2489  ;;  %v2609_v26 = vsel %vm2468_vm8, %v7153_v18, 0.0 }
0x16fd   :  { %7158 = vpow2.f32 %v2856_v37  ;;  %v2858_v35 = vmul.f32 1.442695, %v2855_v28  ;;  %v2496_v52 = vsel %vm2494_vm9, %v2490_v27, 0  ;;  %2610 = vadd.xlane.f32.xlu0 %v2609_v26  ;;  %v2956_v37 = vpack.c.bf16 %v2952_v24, %v2951_v23  ;;  %v2953_v27 = vld [vmem:[%s9076_s15 + $0x10] sm:$0xff]  ;;  %v2954_v26 = vld [vmem:[%s9076_s15 + $0x18] sm:$0xff] }
0x16fe   :  { %6421 = vmatpush3.bf16.msra.mxu1 %v2496_v52  ;;  %v2957_v52 = vpack.c.bf16 %v2954_v26, %v2953_v27  ;;  %v3062_v27 = vld [vmem:[%s9079_s6 + $0x8] sm:$0xff] }
0x16ff   :  { %v7155_v53 = vpop.eup %7154  ;;  %7160 = vpow2.f32 %v2858_v35  ;;  %6432 = vmatprep.subr.bf16.mxu1 %v7551_v40  ;;  %6463 = vmatpush3.bf16.msra.mxu0 %v2956_v37 }
0x1700   :  { %v2733_v38 = vsel %vm2464_vm6, %v7155_v53, 0.0  ;;  %6464 = vmatprep.subr.bf16.mxu0 %v7551_v40 }
0x1701   :  { %v7157_v42 = vpop.eup %7156  ;;  %2734 = vadd.xlane.f32.xlu1 %v2733_v38 }
0x1702   :  { %v2736_v31 = vsel %vm2468_vm8, %v7157_v42, 0.0 }
0x1703   :  { %2737 = vadd.xlane.f32.xlu0 %v2736_v31  ;;  %6465 = vmatpush3.bf16.msra.mxu0 %v2957_v52  ;;  %v3119_v31 = vld [vmem:[%s9077_s16] sm:$0xff]  ;;  %v3064_v52 = vld [vmem:[%s9079_s6 + $0x18] sm:$0xff] }
0x1707   :  { %v8436_v20 = vpop.eup %7158 }
0x1708   :  { %v2860_v16 = vsel %vm2464_vm6, %v8436_v20, 0.0 }
0x1709   :  { %v7161_v22 = vpop.eup %7160  ;;  %2861 = vadd.xlane.f32.xlu1 %v2860_v16 }
0x170a   :  { %v2863_v44 = vsel %vm2468_vm8, %v7161_v22, 0.0 }
0x170b   :  { %2864 = vadd.xlane.f32.xlu0 %v2863_v44 }
0x171a   :  { %2744 = vrot.lane.b32.xlu1 %v8376_v36, %s7563_s13 }
0x171e   :  { %2871 = vrot.lane.b32.xlu1 %v8376_v36, %s7564_s10 }
0x1721   :  { %2617 = vrot.lane.b32.xlu0 %v8376_v36, %s7565_s11 }
0x177e   :  { %v2480_v47 = vpop.xlane.xlu1 %2479 }
0x177f   :  { %7162 = vrcp.f32 %v2480_v47 }
0x1780   :  { %v2483_v49 = vpop.xlane.xlu0 %2482 }
0x1781   :  { %7164 = vrcp.f32 %v2483_v49 }
0x1786   :  { %v2608_v11 = vpop.xlane.xlu1 %2607 }
0x1789   :  { %v7163_v17 = vpop.eup %7162 }
0x178a   :  { %v2611_v55 = vpop.xlane.xlu0 %2610  ;;  %v2486_v15 = vmul.f32 %v7163_v17, %v7147_v62 }
0x178b   :  { %v7165_v41 = vpop.eup %7164  ;;  %7166 = vrcp.f32 %v2611_v55 }
0x178c   :  { %v2487_v56 = vmul.f32 %v7165_v41, %v7149_v50  ;;  %7168 = vrcp.f32 %v2608_v11 }
0x178e   :  { %v2488_v57 = vpack.c.bf16 %v2487_v56, %v2486_v15  ;;  %v2735_v36 = vpop.xlane.xlu1 %2734 }
0x1790   :  { %6423 = vmatmul.mubr.msk.bf16.vlgmr.msra.gmra.mrb[40].mxu1 %vm2464_vm6, %v2488_v57  ;;  %v2738_v59 = vpop.xlane.xlu0 %2737 }
0x1791   :  { %6434 = vmatprep.mubr.msk.bf16.mxu1 %vm7555_vm4, %v7551_v40  ;;  %7170 = vrcp.f32 %v2738_v59 }
0x1792   :  { %7172 = vrcp.f32 %v2735_v36 }
0x1795   :  { %v7167_v60 = vpop.eup %7166 }
0x1796   :  { %v2862_v61 = vpop.xlane.xlu1 %2861  ;;  %v7169_v4 = vpop.eup %7168  ;;  %v2615_v1 = vmul.f32 %v7167_v60, %v7153_v18 }
0x1797   :  { %v2614_v54 = vmul.f32 %v7169_v4, %v8427_v34  ;;  %v3121_v4 = vld [vmem:[%s9077_s16 + $0x10] sm:$0xff] }
0x1798   :  { %v2865_v63 = vpop.xlane.xlu0 %2864 }
0x1799   :  { %7174 = vrcp.f32 %v2865_v63  ;;  %v2616_v32 = vpack.c.bf16 %v2615_v1, %v2614_v54  ;;  %v3122_v1 = vld [vmem:[%s9077_s16 + $0x18] sm:$0xff] }
0x179a   :  { %v2745_v5 = vpop.permute.xlu1 %2744  ;;  %7176 = vrcp.f32 %v2862_v61 }
0x179b   :  { %v7171_v39 = vpop.eup %7170  ;;  %v2750_v29 = vsel %vm2494_vm9, %v2745_v5, 0 }
0x179c   :  { %v2618_v30 = vpop.permute.xlu0 %2617  ;;  %v7173_v43 = vpop.eup %7172  ;;  %v2742_v33 = vmul.f32 %v7171_v39, %v7157_v42  ;;  %v3126_v39 = vpack.c.bf16 %v3122_v1, %v3121_v4  ;;  %v5979_v1 = vld [vmem:[#allocation10] ss:$0 sm:$0xff] }
0x179d   :  { %v2623_v2 = vsel %vm2494_vm9, %v2618_v30, 0  ;;  %v2741_v3 = vmul.f32 %v7173_v43, %v7155_v53 }
0x179e   :  { %6433 = vmatpush3.bf16.msra.mxu1 %v2623_v2  ;;  %v2872_v6 = vpop.permute.xlu1 %2871 }
0x179f   :  { %6444 = vmatprep.subr.bf16.mxu1 %v7551_v40  ;;  %v2743_v7 = vpack.c.bf16 %v2742_v33, %v2741_v3  ;;  %v2877_v8 = vsel %vm2494_vm9, %v2872_v6, 0 }
0x17a1   :  { %6435 = vmatmul.mubr.msk.bf16.vlgmr.msra.gmra.mrb[44].mxu1 %vm2464_vm6, %v2616_v32 }
0x17a2   :  { %6445 = vmatpush3.bf16.msra.mxu1 %v2750_v29  ;;  %6446 = vmatprep.mubr.msk.bf16.mxu1 %vm7555_vm4, %v7551_v40  ;;  %v5976_v29 = vld [vmem:[%s9078_s18] ss:$0 sm:$0xff] }
0x17a3   :  { %6456 = vmatprep.subr.bf16.mxu1 %v7551_v40  ;;  %v7175_v62 = vpop.eup %7174 }
0x17a4   :  { %v7177_v9 = vpop.eup %7176  ;;  %v2869_v13 = vmul.f32 %v7175_v62, %v7161_v22 }
0x17a5   :  { %v2868_v50 = vmul.f32 %v7177_v9, %v8436_v20  ;;  %v3120_v20 = vld [vmem:[%s9077_s16 + $0x8] sm:$0xff] }
0x17a6   :  { %v3125_v16 = vpack.c.bf16 %v3120_v20, %v3119_v31 }
0x17a7   :  { %v2870_v14 = vpack.c.bf16 %v2869_v13, %v2868_v50 }
0x17a8   :  { %6478 = vmatprep.subr.bf16.mxu0 %v3125_v16 }
0x17a9   :  { %6447 = vmatmul.mubr.msk.bf16.vlgmr.msra.gmra.mrb[48].mxu1 %vm2464_vm6, %v2743_v7 }
0x17aa   :  { %6457 = vmatpush3.bf16.msra.mxu1 %v2877_v8  ;;  %6458 = vmatprep.mubr.msk.bf16.mxu1 %vm7555_vm4, %v7551_v40 }
0x17ab   :  { %6470 = vmatprep.subr.bf16.mxu1 %v7551_v40 }
0x17b1   :  { %6459 = vmatmul.mubr.msk.bf16.vlgmr.msra.gmra.mrb[52].mxu1 %vm2464_vm6, %v2870_v14 }
0x17b2   :  { %6474 = vmatprep.mubr.msk.bf16.mxu1 %vm7555_vm4, %v7551_v40 }
0x1863   :  { %v2532_v48 = vpop.f32.mrb[40].mxu1 }
0x1864   :  { %v6424_v12 = vpop.f32.mrb[41].mxu1 }
0x1865   :  { %v2535_v51 = vpop.f32.mrb[42].mxu1 }
0x1866   :  { %v6425_v19 = vpop.f32.mrb[43].mxu1 }
0x1874   :  { %v2659_v21 = vpop.f32.mrb[44].mxu1 }
0x1875   :  { %v6436_v34 = vpop.f32.mrb[45].mxu1 }
0x1876   :  { %v2662_v58 = vpop.f32.mrb[46].mxu1 }
0x1877   :  { %v6942_v25 = vpack.i.bf16 %v2662_v58, %v2659_v21  ;;  %v6437_v18 = vpop.f32.mrb[47].mxu1 }
0x1879   :  { %6943 = vrot.lane.b32.xlu0 %v6942_v25, %s7566_s30 }
0x187c   :  { %v2786_v28 = vpop.f32.mrb[48].mxu1 }
0x187d   :  { %v6448_v35 = vpop.f32.mrb[49].mxu1 }
0x187e   :  { %v2789_v53 = vpop.f32.mrb[50].mxu1  ;;  %v3063_v35 = vld [vmem:[%s9079_s6 + $0x10] sm:$0xff] }
0x187f   :  { %v6947_v38 = vpack.i.bf16 %v2789_v53, %v2786_v28  ;;  %v6449_v42 = vpop.f32.mrb[51].mxu1  ;;  %v3061_v28 = vld [vmem:[%s9079_s6] sm:$0xff]  ;;  %v3067_v53 = vpack.c.bf16 %v3064_v52, %v3063_v35 }
0x1880   :  { %v3066_v26 = vpack.c.bf16 %v3062_v27, %v3061_v28 }
0x1881   :  { %6948 = vrot.lane.b32.xlu1 %v6947_v38, %s7542_s26 }
0x1882   :  { %6471 = vmatpush3.bf16.msra.mxu1 %v3066_v26 }
0x1883   :  { %6472 = vmatprep.subr.bf16.mxu1 %v7551_v40 }
0x1884   :  { %v2913_v22 = vpop.f32.mrb[52].mxu1 }
0x1885   :  { %v6460_v44 = vpop.f32.mrb[53].mxu1 }
0x1886   :  { %v2916_v47 = vpop.f32.mrb[54].mxu1  ;;  %6473 = vmatpush3.bf16.msra.mxu1 %v3067_v53 }
0x1887   :  { %v6952_v49 = vpack.i.bf16 %v2916_v47, %v2913_v22  ;;  %v6461_v17 = vpop.f32.mrb[55].mxu1  ;;  %6486 = vmatprep.subr.bf16.mxu1 %v7551_v40 }
0x1889   :  { %6953 = vrot.lane.b32.xlu0 %v6952_v49, %s7567_s4 }
0x18eb   :  { %v6944_v41 = vpop.permute.xlu0 %6943 }
0x18ec   :  { %v6946_v15 = vunpack.i.h.bf16 %v6944_v41  ;;  %v6945_v56 = vunpack.i.l.bf16 %v6944_v41 }
0x18ee   :  { %v2945_v36 = vsel %vm2412_vm5, %v2535_v51, %v6946_v15  ;;  %v2944_v60 = vsel %vm2412_vm5, %v2532_v48, %v6945_v56  ;;  %v5982_v51 = vld [vmem:[#allocation7] ss:$0 sm:$0xff] }
0x18f3   :  { %v6949_v55 = vpop.permute.xlu1 %6948 }
0x18f4   :  { %v6951_v11 = vunpack.i.h.bf16 %v6949_v55  ;;  %v6950_v57 = vunpack.i.l.bf16 %v6949_v55 }
0x18f6   :  { %v2947_v30 = vsel %vm316_vm0, %v2945_v36, %v6951_v11  ;;  %v2946_v54 = vsel %vm316_vm0, %v2944_v60, %v6950_v57 }
0x18fb   :  { %v6954_v59 = vpop.permute.xlu0 %6953 }
0x18fc   :  { %v6956_v61 = vunpack.i.h.bf16 %v6954_v59  ;;  %v6955_v63 = vunpack.i.l.bf16 %v6954_v59  ;;  %v5978_v59 = vld [vmem:[#allocation9] ss:$0 sm:$0xff] }
0x18fe   :  { %v2950_v2 = vsel %vm2948_vm10, %v2947_v30, %v6956_v61  ;;  %v2949_v5 = vsel %vm2948_vm10, %v2946_v54, %v6955_v63 }
0x18ff   :  { %v2955_v32 = vpack.c.bf16 %v2950_v2, %v2949_v5 }
0x1901   :  { %6467 = vmatmul.mubr.msk.bf16.vlgmr.msra.gmra.mrb[48].mxu0 %vm482_vm7, %v2955_v32 }
0x1902   :  { %6479 = vmatpush3.bf16.msra.mxu0 %v3125_v16  ;;  %6482 = vmatprep.mubr.msk.bf16.mxu0 %vm482_vm7, %v8374_v10 }
0x1903   :  { %6480 = vmatprep.subr.bf16.mxu0 %v3126_v39 }
0x1906   :  { %6481 = vmatpush3.bf16.msra.mxu0 %v3126_v39 }
0x1907   :  { %6494 = vmatprep.subr.bf16.mxu0 %v7551_v40 }
0x1909   :  { %6483 = vmatmul.mubr.msk.bf16.vlgmr.msra.gmra.mrb[52].mxu0 %vm482_vm7, %v8372_v0 }
0x190a   :  { %6498 = vmatprep.mubr.msk.bf16.mxu0 %vm7555_vm4, %v7551_v40 }
0x19d4   :  { %v3002_v43 = vpop.f32.mrb[48].mxu0 }
0x19d5   :  { %v3003_v33 = vadd.f32 %v5976_v29, %v3002_v43  ;;  %v6468_v3 = vpop.f32.mrb[49].mxu0 }
0x19d6   :  { %v3005_v6 = vpop.f32.mrb[50].mxu0 }
0x19d7   :  { %v3009_v7 = vadd.f32 %v3003_v33, %v8363_v46  ;;  %v3006_v62 = vadd.f32 %v5976_v29, %v3005_v6  ;;  %v6469_v8 = vpop.f32.mrb[51].mxu0  ;;  %v5980_v29 = vld [vmem:[#allocation6] ss:$0 sm:$0xff] }
0x19d9   :  { %v3010_v9 = vadd.f32 %v3006_v62, %v8361_v45  ;;  %v3011_v13 = vsel %vm482_vm7, %v3009_v7, 0.0  ;;  %v3021_v48 = vmul.f32 %v3009_v7, %v3009_v7 }
0x19da   :  { %3012 = vadd.xlane.f32.xlu1 %v3011_v13  ;;  %v8532_v13 = vld [vmem:[%s9080_s24] sm:$0xff] }
0x19db   :  { %v3015_v50 = vsel %vm3014_vm11, %v3010_v9, 0.0  ;;  %v3022_v14 = vmul.f32 %v3010_v9, %v3010_v9  ;;  %v3023_v23 = vsel %vm482_vm7, %v3021_v48, 0.0 }
0x19dc   :  { %3016 = vadd.xlane.f32.xlu0 %v3015_v50  ;;  %v6484_v12 = vpop.f32.mrb[52].mxu0 }
0x19dd   :  { %v3174_v19 = vpop.f32.mrb[53].mxu0  ;;  %v3026_v46 = vsel %vm3014_vm11, %v3022_v14, 0.0  ;;  %v3183_v45 = vadd.f32 %v6484_v12, %v5982_v51  ;;  %v8535_v12 = vld [vmem:[%s9080_s24 + $0x8] sm:$0x3f] }
0x19de   :  { %3027 = vadd.xlane.f32.xlu1 %v3026_v46  ;;  %v6485_v21 = vpop.f32.mrb[54].mxu0  ;;  %v3175_v24 = vadd.f32 %v5982_v51, %v3174_v19 }
0x19df   :  { %v3186_v34 = vadd.f32 %v6485_v21, %v5982_v51  ;;  %v3177_v58 = vpop.f32.mrb[55].mxu0 }
0x19e0   :  { %v3178_v25 = vadd.f32 %v5982_v51, %v3177_v58  ;;  %3024 = vadd.xlane.f32.xlu0 %v3023_v23 }
0x19e1   :  { %v8500_v18 = vpack.c.bf16 %v3186_v34, %v3183_v45 }
0x19e2   :  { %v8502_v37 = vpack.c.bf16 %v3178_v25, %v3175_v24 }
0x19e3   :  { %v3199_v39 = vsel %vm2412_vm5, %v8500_v18, 0 }
0x19e4   :  { %v3196_v32 = vsel %vm2412_vm5, %v8502_v37, 0 }
0x1a67   :  { %v3013_v38 = vpop.xlane.xlu1 %3012 }
0x1a68   :  { %v3019_v31 = vmul.f32 0.03125, %v3013_v38 }
0x1a69   :  { %v3017_v42 = vpop.xlane.xlu0 %3016 }
0x1a6a   :  { %v3020_v20 = vmul.f32 0.03125, %v3017_v42  ;;  %v3031_v49 = vmul.f32 %v3019_v31, %v3019_v31  ;;  %v3035_v36 = vsub.f32 %v3009_v7, %v3019_v31 }
0x1a6b   :  { %v3028_v16 = vpop.xlane.xlu1 %3027 }
0x1a6c   :  { %v3032_v22 = vmul.f32 %v3020_v20, %v3020_v20  ;;  %v3030_v44 = vmul.f32 0.03125, %v3028_v16  ;;  %v3036_v11 = vsub.f32 %v3010_v9, %v3020_v20 }
0x1a6d   :  { %v3025_v47 = vpop.xlane.xlu0 %3024 }
0x1a6e   :  { %v3034_v17 = vsub.f32 %v3030_v44, %v3032_v22  ;;  %v3029_v41 = vmul.f32 0.03125, %v3025_v47 }
0x1a70   :  { %v3038_v55 = vadd.f32 1e-05, %v3034_v17  ;;  %v3033_v15 = vsub.f32 %v3029_v41, %v3031_v49 }
0x1a72   :  { %7178 = vrsqrt.f32 %v3038_v55  ;;  %v3037_v56 = vadd.f32 1e-05, %v3033_v15 }
0x1a74   :  { %7180 = vrsqrt.f32 %v3037_v56 }
0x1a7c   :  { %v7179_v57 = vpop.eup %7178 }
0x1a7d   :  { %v3042_v60 = vmul.f32 %v7179_v57, %v3036_v11 }
0x1a7e   :  { %v7181_v61 = vpop.eup %7180 }
0x1a7f   :  { %v3041_v63 = vmul.f32 %v7181_v61, %v3035_v36  ;;  %v3051_v4 = vmul.f32 %v5978_v59, %v3042_v60 }
0x1a81   :  { %v3050_v30 = vmul.f32 %v5978_v59, %v3041_v63  ;;  %v8512_v2 = vadd.f32 %v5979_v1, %v3051_v4 }
0x1a83   :  { %v8510_v54 = vadd.f32 %v5979_v1, %v3050_v30 }
0x1a85   :  { %v3065_v5 = vpack.c.bf16 %v8512_v2, %v8510_v54 }
0x1a87   :  { %6475 = vmatmul.mubr.msk.bf16.vlgmr.msra.gmra.mrb[56].mxu1 %vm482_vm7, %v3065_v5 }
0x1a88   :  { %6487 = vmatpush3.bf16.xpose.msra.mxu1 %v3196_v32  ;;  %6490 = vmatprep.mubr.msk.bf16.mxu1 %vm7555_vm4, %v7551_v40 }
0x1a89   :  { %6488 = vmatprep.subr.bf16.mxu1 %v7551_v40 }
0x1a90   :  { %6489 = vmatpush3.bf16.xpose.msra.mxu1 %v3199_v39 }
0x1a91   :  { %6510 = vmatprep.subr.bf16.mxu1 %v7551_v40 }
0x1b5a   :  { %v3112_v43 = vpop.f32.mrb[56].mxu1 }
0x1b5b   :  { %v6476_v33 = vpop.f32.mrb[57].mxu1  ;;  %v3113_v6 = vadd.f32 %v5980_v29, %v3112_v43 }
0x1b5c   :  { %v3115_v3 = vpop.f32.mrb[58].mxu1 }
0x1b5d   :  { %v3116_v7 = vadd.f32 %v5980_v29, %v3115_v3  ;;  %v6477_v62 = vpop.f32.mrb[59].mxu1 }
0x1b5f   :  { %v8525_v8 = vpack.c.bf16 %v3116_v7, %v3113_v6 }
0x1b61   :  { %6491 = vmatmul.mubr.msk.bf16.vlgmr.msra.gmra.mrb[60].mxu1 %vm2412_vm5, %v8525_v8 }
0x1b62   :  { %6514 = vmatprep.mubr.msk.bf16.mxu1 %vm7555_vm4, %v7551_v40 }
0x1c34   :  { %v3235_v9 = vpop.f32.mrb[60].mxu1 }
0x1c35   :  { %v3242_v50 = vmul.f32 0.35355338, %v3235_v9  ;;  %v6492_v14 = vpop.f32.mrb[61].mxu1 }
0x1c36   :  { %v3238_v48 = vpop.f32.mrb[62].mxu1 }
0x1c37   :  { %v3243_v51 = vmul.f32 0.35355338, %v3238_v48  ;;  %v6493_v19 = vpop.f32.mrb[63].mxu1  ;;  %v3244_v46 = vadd.f32 %v3242_v50, %v8532_v13 }
0x1c39   :  { %v3246_v21 = vsel %vm482_vm7, %v3244_v46, -inf  ;;  %v3245_v45 = vadd.f32 %v3243_v51, %v8535_v12 }
0x1c3a   :  { %3247 = vmax.xlane.f32.xlu0 %v3246_v21 }
0x1c3b   :  { %v3249_v34 = vsel %vm3014_vm11, %v3245_v45, -inf }
0x1c3c   :  { %3250 = vmax.xlane.f32.xlu1 %v3249_v34 }
0x1c4d   :  { %3273 = vrot.lane.b32.xlu1 %v8500_v18, %s7557_s19 }
0x1cc7   :  { %v3248_v58 = vpop.xlane.xlu0 %3247 }
0x1cc8   :  { %v3252_v23 = vsub.f32 %v3244_v46, %v3248_v58 }
0x1cc9   :  { %v3251_v24 = vpop.xlane.xlu1 %3250 }
0x1cca   :  { %v3254_v25 = vmul.f32 1.442695, %v3252_v23  ;;  %v3253_v28 = vsub.f32 %v3245_v45, %v3251_v24 }
0x1ccc   :  { %7182 = vpow2.f32 %v3254_v25  ;;  %v3256_v27 = vmul.f32 1.442695, %v3253_v28 }
0x1ccd   :  { %v3274_v38 = vpop.permute.xlu1 %3273 }
0x1cce   :  { %7184 = vpow2.f32 %v3256_v27 }
0x1cd6   :  { %v7183_v26 = vpop.eup %7182 }
0x1cd7   :  { %v3258_v35 = vsel %vm482_vm7, %v7183_v26, 0.0 }
0x1cd8   :  { %v7185_v52 = vpop.eup %7184  ;;  %3259 = vadd.xlane.f32.xlu0 %v3258_v35 }
0x1cd9   :  { %v3261_v53 = vsel %vm3014_vm11, %v7185_v52, 0.0 }
0x1cda   :  { %3262 = vadd.xlane.f32.xlu1 %v3261_v53 }
0x1ceb   :  { %3324 = vrot.lane.b32.xlu1 %v8502_v37, %s7559_s1 }
0x1cee   :  { %3271 = vrot.lane.b32.xlu0 %v8502_v37, %s7557_s19 }
0x1cef   :  { %3322 = vrot.lane.b32.xlu1 %v8525_v8, %s7559_s1 }
0x1cf2   :  { %3326 = vrot.lane.b32.xlu0 %v8500_v18, %s7559_s1 }
0x1d65   :  { %v3260_v42 = vpop.xlane.xlu0 %3259 }
0x1d66   :  { %7186 = vrcp.f32 %v3260_v42 }
0x1d67   :  { %v3263_v31 = vpop.xlane.xlu1 %3262 }
0x1d68   :  { %7188 = vrcp.f32 %v3263_v31 }
0x1d69   :  { %v3272_v20 = vpop.permute.xlu0 %3271 }
0x1d6a   :  { %6495 = vmatpush3.bf16.msra.mxu0 %v3272_v20 }
0x1d6b   :  { %6496 = vmatprep.subr.bf16.mxu0 %v7551_v40  ;;  %v3325_v49 = vpop.permute.xlu1 %3324 }
0x1d6c   :  { %v3332_v41 = vsel %vm2412_vm5, %v3325_v49, 0 }
0x1d6d   :  { %v3327_v55 = vpop.permute.xlu0 %3326 }
0x1d6e   :  { %6497 = vmatpush3.bf16.msra.mxu0 %v3274_v38  ;;  %v3335_v15 = vsel %vm2412_vm5, %v3327_v55, 0 }
0x1d6f   :  { %6502 = vmatprep.subr.bf16.mxu0 %v7551_v40  ;;  %v3323_v56 = vpop.permute.xlu1 %3322 }
0x1d70   :  { %v7187_v16 = vpop.eup %7186 }
0x1d71   :  { %v3266_v44 = vmul.f32 %v7187_v16, %v7183_v26 }
0x1d72   :  { %v7189_v22 = vpop.eup %7188 }
0x1d73   :  { %v3267_v47 = vmul.f32 %v7189_v22, %v7185_v52 }
0x1d75   :  { %v3268_v17 = vpack.c.bf16 %v3267_v47, %v3266_v44 }
0x1d77   :  { %6499 = vmatmul.mubr.msk.bf16.vlgmr.msra.gmra.mrb[56].mxu0 %vm482_vm7, %v3268_v17 }
0x1d78   :  { %6503 = vmatpush3.bf16.xpose.msra.mxu0 %v3332_v41  ;;  %6506 = vmatprep.mubr.msk.bf16.mxu0 %vm7555_vm4, %v7551_v40 }
0x1d79   :  { %6504 = vmatprep.subr.bf16.mxu0 %v7551_v40 }
0x1d80   :  { %6505 = vmatpush3.bf16.xpose.msra.mxu0 %v3335_v15 }
0x1d81   :  { %6526 = vmatprep.subr.bf16.mxu0 %v7551_v40 }
0x1d87   :  { %6507 = vmatmul.mubr.msk.bf16.vlgmr.msra.gmra.mrb[60].mxu0 %vm2412_vm5, %v3323_v56 }
0x1d88   :  { %6530 = vmatprep.mubr.msk.bf16.mxu0 %vm7555_vm4, %v7551_v40 }
0x1e4a   :  { %v8565_v11 = vpop.f32.mrb[56].mxu0 }
0x1e4b   :  { %v6500_v57 = vpop.f32.mrb[57].mxu0 }
0x1e4c   :  { %v8567_v59 = vpop.f32.mrb[58].mxu0 }
0x1e4d   :  { %v6501_v36 = vpop.f32.mrb[59].mxu0 }
0x1e5a   :  { %v3371_v60 = vpop.f32.mrb[60].mxu0 }
0x1e5b   :  { %v3378_v61 = vmul.f32 0.35355338, %v3371_v60  ;;  %v6508_v63 = vpop.f32.mrb[61].mxu0 }
0x1e5c   :  { %v3374_v4 = vpop.f32.mrb[62].mxu0 }
0x1e5d   :  { %v3379_v1 = vmul.f32 0.35355338, %v3374_v4  ;;  %v6509_v30 = vpop.f32.mrb[63].mxu0  ;;  %v3380_v5 = vadd.f32 %v3378_v61, %v8532_v13 }
0x1e5f   :  { %v3382_v32 = vsel %vm482_vm7, %v3380_v5, -inf  ;;  %v3381_v39 = vadd.f32 %v3379_v1, %v8535_v12 }
0x1e60   :  { %3383 = vmax.xlane.f32.xlu0 %v3382_v32 }
0x1e61   :  { %v3385_v29 = vsel %vm3014_vm11, %v3381_v39, -inf }
0x1e62   :  { %3386 = vmax.xlane.f32.xlu1 %v3385_v29 }
0x1e73   :  { %3405 = vrot.lane.b32.xlu1 %v8502_v37, %s7556_s14 }
0x1e77   :  { %3457 = vrot.lane.b32.xlu1 %v8502_v37, %s7553_s8 }
0x1e7b   :  { %3459 = vrot.lane.b32.xlu1 %v8500_v18, %s7553_s8 }
0x1eed   :  { %v3384_v43 = vpop.xlane.xlu0 %3383 }
0x1eee   :  { %v3388_v33 = vsub.f32 %v3380_v5, %v3384_v43 }
0x1eef   :  { %v3387_v3 = vpop.xlane.xlu1 %3386 }
0x1ef0   :  { %v3390_v6 = vmul.f32 1.442695, %v3388_v33  ;;  %v3389_v7 = vsub.f32 %v3381_v39, %v3387_v3 }
0x1ef2   :  { %7190 = vpow2.f32 %v3390_v6  ;;  %v3392_v62 = vmul.f32 1.442695, %v3389_v7 }
0x1ef3   :  { %v3406_v9 = vpop.permute.xlu1 %3405 }
0x1ef4   :  { %7192 = vpow2.f32 %v3392_v62  ;;  %6511 = vmatpush3.bf16.msra.mxu1 %v3406_v9 }
0x1ef5   :  { %6512 = vmatprep.subr.bf16.mxu1 %v7551_v40 }
0x1ef7   :  { %v3458_v24 = vpop.permute.xlu1 %3457 }
0x1ef8   :  { %v3465_v28 = vsel %vm2412_vm5, %v3458_v24, 0 }
0x1efb   :  { %v3460_v27 = vpop.permute.xlu1 %3459 }
0x1efc   :  { %v7191_v50 = vpop.eup %7190  ;;  %v3468_v26 = vsel %vm2412_vm5, %v3460_v27, 0 }
0x1efd   :  { %v3394_v14 = vsel %vm482_vm7, %v7191_v50, 0.0 }
0x1efe   :  { %v7193_v48 = vpop.eup %7192  ;;  %3395 = vadd.xlane.f32.xlu0 %v3394_v14 }
0x1eff   :  { %v3397_v51 = vsel %vm3014_vm11, %v7193_v48, 0.0 }
0x1f02   :  { %3398 = vadd.xlane.f32.xlu0 %v3397_v51 }
0x1f18   :  { %3407 = vrot.lane.b32.xlu0 %v8500_v18, %s7556_s14 }
0x1f1c   :  { %3455 = vrot.lane.b32.xlu0 %v8525_v8, %s7553_s8 }
0x1f8b   :  { %v3396_v19 = vpop.xlane.xlu0 %3395 }
0x1f8c   :  { %7194 = vrcp.f32 %v3396_v19 }
0x1f8f   :  { %v3399_v46 = vpop.xlane.xlu0 %3398 }
0x1f90   :  { %7196 = vrcp.f32 %v3399_v46 }
0x1f93   :  { %v3408_v21 = vpop.permute.xlu0 %3407 }
0x1f94   :  { %6513 = vmatpush3.bf16.msra.mxu1 %v3408_v21 }
0x1f95   :  { %6518 = vmatprep.subr.bf16.mxu1 %v7551_v40 }
0x1f96   :  { %v7195_v45 = vpop.eup %7194 }
0x1f97   :  { %v3402_v58 = vmul.f32 %v7195_v45, %v7191_v50  ;;  %v3456_v35 = vpop.permute.xlu0 %3455 }
0x1f9a   :  { %v7197_v34 = vpop.eup %7196 }
0x1f9b   :  { %v3403_v23 = vmul.f32 %v7197_v34, %v7193_v48 }
0x1f9d   :  { %v3404_v25 = vpack.c.bf16 %v3403_v23, %v3402_v58 }
0x1f9f   :  { %6515 = vmatmul.mubr.msk.bf16.vlgmr.msra.gmra.mrb[64].mxu1 %vm482_vm7, %v3404_v25 }
0x1fa0   :  { %6519 = vmatpush3.bf16.xpose.msra.mxu1 %v3465_v28  ;;  %6522 = vmatprep.mubr.msk.bf16.mxu1 %vm7555_vm4, %v7551_v40 }
0x1fa1   :  { %6520 = vmatprep.subr.bf16.mxu1 %v7551_v40 }
0x1fa8   :  { %6521 = vmatpush3.bf16.xpose.msra.mxu1 %v3468_v26 }
0x1fa9   :  { %6542 = vmatprep.subr.bf16.mxu1 %v7551_v40 }
0x1faf   :  { %6523 = vmatmul.mubr.msk.bf16.vlgmr.msra.gmra.mrb[68].mxu1 %vm2412_vm5, %v3456_v35 }
0x1fb0   :  { %6546 = vmatprep.mubr.msk.bf16.mxu1 %vm7555_vm4, %v7551_v40 }
0x2072   :  { %v8597_v52 = vpop.f32.mrb[64].mxu1 }
0x2073   :  { %v6516_v53 = vpop.f32.mrb[65].mxu1 }
0x2074   :  { %v8599_v38 = vpop.f32.mrb[66].mxu1 }
0x2075   :  { %v6957_v42 = vpack.i.bf16 %v8599_v38, %v8597_v52  ;;  %v6517_v31 = vpop.f32.mrb[67].mxu1 }
0x2082   :  { %v3504_v20 = vpop.f32.mrb[68].mxu1 }
0x2083   :  { %v3511_v16 = vmul.f32 0.35355338, %v3504_v20  ;;  %v6524_v22 = vpop.f32.mrb[69].mxu1 }
0x2084   :  { %v3507_v44 = vpop.f32.mrb[70].mxu1 }
0x2085   :  { %v3513_v47 = vadd.f32 %v3511_v16, %v8532_v13  ;;  %v3512_v49 = vmul.f32 0.35355338, %v3507_v44  ;;  %v6525_v17 = vpop.f32.mrb[71].mxu1 }
0x2087   :  { %v3514_v41 = vadd.f32 %v3512_v49, %v8535_v12  ;;  %v3515_v55 = vsel %vm482_vm7, %v3513_v47, -inf }
0x2088   :  { %3516 = vmax.xlane.f32.xlu1 %v3515_v55 }
0x2089   :  { %v3518_v15 = vsel %vm3014_vm11, %v3514_v41, -inf }
0x208a   :  { %3519 = vmax.xlane.f32.xlu0 %v3518_v15 }
0x2099   :  { %3540 = vrot.lane.b32.xlu1 %v8500_v18, %s7558_s28 }
0x2115   :  { %v3517_v56 = vpop.xlane.xlu1 %3516 }
0x2116   :  { %v3521_v57 = vsub.f32 %v3513_v47, %v3517_v56 }
0x2117   :  { %v3520_v36 = vpop.xlane.xlu0 %3519 }
0x2118   :  { %v3523_v60 = vmul.f32 1.442695, %v3521_v57  ;;  %v3522_v61 = vsub.f32 %v3514_v41, %v3520_v36  ;;  %v5994_v36 = vld [vmem:[%s9076_s15 + $0x28] sm:$0xff] }
0x2119   :  { %v3541_v32 = vpop.permute.xlu1 %3540 }
0x211a   :  { %7198 = vpow2.f32 %v3523_v60  ;;  %v3525_v63 = vmul.f32 1.442695, %v3522_v61  ;;  %v5995_v61 = vld [vmem:[%s9076_s15 + $0x30] sm:$0xff] }
0x211c   :  { %7200 = vpow2.f32 %v3525_v63  ;;  %v5996_v63 = vld [vmem:[%s9076_s15 + $0x38] sm:$0xff] }
0x2124   :  { %v7199_v4 = vpop.eup %7198 }
0x2125   :  { %v3527_v1 = vsel %vm482_vm7, %v7199_v4, 0.0 }
0x2126   :  { %v7201_v30 = vpop.eup %7200  ;;  %3528 = vadd.xlane.f32.xlu0 %v3527_v1 }
0x2127   :  { %v3530_v5 = vsel %vm3014_vm11, %v7201_v30, 0.0 }
0x2128   :  { %3531 = vadd.xlane.f32.xlu1 %v3530_v5 }
0x2139   :  { %3590 = vrot.lane.b32.xlu1 %v8502_v37, %s7561_s20 }
0x213c   :  { %3538 = vrot.lane.b32.xlu0 %v8502_v37, %s7558_s28 }
0x213d   :  { %3588 = vrot.lane.b32.xlu1 %v8525_v8, %s7561_s20 }
0x2140   :  { %3592 = vrot.lane.b32.xlu0 %v8500_v18, %s7561_s20 }
0x21b3   :  { %v3529_v39 = vpop.xlane.xlu0 %3528 }
0x21b4   :  { %7202 = vrcp.f32 %v3529_v39 }
0x21b5   :  { %v3532_v29 = vpop.xlane.xlu1 %3531 }
0x21b6   :  { %7204 = vrcp.f32 %v3532_v29 }
0x21b7   :  { %v3539_v43 = vpop.permute.xlu0 %3538 }
0x21b8   :  { %6527 = vmatpush3.bf16.msra.mxu0 %v3539_v43 }
0x21b9   :  { %6528 = vmatprep.subr.bf16.mxu0 %v7551_v40  ;;  %v3591_v8 = vpop.permute.xlu1 %3590 }
0x21ba   :  { %v3598_v9 = vsel %vm2412_vm5, %v3591_v8, 0 }
0x21bb   :  { %v3593_v50 = vpop.permute.xlu0 %3592 }
0x21bc   :  { %6529 = vmatpush3.bf16.msra.mxu0 %v3541_v32  ;;  %v3601_v14 = vsel %vm2412_vm5, %v3593_v50, 0 }
0x21bd   :  { %6534 = vmatprep.subr.bf16.mxu0 %v7551_v40  ;;  %v3589_v48 = vpop.permute.xlu1 %3588 }
0x21be   :  { %v7203_v33 = vpop.eup %7202 }
0x21bf   :  { %v3535_v6 = vmul.f32 %v7203_v33, %v7199_v4  ;;  %v3758_v4 = vpack.c.bf16 %v5996_v63, %v5995_v61 }
0x21c0   :  { %v7205_v3 = vpop.eup %7204 }
0x21c1   :  { %v3536_v7 = vmul.f32 %v7205_v3, %v7201_v30 }
0x21c3   :  { %v3537_v62 = vpack.c.bf16 %v3536_v7, %v3535_v6 }
0x21c5   :  { %6531 = vmatmul.mubr.msk.bf16.vlgmr.msra.gmra.mrb[64].mxu0 %vm482_vm7, %v3537_v62 }
0x21c6   :  { %6535 = vmatpush3.bf16.xpose.msra.mxu0 %v3598_v9  ;;  %6538 = vmatprep.mubr.msk.bf16.mxu0 %vm7555_vm4, %v7551_v40 }
0x21c7   :  { %6536 = vmatprep.subr.bf16.mxu0 %v7551_v40 }
0x21ce   :  { %6537 = vmatpush3.bf16.xpose.msra.mxu0 %v3601_v14 }
0x21cf   :  { %6558 = vmatprep.subr.bf16.mxu0 %v7551_v40 }
0x21d5   :  { %6539 = vmatmul.mubr.msk.bf16.vlgmr.msra.gmra.mrb[68].mxu0 %vm2412_vm5, %v3589_v48 }
0x21d6   :  { %6562 = vmatprep.mubr.msk.bf16.mxu0 %vm7555_vm4, %v7551_v40 }
0x2298   :  { %v3581_v51 = vpop.f32.mrb[64].mxu0 }
0x2299   :  { %v6532_v19 = vpop.f32.mrb[65].mxu0 }
0x229a   :  { %v3584_v46 = vpop.f32.mrb[66].mxu0 }
0x229b   :  { %v6962_v21 = vpack.i.bf16 %v3584_v46, %v3581_v51  ;;  %v6533_v45 = vpop.f32.mrb[67].mxu0 }
0x22a8   :  { %v3637_v34 = vpop.f32.mrb[68].mxu0 }
0x22a9   :  { %v3644_v58 = vmul.f32 0.35355338, %v3637_v34  ;;  %v6540_v23 = vpop.f32.mrb[69].mxu0 }
0x22aa   :  { %v3640_v24 = vpop.f32.mrb[70].mxu0 }
0x22ab   :  { %v3646_v25 = vadd.f32 %v3644_v58, %v8532_v13  ;;  %v3645_v28 = vmul.f32 0.35355338, %v3640_v24  ;;  %v6541_v27 = vpop.f32.mrb[71].mxu0 }
0x22ad   :  { %v3647_v26 = vadd.f32 %v3645_v28, %v8535_v12  ;;  %v3648_v35 = vsel %vm482_vm7, %v3646_v25, -inf }
0x22ae   :  { %3649 = vmax.xlane.f32.xlu0 %v3648_v35 }
0x22af   :  { %v3651_v53 = vsel %vm3014_vm11, %v3647_v26, -inf }
0x22b0   :  { %3652 = vmax.xlane.f32.xlu1 %v3651_v53 }
0x22c1   :  { %3671 = vrot.lane.b32.xlu1 %v8502_v37, %s7560_s2 }
0x22c5   :  { %6958 = vrot.lane.b32.xlu1 %v6957_v42, %s7566_s30 }
0x22c9   :  { %6963 = vrot.lane.b32.xlu1 %v6962_v21, %s7542_s26 }
0x233b   :  { %v3650_v13 = vpop.xlane.xlu0 %3649 }
0x233c   :  { %v3654_v31 = vsub.f32 %v3646_v25, %v3650_v13 }
0x233d   :  { %v3653_v20 = vpop.xlane.xlu1 %3652 }
0x233e   :  { %v3656_v12 = vmul.f32 1.442695, %v3654_v31  ;;  %v3655_v16 = vsub.f32 %v3647_v26, %v3653_v20  ;;  %v3863_v31 = vld [vmem:[%s9081_s22] sm:$0xff] }
0x2340   :  { %7206 = vpow2.f32 %v3656_v12  ;;  %v3658_v22 = vmul.f32 1.442695, %v3655_v16  ;;  %v3865_v12 = vld [vmem:[%s9081_s22 + $0x10] sm:$0xff]  ;;  %v3866_v16 = vld [vmem:[%s9081_s22 + $0x18] sm:$0xff] }
0x2341   :  { %v3672_v44 = vpop.permute.xlu1 %3671 }
0x2342   :  { %7208 = vpow2.f32 %v3658_v22  ;;  %6543 = vmatpush3.bf16.msra.mxu1 %v3672_v44  ;;  %v3869_v22 = vpack.c.bf16 %v3866_v16, %v3865_v12  ;;  %v3923_v44 = vld [vmem:[%s9082_s23] sm:$0xff] }
0x2343   :  { %6544 = vmatprep.subr.bf16.mxu1 %v7551_v40 }
0x2345   :  { %v6959_v29 = vpop.permute.xlu1 %6958 }
0x2346   :  { %v6961_v33 = vunpack.i.h.bf16 %v6959_v29  ;;  %v6960_v3 = vunpack.i.l.bf16 %v6959_v29 }
0x2348   :  { %v3746_v62 = vsel %vm2412_vm5, %v8567_v59, %v6961_v33  ;;  %v3745_v9 = vsel %vm2412_vm5, %v8565_v11, %v6960_v3  ;;  %v5998_v59 = vld [vmem:[%s9078_s18 + $0x1] ss:$0 sm:$0xff] }
0x2349   :  { %v6964_v43 = vpop.permute.xlu1 %6963 }
0x234a   :  { %v7207_v37 = vpop.eup %7206  ;;  %v6966_v6 = vunpack.i.h.bf16 %v6964_v43  ;;  %v6965_v7 = vunpack.i.l.bf16 %v6964_v43 }
0x234b   :  { %v3660_v47 = vsel %vm482_vm7, %v7207_v37, 0.0 }
0x234c   :  { %v7209_v49 = vpop.eup %7208  ;;  %3661 = vadd.xlane.f32.xlu0 %v3660_v47  ;;  %v3747_v48 = vsel %vm316_vm0, %v3745_v9, %v6965_v7  ;;  %v3748_v51 = vsel %vm316_vm0, %v3746_v62, %v6966_v6  ;;  %v3925_v47 = vld [vmem:[%s9082_s23 + $0x10] sm:$0xff] }
0x234d   :  { %v3663_v52 = vsel %vm3014_vm11, %v7209_v49, 0.0  ;;  %v6001_v6 = vld [vmem:[#allocation10 + $0x1] ss:$0 sm:$0xff] }
0x2350   :  { %3664 = vadd.xlane.f32.xlu0 %v3663_v52  ;;  %v3926_v52 = vld [vmem:[%s9082_s23 + $0x18] sm:$0xff] }
0x2366   :  { %3673 = vrot.lane.b32.xlu0 %v8500_v18, %s7560_s2  ;;  %v5993_v18 = vld [vmem:[%s9076_s15 + $0x20] sm:$0xff] }
0x2367   :  { %v3757_v60 = vpack.c.bf16 %v5994_v36, %v5993_v18 }
0x23d9   :  { %v3662_v38 = vpop.xlane.xlu0 %3661 }
0x23da   :  { %7210 = vrcp.f32 %v3662_v38  ;;  %v3933_v38 = vpack.c.bf16 %v3926_v52, %v3925_v47  ;;  %v6009_v52 = vld [vmem:[%s9072_s21 + $0x28] sm:$0xff] }
0x23dd   :  { %v3665_v42 = vpop.xlane.xlu0 %3664 }
0x23de   :  { %7212 = vrcp.f32 %v3665_v42 }
0x23e1   :  { %v3674_v17 = vpop.permute.xlu0 %3673 }
0x23e2   :  { %6545 = vmatpush3.bf16.msra.mxu1 %v3674_v17 }
0x23e3   :  { %6550 = vmatprep.subr.bf16.mxu1 %v7551_v40 }
0x23e4   :  { %v7211_v41 = vpop.eup %7210 }
0x23e5   :  { %v3668_v15 = vmul.f32 %v7211_v41, %v7207_v37  ;;  %v3924_v37 = vld [vmem:[%s9082_s23 + $0x8] sm:$0xff] }
0x23e8   :  { %v7213_v55 = vpop.eup %7212 }
0x23e9   :  { %v3669_v56 = vmul.f32 %v7213_v55, %v7209_v49  ;;  %v3932_v49 = vpack.c.bf16 %v3924_v37, %v3923_v44 }
0x23eb   :  { %v3670_v57 = vpack.c.bf16 %v3669_v56, %v3668_v15 }
0x23ed   :  { %6547 = vmatmul.mubr.msk.bf16.vlgmr.msra.gmra.mrb[72].mxu1 %vm482_vm7, %v3670_v57 }
0x23ee   :  { %6554 = vmatprep.mubr.msk.bf16.mxu1 %vm7555_vm4, %v7551_v40  ;;  %6551 = vmatpush3.bf16.msra.mxu1 %v3757_v60 }
0x23ef   :  { %6552 = vmatprep.subr.bf16.mxu1 %v7551_v40 }
0x23f2   :  { %6553 = vmatpush3.bf16.msra.mxu1 %v3758_v4 }
0x23f3   :  { %6566 = vmatprep.subr.bf16.mxu1 %v7551_v40 }
0x24c0   :  { %v3714_v1 = vpop.f32.mrb[72].mxu1 }
0x24c1   :  { %v6548_v30 = vpop.f32.mrb[73].mxu1 }
0x24c2   :  { %v3717_v5 = vpop.f32.mrb[74].mxu1 }
0x24c3   :  { %v6967_v32 = vpack.i.bf16 %v3717_v5, %v3714_v1  ;;  %v6549_v39 = vpop.f32.mrb[75].mxu1 }
0x24c5   :  { %6968 = vrot.lane.b32.xlu0 %v6967_v32, %s7567_s4  ;;  %v6000_v32 = vld [vmem:[#allocation9 + $0x1] ss:$0 sm:$0xff] }
0x2537   :  { %v6969_v8 = vpop.permute.xlu0 %6968 }
0x2538   :  { %v6971_v50 = vunpack.i.h.bf16 %v6969_v8  ;;  %v6970_v14 = vunpack.i.l.bf16 %v6969_v8 }
0x253a   :  { %v3750_v19 = vsel %vm2948_vm10, %v3748_v51, %v6971_v50  ;;  %v3749_v46 = vsel %vm2948_vm10, %v3747_v48, %v6970_v14  ;;  %v3927_v50 = vld [vmem:[%s9082_s23 + $0x20] sm:$0xff]  ;;  %v3928_v14 = vld [vmem:[%s9082_s23 + $0x28] sm:$0xff]  ;;  %v3929_v51 = vld [vmem:[%s9082_s23 + $0x30] sm:$0xff] }
0x253b   :  { %v3756_v21 = vpack.c.bf16 %v3750_v19, %v3749_v46  ;;  %v3934_v48 = vpack.c.bf16 %v3928_v14, %v3927_v50  ;;  %v3930_v19 = vld [vmem:[%s9082_s23 + $0x38] sm:$0xff] }
0x253c   :  { %v3935_v46 = vpack.c.bf16 %v3930_v19, %v3929_v51  ;;  %v6012_v51 = vld [vmem:[#allocation4 + $0x1] ss:$0 sm:$0xff] }
0x253d   :  { %6555 = vmatmul.mubr.msk.bf16.vlgmr.msra.gmra.mrb[76].mxu1 %vm482_vm7, %v3756_v21  ;;  %v6002_v21 = vld [vmem:[#allocation12] ss:$0 sm:$0xff] }
0x253e   :  { %6574 = vmatprep.mubr.msk.bf16.mxu1 %vm7555_vm4, %v7551_v40  ;;  %6567 = vmatpush3.bf16.msra.mxu1 %v3932_v49  ;;  %v6008_v49 = vld [vmem:[%s9072_s21 + $0x20] sm:$0xff] }
0x253f   :  { %6568 = vmatprep.subr.bf16.mxu1 %v7551_v40 }
0x2542   :  { %6569 = vmatpush3.bf16.msra.mxu1 %v3933_v38  ;;  %v4046_v38 = vpack.c.bf16 %v6009_v52, %v6008_v49 }
0x2543   :  { %6570 = vmatprep.subr.bf16.mxu1 %v7551_v40 }
0x2546   :  { %6571 = vmatpush3.bf16.msra.mxu1 %v3934_v48 }
0x2547   :  { %6572 = vmatprep.subr.bf16.mxu1 %v7551_v40 }
0x254a   :  { %6573 = vmatpush3.bf16.msra.mxu1 %v3935_v46 }
0x254b   :  { %6592 = vmatprep.subr.bf16.mxu1 %v7551_v40 }
0x2610   :  { %v3804_v45 = vpop.f32.mrb[76].mxu1 }
0x2611   :  { %v3805_v34 = vadd.f32 %v5998_v59, %v3804_v45  ;;  %v6556_v11 = vpop.f32.mrb[77].mxu1 }
0x2612   :  { %v3807_v58 = vpop.f32.mrb[78].mxu1 }
0x2613   :  { %v3811_v23 = vadd.f32 %v3805_v34, %v8510_v54  ;;  %v3808_v24 = vadd.f32 %v5998_v59, %v3807_v58  ;;  %v6557_v25 = vpop.f32.mrb[79].mxu1 }
0x2615   :  { %v3812_v28 = vadd.f32 %v3808_v24, %v8512_v2  ;;  %v3813_v27 = vsel %vm482_vm7, %v3811_v23, 0.0  ;;  %v3821_v53 = vmul.f32 %v3811_v23, %v3811_v23  ;;  %v3864_v2 = vld [vmem:[%s9081_s22 + $0x8] sm:$0xff] }
0x2616   :  { %3814 = vadd.xlane.f32.xlu1 %v3813_v27  ;;  %v3868_v20 = vpack.c.bf16 %v3864_v2, %v3863_v31  ;;  %v6004_v27 = vld [vmem:[#allocation13] ss:$0 sm:$0xff] }
0x2617   :  { %v3816_v26 = vsel %vm3014_vm11, %v3812_v28, 0.0  ;;  %v3822_v35 = vmul.f32 %v3812_v28, %v3812_v28  ;;  %v3823_v54 = vsel %vm482_vm7, %v3821_v53, 0.0 }
0x2618   :  { %3817 = vadd.xlane.f32.xlu0 %v3816_v26  ;;  %6559 = vmatpush3.bf16.msra.mxu0 %v3868_v20 }
0x2619   :  { %v3826_v13 = vsel %vm3014_vm11, %v3822_v35, 0.0  ;;  %6560 = vmatprep.subr.bf16.mxu0 %v7551_v40 }
0x261a   :  { %3827 = vadd.xlane.f32.xlu1 %v3826_v13 }
0x261c   :  { %3824 = vadd.xlane.f32.xlu0 %v3823_v54  ;;  %6561 = vmatpush3.bf16.msra.mxu0 %v3869_v22 }
0x261d   :  { %6578 = vmatprep.subr.bf16.mxu0 %v7551_v40 }
0x26a3   :  { %v3815_v42 = vpop.xlane.xlu1 %3814 }
0x26a4   :  { %v3819_v41 = vmul.f32 0.03125, %v3815_v42  ;;  %v6010_v42 = vld [vmem:[%s9072_s21 + $0x30] sm:$0xff] }
0x26a5   :  { %v3818_v17 = vpop.xlane.xlu0 %3817 }
0x26a6   :  { %v3820_v55 = vmul.f32 0.03125, %v3818_v17  ;;  %v3831_v36 = vmul.f32 %v3819_v41, %v3819_v41  ;;  %v3835_v39 = vsub.f32 %v3811_v23, %v3819_v41  ;;  %v6011_v17 = vld [vmem:[%s9072_s21 + $0x38] sm:$0xff] }
0x26a7   :  { %v3828_v15 = vpop.xlane.xlu1 %3827  ;;  %v4047_v41 = vpack.c.bf16 %v6011_v17, %v6010_v42 }
0x26a8   :  { %v3832_v56 = vmul.f32 %v3820_v55, %v3820_v55  ;;  %v3830_v57 = vmul.f32 0.03125, %v3828_v15  ;;  %v3836_v30 = vsub.f32 %v3812_v28, %v3820_v55 }
0x26a9   :  { %v3825_v18 = vpop.xlane.xlu0 %3824 }
0x26aa   :  { %v3834_v60 = vsub.f32 %v3830_v57, %v3832_v56  ;;  %v3829_v61 = vmul.f32 0.03125, %v3825_v18 }
0x26ac   :  { %v3838_v63 = vadd.f32 1e-05, %v3834_v60  ;;  %v3833_v4 = vsub.f32 %v3829_v61, %v3831_v36 }
0x26ae   :  { %7214 = vrsqrt.f32 %v3838_v63  ;;  %v3837_v1 = vadd.f32 1e-05, %v3833_v4 }
0x26b0   :  { %7216 = vrsqrt.f32 %v3837_v1 }
0x26b8   :  { %v7215_v5 = vpop.eup %7214 }
0x26b9   :  { %v3842_v29 = vmul.f32 %v7215_v5, %v3836_v30 }
0x26ba   :  { %v7217_v43 = vpop.eup %7216 }
0x26bb   :  { %v3841_v33 = vmul.f32 %v7217_v43, %v3835_v39  ;;  %v3852_v3 = vmul.f32 %v6000_v32, %v3842_v29  ;;  %v6006_v43 = vld [vmem:[#allocation9 + $0x2] ss:$0 sm:$0xff] }
0x26bd   :  { %v3851_v7 = vmul.f32 %v6000_v32, %v3841_v33  ;;  %v3862_v62 = vadd.f32 %v6001_v6, %v3852_v3 }
0x26bf   :  { %v3861_v8 = vadd.f32 %v6001_v6, %v3851_v7 }
0x26c1   :  { %v3867_v9 = vpack.c.bf16 %v3862_v62, %v3861_v8 }
0x26c3   :  { %6563 = vmatmul.mubr.msk.bf16.vlgmr.msra.gmra.mrb[72].mxu0 %vm482_vm7, %v3867_v9 }
0x26c4   :  { %6582 = vmatprep.mubr.msk.bf16.mxu0 %vm7555_vm4, %v7551_v40  ;;  %6579 = vmatpush3.bf16.msra.mxu0 %v4046_v38 }
0x26c5   :  { %6580 = vmatprep.subr.bf16.mxu0 %v7551_v40 }
0x26c8   :  { %6581 = vmatpush3.bf16.msra.mxu0 %v4047_v41 }
0x26c9   :  { %6586 = vmatprep.subr.bf16.mxu0 %v7551_v40 }
0x2796   :  { %v3914_v59 = vpop.f32.mrb[72].mxu0 }
0x2797   :  { %v3915_v45 = vadd.f32 %v6002_v21, %v3914_v59  ;;  %v6564_v34 = vpop.f32.mrb[73].mxu0 }
0x2798   :  { %v3917_v11 = vpop.f32.mrb[74].mxu0 }
0x2799   :  { %v3918_v58 = vadd.f32 %v6002_v21, %v3917_v11  ;;  %v6565_v23 = vpop.f32.mrb[75].mxu0  ;;  %v3921_v24 = vmax.f32 %v3915_v45, 0.0 }
0x279b   :  { %v3922_v25 = vmax.f32 %v3918_v58, 0.0 }
0x279d   :  { %v3931_v28 = vpack.c.bf16 %v3922_v25, %v3921_v24 }
0x279f   :  { %6575 = vmatmul.mubr.msk.bf16.vlgmr.msra.gmra.mrb[80].mxu1 %vm3943_vm12, %v3931_v28 }
0x27a0   :  { %6594 = vmatprep.mubr.msk.bf16.mxu1 %vm7555_vm4, %v7551_v40 }
0x2872   :  { %v3981_v26 = vpop.f32.mrb[80].mxu1 }
0x2873   :  { %v3982_v35 = vadd.f32 %v6004_v27, %v3981_v26  ;;  %v6576_v53 = vpop.f32.mrb[81].mxu1 }
0x2874   :  { %v3984_v13 = vpop.f32.mrb[82].mxu1 }
0x2875   :  { %v3988_v54 = vadd.f32 %v3982_v35, %v3861_v8  ;;  %v3985_v31 = vadd.f32 %v6004_v27, %v3984_v13  ;;  %v6577_v2 = vpop.f32.mrb[83].mxu1 }
0x2877   :  { %v3989_v20 = vadd.f32 %v3985_v31, %v3862_v62  ;;  %v3990_v12 = vsel %vm482_vm7, %v3988_v54, 0.0  ;;  %v3998_v16 = vmul.f32 %v3988_v54, %v3988_v54  ;;  %v6007_v62 = vld [vmem:[#allocation10 + $0x2] ss:$0 sm:$0xff] }
0x2878   :  { %3991 = vadd.xlane.f32.xlu0 %v3990_v12 }
0x2879   :  { %v3993_v22 = vsel %vm3014_vm11, %v3989_v20, 0.0  ;;  %v3999_v44 = vmul.f32 %v3989_v20, %v3989_v20  ;;  %v4000_v37 = vsel %vm482_vm7, %v3998_v16, 0.0  ;;  %v7298_v16 = vld [vmem:[%s9075_s3] sm:$0xff] }
0x287a   :  { %3994 = vadd.xlane.f32.xlu1 %v3993_v22 }
0x287b   :  { %v4003_v47 = vsel %vm3014_vm11, %v3999_v44, 0.0 }
0x287c   :  { %4001 = vadd.xlane.f32.xlu0 %v4000_v37 }
0x287e   :  { %4004 = vadd.xlane.f32.xlu1 %v4003_v47  ;;  %v7299_v47 = vld [vmem:[%s9075_s3 + $0x8] sm:$0x3f] }
0x2905   :  { %v3992_v55 = vpop.xlane.xlu0 %3991 }
0x2906   :  { %v3996_v15 = vmul.f32 0.03125, %v3992_v55 }
0x2907   :  { %v3995_v56 = vpop.xlane.xlu1 %3994 }
0x2908   :  { %v3997_v57 = vmul.f32 0.03125, %v3995_v56  ;;  %v4008_v36 = vmul.f32 %v3996_v15, %v3996_v15  ;;  %v4012_v39 = vsub.f32 %v3988_v54, %v3996_v15 }
0x2909   :  { %v4002_v18 = vpop.xlane.xlu0 %4001 }
0x290a   :  { %v4006_v60 = vmul.f32 0.03125, %v4002_v18  ;;  %v4009_v63 = vmul.f32 %v3997_v57, %v3997_v57  ;;  %v4013_v33 = vsub.f32 %v3989_v20, %v3997_v57 }
0x290b   :  { %v4005_v61 = vpop.xlane.xlu1 %4004 }
0x290c   :  { %v4010_v4 = vsub.f32 %v4006_v60, %v4008_v36  ;;  %v4007_v1 = vmul.f32 0.03125, %v4005_v61 }
0x290e   :  { %v4014_v30 = vadd.f32 1e-05, %v4010_v4  ;;  %v4011_v5 = vsub.f32 %v4007_v1, %v4009_v63 }
0x2910   :  { %7218 = vrsqrt.f32 %v4014_v30  ;;  %v4015_v32 = vadd.f32 1e-05, %v4011_v5 }
0x2912   :  { %7220 = vrsqrt.f32 %v4015_v32 }
0x291a   :  { %v7219_v29 = vpop.eup %7218 }
0x291b   :  { %v4018_v3 = vmul.f32 %v7219_v29, %v4012_v39 }
0x291c   :  { %v7221_v6 = vpop.eup %7220 }
0x291d   :  { %v4019_v7 = vmul.f32 %v7221_v6, %v4013_v33  ;;  %v4028_v8 = vmul.f32 %v6006_v43, %v4018_v3 }
0x291f   :  { %v4029_v9 = vmul.f32 %v6006_v43, %v4019_v7  ;;  %v8710_v50 = vadd.f32 %v6007_v62, %v4028_v8 }
0x2921   :  { %v8712_v14 = vadd.f32 %v6007_v62, %v4029_v9 }
0x2923   :  { %v4045_v48 = vpack.c.bf16 %v8712_v14, %v8710_v50 }
0x2925   :  { %6583 = vmatmul.mubr.msk.bf16.vlgmr.msra.gmra.mrb[76].mxu0 %vm482_vm7, %v4045_v48 }
0x2926   :  { %6588 = vmatprep.mubr.msk.bf16.mxu0 %vm7555_vm4, %v7551_v40 }
0x29f8   :  { %v4093_v19 = vpop.f32.mrb[76].mxu0 }
0x29f9   :  { %v6584_v46 = vpop.f32.mrb[77].mxu0  ;;  %v4094_v59 = vadd.f32 %v6012_v51, %v4093_v19 }
0x29fa   :  { %v4096_v21 = vpop.f32.mrb[78].mxu0 }
0x29fb   :  { %v4097_v45 = vadd.f32 %v6012_v51, %v4096_v21  ;;  %v6585_v34 = vpop.f32.mrb[79].mxu0 }
0x29fd   :  { %v8719_v11 = vpack.c.bf16 %v4097_v45, %v4094_v59 }
0x29ff   :  { %4229 = vrot.lane.b32.xlu1 %v8719_v11, %s7556_s14  ;;  %4102 = vrot.lane.b32.xlu0 %v8719_v11, %s7557_s19 }
0x2a03   :  { %4227 = vrot.lane.b32.xlu1 %v8719_v11, %s7559_s1  ;;  %4356 = vrot.lane.b32.xlu0 %v8719_v11, %s7558_s28 }
0x2a07   :  { %4354 = vrot.lane.b32.xlu1 %v8719_v11, %s7553_s8  ;;  %4483 = vrot.lane.b32.xlu0 %v8719_v11, %s7560_s2 }
0x2a0b   :  { %4481 = vrot.lane.b32.xlu1 %v8719_v11, %s7561_s20 }
0x2a71   :  { %v4103_v58 = vpop.permute.xlu0 %4102  ;;  %v4230_v24 = vpop.permute.xlu1 %4229 }
0x2a72   :  { %v4108_v23 = vsel %vm2412_vm5, %v4103_v58, 0  ;;  %v4235_v25 = vsel %vm2412_vm5, %v4230_v24, 0 }
0x2a73   :  { %6587 = vmatpush3.bf16.xpose.msra.mxu0 %v4108_v23 }
0x2a74   :  { %6598 = vmatprep.subr.bf16.mxu0 %v7551_v40 }
0x2a75   :  { %v4357_v28 = vpop.permute.xlu0 %4356  ;;  %v4228_v27 = vpop.permute.xlu1 %4227 }
0x2a76   :  { %v4362_v26 = vsel %vm2412_vm5, %v4357_v28, 0 }
0x2a79   :  { %v4484_v35 = vpop.permute.xlu0 %4483  ;;  %v4355_v53 = vpop.permute.xlu1 %4354 }
0x2a7a   :  { %6589 = vmatmul.mubr.msk.bf16.vlgmr.msra.gmra.mrb[80].mxu0 %vm2412_vm5, %v8719_v11  ;;  %v4489_v13 = vsel %vm2412_vm5, %v4484_v35, 0 }
0x2a7b   :  { %6599 = vmatpush3.bf16.xpose.msra.mxu0 %v4235_v25  ;;  %6600 = vmatprep.mubr.msk.bf16.mxu0 %vm7555_vm4, %v7551_v40 }
0x2a7c   :  { %6610 = vmatprep.subr.bf16.mxu0 %v7551_v40 }
0x2a7d   :  { %v4482_v54 = vpop.permute.xlu1 %4481 }
0x2a82   :  { %6601 = vmatmul.mubr.msk.bf16.vlgmr.msra.gmra.mrb[84].mxu0 %vm2412_vm5, %v4228_v27 }
0x2a83   :  { %6611 = vmatpush3.bf16.xpose.msra.mxu0 %v4362_v26  ;;  %6612 = vmatprep.mubr.msk.bf16.mxu0 %vm7555_vm4, %v7551_v40 }
0x2a84   :  { %6622 = vmatprep.subr.bf16.mxu0 %v7551_v40 }
0x2a8a   :  { %6613 = vmatmul.mubr.msk.bf16.vlgmr.msra.gmra.mrb[88].mxu0 %vm2412_vm5, %v4355_v53 }
0x2a8b   :  { %6623 = vmatpush3.bf16.xpose.msra.mxu0 %v4489_v13  ;;  %6624 = vmatprep.mubr.msk.bf16.mxu0 %vm7555_vm4, %v7551_v40 }
0x2a8c   :  { %6634 = vmatprep.subr.bf16.mxu0 %v7551_v40 }
0x2a92   :  { %6625 = vmatmul.mubr.msk.bf16.vlgmr.msra.gmra.mrb[92].mxu0 %vm2412_vm5, %v4482_v54 }
0x2a93   :  { %6638 = vmatprep.mubr.msk.bf16.mxu0 %vm7555_vm4, %v7551_v40 }
0x2b4d   :  { %v4144_v31 = vpop.f32.mrb[80].mxu0 }
0x2b4e   :  { %v4151_v2 = vmul.f32 0.35355338, %v4144_v31  ;;  %v6590_v20 = vpop.f32.mrb[81].mxu0 }
0x2b4f   :  { %v4147_v12 = vpop.f32.mrb[82].mxu0 }
0x2b50   :  { %v4153_v22 = vadd.f32 %v7298_v16, %v4151_v2  ;;  %v4152_v44 = vmul.f32 0.35355338, %v4147_v12  ;;  %v6591_v37 = vpop.f32.mrb[83].mxu0 }
0x2b52   :  { %v4154_v49 = vadd.f32 %v7299_v47, %v4152_v44  ;;  %v4155_v52 = vsel %vm2464_vm6, %v4153_v22, -inf }
0x2b53   :  { %4156 = vmax.xlane.f32.xlu0 %v4155_v52 }
0x2b54   :  { %v4158_v38 = vsel %vm2468_vm8, %v4154_v49, -inf }
0x2b55   :  { %4159 = vmax.xlane.f32.xlu1 %v4158_v38  ;;  %v4271_v42 = vpop.f32.mrb[84].mxu0 }
0x2b56   :  { %v4278_v17 = vmul.f32 0.35355338, %v4271_v42  ;;  %v6602_v41 = vpop.f32.mrb[85].mxu0 }
0x2b57   :  { %v4274_v55 = vpop.f32.mrb[86].mxu0 }
0x2b58   :  { %v4280_v15 = vadd.f32 %v7298_v16, %v4278_v17  ;;  %v4279_v56 = vmul.f32 0.35355338, %v4274_v55  ;;  %v6603_v57 = vpop.f32.mrb[87].mxu0 }
0x2b5a   :  { %v4281_v18 = vadd.f32 %v7299_v47, %v4279_v56  ;;  %v4282_v36 = vsel %vm2464_vm6, %v4280_v15, -inf }
0x2b5b   :  { %4283 = vmax.xlane.f32.xlu0 %v4282_v36 }
0x2b5c   :  { %v4285_v4 = vsel %vm2468_vm8, %v4281_v18, -inf }
0x2b5d   :  { %v4398_v60 = vpop.f32.mrb[88].mxu0 }
0x2b5e   :  { %v4405_v61 = vmul.f32 0.35355338, %v4398_v60  ;;  %v6614_v63 = vpop.f32.mrb[89].mxu0 }
0x2b5f   :  { %4286 = vmax.xlane.f32.xlu0 %v4285_v4  ;;  %v4401_v1 = vpop.f32.mrb[90].mxu0 }
0x2b60   :  { %v4407_v30 = vadd.f32 %v7298_v16, %v4405_v61  ;;  %v4406_v5 = vmul.f32 0.35355338, %v4401_v1  ;;  %v6615_v32 = vpop.f32.mrb[91].mxu0 }
0x2b62   :  { %v4408_v39 = vadd.f32 %v7299_v47, %v4406_v5  ;;  %v4409_v29 = vsel %vm2464_vm6, %v4407_v30, -inf }
0x2b63   :  { %4410 = vmax.xlane.f32.xlu1 %v4409_v29 }
0x2b64   :  { %v4412_v43 = vsel %vm2468_vm8, %v4408_v39, -inf }
0x2b65   :  { %4413 = vmax.xlane.f32.xlu0 %v4412_v43  ;;  %v4525_v33 = vpop.f32.mrb[92].mxu0 }
0x2b66   :  { %v4532_v3 = vmul.f32 0.35355338, %v4525_v33  ;;  %v6626_v6 = vpop.f32.mrb[93].mxu0 }
0x2b67   :  { %v4528_v7 = vpop.f32.mrb[94].mxu0 }
0x2b68   :  { %v4534_v8 = vadd.f32 %v7298_v16, %v4532_v3  ;;  %v4533_v62 = vmul.f32 0.35355338, %v4528_v7  ;;  %v6627_v9 = vpop.f32.mrb[95].mxu0 }
0x2b6a   :  { %v4535_v48 = vadd.f32 %v7299_v47, %v4533_v62  ;;  %v4536_v51 = vsel %vm2464_vm6, %v4534_v8, -inf }
0x2b6b   :  { %4537 = vmax.xlane.f32.xlu1 %v4536_v51 }
0x2b6c   :  { %v4539_v19 = vsel %vm2468_vm8, %v4535_v48, -inf }
0x2b6d   :  { %4540 = vmax.xlane.f32.xlu0 %v4539_v19 }
0x2b7c   :  { %4178 = vrot.lane.b32.xlu1 %v8719_v11, %s7562_s7 }
0x2be0   :  { %v4157_v46 = vpop.xlane.xlu0 %4156 }
0x2be1   :  { %v4161_v21 = vsub.f32 %v4153_v22, %v4157_v46 }
0x2be2   :  { %v4160_v59 = vpop.xlane.xlu1 %4159 }
0x2be3   :  { %v4163_v45 = vmul.f32 1.442695, %v4161_v21  ;;  %v4162_v34 = vsub.f32 %v4154_v49, %v4160_v59 }
0x2be5   :  { %7222 = vpow2.f32 %v4163_v45  ;;  %v4165_v58 = vmul.f32 1.442695, %v4162_v34 }
0x2be7   :  { %7224 = vpow2.f32 %v4165_v58 }
0x2be8   :  { %v4284_v23 = vpop.xlane.xlu0 %4283 }
0x2be9   :  { %v4288_v24 = vsub.f32 %v4280_v15, %v4284_v23 }
0x2beb   :  { %v4290_v25 = vmul.f32 1.442695, %v4288_v24 }
0x2bec   :  { %v4287_v28 = vpop.xlane.xlu0 %4286 }
0x2bed   :  { %7226 = vpow2.f32 %v4290_v25  ;;  %v4289_v27 = vsub.f32 %v4281_v18, %v4287_v28 }
0x2bef   :  { %v7223_v26 = vpop.eup %7222  ;;  %v4292_v35 = vmul.f32 1.442695, %v4289_v27 }
0x2bf0   :  { %v4411_v53 = vpop.xlane.xlu1 %4410  ;;  %v4167_v13 = vsel %vm2464_vm6, %v7223_v26, 0.0 }
0x2bf1   :  { %v7225_v54 = vpop.eup %7224  ;;  %7228 = vpow2.f32 %v4292_v35  ;;  %v4415_v31 = vsub.f32 %v4407_v30, %v4411_v53  ;;  %4168 = vadd.xlane.f32.xlu1 %v4167_v13 }
0x2bf2   :  { %v4414_v2 = vpop.xlane.xlu0 %4413  ;;  %v4170_v20 = vsel %vm2468_vm8, %v7225_v54, 0.0 }
0x2bf3   :  { %v4417_v12 = vmul.f32 1.442695, %v4415_v31  ;;  %v4416_v16 = vsub.f32 %v4408_v39, %v4414_v2  ;;  %4171 = vadd.xlane.f32.xlu0 %v4170_v20 }
0x2bf5   :  { %7230 = vpow2.f32 %v4417_v12  ;;  %v4419_v22 = vmul.f32 1.442695, %v4416_v16 }
0x2bf7   :  { %v7227_v44 = vpop.eup %7226  ;;  %7232 = vpow2.f32 %v4419_v22 }
0x2bf8   :  { %v4538_v37 = vpop.xlane.xlu1 %4537  ;;  %v4294_v47 = vsel %vm2464_vm6, %v7227_v44, 0.0 }
0x2bf9   :  { %v4542_v49 = vsub.f32 %v4534_v8, %v4538_v37  ;;  %4295 = vadd.xlane.f32.xlu1 %v4294_v47  ;;  %v6022_v47 = vld [vmem:[%s9076_s15 + $0x40] sm:$0xff] }
0x2bfa   :  { %v4541_v52 = vpop.xlane.xlu0 %4540 }
0x2bfb   :  { %v7229_v38 = vpop.eup %7228  ;;  %v4544_v42 = vmul.f32 1.442695, %v4542_v49  ;;  %v4543_v17 = vsub.f32 %v4535_v48, %v4541_v52  ;;  %v6023_v49 = vld [vmem:[%s9076_s15 + $0x48] sm:$0xff] }
0x2bfc   :  { %v4179_v41 = vpop.permute.xlu1 %4178  ;;  %v4297_v55 = vsel %vm2468_vm8, %v7229_v38, 0.0 }
0x2bfd   :  { %7234 = vpow2.f32 %v4544_v42  ;;  %v4546_v15 = vmul.f32 1.442695, %v4543_v17  ;;  %v4184_v56 = vsel %vm2494_vm9, %v4179_v41, 0  ;;  %4298 = vadd.xlane.f32.xlu0 %v4297_v55  ;;  %v4644_v42 = vpack.c.bf16 %v6023_v49, %v6022_v47  ;;  %v6024_v41 = vld [vmem:[%s9076_s15 + $0x50] sm:$0xff]  ;;  %v6025_v55 = vld [vmem:[%s9076_s15 + $0x58] sm:$0xff] }
0x2bfe   :  { %6593 = vmatpush3.bf16.msra.mxu1 %v4184_v56  ;;  %v4645_v56 = vpack.c.bf16 %v6025_v55, %v6024_v41  ;;  %v6033_v41 = vld [vmem:[%s9079_s6 + $0x30] sm:$0xff]  ;;  %v6034_v55 = vld [vmem:[%s9079_s6 + $0x38] sm:$0xff] }
0x2bff   :  { %v7231_v57 = vpop.eup %7230  ;;  %7236 = vpow2.f32 %v4546_v15  ;;  %6604 = vmatprep.subr.bf16.mxu1 %v7551_v40  ;;  %6635 = vmatpush3.bf16.msra.mxu0 %v4644_v42  ;;  %v6032_v42 = vld [vmem:[%s9079_s6 + $0x28] sm:$0xff] }
0x2c00   :  { %v4421_v18 = vsel %vm2464_vm6, %v7231_v57, 0.0  ;;  %6636 = vmatprep.subr.bf16.mxu0 %v7551_v40 }
0x2c01   :  { %v7233_v36 = vpop.eup %7232  ;;  %4422 = vadd.xlane.f32.xlu1 %v4421_v18 }
0x2c02   :  { %v4424_v60 = vsel %vm2468_vm8, %v7233_v36, 0.0 }
0x2c03   :  { %4425 = vadd.xlane.f32.xlu0 %v4424_v60  ;;  %6637 = vmatpush3.bf16.msra.mxu0 %v4645_v56  ;;  %v6037_v60 = vld [vmem:[%s9077_s16 + $0x20] sm:$0xff] }
0x2c07   :  { %v7235_v61 = vpop.eup %7234 }
0x2c08   :  { %v4548_v63 = vsel %vm2464_vm6, %v7235_v61, 0.0 }
0x2c09   :  { %v7237_v4 = vpop.eup %7236  ;;  %4549 = vadd.xlane.f32.xlu1 %v4548_v63 }
0x2c0a   :  { %v4551_v1 = vsel %vm2468_vm8, %v7237_v4, 0.0 }
0x2c0b   :  { %4552 = vadd.xlane.f32.xlu0 %v4551_v1 }
0x2c1a   :  { %4432 = vrot.lane.b32.xlu1 %v8719_v11, %s7563_s13 }
0x2c1e   :  { %4559 = vrot.lane.b32.xlu1 %v8719_v11, %s7564_s10 }
0x2c21   :  { %4305 = vrot.lane.b32.xlu0 %v8719_v11, %s7565_s11 }
0x2c7e   :  { %v4169_v30 = vpop.xlane.xlu1 %4168 }
0x2c7f   :  { %7238 = vrcp.f32 %v4169_v30 }
0x2c80   :  { %v4172_v5 = vpop.xlane.xlu0 %4171 }
0x2c81   :  { %7240 = vrcp.f32 %v4172_v5 }
0x2c86   :  { %v4296_v3 = vpop.xlane.xlu1 %4295 }
0x2c89   :  { %v7239_v32 = vpop.eup %7238 }
0x2c8a   :  { %v4299_v29 = vpop.xlane.xlu0 %4298  ;;  %v4175_v43 = vmul.f32 %v7239_v32, %v7223_v26 }
0x2c8b   :  { %v7241_v39 = vpop.eup %7240  ;;  %7242 = vrcp.f32 %v4299_v29 }
0x2c8c   :  { %v4176_v33 = vmul.f32 %v7241_v39, %v7225_v54  ;;  %7244 = vrcp.f32 %v4296_v3 }
0x2c8e   :  { %v4177_v6 = vpack.c.bf16 %v4176_v33, %v4175_v43  ;;  %v4423_v11 = vpop.xlane.xlu1 %4422 }
0x2c90   :  { %6595 = vmatmul.mubr.msk.bf16.vlgmr.msra.gmra.mrb[84].mxu1 %vm2464_vm6, %v4177_v6  ;;  %v4426_v7 = vpop.xlane.xlu0 %4425 }
0x2c91   :  { %6606 = vmatprep.mubr.msk.bf16.mxu1 %vm7555_vm4, %v7551_v40  ;;  %7246 = vrcp.f32 %v4426_v7 }
0x2c92   :  { %7248 = vrcp.f32 %v4423_v11 }
0x2c95   :  { %v7243_v8 = vpop.eup %7242 }
0x2c96   :  { %v4550_v62 = vpop.xlane.xlu1 %4549  ;;  %v7245_v48 = vpop.eup %7244  ;;  %v4303_v51 = vmul.f32 %v7243_v8, %v7229_v38 }
0x2c97   :  { %v4302_v46 = vmul.f32 %v7245_v48, %v7227_v44  ;;  %v6039_v48 = vld [vmem:[%s9077_s16 + $0x30] sm:$0xff] }
0x2c98   :  { %v4553_v9 = vpop.xlane.xlu0 %4552 }
0x2c99   :  { %7250 = vrcp.f32 %v4553_v9  ;;  %v4304_v45 = vpack.c.bf16 %v4303_v51, %v4302_v46  ;;  %v6040_v51 = vld [vmem:[%s9077_s16 + $0x38] sm:$0xff] }
0x2c9a   :  { %v4433_v59 = vpop.permute.xlu1 %4432  ;;  %7252 = vrcp.f32 %v4550_v62 }
0x2c9b   :  { %v7247_v34 = vpop.eup %7246  ;;  %v4438_v58 = vsel %vm2494_vm9, %v4433_v59, 0 }
0x2c9c   :  { %v4306_v19 = vpop.permute.xlu0 %4305  ;;  %v7249_v23 = vpop.eup %7248  ;;  %v4430_v24 = vmul.f32 %v7247_v34, %v7233_v36  ;;  %v4816_v34 = vpack.c.bf16 %v6040_v51, %v6039_v48 }
0x2c9d   :  { %v4311_v21 = vsel %vm2494_vm9, %v4306_v19, 0  ;;  %v4429_v25 = vmul.f32 %v7249_v23, %v7231_v57 }
0x2c9e   :  { %6605 = vmatpush3.bf16.msra.mxu1 %v4311_v21  ;;  %v4560_v28 = vpop.permute.xlu1 %4559 }
0x2c9f   :  { %6616 = vmatprep.subr.bf16.mxu1 %v7551_v40  ;;  %v4431_v27 = vpack.c.bf16 %v4430_v24, %v4429_v25  ;;  %v4565_v35 = vsel %vm2494_vm9, %v4560_v28, 0 }
0x2ca1   :  { %6607 = vmatmul.mubr.msk.bf16.vlgmr.msra.gmra.mrb[88].mxu1 %vm2464_vm6, %v4304_v45 }
0x2ca2   :  { %6617 = vmatpush3.bf16.msra.mxu1 %v4438_v58  ;;  %6618 = vmatprep.mubr.msk.bf16.mxu1 %vm7555_vm4, %v7551_v40  ;;  %v6027_v58 = vld [vmem:[%s9078_s18 + $0x2] ss:$0 sm:$0xff] }
0x2ca3   :  { %6628 = vmatprep.subr.bf16.mxu1 %v7551_v40  ;;  %v7251_v26 = vpop.eup %7250 }
0x2ca4   :  { %v7253_v53 = vpop.eup %7252  ;;  %v4557_v13 = vmul.f32 %v7251_v26, %v7237_v4 }
0x2ca5   :  { %v4556_v54 = vmul.f32 %v7253_v53, %v7235_v61  ;;  %v6038_v61 = vld [vmem:[%s9077_s16 + $0x28] sm:$0xff] }
0x2ca6   :  { %v4815_v63 = vpack.c.bf16 %v6038_v61, %v6037_v60 }
0x2ca7   :  { %v4558_v31 = vpack.c.bf16 %v4557_v13, %v4556_v54 }
0x2ca8   :  { %6650 = vmatprep.subr.bf16.mxu0 %v4815_v63 }
0x2ca9   :  { %6619 = vmatmul.mubr.msk.bf16.vlgmr.msra.gmra.mrb[92].mxu1 %vm2464_vm6, %v4431_v27 }
0x2caa   :  { %6629 = vmatpush3.bf16.msra.mxu1 %v4565_v35  ;;  %6630 = vmatprep.mubr.msk.bf16.mxu1 %vm7555_vm4, %v7551_v40 }
0x2cab   :  { %6642 = vmatprep.subr.bf16.mxu1 %v7551_v40 }
0x2cb1   :  { %6631 = vmatmul.mubr.msk.bf16.vlgmr.msra.gmra.mrb[96].mxu1 %vm2464_vm6, %v4558_v31 }
0x2cb2   :  { %6646 = vmatprep.mubr.msk.bf16.mxu1 %vm7555_vm4, %v7551_v40 }
0x2d63   :  { %v4220_v2 = vpop.f32.mrb[84].mxu1 }
0x2d64   :  { %v6596_v20 = vpop.f32.mrb[85].mxu1 }
0x2d65   :  { %v4223_v12 = vpop.f32.mrb[86].mxu1 }
0x2d66   :  { %v6597_v16 = vpop.f32.mrb[87].mxu1 }
0x2d74   :  { %v4347_v22 = vpop.f32.mrb[88].mxu1 }
0x2d75   :  { %v6608_v44 = vpop.f32.mrb[89].mxu1 }
0x2d76   :  { %v4350_v37 = vpop.f32.mrb[90].mxu1 }
0x2d77   :  { %v6972_v52 = vpack.i.bf16 %v4350_v37, %v4347_v22  ;;  %v6609_v38 = vpop.f32.mrb[91].mxu1 }
0x2d78   :  { %v6031_v38 = vld [vmem:[%s9079_s6 + $0x20] sm:$0xff] }
0x2d79   :  { %6973 = vrot.lane.b32.xlu0 %v6972_v52, %s7566_s30 }
0x2d7c   :  { %v4474_v17 = vpop.f32.mrb[92].mxu1 }
0x2d7d   :  { %v6620_v15 = vpop.f32.mrb[93].mxu1 }
0x2d7e   :  { %v4477_v57 = vpop.f32.mrb[94].mxu1  ;;  %v4757_v15 = vpack.c.bf16 %v6034_v55, %v6033_v41 }
0x2d7f   :  { %v6977_v18 = vpack.i.bf16 %v4477_v57, %v4474_v17  ;;  %v6621_v36 = vpop.f32.mrb[95].mxu1  ;;  %v4756_v17 = vpack.c.bf16 %v6032_v42, %v6031_v38 }
0x2d81   :  { %6978 = vrot.lane.b32.xlu1 %v6977_v18, %s7542_s26  ;;  %6643 = vmatpush3.bf16.msra.mxu1 %v4756_v17 }
0x2d82   :  { %6644 = vmatprep.subr.bf16.mxu1 %v7551_v40 }
0x2d84   :  { %v4601_v4 = vpop.f32.mrb[96].mxu1 }
0x2d85   :  { %v6632_v1 = vpop.f32.mrb[97].mxu1  ;;  %6645 = vmatpush3.bf16.msra.mxu1 %v4757_v15 }
0x2d86   :  { %v4604_v30 = vpop.f32.mrb[98].mxu1  ;;  %6658 = vmatprep.subr.bf16.mxu1 %v7551_v40 }
0x2d87   :  { %v6982_v5 = vpack.i.bf16 %v4604_v30, %v4601_v4  ;;  %v6633_v32 = vpop.f32.mrb[99].mxu1 }
0x2d89   :  { %6983 = vrot.lane.b32.xlu0 %v6982_v5, %s7567_s4 }
0x2deb   :  { %v6974_v39 = vpop.permute.xlu0 %6973 }
0x2dec   :  { %v6976_v43 = vunpack.i.h.bf16 %v6974_v39  ;;  %v6975_v33 = vunpack.i.l.bf16 %v6974_v39 }
0x2dee   :  { %v4633_v11 = vsel %vm2412_vm5, %v4223_v12, %v6976_v43  ;;  %v4632_v8 = vsel %vm2412_vm5, %v4220_v2, %v6975_v33  ;;  %v6041_v2 = vld [vmem:[#allocation7 + $0x1] ss:$0 sm:$0xff] }
0x2df3   :  { %v6979_v29 = vpop.permute.xlu1 %6978 }
0x2df4   :  { %v6981_v3 = vunpack.i.h.bf16 %v6979_v29  ;;  %v6980_v6 = vunpack.i.l.bf16 %v6979_v29 }
0x2df6   :  { %v4635_v19 = vsel %vm316_vm0, %v4633_v11, %v6981_v3  ;;  %v4634_v46 = vsel %vm316_vm0, %v4632_v8, %v6980_v6  ;;  %v6029_v3 = vld [vmem:[#allocation9 + $0x3] ss:$0 sm:$0xff] }
0x2dfb   :  { %v6984_v7 = vpop.permute.xlu0 %6983 }
0x2dfc   :  { %v6986_v62 = vunpack.i.h.bf16 %v6984_v7  ;;  %v6985_v9 = vunpack.i.l.bf16 %v6984_v7 }
0x2dfe   :  { %v4637_v21 = vsel %vm2948_vm10, %v4635_v19, %v6986_v62  ;;  %v4636_v59 = vsel %vm2948_vm10, %v4634_v46, %v6985_v9  ;;  %v6030_v9 = vld [vmem:[#allocation10 + $0x3] ss:$0 sm:$0xff] }
0x2dff   :  { %v4643_v45 = vpack.c.bf16 %v4637_v21, %v4636_v59 }
0x2e01   :  { %6639 = vmatmul.mubr.msk.bf16.vlgmr.msra.gmra.mrb[96].mxu0 %vm482_vm7, %v4643_v45  ;;  %v6035_v45 = vld [vmem:[#allocation6 + $0x1] ss:$0 sm:$0xff] }
0x2e02   :  { %6651 = vmatpush3.bf16.msra.mxu0 %v4815_v63  ;;  %6654 = vmatprep.mubr.msk.bf16.mxu0 %vm482_vm7, %v8374_v10 }
0x2e03   :  { %6652 = vmatprep.subr.bf16.mxu0 %v4816_v34 }
0x2e06   :  { %6653 = vmatpush3.bf16.msra.mxu0 %v4816_v34 }
0x2e07   :  { %6666 = vmatprep.subr.bf16.mxu0 %v7551_v40 }
0x2e09   :  { %6655 = vmatmul.mubr.msk.bf16.vlgmr.msra.gmra.mrb[100].mxu0 %vm482_vm7, %v8372_v0 }
0x2e0a   :  { %6670 = vmatprep.mubr.msk.bf16.mxu0 %vm7555_vm4, %v7551_v40 }
0x2ed4   :  { %v4691_v23 = vpop.f32.mrb[96].mxu0 }
0x2ed5   :  { %v4692_v24 = vadd.f32 %v6027_v58, %v4691_v23  ;;  %v6640_v25 = vpop.f32.mrb[97].mxu0 }
0x2ed6   :  { %v4694_v28 = vpop.f32.mrb[98].mxu0 }
0x2ed7   :  { %v4698_v27 = vadd.f32 %v4692_v24, %v8710_v50  ;;  %v4695_v26 = vadd.f32 %v6027_v58, %v4694_v28  ;;  %v6641_v35 = vpop.f32.mrb[99].mxu0 }
0x2ed9   :  { %v4699_v10 = vadd.f32 %v4695_v26, %v8712_v14  ;;  %v4700_v53 = vsel %vm482_vm7, %v4698_v27, 0.0  ;;  %v4708_v54 = vmul.f32 %v4698_v27, %v4698_v27 }
0x2eda   :  { %4701 = vadd.xlane.f32.xlu1 %v4700_v53 }
0x2edb   :  { %v4703_v13 = vsel %vm3014_vm11, %v4699_v10, 0.0  ;;  %v4709_v0 = vmul.f32 %v4699_v10, %v4699_v10  ;;  %v4710_v44 = vsel %vm482_vm7, %v4708_v54, 0.0 }
0x2edc   :  { %4704 = vadd.xlane.f32.xlu0 %v4703_v13  ;;  %v6656_v31 = vpop.f32.mrb[100].mxu0  ;;  %v8867_v13 = vld [vmem:[%s9080_s24] sm:$0xff] }
0x2edd   :  { %v4859_v20 = vpop.f32.mrb[101].mxu0  ;;  %v4713_v12 = vsel %vm3014_vm11, %v4709_v0, 0.0  ;;  %v4868_v14 = vadd.f32 %v6656_v31, %v6041_v2 }
0x2ede   :  { %4714 = vadd.xlane.f32.xlu1 %v4713_v12  ;;  %v6657_v50 = vpop.f32.mrb[102].mxu0  ;;  %v4860_v37 = vadd.f32 %v6041_v2, %v4859_v20 }
0x2edf   :  { %v4871_v16 = vadd.f32 %v6657_v50, %v6041_v2  ;;  %v4862_v22 = vpop.f32.mrb[103].mxu0 }
0x2ee0   :  { %v4863_v47 = vadd.f32 %v6041_v2, %v4862_v22  ;;  %4711 = vadd.xlane.f32.xlu0 %v4710_v44  ;;  %v8871_v2 = vld [vmem:[%s9080_s24 + $0x8] sm:$0x3f] }
0x2ee1   :  { %v8835_v49 = vpack.c.bf16 %v4871_v16, %v4868_v14 }
0x2ee2   :  { %v8837_v52 = vpack.c.bf16 %v4863_v47, %v4860_v37 }
0x2ee3   :  { %v4884_v59 = vsel %vm2412_vm5, %v8835_v49, 0 }
0x2ee4   :  { %v4881_v21 = vsel %vm2412_vm5, %v8837_v52, 0 }
0x2f67   :  { %v4702_v56 = vpop.xlane.xlu1 %4701 }
0x2f68   :  { %v4706_v18 = vmul.f32 0.03125, %v4702_v56 }
0x2f69   :  { %v4705_v57 = vpop.xlane.xlu0 %4704 }
0x2f6a   :  { %v4707_v36 = vmul.f32 0.03125, %v4705_v57  ;;  %v4718_v1 = vmul.f32 %v4706_v18, %v4706_v18  ;;  %v4722_v6 = vsub.f32 %v4698_v27, %v4706_v18 }
0x2f6b   :  { %v4715_v60 = vpop.xlane.xlu1 %4714 }
0x2f6c   :  { %v4719_v61 = vmul.f32 %v4707_v36, %v4707_v36  ;;  %v4717_v63 = vmul.f32 0.03125, %v4715_v60  ;;  %v4723_v43 = vsub.f32 %v4699_v10, %v4707_v36 }
0x2f6d   :  { %v4712_v4 = vpop.xlane.xlu0 %4711 }
0x2f6e   :  { %v4721_v30 = vsub.f32 %v4717_v63, %v4719_v61  ;;  %v4716_v5 = vmul.f32 0.03125, %v4712_v4 }
0x2f70   :  { %v4725_v32 = vadd.f32 1e-05, %v4721_v30  ;;  %v4720_v39 = vsub.f32 %v4716_v5, %v4718_v1 }
0x2f72   :  { %7254 = vrsqrt.f32 %v4725_v32  ;;  %v4724_v29 = vadd.f32 1e-05, %v4720_v39 }
0x2f74   :  { %7256 = vrsqrt.f32 %v4724_v29 }
0x2f7c   :  { %v7255_v33 = vpop.eup %7254 }
0x2f7d   :  { %v4729_v7 = vmul.f32 %v7255_v33, %v4723_v43 }
0x2f7e   :  { %v7257_v11 = vpop.eup %7256 }
0x2f7f   :  { %v4728_v8 = vmul.f32 %v7257_v11, %v4722_v6  ;;  %v4739_v62 = vmul.f32 %v6029_v3, %v4729_v7 }
0x2f81   :  { %v4738_v48 = vmul.f32 %v6029_v3, %v4728_v8  ;;  %v8847_v19 = vadd.f32 %v6030_v9, %v4739_v62 }
0x2f83   :  { %v8845_v51 = vadd.f32 %v6030_v9, %v4738_v48 }
0x2f85   :  { %v4755_v46 = vpack.c.bf16 %v8847_v19, %v8845_v51 }
0x2f87   :  { %6647 = vmatmul.mubr.msk.bf16.vlgmr.msra.gmra.mrb[100].mxu1 %vm482_vm7, %v4755_v46 }
0x2f88   :  { %6659 = vmatpush3.bf16.xpose.msra.mxu1 %v4881_v21  ;;  %6662 = vmatprep.mubr.msk.bf16.mxu1 %vm7555_vm4, %v7551_v40 }
0x2f89   :  { %6660 = vmatprep.subr.bf16.mxu1 %v7551_v40 }
0x2f90   :  { %6661 = vmatpush3.bf16.xpose.msra.mxu1 %v4884_v59 }
0x2f91   :  { %6682 = vmatprep.subr.bf16.mxu1 %v7551_v40 }
0x305a   :  { %v4803_v34 = vpop.f32.mrb[100].mxu1 }
0x305b   :  { %v6648_v58 = vpop.f32.mrb[101].mxu1  ;;  %v4804_v24 = vadd.f32 %v6035_v45, %v4803_v34 }
0x305c   :  { %v4806_v23 = vpop.f32.mrb[102].mxu1 }
0x305d   :  { %v4807_v25 = vadd.f32 %v6035_v45, %v4806_v23  ;;  %v6649_v28 = vpop.f32.mrb[103].mxu1 }
0x305f   :  { %v8860_v27 = vpack.c.bf16 %v4807_v25, %v4804_v24 }
0x3061   :  { %6663 = vmatmul.mubr.msk.bf16.vlgmr.msra.gmra.mrb[104].mxu1 %vm2412_vm5, %v8860_v27 }
0x3062   :  { %6686 = vmatprep.mubr.msk.bf16.mxu1 %vm7555_vm4, %v7551_v40 }
0x3134   :  { %v4920_v26 = vpop.f32.mrb[104].mxu1 }
0x3135   :  { %v4927_v35 = vmul.f32 0.35355338, %v4920_v26  ;;  %v6664_v10 = vpop.f32.mrb[105].mxu1 }
0x3136   :  { %v4923_v53 = vpop.f32.mrb[106].mxu1 }
0x3137   :  { %v4929_v0 = vadd.f32 %v8867_v13, %v4927_v35  ;;  %v4928_v54 = vmul.f32 0.35355338, %v4923_v53  ;;  %v6665_v31 = vpop.f32.mrb[107].mxu1 }
0x3139   :  { %v4930_v20 = vadd.f32 %v8871_v2, %v4928_v54  ;;  %v4931_v12 = vsel %vm482_vm7, %v4929_v0, -inf }
0x313a   :  { %4932 = vmax.xlane.f32.xlu0 %v4931_v12 }
0x313b   :  { %v4934_v50 = vsel %vm3014_vm11, %v4930_v20, -inf }
0x313c   :  { %4935 = vmax.xlane.f32.xlu1 %v4934_v50 }
0x314d   :  { %4958 = vrot.lane.b32.xlu1 %v8835_v49, %s7557_s19 }
0x31c7   :  { %v4933_v14 = vpop.xlane.xlu0 %4932 }
0x31c8   :  { %v4937_v16 = vsub.f32 %v4929_v0, %v4933_v14 }
0x31c9   :  { %v4936_v22 = vpop.xlane.xlu1 %4935 }
0x31ca   :  { %v4939_v44 = vmul.f32 1.442695, %v4937_v16  ;;  %v4938_v37 = vsub.f32 %v4930_v20, %v4936_v22 }
0x31cc   :  { %7258 = vpow2.f32 %v4939_v44  ;;  %v4941_v47 = vmul.f32 1.442695, %v4938_v37 }
0x31cd   :  { %v4959_v55 = vpop.permute.xlu1 %4958 }
0x31ce   :  { %7260 = vpow2.f32 %v4941_v47 }
0x31d6   :  { %v7259_v38 = vpop.eup %7258 }
0x31d7   :  { %v4943_v42 = vsel %vm482_vm7, %v7259_v38, 0.0 }
0x31d8   :  { %v7261_v17 = vpop.eup %7260  ;;  %4944 = vadd.xlane.f32.xlu0 %v4943_v42 }
0x31d9   :  { %v4946_v41 = vsel %vm3014_vm11, %v7261_v17, 0.0 }
0x31da   :  { %4947 = vadd.xlane.f32.xlu1 %v4946_v41 }
0x31eb   :  { %5009 = vrot.lane.b32.xlu1 %v8837_v52, %s7559_s1 }
0x31ee   :  { %4956 = vrot.lane.b32.xlu0 %v8837_v52, %s7557_s19 }
0x31ef   :  { %5007 = vrot.lane.b32.xlu1 %v8860_v27, %s7559_s1 }
0x31f2   :  { %5011 = vrot.lane.b32.xlu0 %v8835_v49, %s7559_s1 }
0x3265   :  { %v4945_v15 = vpop.xlane.xlu0 %4944 }
0x3266   :  { %7262 = vrcp.f32 %v4945_v15 }
0x3267   :  { %v4948_v56 = vpop.xlane.xlu1 %4947 }
0x3268   :  { %7264 = vrcp.f32 %v4948_v56 }
0x3269   :  { %v4957_v57 = vpop.permute.xlu0 %4956 }
0x326a   :  { %6667 = vmatpush3.bf16.msra.mxu0 %v4957_v57 }
0x326b   :  { %6668 = vmatprep.subr.bf16.mxu0 %v7551_v40  ;;  %v5010_v63 = vpop.permute.xlu1 %5009 }
0x326c   :  { %v5017_v1 = vsel %vm2412_vm5, %v5010_v63, 0 }
0x326d   :  { %v5012_v30 = vpop.permute.xlu0 %5011 }
0x326e   :  { %6669 = vmatpush3.bf16.msra.mxu0 %v4959_v55  ;;  %v5020_v5 = vsel %vm2412_vm5, %v5012_v30, 0 }
0x326f   :  { %6674 = vmatprep.subr.bf16.mxu0 %v7551_v40  ;;  %v5008_v32 = vpop.permute.xlu1 %5007 }
0x3270   :  { %v7263_v18 = vpop.eup %7262 }
0x3271   :  { %v4951_v60 = vmul.f32 %v7263_v18, %v7259_v38 }
0x3272   :  { %v7265_v36 = vpop.eup %7264 }
0x3273   :  { %v4952_v61 = vmul.f32 %v7265_v36, %v7261_v17 }
0x3275   :  { %v4953_v4 = vpack.c.bf16 %v4952_v61, %v4951_v60 }
0x3277   :  { %6671 = vmatmul.mubr.msk.bf16.vlgmr.msra.gmra.mrb[104].mxu0 %vm482_vm7, %v4953_v4 }
0x3278   :  { %6675 = vmatpush3.bf16.xpose.msra.mxu0 %v5017_v1  ;;  %6678 = vmatprep.mubr.msk.bf16.mxu0 %vm7555_vm4, %v7551_v40 }
0x3279   :  { %6676 = vmatprep.subr.bf16.mxu0 %v7551_v40 }
0x3280   :  { %6677 = vmatpush3.bf16.xpose.msra.mxu0 %v5020_v5 }
0x3281   :  { %6698 = vmatprep.subr.bf16.mxu0 %v7551_v40 }
0x3287   :  { %6679 = vmatmul.mubr.msk.bf16.vlgmr.msra.gmra.mrb[108].mxu0 %vm2412_vm5, %v5008_v32 }
0x3288   :  { %6702 = vmatprep.mubr.msk.bf16.mxu0 %vm7555_vm4, %v7551_v40 }
0x334a   :  { %v8900_v39 = vpop.f32.mrb[104].mxu0 }
0x334b   :  { %v6672_v29 = vpop.f32.mrb[105].mxu0 }
0x334c   :  { %v8902_v43 = vpop.f32.mrb[106].mxu0 }
0x334d   :  { %v6673_v33 = vpop.f32.mrb[107].mxu0 }
0x335a   :  { %v5056_v3 = vpop.f32.mrb[108].mxu0 }
0x335b   :  { %v5063_v6 = vmul.f32 0.35355338, %v5056_v3  ;;  %v6680_v7 = vpop.f32.mrb[109].mxu0 }
0x335c   :  { %v5059_v11 = vpop.f32.mrb[110].mxu0 }
0x335d   :  { %v5065_v8 = vadd.f32 %v8867_v13, %v5063_v6  ;;  %v5064_v62 = vmul.f32 0.35355338, %v5059_v11  ;;  %v6681_v9 = vpop.f32.mrb[111].mxu0 }
0x335f   :  { %v5066_v48 = vadd.f32 %v8871_v2, %v5064_v62  ;;  %v5067_v46 = vsel %vm482_vm7, %v5065_v8, -inf }
0x3360   :  { %5068 = vmax.xlane.f32.xlu0 %v5067_v46 }
0x3361   :  { %v5070_v21 = vsel %vm3014_vm11, %v5066_v48, -inf }
0x3362   :  { %5071 = vmax.xlane.f32.xlu1 %v5070_v21 }
0x3373   :  { %5090 = vrot.lane.b32.xlu1 %v8837_v52, %s7556_s14 }
0x3377   :  { %5142 = vrot.lane.b32.xlu1 %v8837_v52, %s7553_s8 }
0x337b   :  { %5144 = vrot.lane.b32.xlu1 %v8835_v49, %s7553_s8 }
0x33ed   :  { %v5069_v59 = vpop.xlane.xlu0 %5068 }
0x33ee   :  { %v5073_v45 = vsub.f32 %v5065_v8, %v5069_v59 }
0x33ef   :  { %v5072_v34 = vpop.xlane.xlu1 %5071 }
0x33f0   :  { %v5075_v58 = vmul.f32 1.442695, %v5073_v45  ;;  %v5074_v23 = vsub.f32 %v5066_v48, %v5072_v34 }
0x33f2   :  { %7266 = vpow2.f32 %v5075_v58  ;;  %v5077_v24 = vmul.f32 1.442695, %v5074_v23 }
0x33f3   :  { %v5091_v25 = vpop.permute.xlu1 %5090 }
0x33f4   :  { %7268 = vpow2.f32 %v5077_v24  ;;  %6683 = vmatpush3.bf16.msra.mxu1 %v5091_v25 }
0x33f5   :  { %6684 = vmatprep.subr.bf16.mxu1 %v7551_v40 }
0x33f7   :  { %v5143_v14 = vpop.permute.xlu1 %5142 }
0x33f8   :  { %v5150_v22 = vsel %vm2412_vm5, %v5143_v14, 0 }
0x33fb   :  { %v5145_v44 = vpop.permute.xlu1 %5144 }
0x33fc   :  { %v7267_v28 = vpop.eup %7266  ;;  %v5153_v37 = vsel %vm2412_vm5, %v5145_v44, 0 }
0x33fd   :  { %v5079_v26 = vsel %vm482_vm7, %v7267_v28, 0.0 }
0x33fe   :  { %v7269_v35 = vpop.eup %7268  ;;  %5080 = vadd.xlane.f32.xlu0 %v5079_v26 }
0x33ff   :  { %v5082_v10 = vsel %vm3014_vm11, %v7269_v35, 0.0 }
0x3402   :  { %5083 = vadd.xlane.f32.xlu0 %v5082_v10 }
0x3418   :  { %5092 = vrot.lane.b32.xlu0 %v8835_v49, %s7556_s14 }
0x341c   :  { %5140 = vrot.lane.b32.xlu0 %v8860_v27, %s7553_s8 }
0x348b   :  { %v5081_v53 = vpop.xlane.xlu0 %5080 }
0x348c   :  { %7270 = vrcp.f32 %v5081_v53 }
0x348f   :  { %v5084_v0 = vpop.xlane.xlu0 %5083 }
0x3490   :  { %7272 = vrcp.f32 %v5084_v0 }
0x3493   :  { %v5093_v54 = vpop.permute.xlu0 %5092 }
0x3494   :  { %6685 = vmatpush3.bf16.msra.mxu1 %v5093_v54 }
0x3495   :  { %6690 = vmatprep.subr.bf16.mxu1 %v7551_v40 }
0x3496   :  { %v7271_v31 = vpop.eup %7270 }
0x3497   :  { %v5087_v12 = vmul.f32 %v7271_v31, %v7267_v28  ;;  %v5141_v47 = vpop.permute.xlu0 %5140 }
0x349a   :  { %v7273_v20 = vpop.eup %7272 }
0x349b   :  { %v5088_v50 = vmul.f32 %v7273_v20, %v7269_v35 }
0x349d   :  { %v5089_v16 = vpack.c.bf16 %v5088_v50, %v5087_v12 }
0x349f   :  { %6687 = vmatmul.mubr.msk.bf16.vlgmr.msra.gmra.mrb[108].mxu1 %vm482_vm7, %v5089_v16 }
0x34a0   :  { %6691 = vmatpush3.bf16.xpose.msra.mxu1 %v5150_v22  ;;  %6694 = vmatprep.mubr.msk.bf16.mxu1 %vm7555_vm4, %v7551_v40 }
0x34a1   :  { %6692 = vmatprep.subr.bf16.mxu1 %v7551_v40 }
0x34a8   :  { %6693 = vmatpush3.bf16.xpose.msra.mxu1 %v5153_v37 }
0x34a9   :  { %6714 = vmatprep.subr.bf16.mxu1 %v7551_v40 }
0x34af   :  { %6695 = vmatmul.mubr.msk.bf16.vlgmr.msra.gmra.mrb[112].mxu1 %vm2412_vm5, %v5141_v47 }
0x34b0   :  { %6718 = vmatprep.mubr.msk.bf16.mxu1 %vm7555_vm4, %v7551_v40 }
0x3572   :  { %v8932_v38 = vpop.f32.mrb[108].mxu1 }
0x3573   :  { %v6688_v42 = vpop.f32.mrb[109].mxu1 }
0x3574   :  { %v8934_v17 = vpop.f32.mrb[110].mxu1 }
0x3575   :  { %v6987_v41 = vpack.i.bf16 %v8934_v17, %v8932_v38  ;;  %v6689_v55 = vpop.f32.mrb[111].mxu1 }
0x3582   :  { %v5189_v15 = vpop.f32.mrb[112].mxu1 }
0x3583   :  { %v5196_v56 = vmul.f32 0.35355338, %v5189_v15  ;;  %v6696_v57 = vpop.f32.mrb[113].mxu1 }
0x3584   :  { %v5192_v18 = vpop.f32.mrb[114].mxu1 }
0x3585   :  { %v5198_v36 = vadd.f32 %v8867_v13, %v5196_v56  ;;  %v5197_v60 = vmul.f32 0.35355338, %v5192_v18  ;;  %v6697_v61 = vpop.f32.mrb[115].mxu1 }
0x3587   :  { %v5199_v63 = vadd.f32 %v8871_v2, %v5197_v60  ;;  %v5200_v4 = vsel %vm482_vm7, %v5198_v36, -inf }
0x3588   :  { %5201 = vmax.xlane.f32.xlu1 %v5200_v4 }
0x3589   :  { %v5203_v1 = vsel %vm3014_vm11, %v5199_v63, -inf }
0x358a   :  { %5204 = vmax.xlane.f32.xlu0 %v5203_v1 }
0x3599   :  { %5225 = vrot.lane.b32.xlu1 %v8835_v49, %s7558_s28 }
0x3615   :  { %v5202_v30 = vpop.xlane.xlu1 %5201 }
0x3616   :  { %v5206_v5 = vsub.f32 %v5198_v36, %v5202_v30  ;;  %v6053_v30 = vld [vmem:[%s9076_s15 + $0x68] sm:$0xff] }
0x3617   :  { %v5205_v32 = vpop.xlane.xlu0 %5204 }
0x3618   :  { %v5208_v29 = vmul.f32 1.442695, %v5206_v5  ;;  %v5207_v33 = vsub.f32 %v5199_v63, %v5205_v32  ;;  %v6054_v32 = vld [vmem:[%s9076_s15 + $0x70] sm:$0xff] }
0x3619   :  { %v5226_v62 = vpop.permute.xlu1 %5225 }
0x361a   :  { %7274 = vpow2.f32 %v5208_v29  ;;  %v5210_v3 = vmul.f32 1.442695, %v5207_v33  ;;  %v6055_v29 = vld [vmem:[%s9076_s15 + $0x78] sm:$0xff] }
0x361b   :  { %v5443_v33 = vpack.c.bf16 %v6055_v29, %v6054_v32 }
0x361c   :  { %7276 = vpow2.f32 %v5210_v3 }
0x3624   :  { %v7275_v6 = vpop.eup %7274 }
0x3625   :  { %v5212_v7 = vsel %vm482_vm7, %v7275_v6, 0.0 }
0x3626   :  { %v7277_v11 = vpop.eup %7276  ;;  %5213 = vadd.xlane.f32.xlu0 %v5212_v7 }
0x3627   :  { %v5215_v8 = vsel %vm3014_vm11, %v7277_v11, 0.0 }
0x3628   :  { %5216 = vadd.xlane.f32.xlu1 %v5215_v8 }
0x3639   :  { %5275 = vrot.lane.b32.xlu1 %v8837_v52, %s7561_s20 }
0x363c   :  { %5223 = vrot.lane.b32.xlu0 %v8837_v52, %s7558_s28 }
0x363d   :  { %5273 = vrot.lane.b32.xlu1 %v8860_v27, %s7561_s20 }
0x3640   :  { %5277 = vrot.lane.b32.xlu0 %v8835_v49, %s7561_s20 }
0x36b3   :  { %v5214_v9 = vpop.xlane.xlu0 %5213 }
0x36b4   :  { %7278 = vrcp.f32 %v5214_v9 }
0x36b5   :  { %v5217_v48 = vpop.xlane.xlu1 %5216 }
0x36b6   :  { %7280 = vrcp.f32 %v5217_v48 }
0x36b7   :  { %v5224_v46 = vpop.permute.xlu0 %5223 }
0x36b8   :  { %6699 = vmatpush3.bf16.msra.mxu0 %v5224_v46 }
0x36b9   :  { %6700 = vmatprep.subr.bf16.mxu0 %v7551_v40  ;;  %v5276_v27 = vpop.permute.xlu1 %5275 }
0x36ba   :  { %v5283_v23 = vsel %vm2412_vm5, %v5276_v27, 0 }
0x36bb   :  { %v5278_v24 = vpop.permute.xlu0 %5277 }
0x36bc   :  { %6701 = vmatpush3.bf16.msra.mxu0 %v5226_v62  ;;  %v5286_v25 = vsel %vm2412_vm5, %v5278_v24, 0 }
0x36bd   :  { %6706 = vmatprep.subr.bf16.mxu0 %v7551_v40  ;;  %v5274_v28 = vpop.permute.xlu1 %5273 }
0x36be   :  { %v7279_v21 = vpop.eup %7278 }
0x36bf   :  { %v5220_v45 = vmul.f32 %v7279_v21, %v7275_v6 }
0x36c0   :  { %v7281_v59 = vpop.eup %7280 }
0x36c1   :  { %v5221_v34 = vmul.f32 %v7281_v59, %v7277_v11 }
0x36c3   :  { %v5222_v58 = vpack.c.bf16 %v5221_v34, %v5220_v45 }
0x36c5   :  { %6703 = vmatmul.mubr.msk.bf16.vlgmr.msra.gmra.mrb[112].mxu0 %vm482_vm7, %v5222_v58 }
0x36c6   :  { %6707 = vmatpush3.bf16.xpose.msra.mxu0 %v5283_v23  ;;  %6710 = vmatprep.mubr.msk.bf16.mxu0 %vm7555_vm4, %v7551_v40 }
0x36c7   :  { %6708 = vmatprep.subr.bf16.mxu0 %v7551_v40 }
0x36ce   :  { %6709 = vmatpush3.bf16.xpose.msra.mxu0 %v5286_v25 }
0x36cf   :  { %6730 = vmatprep.subr.bf16.mxu0 %v7551_v40 }
0x36d5   :  { %6711 = vmatmul.mubr.msk.bf16.vlgmr.msra.gmra.mrb[116].mxu0 %vm2412_vm5, %v5274_v28 }
0x36d6   :  { %6734 = vmatprep.mubr.msk.bf16.mxu0 %vm7555_vm4, %v7551_v40 }
0x3798   :  { %v5266_v26 = vpop.f32.mrb[112].mxu0 }
0x3799   :  { %v6704_v35 = vpop.f32.mrb[113].mxu0 }
0x379a   :  { %v5269_v10 = vpop.f32.mrb[114].mxu0 }
0x379b   :  { %v6992_v53 = vpack.i.bf16 %v5269_v10, %v5266_v26  ;;  %v6705_v0 = vpop.f32.mrb[115].mxu0 }
0x37a8   :  { %v5322_v54 = vpop.f32.mrb[116].mxu0 }
0x37a9   :  { %v5329_v31 = vmul.f32 0.35355338, %v5322_v54  ;;  %v6712_v20 = vpop.f32.mrb[117].mxu0 }
0x37aa   :  { %v5325_v12 = vpop.f32.mrb[118].mxu0 }
0x37ab   :  { %v5331_v50 = vadd.f32 %v8867_v13, %v5329_v31  ;;  %v5330_v14 = vmul.f32 0.35355338, %v5325_v12  ;;  %v6713_v16 = vpop.f32.mrb[119].mxu0 }
0x37ad   :  { %v5332_v22 = vadd.f32 %v8871_v2, %v5330_v14  ;;  %v5333_v44 = vsel %vm482_vm7, %v5331_v50, -inf }
0x37ae   :  { %5334 = vmax.xlane.f32.xlu0 %v5333_v44 }
0x37af   :  { %v5336_v37 = vsel %vm3014_vm11, %v5332_v22, -inf }
0x37b0   :  { %5337 = vmax.xlane.f32.xlu1 %v5336_v37  ;;  %v6061_v37 = vld [vmem:[%s9081_s22 + $0x20] sm:$0xff] }
0x37c1   :  { %5356 = vrot.lane.b32.xlu1 %v8837_v52, %s7560_s2 }
0x37c5   :  { %6988 = vrot.lane.b32.xlu1 %v6987_v41, %s7566_s30 }
0x37c9   :  { %6993 = vrot.lane.b32.xlu1 %v6992_v53, %s7542_s26 }
0x383b   :  { %v5335_v13 = vpop.xlane.xlu0 %5334 }
0x383c   :  { %v5339_v47 = vsub.f32 %v5331_v50, %v5335_v13 }
0x383d   :  { %v5338_v42 = vpop.xlane.xlu1 %5337 }
0x383e   :  { %v5341_v2 = vmul.f32 1.442695, %v5339_v47  ;;  %v5340_v55 = vsub.f32 %v5332_v22, %v5338_v42  ;;  %v6063_v47 = vld [vmem:[%s9081_s22 + $0x30] sm:$0xff]  ;;  %v6064_v42 = vld [vmem:[%s9081_s22 + $0x38] sm:$0xff] }
0x3840   :  { %7282 = vpow2.f32 %v5341_v2  ;;  %v5343_v15 = vmul.f32 1.442695, %v5340_v55  ;;  %v5555_v2 = vpack.c.bf16 %v6064_v42, %v6063_v47  ;;  %v6067_v55 = vld [vmem:[%s9082_s23 + $0x40] sm:$0xff] }
0x3841   :  { %v5357_v56 = vpop.permute.xlu1 %5356 }
0x3842   :  { %7284 = vpow2.f32 %v5343_v15  ;;  %6715 = vmatpush3.bf16.msra.mxu1 %v5357_v56  ;;  %v6068_v15 = vld [vmem:[%s9082_s23 + $0x48] sm:$0xff]  ;;  %v6069_v56 = vld [vmem:[%s9082_s23 + $0x50] sm:$0xff] }
0x3843   :  { %6716 = vmatprep.subr.bf16.mxu1 %v7551_v40 }
0x3845   :  { %v6989_v62 = vpop.permute.xlu1 %6988 }
0x3846   :  { %v6991_v48 = vunpack.i.h.bf16 %v6989_v62  ;;  %v6990_v46 = vunpack.i.l.bf16 %v6989_v62 }
0x3848   :  { %v5431_v34 = vsel %vm2412_vm5, %v8902_v43, %v6991_v48  ;;  %v5430_v27 = vsel %vm2412_vm5, %v8900_v39, %v6990_v46  ;;  %v6057_v43 = vld [vmem:[%s9078_s18 + $0x3] ss:$0 sm:$0xff]  ;;  %v6060_v48 = vld [vmem:[#allocation10 + $0x4] ss:$0 sm:$0xff] }
0x3849   :  { %v6994_v9 = vpop.permute.xlu1 %6993 }
0x384a   :  { %v7283_v52 = vpop.eup %7282  ;;  %v6996_v21 = vunpack.i.h.bf16 %v6994_v9  ;;  %v6995_v59 = vunpack.i.l.bf16 %v6994_v9 }
0x384b   :  { %v5345_v57 = vsel %vm482_vm7, %v7283_v52, 0.0 }
0x384c   :  { %v7285_v18 = vpop.eup %7284  ;;  %5346 = vadd.xlane.f32.xlu0 %v5345_v57  ;;  %v5432_v24 = vsel %vm316_vm0, %v5430_v27, %v6995_v59  ;;  %v5433_v25 = vsel %vm316_vm0, %v5431_v34, %v6996_v21  ;;  %v6070_v57 = vld [vmem:[%s9082_s23 + $0x58] sm:$0xff]  ;;  %v6071_v34 = vld [vmem:[%s9082_s23 + $0x60] sm:$0xff]  ;;  %v6072_v27 = vld [vmem:[%s9082_s23 + $0x68] sm:$0xff] }
0x384d   :  { %v5348_v38 = vsel %vm3014_vm11, %v7285_v18, 0.0 }
0x3850   :  { %5349 = vadd.xlane.f32.xlu0 %v5348_v38 }
0x3866   :  { %5358 = vrot.lane.b32.xlu0 %v8835_v49, %s7560_s2  ;;  %v6052_v49 = vld [vmem:[%s9076_s15 + $0x60] sm:$0xff] }
0x3867   :  { %v5442_v5 = vpack.c.bf16 %v6053_v30, %v6052_v49 }
0x38d9   :  { %v5347_v17 = vpop.xlane.xlu0 %5346 }
0x38da   :  { %7286 = vrcp.f32 %v5347_v17 }
0x38dd   :  { %v5350_v41 = vpop.xlane.xlu0 %5349 }
0x38de   :  { %7288 = vrcp.f32 %v5350_v41 }
0x38e1   :  { %v5359_v36 = vpop.permute.xlu0 %5358 }
0x38e2   :  { %6717 = vmatpush3.bf16.msra.mxu1 %v5359_v36 }
0x38e3   :  { %6722 = vmatprep.subr.bf16.mxu1 %v7551_v40 }
0x38e4   :  { %v7287_v60 = vpop.eup %7286 }
0x38e5   :  { %v5353_v63 = vmul.f32 %v7287_v60, %v7283_v52  ;;  %v5620_v52 = vpack.c.bf16 %v6068_v15, %v6067_v55  ;;  %v5728_v15 = vld [vmem:[%s7716_s27] sm:$0xff] }
0x38e8   :  { %v7289_v61 = vpop.eup %7288 }
0x38e9   :  { %v5354_v4 = vmul.f32 %v7289_v61, %v7285_v18  ;;  %v5621_v18 = vpack.c.bf16 %v6070_v57, %v6069_v56  ;;  %v5729_v56 = vld [vmem:[%s7716_s27 + $0x8] sm:$0xff]  ;;  %v5730_v57 = vld [vmem:[%s7716_s27 + $0x10] sm:$0xff] }
0x38eb   :  { %v5355_v1 = vpack.c.bf16 %v5354_v4, %v5353_v63 }
0x38ed   :  { %6719 = vmatmul.mubr.msk.bf16.vlgmr.msra.gmra.mrb[116].mxu1 %vm482_vm7, %v5355_v1 }
0x38ee   :  { %6726 = vmatprep.mubr.msk.bf16.mxu1 %vm7555_vm4, %v7551_v40  ;;  %6723 = vmatpush3.bf16.msra.mxu1 %v5442_v5 }
0x38ef   :  { %6724 = vmatprep.subr.bf16.mxu1 %v7551_v40 }
0x38f2   :  { %6725 = vmatpush3.bf16.msra.mxu1 %v5443_v33 }
0x38f3   :  { %6738 = vmatprep.subr.bf16.mxu1 %v7551_v40 }
0x39c0   :  { %v5399_v3 = vpop.f32.mrb[116].mxu1 }
0x39c1   :  { %v6720_v6 = vpop.f32.mrb[117].mxu1 }
0x39c2   :  { %v5402_v7 = vpop.f32.mrb[118].mxu1  ;;  %v6059_v6 = vld [vmem:[#allocation9 + $0x4] ss:$0 sm:$0xff] }
0x39c3   :  { %v6997_v11 = vpack.i.bf16 %v5402_v7, %v5399_v3  ;;  %v6721_v8 = vpop.f32.mrb[119].mxu1 }
0x39c5   :  { %6998 = vrot.lane.b32.xlu0 %v6997_v11, %s7567_s4 }
0x3a37   :  { %v6999_v45 = vpop.permute.xlu0 %6998 }
0x3a38   :  { %v7001_v58 = vunpack.i.h.bf16 %v6999_v45  ;;  %v7000_v23 = vunpack.i.l.bf16 %v6999_v45 }
0x3a3a   :  { %v5435_v28 = vsel %vm2948_vm10, %v5433_v25, %v7001_v58  ;;  %v5434_v26 = vsel %vm2948_vm10, %v5432_v24, %v7000_v23  ;;  %v5622_v58 = vpack.c.bf16 %v6072_v27, %v6071_v34  ;;  %v6073_v23 = vld [vmem:[%s9082_s23 + $0x70] sm:$0xff]  ;;  %v6074_v24 = vld [vmem:[%s9082_s23 + $0x78] sm:$0xff] }
0x3a3b   :  { %v5441_v35 = vpack.c.bf16 %v5435_v28, %v5434_v26  ;;  %v5623_v25 = vpack.c.bf16 %v6074_v24, %v6073_v23  ;;  %v6065_v28 = vld [vmem:[#allocation12 + $0x1] ss:$0 sm:$0xff]  ;;  %v6079_v34 = vld [vmem:[#allocation15] ss:$0 sm:$0xff] }
0x3a3d   :  { %6727 = vmatmul.mubr.msk.bf16.vlgmr.msra.gmra.mrb[120].mxu1 %vm482_vm7, %v5441_v35 }
0x3a3e   :  { %6746 = vmatprep.mubr.msk.bf16.mxu1 %vm7555_vm4, %v7551_v40  ;;  %6739 = vmatpush3.bf16.msra.mxu1 %v5620_v52  ;;  %v5733_v52 = vpack.c.bf16 %v5729_v56, %v5728_v15 }
0x3a3f   :  { %6740 = vmatprep.subr.bf16.mxu1 %v7551_v40 }
0x3a42   :  { %6741 = vmatpush3.bf16.msra.mxu1 %v5621_v18  ;;  %v5731_v18 = vld [vmem:[%s7716_s27 + $0x18] sm:$0xff] }
0x3a43   :  { %6742 = vmatprep.subr.bf16.mxu1 %v7551_v40 }
0x3a46   :  { %6743 = vmatpush3.bf16.msra.mxu1 %v5622_v58 }
0x3a47   :  { %6744 = vmatprep.subr.bf16.mxu1 %v7551_v40 }
0x3a4a   :  { %6745 = vmatpush3.bf16.msra.mxu1 %v5623_v25 }
0x3b10   :  { %v5489_v10 = vpop.f32.mrb[120].mxu1 }
0x3b11   :  { %v5490_v53 = vadd.f32 %v6057_v43, %v5489_v10  ;;  %v6728_v39 = vpop.f32.mrb[121].mxu1 }
0x3b12   :  { %v5492_v0 = vpop.f32.mrb[122].mxu1 }
0x3b13   :  { %v5496_v54 = vadd.f32 %v5490_v53, %v8845_v51  ;;  %v5493_v31 = vadd.f32 %v6057_v43, %v5492_v0  ;;  %v6729_v20 = vpop.f32.mrb[123].mxu1 }
0x3b14   :  { %v6075_v20 = vld [vmem:[#allocation13 + $0x1] ss:$0 sm:$0xff] }
0x3b15   :  { %v5497_v12 = vadd.f32 %v5493_v31, %v8847_v19  ;;  %v5498_v50 = vsel %vm482_vm7, %v5496_v54, 0.0  ;;  %v5506_v22 = vmul.f32 %v5496_v54, %v5496_v54  ;;  %v6062_v19 = vld [vmem:[%s9081_s22 + $0x28] sm:$0xff] }
0x3b16   :  { %5499 = vadd.xlane.f32.xlu1 %v5498_v50  ;;  %v5554_v13 = vpack.c.bf16 %v6062_v19, %v6061_v37 }
0x3b17   :  { %v5501_v14 = vsel %vm3014_vm11, %v5497_v12, 0.0  ;;  %v5507_v16 = vmul.f32 %v5497_v12, %v5497_v12  ;;  %v5508_v51 = vsel %vm482_vm7, %v5506_v22, 0.0 }
0x3b18   :  { %5502 = vadd.xlane.f32.xlu0 %v5501_v14  ;;  %6731 = vmatpush3.bf16.msra.mxu0 %v5554_v13 }
0x3b19   :  { %v5511_v44 = vsel %vm3014_vm11, %v5507_v16, 0.0  ;;  %6732 = vmatprep.subr.bf16.mxu0 %v7551_v40 }
0x3b1a   :  { %5512 = vadd.xlane.f32.xlu1 %v5511_v44 }
0x3b1c   :  { %5509 = vadd.xlane.f32.xlu0 %v5508_v51  ;;  %6733 = vmatpush3.bf16.msra.mxu0 %v5555_v2 }
0x3b1d   :  { %6750 = vmatprep.subr.bf16.mxu0 %v7551_v40 }
0x3ba3   :  { %v5500_v38 = vpop.xlane.xlu1 %5499 }
0x3ba4   :  { %v5504_v41 = vmul.f32 0.03125, %v5500_v38  ;;  %v5734_v38 = vpack.c.bf16 %v5731_v18, %v5730_v57 }
0x3ba5   :  { %v5503_v17 = vpop.xlane.xlu0 %5502 }
0x3ba6   :  { %v5505_v36 = vmul.f32 0.03125, %v5503_v17  ;;  %v5516_v1 = vmul.f32 %v5504_v41, %v5504_v41  ;;  %v5520_v7 = vsub.f32 %v5496_v54, %v5504_v41 }
0x3ba7   :  { %v5513_v60 = vpop.xlane.xlu1 %5512 }
0x3ba8   :  { %v5517_v61 = vmul.f32 %v5505_v36, %v5505_v36  ;;  %v5515_v63 = vmul.f32 0.03125, %v5513_v60  ;;  %v5521_v33 = vsub.f32 %v5497_v12, %v5505_v36 }
0x3ba9   :  { %v5510_v4 = vpop.xlane.xlu0 %5509 }
0x3baa   :  { %v5519_v49 = vsub.f32 %v5515_v63, %v5517_v61  ;;  %v5514_v30 = vmul.f32 0.03125, %v5510_v4 }
0x3bac   :  { %v5523_v5 = vadd.f32 1e-05, %v5519_v49  ;;  %v5518_v32 = vsub.f32 %v5514_v30, %v5516_v1 }
0x3bae   :  { %7290 = vrsqrt.f32 %v5523_v5  ;;  %v5522_v29 = vadd.f32 1e-05, %v5518_v32 }
0x3bb0   :  { %7292 = vrsqrt.f32 %v5522_v29 }
0x3bb8   :  { %v7291_v3 = vpop.eup %7290 }
0x3bb9   :  { %v5527_v11 = vmul.f32 %v7291_v3, %v5521_v33 }
0x3bba   :  { %v7293_v8 = vpop.eup %7292 }
0x3bbb   :  { %v5526_v62 = vmul.f32 %v7293_v8, %v5520_v7  ;;  %v5537_v9 = vmul.f32 %v6059_v6, %v5527_v11 }
0x3bbd   :  { %v5536_v46 = vmul.f32 %v6059_v6, %v5526_v62  ;;  %v5547_v59 = vadd.f32 %v6060_v48, %v5537_v9  ;;  %v6077_v6 = vld [vmem:[#allocation9 + $0x5] ss:$0 sm:$0xff] }
0x3bbf   :  { %v5546_v21 = vadd.f32 %v6060_v48, %v5536_v46  ;;  %v6078_v48 = vld [vmem:[#allocation10 + $0x5] ss:$0 sm:$0xff] }
0x3bc1   :  { %v5553_v45 = vpack.c.bf16 %v5547_v59, %v5546_v21 }
0x3bc3   :  { %6735 = vmatmul.mubr.msk.bf16.vlgmr.msra.gmra.mrb[120].mxu0 %vm482_vm7, %v5553_v45 }
0x3bc4   :  { %6754 = vmatprep.mubr.msk.bf16.mxu0 %vm7555_vm4, %v7551_v40  ;;  %6751 = vmatpush3.bf16.msra.mxu0 %v5733_v52 }
0x3bc5   :  { %6752 = vmatprep.subr.bf16.mxu0 %v7551_v40 }
0x3bc8   :  { %6753 = vmatpush3.bf16.msra.mxu0 %v5734_v38 }
0x3c96   :  { %v5601_v26 = vpop.f32.mrb[120].mxu0 }
0x3c97   :  { %v5602_v35 = vadd.f32 %v6065_v28, %v5601_v26  ;;  %v6736_v43 = vpop.f32.mrb[121].mxu0 }
0x3c98   :  { %v5604_v10 = vpop.f32.mrb[122].mxu0 }
0x3c99   :  { %v5605_v53 = vadd.f32 %v6065_v28, %v5604_v10  ;;  %v6737_v39 = vpop.f32.mrb[123].mxu0  ;;  %v5608_v0 = vmax.f32 %v5602_v35, 0.0 }
0x3c9b   :  { %v5609_v54 = vmax.f32 %v5605_v53, 0.0 }
0x3c9d   :  { %v5619_v31 = vpack.c.bf16 %v5609_v54, %v5608_v0 }
0x3c9f   :  { %6747 = vmatmul.mubr.msk.bf16.vlgmr.msra.gmra.mrb[124].mxu1 %vm3943_vm12, %v5619_v31 }
0x3d72   :  { %v5669_v12 = vpop.f32.mrb[124].mxu1 }
0x3d73   :  { %v5670_v50 = vadd.f32 %v6075_v20, %v5669_v12  ;;  %v6748_v14 = vpop.f32.mrb[125].mxu1 }
0x3d74   :  { %v5672_v16 = vpop.f32.mrb[126].mxu1 }
0x3d75   :  { %v5676_v22 = vadd.f32 %v5670_v50, %v5546_v21  ;;  %v5673_v44 = vadd.f32 %v6075_v20, %v5672_v16  ;;  %v6749_v51 = vpop.f32.mrb[127].mxu1 }
0x3d77   :  { %v5677_v37 = vadd.f32 %v5673_v44, %v5547_v59  ;;  %v5678_v19 = vsel %vm482_vm7, %v5676_v22, 0.0  ;;  %v5686_v13 = vmul.f32 %v5676_v22, %v5676_v22 }
0x3d78   :  { %5679 = vadd.xlane.f32.xlu0 %v5678_v19 }
0x3d79   :  { %v5681_v47 = vsel %vm3014_vm11, %v5677_v37, 0.0  ;;  %v5687_v42 = vmul.f32 %v5677_v37, %v5677_v37  ;;  %v5688_v2 = vsel %vm482_vm7, %v5686_v13, 0.0 }
0x3d7a   :  { %5682 = vadd.xlane.f32.xlu1 %v5681_v47 }
0x3d7b   :  { %v5691_v55 = vsel %vm3014_vm11, %v5687_v42, 0.0 }
0x3d7c   :  { %5689 = vadd.xlane.f32.xlu0 %v5688_v2 }
0x3d7e   :  { %5692 = vadd.xlane.f32.xlu1 %v5691_v55 }
0x3e05   :  { %v5680_v17 = vpop.xlane.xlu0 %5679 }
0x3e06   :  { %v5684_v41 = vmul.f32 0.03125, %v5680_v17 }
0x3e07   :  { %v5683_v36 = vpop.xlane.xlu1 %5682 }
0x3e08   :  { %v5685_v60 = vmul.f32 0.03125, %v5683_v36  ;;  %v5696_v63 = vmul.f32 %v5684_v41, %v5684_v41  ;;  %v5700_v40 = vsub.f32 %v5676_v22, %v5684_v41 }
0x3e09   :  { %v5690_v61 = vpop.xlane.xlu0 %5689 }
0x3e0a   :  { %v5694_v4 = vmul.f32 0.03125, %v5690_v61  ;;  %v5697_v49 = vmul.f32 %v5685_v60, %v5685_v60  ;;  %v5701_v7 = vsub.f32 %v5677_v37, %v5685_v60 }
0x3e0b   :  { %v5693_v1 = vpop.xlane.xlu1 %5692 }
0x3e0c   :  { %v5698_v30 = vsub.f32 %v5694_v4, %v5696_v63  ;;  %v5695_v5 = vmul.f32 0.03125, %v5693_v1 }
0x3e0e   :  { %v5702_v32 = vadd.f32 1e-05, %v5698_v30  ;;  %v5699_v29 = vsub.f32 %v5695_v5, %v5697_v49 }
0x3e10   :  { %7294 = vrsqrt.f32 %v5702_v32  ;;  %v5703_v33 = vadd.f32 1e-05, %v5699_v29 }
0x3e12   :  { %7296 = vrsqrt.f32 %v5703_v33 }
0x3e1a   :  { %v7295_v3 = vpop.eup %7294 }
0x3e1b   :  { %v5706_v11 = vmul.f32 %v7295_v3, %v5700_v40 }
0x3e1c   :  { %v7297_v8 = vpop.eup %7296 }
0x3e1d   :  { %v5716_v62 = vmul.f32 %v6077_v6, %v5706_v11  ;;  %v5707_v9 = vmul.f32 %v7297_v8, %v5701_v7 }
0x3e1f   :  { %v5717_v46 = vmul.f32 %v6077_v6, %v5707_v9  ;;  %v5726_v21 = vadd.f32 %v6078_v48, %v5716_v62 }
0x3e21   :  { %v5727_v59 = vadd.f32 %v6078_v48, %v5717_v46 }
0x3e23   :  { %v5732_v45 = vpack.c.bf16 %v5727_v59, %v5726_v21 }
0x3e25   :  { %6755 = vmatmul.mubr.msk.bf16.vlgmr.msra.gmra.mrb[124].mxu0 %vm482_vm7, %v5732_v45 }
0x3ef8   :  { %v5779_v27 = vpop.f32.mrb[124].mxu0 }
0x3ef9   :  { %v5780_v58 = vadd.f32 %v6079_v34, %v5779_v27  ;;  %v6756_v23 = vpop.f32.mrb[125].mxu0 }
0x3efa   :  { %v5782_v24 = vpop.f32.mrb[126].mxu0 }
0x3efb   :  { %5786 = vst [vmem:[%s7726_s12] sm:$0xff] %v5780_v58  ;;  %v5783_v25 = vadd.f32 %v6079_v34, %v5782_v24  ;;  %v6757_v28 = vpop.f32.mrb[127].mxu0 }
0x3efd   :  { %5787 = vst [vmem:[%s7726_s12 + $0x8] sm:$0x3f] %v5783_v25 }
0x3efe   :  { %5792 = vsyncpa [#allocation3], 1 }
0x3eff   :  { %5793 = vsyncpa [#allocation5], 1 }
0x3f00   :  { %5794 = vsyncpa [#allocation8], 1 }
0x3f01   :  { %5795 = vsyncpa [#allocation11], 1 }
0x3f02   :  { %5796 = vsyncpa [#allocation14], 1 }

</bundles_post_ra>
